<compile_context>
chip_gen: v7x
topology: tpu7x:2x2x1
jax: 0.10.0
libtpu: 0.0.40
codegen_flags: <defaults>
</compile_context>

<pallas_src>
import jax
import jax.numpy as jnp
from jax.experimental import pallas as pl
from jax.experimental.pallas import tpu as pltpu

_INV_SQRT2 = 0.7071067811865476
_EPS = 1e-5

# Scratch column mapping: padded column q <-> slot (t = q % 2, u = q // 2).
# Depthwise conv: output at original column 2*m + s, kernel column kw, reads
# padded column q = 2*m + s + kw  ->  slot (t, u = m + u0):
_DW_COLTAP = (((0, 0), (1, 0), (0, 1)),   # s = 0 (even original columns)
              ((1, 0), (0, 1), (1, 1)))   # s = 1 (odd original columns)
# Stride-2 down conv: output column j reads padded column q = 2*j + kw:
_DN_COLTAP = ((0, 0), (1, 0), (0, 1))     # kw = 0, 1, 2


def _fused_encoder_kernel(xim_ref, w1_ref, b1_ref, bnw_ref, bnb_ref,
                          dww_ref, dwb_ref, g1w_ref, g1b_ref, g2w_ref, g2b_ref,
                          dnw_ref, dnb_ref, out_ref, pg_ref):
    N, Ho, Wo, C = out_ref.shape
    H, Wh = 2 * Ho, Wo
    Hp, Whp = pg_ref.shape[1], pg_ref.shape[3]       # H + 2, W//2 + 1
    HW = H * 2 * Wh                                  # = H * W

    # ---- Conv2d(in_c, out_c, 3, pad=1): single im2col matmul (bf16 in, f32 acc).
    y = jnp.dot(xim_ref[...], w1_ref[...],
                preferred_element_type=jnp.float32) + b1_ref[...]
    y = y.reshape(N, HW, C)

    # ---- HybridNorm = 0.5*InstanceNorm + 0.5*BatchNorm folded into one affine.
    inv_hw = 1.0 / HW
    s1 = jnp.sum(y, axis=1, keepdims=True)                  # (N,1,C)
    s2 = jnp.sum(y * y, axis=1, keepdims=True)
    in_mean = s1 * inv_hw
    in_var = s2 * inv_hw - in_mean * in_mean
    bn_mean = jnp.mean(in_mean, axis=0, keepdims=True)      # (1,1,C)
    bn_var = jnp.mean(s2 * inv_hw, axis=0, keepdims=True) - bn_mean * bn_mean
    r_in = jax.lax.rsqrt(in_var + _EPS)
    r_bn = jax.lax.rsqrt(bn_var + _EPS) * bnw_ref[...]
    scale = 0.5 * (r_in + r_bn)                             # (N,1,C)
    shift = 0.5 * bnb_ref[...] - 0.5 * (in_mean * r_in + bn_mean * r_bn)
    h = y * scale + shift

    # ---- GELU (exact erf), then switch to the column-parity-split layout.
    g = 0.5 * h * (1.0 + jax.lax.erf(h * _INV_SQRT2))
    g = g.reshape(N, H, 2, Wh, C)             # [n, h, s, m, c], column = 2m + s

    # ---- Depthwise 3x3: padded parity-split scratch; zero only the halo.
    zero_row = jnp.zeros((N, 1, 2, Whp, C), jnp.float32)
    zero_col = jnp.zeros((N, Hp, 1, C), jnp.float32)
    pg_ref[:, 0:1, :, :, :] = zero_row                       # padded row 0
    pg_ref[:, Hp - 1:Hp, :, :, :] = zero_row                 # padded row H+1
    pg_ref[:, :, 0, 0:1, :] = zero_col                       # padded col 0
    pg_ref[:, :, 1, Whp - 1:Whp, :] = zero_col               # padded col W+1
    pg_ref[:, 1:H + 1, 1, 0:Wh, :] = g[:, :, 0]              # even original cols
    pg_ref[:, 1:H + 1, 0, 1:Wh + 1, :] = g[:, :, 1]          # odd original cols

    dw_all = dww_ref[...]                                    # (9, C), loaded once
    tap_cache = {}

    def dw_tap(kh, t, u0):
        key = (kh, t, u0)
        if key not in tap_cache:
            tap_cache[key] = pg_ref[:, kh:kh + H, t, u0:u0 + Wh, :]
        return tap_cache[key]

    z = []
    for s in range(2):
        acc = jnp.zeros((N, H, Wh, C), jnp.float32)
        for kh in range(3):
            for kw in range(3):
                t, u0 = _DW_COLTAP[s][kw]
                acc = acc + dw_tap(kh, t, u0) * dw_all[kh * 3 + kw]
        z.append(acc + dwb_ref[...])

    # ---- ChannelGate: GAP -> 1x1 -> ReLU -> 1x1 -> Sigmoid -> scale.
    gap = (jnp.sum(z[0], axis=(1, 2)) + jnp.sum(z[1], axis=(1, 2))) * inv_hw
    a1 = jnp.maximum(
        jnp.dot(gap, g1w_ref[...], preferred_element_type=jnp.float32)
        + g1b_ref[...], 0.0)
    gate = jax.nn.sigmoid(
        jnp.dot(a1, g2w_ref[...], preferred_element_type=jnp.float32)
        + g2b_ref[...])
    gate = gate[:, None, None, :]
    zg0 = z[0] * gate
    zg1 = z[1] * gate

    # ---- Stride-2 down conv, fused: overwrite scratch interior (halo still 0),
    #      gather the 9 taps with static slices + an even-row reshape, and run a
    #      single K = 9*C bf16 matmul.
    pg_ref[:, 1:H + 1, 1, 0:Wh, :] = zg0
    pg_ref[:, 1:H + 1, 0, 1:Wh + 1, :] = zg1

    taps = []
    for kh in range(3):
        for kw in range(3):
            t, u0 = _DN_COLTAP[kw]
            full = pg_ref[:, kh:kh + H, t, u0:u0 + Wo, :]        # rows kh..kh+H-1
            even = full.reshape(N, Ho, 2, Wo, C)[:, :, 0]        # rows 2i + kh
            taps.append(even.reshape(N * Ho * Wo, C))
    lhs = jnp.concatenate(taps, axis=-1).astype(jnp.bfloat16)    # (N*Ho*Wo, 9C)
    res = jnp.dot(lhs, dnw_ref[...],
                  preferred_element_type=jnp.float32) + dnb_ref[...]
    out_ref[...] = res.reshape(N, Ho, Wo, C).astype(out_ref.dtype)


def _vmem_limit_bytes(N, H, W, C, Cin):
    cpad = max(C, 128)
    est = 4 * N * (H + 2) * (W + 2) * cpad       # padded parity-split scratch
    est += 6 * 4 * N * H * W * cpad              # live f32 intermediates
    est += 2 * 2 * N * H * W * 9 * Cin           # bf16 im2col operand
    return int(min(max(2 * est, 32 * 1024 * 1024), 64 * 1024 * 1024))


def wavelet_encoder_block(x_nchw, params):
    N, Cin, H, W = x_nchw.shape
    C = params["w1"].shape[0]
    # TODO(synk): odd spatial sizes need a ragged last row/column; the
    # column-parity-split layout below assumes even H and W.
    assert H % 2 == 0 and W % 2 == 0, "even spatial dims required"
    Ho, Wo = H // 2, W // 2
    Wh = Wo

    x = jnp.transpose(x_nchw, (0, 2, 3, 1)).astype(jnp.float32)   # NCHW -> NHWC
    xpad = jnp.pad(x, ((0, 0), (1, 1), (1, 1), (0, 0)))

    # Conv1 im2col built in wrapper glue on the (small, in_c-channel) input.
    # Rows ordered (n, h, col-parity, w//2); columns ordered (kh, kw, cin).
    taps = [xpad[:, kh:kh + H, kw:kw + W, :]
            for kh in range(3) for kw in range(3)]
    xim = jnp.concatenate(taps, axis=-1)                          # (N,H,W,9*Cin)
    xim = xim.reshape(N, H, Wh, 2, 9 * Cin).transpose(0, 1, 3, 2, 4)
    xim = xim.reshape(N * H * 2 * Wh, 9 * Cin).astype(jnp.bfloat16)

    # Repack PyTorch-layout parameters (glue only).
    w1 = jnp.transpose(params["w1"], (2, 3, 1, 0)).reshape(9 * Cin, C).astype(jnp.bfloat16)
    b1 = params["b1"].reshape(1, C).astype(jnp.float32)
    bnw = params["bn_w"].reshape(1, 1, C).astype(jnp.float32)
    bnb = params["bn_b"].reshape(1, 1, C).astype(jnp.float32)
    dww = jnp.transpose(params["dw_w"][:, 0], (1, 2, 0)).reshape(9, C).astype(jnp.float32)
    dwb = params["dw_b"].reshape(1, C).astype(jnp.float32)
    g1w = params["g1_w"][:, :, 0, 0].T.astype(jnp.float32)
    g1b = params["g1_b"].reshape(1, C).astype(jnp.float32)
    g2w = params["g2_w"][:, :, 0, 0].T.astype(jnp.float32)
    g2b = params["g2_b"].reshape(1, C).astype(jnp.float32)
    dnw = jnp.transpose(params["dn_w"], (2, 3, 1, 0)).reshape(9 * C, C).astype(jnp.bfloat16)
    dnb = params["dn_b"].reshape(1, C).astype(jnp.float32)

    vmem = pl.BlockSpec(memory_space=pltpu.MemorySpace.VMEM)
    # TODO(synk): for production-size images, add a grid over row blocks with
    # dimension_semantics=("parallel",...) and a two-pass / cross-tile reduction
    # for the norm + gate statistics, so the working set fits v7x's 64 MiB VMEM
    # and both TensorCores are used.
    out_nhwc = pl.pallas_call(
        _fused_encoder_kernel,
        out_shape=jax.ShapeDtypeStruct((N, Ho, Wo, C), jnp.float32),
        in_specs=[vmem] * 13,
        out_specs=vmem,
        scratch_shapes=[pltpu.VMEM((N, H + 2, 2, Wh + 1, C), jnp.float32)],
        compiler_params=pltpu.CompilerParams(
            vmem_limit_bytes=_vmem_limit_bytes(N, H, W, C, Cin)),
    )(xim, w1, b1, bnw, bnb, dww, dwb, g1w, g1b, g2w, g2b, dnw, dnb)

    return jnp.transpose(out_nhwc, (0, 3, 1, 2))                  # NHWC -> NCHW


def _reference_forward(x_nchw, p, mm_dtype=jnp.float32):
    """Pure-JAX reference of the PyTorch forward (train-mode BatchNorm).

    mm_dtype controls the operand precision of the two dense convs (conv1 and
    the stride-2 down conv) so the kernel's bf16-MXU path can be checked tightly;
    accumulation is always f32.
    """
    x = jnp.transpose(x_nchw, (0, 2, 3, 1)).astype(jnp.float32)
    dn = ("NHWC", "HWIO", "NHWC")
    C = p["w1"].shape[0]

    def conv(inp, w, stride, groups=1, dtype=jnp.float32):
        return jax.lax.conv_general_dilated(
            inp.astype(dtype), jnp.transpose(w, (2, 3, 1, 0)).astype(dtype),
            (stride, stride), ((1, 1), (1, 1)), dimension_numbers=dn,
            feature_group_count=groups, preferred_element_type=jnp.float32)

    y = conv(x, p["w1"], 1, dtype=mm_dtype) + p["b1"]
    in_m = y.mean(axis=(1, 2), keepdims=True)
    in_v = y.var(axis=(1, 2), keepdims=True)
    bn_m = y.mean(axis=(0, 1, 2), keepdims=True)
    bn_v = y.var(axis=(0, 1, 2), keepdims=True)
    h = 0.5 * (y - in_m) / jnp.sqrt(in_v + _EPS) + \
        0.5 * ((y - bn_m) / jnp.sqrt(bn_v + _EPS) * p["bn_w"] + p["bn_b"])
    g = jax.nn.gelu(h, approximate=False)
    z = conv(g, p["dw_w"], 1, groups=C) + p["dw_b"]
    gap = z.mean(axis=(1, 2))
    a = jax.nn.relu(gap @ p["g1_w"][:, :, 0, 0].T + p["g1_b"])
    gate = jax.nn.sigmoid(a @ p["g2_w"][:, :, 0, 0].T + p["g2_b"])
    zg = z * gate[:, None, None, :]
    out = conv(zg, p["dn_w"], 2, dtype=mm_dtype) + p["dn_b"]
    return jnp.transpose(out, (0, 3, 1, 2))


if __name__ == "__main__":
    key = jax.random.PRNGKey(0)
    N, Cin, H, W = 2, 4, 16, 16
    Cout = 8
    ks = jax.random.split(key, 11)
    x = jax.random.normal(ks[0], (N, Cin, H, W), jnp.float32)

    # Deterministic synthetic parameters in PyTorch layouts (OIHW / (O,1,H,W) / OI11).
    params = {
        "w1": jax.random.normal(ks[1], (Cout, Cin, 3, 3), jnp.float32) * 0.1,
        "b1": jax.random.normal(ks[2], (Cout,), jnp.float32) * 0.1,
        "bn_w": jnp.ones((Cout,), jnp.float32),     # BatchNorm2d default affine init
        "bn_b": jnp.zeros((Cout,), jnp.float32),
        "dw_w": jax.random.normal(ks[3], (Cout, 1, 3, 3), jnp.float32) * 0.1,
        "dw_b": jax.random.normal(ks[4], (Cout,), jnp.float32) * 0.1,
        "g1_w": jax.random.normal(ks[5], (Cout, Cout, 1, 1), jnp.float32) * 0.1,
        "g1_b": jax.random.normal(ks[6], (Cout,), jnp.float32) * 0.1,
        "g2_w": jax.random.normal(ks[7], (Cout, Cout, 1, 1), jnp.float32) * 0.1,
        "g2_b": jax.random.normal(ks[8], (Cout,), jnp.float32) * 0.1,
        "dn_w": jax.random.normal(ks[9], (Cout, Cout, 3, 3), jnp.float32) * 0.1,
        "dn_b": jax.random.normal(ks[10], (Cout,), jnp.float32) * 0.1,
    }

    out = jax.block_until_ready(wavelet_encoder_block(x, params))
    assert out.shape == (N, Cout, (H + 1) // 2, (W + 1) // 2), out.shape

    # Tight structural check: reference fed with the same bf16 MXU operands.
    ref_bf16 = jax.block_until_ready(
        _reference_forward(x, params, mm_dtype=jnp.bfloat16))
    assert jnp.allclose(out, ref_bf16, atol=3e-3, rtol=3e-3), \
        float(jnp.max(jnp.abs(out - ref_bf16)))

    # Fidelity check vs. the pure-f32 PyTorch semantics (bf16 MXU inputs only).
    ref_f32 = jax.block_until_ready(
        _reference_forward(x, params, mm_dtype=jnp.float32))
    assert jnp.allclose(out, ref_f32, atol=2e-2, rtol=2e-2), \
        float(jnp.max(jnp.abs(out - ref_f32)))

    print("KERNEL_OK")
</pallas_src>

<mosaic_0001>
module attributes {stable_mosaic.version = 11 : i64} {
  func.func @_fused_encoder_kernel(%arg0: memref<512x36xbf16, #tpu.memory_space<vmem>>, %arg1: memref<36x8xbf16, #tpu.memory_space<vmem>>, %arg2: memref<1x8xf32, #tpu.memory_space<vmem>>, %arg3: memref<1x1x8xf32, #tpu.memory_space<vmem>>, %arg4: memref<1x1x8xf32, #tpu.memory_space<vmem>>, %arg5: memref<9x8xf32, #tpu.memory_space<vmem>>, %arg6: memref<1x8xf32, #tpu.memory_space<vmem>>, %arg7: memref<8x8xf32, #tpu.memory_space<vmem>>, %arg8: memref<1x8xf32, #tpu.memory_space<vmem>>, %arg9: memref<8x8xf32, #tpu.memory_space<vmem>>, %arg10: memref<1x8xf32, #tpu.memory_space<vmem>>, %arg11: memref<72x8xbf16, #tpu.memory_space<vmem>>, %arg12: memref<1x8xf32, #tpu.memory_space<vmem>>, %arg13: memref<2x8x8x8xf32, #tpu.memory_space<vmem>>, %arg14: memref<2x18x2x9x8xf32, #tpu.memory_space<vmem>>) attributes {dimension_semantics = [], scalar_prefetch = 0 : i64, scratch_operands = 1 : i64, tpu.core_type = #tpu.core_type<tc>} {
    %c0 = arith.constant 0 : index
    %c0_0 = arith.constant 0 : index
    %0 = vector.load %arg0[%c0, %c0_0] : memref<512x36xbf16, #tpu.memory_space<vmem>>, vector<512x36xbf16>
    %c0_1 = arith.constant 0 : index
    %c0_2 = arith.constant 0 : index
    %1 = vector.load %arg1[%c0_1, %c0_2] : memref<36x8xbf16, #tpu.memory_space<vmem>>, vector<36x8xbf16>
    %cst = arith.constant dense<0.000000e+00> : vector<512x8xf32>
    %2 = tpu.matmul %0, %1, %cst {dimension_numbers = #tpu.dot_dimension_numbers<[1], [0], [0], [1], [0, 0, 1, 1], [], []>} : vector<512x36xbf16>, vector<36x8xbf16>, vector<512x8xf32> -> vector<512x8xf32>
    %c0_3 = arith.constant 0 : index
    %c0_4 = arith.constant 0 : index
    %3 = vector.load %arg2[%c0_3, %c0_4] : memref<1x8xf32, #tpu.memory_space<vmem>>, vector<1x8xf32>
    %4 = vector.broadcast %3 : vector<1x8xf32> to vector<512x8xf32>
    %5 = arith.addf %2, %4 : vector<512x8xf32>
    %6 = vector.shape_cast %5 : vector<512x8xf32> to vector<2x256x8xf32>
    %cst_5 = arith.constant dense<0.000000e+00> : vector<2x8xf32>
    %7 = vector.multi_reduction <add>, %6, %cst_5 [1] : vector<2x256x8xf32> to vector<2x8xf32>
    %8 = vector.shape_cast %7 : vector<2x8xf32> to vector<2x1x8xf32>
    %9 = arith.mulf %6, %6 : vector<2x256x8xf32>
    %cst_6 = arith.constant dense<0.000000e+00> : vector<2x8xf32>
    %10 = vector.multi_reduction <add>, %9, %cst_6 [1] : vector<2x256x8xf32> to vector<2x8xf32>
    %11 = vector.shape_cast %10 : vector<2x8xf32> to vector<2x1x8xf32>
    %cst_7 = arith.constant 3.906250e-03 : f32
    %12 = vector.broadcast %cst_7 : f32 to vector<2x1x8xf32>
    %13 = arith.mulf %8, %12 : vector<2x1x8xf32>
    %cst_8 = arith.constant 3.906250e-03 : f32
    %14 = vector.broadcast %cst_8 : f32 to vector<2x1x8xf32>
    %15 = arith.mulf %11, %14 : vector<2x1x8xf32>
    %16 = arith.mulf %13, %13 : vector<2x1x8xf32>
    %17 = arith.subf %15, %16 : vector<2x1x8xf32>
    %cst_9 = arith.constant dense<0.000000e+00> : vector<1x8xf32>
    %18 = vector.multi_reduction <add>, %13, %cst_9 [0] : vector<2x1x8xf32> to vector<1x8xf32>
    %19 = vector.shape_cast %18 : vector<1x8xf32> to vector<1x1x8xf32>
    %cst_10 = arith.constant 2.000000e+00 : f32
    %20 = vector.broadcast %cst_10 : f32 to vector<1x1x8xf32>
    %21 = arith.divf %19, %20 : vector<1x1x8xf32>
    %cst_11 = arith.constant 3.906250e-03 : f32
    %22 = vector.broadcast %cst_11 : f32 to vector<2x1x8xf32>
    %23 = arith.mulf %11, %22 : vector<2x1x8xf32>
    %cst_12 = arith.constant dense<0.000000e+00> : vector<1x8xf32>
    %24 = vector.multi_reduction <add>, %23, %cst_12 [0] : vector<2x1x8xf32> to vector<1x8xf32>
    %25 = vector.shape_cast %24 : vector<1x8xf32> to vector<1x1x8xf32>
    %cst_13 = arith.constant 2.000000e+00 : f32
    %26 = vector.broadcast %cst_13 : f32 to vector<1x1x8xf32>
    %27 = arith.divf %25, %26 : vector<1x1x8xf32>
    %28 = arith.mulf %21, %21 : vector<1x1x8xf32>
    %29 = arith.subf %27, %28 : vector<1x1x8xf32>
    %cst_14 = arith.constant 9.99999974E-6 : f32
    %30 = vector.broadcast %cst_14 : f32 to vector<2x1x8xf32>
    %31 = arith.addf %17, %30 : vector<2x1x8xf32>
    %32 = math.rsqrt %31 : vector<2x1x8xf32>
    %cst_15 = arith.constant 9.99999974E-6 : f32
    %33 = vector.broadcast %cst_15 : f32 to vector<1x1x8xf32>
    %34 = arith.addf %29, %33 : vector<1x1x8xf32>
    %35 = math.rsqrt %34 : vector<1x1x8xf32>
    %c0_16 = arith.constant 0 : index
    %c0_17 = arith.constant 0 : index
    %c0_18 = arith.constant 0 : index
    %36 = vector.load %arg3[%c0_16, %c0_17, %c0_18] : memref<1x1x8xf32, #tpu.memory_space<vmem>>, vector<1x1x8xf32>
    %37 = arith.mulf %35, %36 : vector<1x1x8xf32>
    %38 = vector.broadcast %37 : vector<1x1x8xf32> to vector<2x1x8xf32>
    %39 = arith.addf %32, %38 : vector<2x1x8xf32>
    %cst_19 = arith.constant 5.000000e-01 : f32
    %40 = vector.broadcast %cst_19 : f32 to vector<2x1x8xf32>
    %41 = arith.mulf %40, %39 : vector<2x1x8xf32>
    %c0_20 = arith.constant 0 : index
    %c0_21 = arith.constant 0 : index
    %c0_22 = arith.constant 0 : index
    %42 = vector.load %arg4[%c0_20, %c0_21, %c0_22] : memref<1x1x8xf32, #tpu.memory_space<vmem>>, vector<1x1x8xf32>
    %cst_23 = arith.constant 5.000000e-01 : f32
    %43 = vector.broadcast %cst_23 : f32 to vector<1x1x8xf32>
    %44 = arith.mulf %43, %42 : vector<1x1x8xf32>
    %45 = arith.mulf %13, %32 : vector<2x1x8xf32>
    %46 = arith.mulf %21, %37 : vector<1x1x8xf32>
    %47 = vector.broadcast %46 : vector<1x1x8xf32> to vector<2x1x8xf32>
    %48 = arith.addf %45, %47 : vector<2x1x8xf32>
    %cst_24 = arith.constant 5.000000e-01 : f32
    %49 = vector.broadcast %cst_24 : f32 to vector<2x1x8xf32>
    %50 = arith.mulf %49, %48 : vector<2x1x8xf32>
    %51 = vector.broadcast %44 : vector<1x1x8xf32> to vector<2x1x8xf32>
    %52 = arith.subf %51, %50 : vector<2x1x8xf32>
    %53 = vector.broadcast %41 : vector<2x1x8xf32> to vector<2x256x8xf32>
    %54 = arith.mulf %6, %53 : vector<2x256x8xf32>
    %55 = vector.broadcast %52 : vector<2x1x8xf32> to vector<2x256x8xf32>
    %56 = arith.addf %54, %55 : vector<2x256x8xf32>
    %cst_25 = arith.constant 5.000000e-01 : f32
    %57 = vector.broadcast %cst_25 : f32 to vector<2x256x8xf32>
    %58 = arith.mulf %57, %56 : vector<2x256x8xf32>
    %cst_26 = arith.constant 0.707106769 : f32
    %59 = vector.broadcast %cst_26 : f32 to vector<2x256x8xf32>
    %60 = arith.mulf %56, %59 : vector<2x256x8xf32>
    %61 = math.erf %60 : vector<2x256x8xf32>
    %cst_27 = arith.constant 1.000000e+00 : f32
    %62 = vector.broadcast %cst_27 : f32 to vector<2x256x8xf32>
    %63 = arith.addf %62, %61 : vector<2x256x8xf32>
    %64 = arith.mulf %58, %63 : vector<2x256x8xf32>
    %65 = vector.shape_cast %64 : vector<2x256x8xf32> to vector<2x16x2x8x8xf32>
    %cst_28 = arith.constant 0.000000e+00 : f32
    %66 = vector.broadcast %cst_28 : f32 to vector<2x1x2x9x8xf32>
    %cst_29 = arith.constant 0.000000e+00 : f32
    %67 = vector.broadcast %cst_29 : f32 to vector<2x18x1x8xf32>
    %c0_30 = arith.constant 0 : index
    %c0_31 = arith.constant 0 : index
    %c0_32 = arith.constant 0 : index
    %c0_33 = arith.constant 0 : index
    %c0_34 = arith.constant 0 : index
    %68 = vector.load %arg14[%c0_30, %c0_31, %c0_32, %c0_33, %c0_34] : memref<2x18x2x9x8xf32, #tpu.memory_space<vmem>>, vector<2x1x2x9x8xf32>
    tpu.vector_store %arg14[%c0_30, %c0_31, %c0_32, %c0_33, %c0_34], %66 {strides = array<i32>} : memref<2x18x2x9x8xf32, #tpu.memory_space<vmem>>, vector<2x1x2x9x8xf32>,
    %c0_35 = arith.constant 0 : index
    %c17 = arith.constant 17 : index
    %c0_36 = arith.constant 0 : index
    %c0_37 = arith.constant 0 : index
    %c0_38 = arith.constant 0 : index
    %69 = vector.load %arg14[%c0_35, %c17, %c0_36, %c0_37, %c0_38] : memref<2x18x2x9x8xf32, #tpu.memory_space<vmem>>, vector<2x1x2x9x8xf32>
    tpu.vector_store %arg14[%c0_35, %c17, %c0_36, %c0_37, %c0_38], %66 {strides = array<i32>} : memref<2x18x2x9x8xf32, #tpu.memory_space<vmem>>, vector<2x1x2x9x8xf32>,
    %c0_39 = arith.constant 0 : index
    %c0_40 = arith.constant 0 : index
    %c0_41 = arith.constant 0 : index
    %c0_42 = arith.constant 0 : index
    %c0_43 = arith.constant 0 : index
    %70 = vector.load %arg14[%c0_39, %c0_40, %c0_41, %c0_42, %c0_43] : memref<2x18x2x9x8xf32, #tpu.memory_space<vmem>>, vector<2x18x1x1x8xf32>
    %71 = vector.shape_cast %70 : vector<2x18x1x1x8xf32> to vector<2x18x1x8xf32>
    %72 = vector.shape_cast %67 : vector<2x18x1x8xf32> to vector<2x18x1x1x8xf32>
    tpu.vector_store %arg14[%c0_39, %c0_40, %c0_41, %c0_42, %c0_43], %72 {strides = array<i32>} : memref<2x18x2x9x8xf32, #tpu.memory_space<vmem>>, vector<2x18x1x1x8xf32>,
    %c0_44 = arith.constant 0 : index
    %c0_45 = arith.constant 0 : index
    %c1 = arith.constant 1 : index
    %c8 = arith.constant 8 : index
    %c0_46 = arith.constant 0 : index
    %73 = vector.load %arg14[%c0_44, %c0_45, %c1, %c8, %c0_46] : memref<2x18x2x9x8xf32, #tpu.memory_space<vmem>>, vector<2x18x1x1x8xf32>
    %74 = vector.shape_cast %73 : vector<2x18x1x1x8xf32> to vector<2x18x1x8xf32>
    %75 = vector.shape_cast %67 : vector<2x18x1x8xf32> to vector<2x18x1x1x8xf32>
    tpu.vector_store %arg14[%c0_44, %c0_45, %c1, %c8, %c0_46], %75 {strides = array<i32>} : memref<2x18x2x9x8xf32, #tpu.memory_space<vmem>>, vector<2x18x1x1x8xf32>,
    %76 = vector.extract_strided_slice %65 {offsets = [0, 0, 0, 0, 0], sizes = [2, 16, 1, 8, 8], strides = [1, 1, 1, 1, 1]} : vector<2x16x2x8x8xf32> to vector<2x16x1x8x8xf32>
    %77 = vector.shape_cast %76 : vector<2x16x1x8x8xf32> to vector<2x16x8x8xf32>
    %c0_47 = arith.constant 0 : index
    %c1_48 = arith.constant 1 : index
    %c1_49 = arith.constant 1 : index
    %c0_50 = arith.constant 0 : index
    %c0_51 = arith.constant 0 : index
    %78 = vector.load %arg14[%c0_47, %c1_48, %c1_49, %c0_50, %c0_51] : memref<2x18x2x9x8xf32, #tpu.memory_space<vmem>>, vector<2x16x1x8x8xf32>
    %79 = vector.shape_cast %78 : vector<2x16x1x8x8xf32> to vector<2x16x8x8xf32>
    %80 = vector.shape_cast %77 : vector<2x16x8x8xf32> to vector<2x16x1x8x8xf32>
    tpu.vector_store %arg14[%c0_47, %c1_48, %c1_49, %c0_50, %c0_51], %80 {strides = array<i32>} : memref<2x18x2x9x8xf32, #tpu.memory_space<vmem>>, vector<2x16x1x8x8xf32>,
    %81 = vector.extract_strided_slice %65 {offsets = [0, 0, 1, 0, 0], sizes = [2, 16, 1, 8, 8], strides = [1, 1, 1, 1, 1]} : vector<2x16x2x8x8xf32> to vector<2x16x1x8x8xf32>
    %82 = vector.shape_cast %81 : vector<2x16x1x8x8xf32> to vector<2x16x8x8xf32>
    %c0_52 = arith.constant 0 : index
    %c1_53 = arith.constant 1 : index
    %c0_54 = arith.constant 0 : index
    %c1_55 = arith.constant 1 : index
    %c0_56 = arith.constant 0 : index
    %83 = vector.load %arg14[%c0_52, %c1_53, %c0_54, %c1_55, %c0_56] : memref<2x18x2x9x8xf32, #tpu.memory_space<vmem>>, vector<2x16x1x8x8xf32>
    %84 = vector.shape_cast %83 : vector<2x16x1x8x8xf32> to vector<2x16x8x8xf32>
    %85 = vector.shape_cast %82 : vector<2x16x8x8xf32> to vector<2x16x1x8x8xf32>
    tpu.vector_store %arg14[%c0_52, %c1_53, %c0_54, %c1_55, %c0_56], %85 {strides = array<i32>} : memref<2x18x2x9x8xf32, #tpu.memory_space<vmem>>, vector<2x16x1x8x8xf32>,
    %c0_57 = arith.constant 0 : index
    %c0_58 = arith.constant 0 : index
    %86 = vector.load %arg5[%c0_57, %c0_58] : memref<9x8xf32, #tpu.memory_space<vmem>>, vector<9x8xf32>
    %cst_59 = arith.constant 0.000000e+00 : f32
    %87 = vector.broadcast %cst_59 : f32 to vector<2x16x8x8xf32>
    %c0_60 = arith.constant 0 : index
    %c0_61 = arith.constant 0 : index
    %c0_62 = arith.constant 0 : index
    %c0_63 = arith.constant 0 : index
    %c0_64 = arith.constant 0 : index
    %88 = vector.load %arg14[%c0_60, %c0_61, %c0_62, %c0_63, %c0_64] : memref<2x18x2x9x8xf32, #tpu.memory_space<vmem>>, vector<2x16x1x8x8xf32>
    %89 = vector.shape_cast %88 : vector<2x16x1x8x8xf32> to vector<2x16x8x8xf32>
    %90 = vector.extract_strided_slice %86 {offsets = [0, 0], sizes = [1, 8], strides = [1, 1]} : vector<9x8xf32> to vector<1x8xf32>
    %91 = vector.shape_cast %90 : vector<1x8xf32> to vector<8xf32>
    %92 = vector.shape_cast %91 : vector<8xf32> to vector<1x1x1x8xf32>
    %93 = vector.broadcast %92 : vector<1x1x1x8xf32> to vector<2x16x8x8xf32>
    %94 = arith.mulf %89, %93 : vector<2x16x8x8xf32>
    %95 = arith.addf %87, %94 : vector<2x16x8x8xf32>
    %c0_65 = arith.constant 0 : index
    %c0_66 = arith.constant 0 : index
    %c1_67 = arith.constant 1 : index
    %c0_68 = arith.constant 0 : index
    %c0_69 = arith.constant 0 : index
    %96 = vector.load %arg14[%c0_65, %c0_66, %c1_67, %c0_68, %c0_69] : memref<2x18x2x9x8xf32, #tpu.memory_space<vmem>>, vector<2x16x1x8x8xf32>
    %97 = vector.shape_cast %96 : vector<2x16x1x8x8xf32> to vector<2x16x8x8xf32>
    %98 = vector.extract_strided_slice %86 {offsets = [1, 0], sizes = [1, 8], strides = [1, 1]} : vector<9x8xf32> to vector<1x8xf32>
    %99 = vector.shape_cast %98 : vector<1x8xf32> to vector<8xf32>
    %100 = vector.shape_cast %99 : vector<8xf32> to vector<1x1x1x8xf32>
    %101 = vector.broadcast %100 : vector<1x1x1x8xf32> to vector<2x16x8x8xf32>
    %102 = arith.mulf %97, %101 : vector<2x16x8x8xf32>
    %103 = arith.addf %95, %102 : vector<2x16x8x8xf32>
    %c0_70 = arith.constant 0 : index
    %c0_71 = arith.constant 0 : index
    %c0_72 = arith.constant 0 : index
    %c1_73 = arith.constant 1 : index
    %c0_74 = arith.constant 0 : index
    %104 = vector.load %arg14[%c0_70, %c0_71, %c0_72, %c1_73, %c0_74] : memref<2x18x2x9x8xf32, #tpu.memory_space<vmem>>, vector<2x16x1x8x8xf32>
    %105 = vector.shape_cast %104 : vector<2x16x1x8x8xf32> to vector<2x16x8x8xf32>
    %106 = vector.extract_strided_slice %86 {offsets = [2, 0], sizes = [1, 8], strides = [1, 1]} : vector<9x8xf32> to vector<1x8xf32>
    %107 = vector.shape_cast %106 : vector<1x8xf32> to vector<8xf32>
    %108 = vector.shape_cast %107 : vector<8xf32> to vector<1x1x1x8xf32>
    %109 = vector.broadcast %108 : vector<1x1x1x8xf32> to vector<2x16x8x8xf32>
    %110 = arith.mulf %105, %109 : vector<2x16x8x8xf32>
    %111 = arith.addf %103, %110 : vector<2x16x8x8xf32>
    %c0_75 = arith.constant 0 : index
    %c1_76 = arith.constant 1 : index
    %c0_77 = arith.constant 0 : index
    %c0_78 = arith.constant 0 : index
    %c0_79 = arith.constant 0 : index
    %112 = vector.load %arg14[%c0_75, %c1_76, %c0_77, %c0_78, %c0_79] : memref<2x18x2x9x8xf32, #tpu.memory_space<vmem>>, vector<2x16x1x8x8xf32>
    %113 = vector.shape_cast %112 : vector<2x16x1x8x8xf32> to vector<2x16x8x8xf32>
    %114 = vector.extract_strided_slice %86 {offsets = [3, 0], sizes = [1, 8], strides = [1, 1]} : vector<9x8xf32> to vector<1x8xf32>
    %115 = vector.shape_cast %114 : vector<1x8xf32> to vector<8xf32>
    %116 = vector.shape_cast %115 : vector<8xf32> to vector<1x1x1x8xf32>
    %117 = vector.broadcast %116 : vector<1x1x1x8xf32> to vector<2x16x8x8xf32>
    %118 = arith.mulf %113, %117 : vector<2x16x8x8xf32>
    %119 = arith.addf %111, %118 : vector<2x16x8x8xf32>
    %c0_80 = arith.constant 0 : index
    %c1_81 = arith.constant 1 : index
    %c1_82 = arith.constant 1 : index
    %c0_83 = arith.constant 0 : index
    %c0_84 = arith.constant 0 : index
    %120 = vector.load %arg14[%c0_80, %c1_81, %c1_82, %c0_83, %c0_84] : memref<2x18x2x9x8xf32, #tpu.memory_space<vmem>>, vector<2x16x1x8x8xf32>
    %121 = vector.shape_cast %120 : vector<2x16x1x8x8xf32> to vector<2x16x8x8xf32>
    %122 = vector.extract_strided_slice %86 {offsets = [4, 0], sizes = [1, 8], strides = [1, 1]} : vector<9x8xf32> to vector<1x8xf32>
    %123 = vector.shape_cast %122 : vector<1x8xf32> to vector<8xf32>
    %124 = vector.shape_cast %123 : vector<8xf32> to vector<1x1x1x8xf32>
    %125 = vector.broadcast %124 : vector<1x1x1x8xf32> to vector<2x16x8x8xf32>
    %126 = arith.mulf %121, %125 : vector<2x16x8x8xf32>
    %127 = arith.addf %119, %126 : vector<2x16x8x8xf32>
    %c0_85 = arith.constant 0 : index
    %c1_86 = arith.constant 1 : index
    %c0_87 = arith.constant 0 : index
    %c1_88 = arith.constant 1 : index
    %c0_89 = arith.constant 0 : index
    %128 = vector.load %arg14[%c0_85, %c1_86, %c0_87, %c1_88, %c0_89] : memref<2x18x2x9x8xf32, #tpu.memory_space<vmem>>, vector<2x16x1x8x8xf32>
    %129 = vector.shape_cast %128 : vector<2x16x1x8x8xf32> to vector<2x16x8x8xf32>
    %130 = vector.extract_strided_slice %86 {offsets = [5, 0], sizes = [1, 8], strides = [1, 1]} : vector<9x8xf32> to vector<1x8xf32>
    %131 = vector.shape_cast %130 : vector<1x8xf32> to vector<8xf32>
    %132 = vector.shape_cast %131 : vector<8xf32> to vector<1x1x1x8xf32>
    %133 = vector.broadcast %132 : vector<1x1x1x8xf32> to vector<2x16x8x8xf32>
    %134 = arith.mulf %129, %133 : vector<2x16x8x8xf32>
    %135 = arith.addf %127, %134 : vector<2x16x8x8xf32>
    %c0_90 = arith.constant 0 : index
    %c2 = arith.constant 2 : index
    %c0_91 = arith.constant 0 : index
    %c0_92 = arith.constant 0 : index
    %c0_93 = arith.constant 0 : index
    %136 = vector.load %arg14[%c0_90, %c2, %c0_91, %c0_92, %c0_93] : memref<2x18x2x9x8xf32, #tpu.memory_space<vmem>>, vector<2x16x1x8x8xf32>
    %137 = vector.shape_cast %136 : vector<2x16x1x8x8xf32> to vector<2x16x8x8xf32>
    %138 = vector.extract_strided_slice %86 {offsets = [6, 0], sizes = [1, 8], strides = [1, 1]} : vector<9x8xf32> to vector<1x8xf32>
    %139 = vector.shape_cast %138 : vector<1x8xf32> to vector<8xf32>
    %140 = vector.shape_cast %139 : vector<8xf32> to vector<1x1x1x8xf32>
    %141 = vector.broadcast %140 : vector<1x1x1x8xf32> to vector<2x16x8x8xf32>
    %142 = arith.mulf %137, %141 : vector<2x16x8x8xf32>
    %143 = arith.addf %135, %142 : vector<2x16x8x8xf32>
    %c0_94 = arith.constant 0 : index
    %c2_95 = arith.constant 2 : index
    %c1_96 = arith.constant 1 : index
    %c0_97 = arith.constant 0 : index
    %c0_98 = arith.constant 0 : index
    %144 = vector.load %arg14[%c0_94, %c2_95, %c1_96, %c0_97, %c0_98] : memref<2x18x2x9x8xf32, #tpu.memory_space<vmem>>, vector<2x16x1x8x8xf32>
    %145 = vector.shape_cast %144 : vector<2x16x1x8x8xf32> to vector<2x16x8x8xf32>
    %146 = vector.extract_strided_slice %86 {offsets = [7, 0], sizes = [1, 8], strides = [1, 1]} : vector<9x8xf32> to vector<1x8xf32>
    %147 = vector.shape_cast %146 : vector<1x8xf32> to vector<8xf32>
    %148 = vector.shape_cast %147 : vector<8xf32> to vector<1x1x1x8xf32>
    %149 = vector.broadcast %148 : vector<1x1x1x8xf32> to vector<2x16x8x8xf32>
    %150 = arith.mulf %145, %149 : vector<2x16x8x8xf32>
    %151 = arith.addf %143, %150 : vector<2x16x8x8xf32>
    %c0_99 = arith.constant 0 : index
    %c2_100 = arith.constant 2 : index
    %c0_101 = arith.constant 0 : index
    %c1_102 = arith.constant 1 : index
    %c0_103 = arith.constant 0 : index
    %152 = vector.load %arg14[%c0_99, %c2_100, %c0_101, %c1_102, %c0_103] : memref<2x18x2x9x8xf32, #tpu.memory_space<vmem>>, vector<2x16x1x8x8xf32>
    %153 = vector.shape_cast %152 : vector<2x16x1x8x8xf32> to vector<2x16x8x8xf32>
    %154 = vector.extract_strided_slice %86 {offsets = [8, 0], sizes = [1, 8], strides = [1, 1]} : vector<9x8xf32> to vector<1x8xf32>
    %155 = vector.shape_cast %154 : vector<1x8xf32> to vector<8xf32>
    %156 = vector.shape_cast %155 : vector<8xf32> to vector<1x1x1x8xf32>
    %157 = vector.broadcast %156 : vector<1x1x1x8xf32> to vector<2x16x8x8xf32>
    %158 = arith.mulf %153, %157 : vector<2x16x8x8xf32>
    %159 = arith.addf %151, %158 : vector<2x16x8x8xf32>
    %c0_104 = arith.constant 0 : index
    %c0_105 = arith.constant 0 : index
    %160 = vector.load %arg6[%c0_104, %c0_105] : memref<1x8xf32, #tpu.memory_space<vmem>>, vector<1x8xf32>
    %161 = vector.shape_cast %160 : vector<1x8xf32> to vector<1x1x1x8xf32>
    %162 = vector.broadcast %161 : vector<1x1x1x8xf32> to vector<2x16x8x8xf32>
    %163 = arith.addf %159, %162 : vector<2x16x8x8xf32>
    %cst_106 = arith.constant 0.000000e+00 : f32
    %164 = vector.broadcast %cst_106 : f32 to vector<2x16x8x8xf32>
    %165 = vector.extract_strided_slice %86 {offsets = [0, 0], sizes = [1, 8], strides = [1, 1]} : vector<9x8xf32> to vector<1x8xf32>
    %166 = vector.shape_cast %165 : vector<1x8xf32> to vector<8xf32>
    %167 = vector.shape_cast %166 : vector<8xf32> to vector<1x1x1x8xf32>
    %168 = vector.broadcast %167 : vector<1x1x1x8xf32> to vector<2x16x8x8xf32>
    %169 = arith.mulf %97, %168 : vector<2x16x8x8xf32>
    %170 = arith.addf %164, %169 : vector<2x16x8x8xf32>
    %171 = vector.extract_strided_slice %86 {offsets = [1, 0], sizes = [1, 8], strides = [1, 1]} : vector<9x8xf32> to vector<1x8xf32>
    %172 = vector.shape_cast %171 : vector<1x8xf32> to vector<8xf32>
    %173 = vector.shape_cast %172 : vector<8xf32> to vector<1x1x1x8xf32>
    %174 = vector.broadcast %173 : vector<1x1x1x8xf32> to vector<2x16x8x8xf32>
    %175 = arith.mulf %105, %174 : vector<2x16x8x8xf32>
    %176 = arith.addf %170, %175 : vector<2x16x8x8xf32>
    %c0_107 = arith.constant 0 : index
    %c0_108 = arith.constant 0 : index
    %c1_109 = arith.constant 1 : index
    %c1_110 = arith.constant 1 : index
    %c0_111 = arith.constant 0 : index
    %177 = vector.load %arg14[%c0_107, %c0_108, %c1_109, %c1_110, %c0_111] : memref<2x18x2x9x8xf32, #tpu.memory_space<vmem>>, vector<2x16x1x8x8xf32>
    %178 = vector.shape_cast %177 : vector<2x16x1x8x8xf32> to vector<2x16x8x8xf32>
    %179 = vector.extract_strided_slice %86 {offsets = [2, 0], sizes = [1, 8], strides = [1, 1]} : vector<9x8xf32> to vector<1x8xf32>
    %180 = vector.shape_cast %179 : vector<1x8xf32> to vector<8xf32>
    %181 = vector.shape_cast %180 : vector<8xf32> to vector<1x1x1x8xf32>
    %182 = vector.broadcast %181 : vector<1x1x1x8xf32> to vector<2x16x8x8xf32>
    %183 = arith.mulf %178, %182 : vector<2x16x8x8xf32>
    %184 = arith.addf %176, %183 : vector<2x16x8x8xf32>
    %185 = vector.extract_strided_slice %86 {offsets = [3, 0], sizes = [1, 8], strides = [1, 1]} : vector<9x8xf32> to vector<1x8xf32>
    %186 = vector.shape_cast %185 : vector<1x8xf32> to vector<8xf32>
    %187 = vector.shape_cast %186 : vector<8xf32> to vector<1x1x1x8xf32>
    %188 = vector.broadcast %187 : vector<1x1x1x8xf32> to vector<2x16x8x8xf32>
    %189 = arith.mulf %121, %188 : vector<2x16x8x8xf32>
    %190 = arith.addf %184, %189 : vector<2x16x8x8xf32>
    %191 = vector.extract_strided_slice %86 {offsets = [4, 0], sizes = [1, 8], strides = [1, 1]} : vector<9x8xf32> to vector<1x8xf32>
    %192 = vector.shape_cast %191 : vector<1x8xf32> to vector<8xf32>
    %193 = vector.shape_cast %192 : vector<8xf32> to vector<1x1x1x8xf32>
    %194 = vector.broadcast %193 : vector<1x1x1x8xf32> to vector<2x16x8x8xf32>
    %195 = arith.mulf %129, %194 : vector<2x16x8x8xf32>
    %196 = arith.addf %190, %195 : vector<2x16x8x8xf32>
    %c0_112 = arith.constant 0 : index
    %c1_113 = arith.constant 1 : index
    %c1_114 = arith.constant 1 : index
    %c1_115 = arith.constant 1 : index
    %c0_116 = arith.constant 0 : index
    %197 = vector.load %arg14[%c0_112, %c1_113, %c1_114, %c1_115, %c0_116] : memref<2x18x2x9x8xf32, #tpu.memory_space<vmem>>, vector<2x16x1x8x8xf32>
    %198 = vector.shape_cast %197 : vector<2x16x1x8x8xf32> to vector<2x16x8x8xf32>
    %199 = vector.extract_strided_slice %86 {offsets = [5, 0], sizes = [1, 8], strides = [1, 1]} : vector<9x8xf32> to vector<1x8xf32>
    %200 = vector.shape_cast %199 : vector<1x8xf32> to vector<8xf32>
    %201 = vector.shape_cast %200 : vector<8xf32> to vector<1x1x1x8xf32>
    %202 = vector.broadcast %201 : vector<1x1x1x8xf32> to vector<2x16x8x8xf32>
    %203 = arith.mulf %198, %202 : vector<2x16x8x8xf32>
    %204 = arith.addf %196, %203 : vector<2x16x8x8xf32>
    %205 = vector.extract_strided_slice %86 {offsets = [6, 0], sizes = [1, 8], strides = [1, 1]} : vector<9x8xf32> to vector<1x8xf32>
    %206 = vector.shape_cast %205 : vector<1x8xf32> to vector<8xf32>
    %207 = vector.shape_cast %206 : vector<8xf32> to vector<1x1x1x8xf32>
    %208 = vector.broadcast %207 : vector<1x1x1x8xf32> to vector<2x16x8x8xf32>
    %209 = arith.mulf %145, %208 : vector<2x16x8x8xf32>
    %210 = arith.addf %204, %209 : vector<2x16x8x8xf32>
    %211 = vector.extract_strided_slice %86 {offsets = [7, 0], sizes = [1, 8], strides = [1, 1]} : vector<9x8xf32> to vector<1x8xf32>
    %212 = vector.shape_cast %211 : vector<1x8xf32> to vector<8xf32>
    %213 = vector.shape_cast %212 : vector<8xf32> to vector<1x1x1x8xf32>
    %214 = vector.broadcast %213 : vector<1x1x1x8xf32> to vector<2x16x8x8xf32>
    %215 = arith.mulf %153, %214 : vector<2x16x8x8xf32>
    %216 = arith.addf %210, %215 : vector<2x16x8x8xf32>
    %c0_117 = arith.constant 0 : index
    %c2_118 = arith.constant 2 : index
    %c1_119 = arith.constant 1 : index
    %c1_120 = arith.constant 1 : index
    %c0_121 = arith.constant 0 : index
    %217 = vector.load %arg14[%c0_117, %c2_118, %c1_119, %c1_120, %c0_121] : memref<2x18x2x9x8xf32, #tpu.memory_space<vmem>>, vector<2x16x1x8x8xf32>
    %218 = vector.shape_cast %217 : vector<2x16x1x8x8xf32> to vector<2x16x8x8xf32>
    %219 = vector.extract_strided_slice %86 {offsets = [8, 0], sizes = [1, 8], strides = [1, 1]} : vector<9x8xf32> to vector<1x8xf32>
    %220 = vector.shape_cast %219 : vector<1x8xf32> to vector<8xf32>
    %221 = vector.shape_cast %220 : vector<8xf32> to vector<1x1x1x8xf32>
    %222 = vector.broadcast %221 : vector<1x1x1x8xf32> to vector<2x16x8x8xf32>
    %223 = arith.mulf %218, %222 : vector<2x16x8x8xf32>
    %224 = arith.addf %216, %223 : vector<2x16x8x8xf32>
    %c0_122 = arith.constant 0 : index
    %c0_123 = arith.constant 0 : index
    %225 = vector.load %arg6[%c0_122, %c0_123] : memref<1x8xf32, #tpu.memory_space<vmem>>, vector<1x8xf32>
    %226 = vector.shape_cast %225 : vector<1x8xf32> to vector<1x1x1x8xf32>
    %227 = vector.broadcast %226 : vector<1x1x1x8xf32> to vector<2x16x8x8xf32>
    %228 = arith.addf %224, %227 : vector<2x16x8x8xf32>
    %cst_124 = arith.constant dense<0.000000e+00> : vector<2x8xf32>
    %229 = vector.multi_reduction <add>, %163, %cst_124 [1, 2] : vector<2x16x8x8xf32> to vector<2x8xf32>
    %cst_125 = arith.constant dense<0.000000e+00> : vector<2x8xf32>
    %230 = vector.multi_reduction <add>, %228, %cst_125 [1, 2] : vector<2x16x8x8xf32> to vector<2x8xf32>
    %231 = arith.addf %229, %230 : vector<2x8xf32>
    %cst_126 = arith.constant 3.906250e-03 : f32
    %232 = vector.broadcast %cst_126 : f32 to vector<2x8xf32>
    %233 = arith.mulf %231, %232 : vector<2x8xf32>
    %c0_127 = arith.constant 0 : index
    %c0_128 = arith.constant 0 : index
    %234 = vector.load %arg7[%c0_127, %c0_128] : memref<8x8xf32, #tpu.memory_space<vmem>>, vector<8x8xf32>
    %cst_129 = arith.constant dense<0.000000e+00> : vector<2x8xf32>
    %235 = tpu.matmul %233, %234, %cst_129 {dimension_numbers = #tpu.dot_dimension_numbers<[1], [0], [0], [1], [0, 0, 1, 1], [], []>} : vector<2x8xf32>, vector<8x8xf32>, vector<2x8xf32> -> vector<2x8xf32>
    %c0_130 = arith.constant 0 : index
    %c0_131 = arith.constant 0 : index
    %236 = vector.load %arg8[%c0_130, %c0_131] : memref<1x8xf32, #tpu.memory_space<vmem>>, vector<1x8xf32>
    %237 = vector.broadcast %236 : vector<1x8xf32> to vector<2x8xf32>
    %238 = arith.addf %235, %237 : vector<2x8xf32>
    %cst_132 = arith.constant 0.000000e+00 : f32
    %239 = vector.broadcast %cst_132 : f32 to vector<2x8xf32>
    %240 = arith.maximumf %238, %239 : vector<2x8xf32>
    %c0_133 = arith.constant 0 : index
    %c0_134 = arith.constant 0 : index
    %241 = vector.load %arg9[%c0_133, %c0_134] : memref<8x8xf32, #tpu.memory_space<vmem>>, vector<8x8xf32>
    %cst_135 = arith.constant dense<0.000000e+00> : vector<2x8xf32>
    %242 = tpu.matmul %240, %241, %cst_135 {dimension_numbers = #tpu.dot_dimension_numbers<[1], [0], [0], [1], [0, 0, 1, 1], [], []>} : vector<2x8xf32>, vector<8x8xf32>, vector<2x8xf32> -> vector<2x8xf32>
    %c0_136 = arith.constant 0 : index
    %c0_137 = arith.constant 0 : index
    %243 = vector.load %arg10[%c0_136, %c0_137] : memref<1x8xf32, #tpu.memory_space<vmem>>, vector<1x8xf32>
    %244 = vector.broadcast %243 : vector<1x8xf32> to vector<2x8xf32>
    %245 = arith.addf %242, %244 : vector<2x8xf32>
    %246 = arith.negf %245 : vector<2x8xf32>
    %247 = math.exp %246 : vector<2x8xf32>
    %cst_138 = arith.constant 1.000000e+00 : f32
    %248 = vector.broadcast %cst_138 : f32 to vector<2x8xf32>
    %249 = arith.addf %248, %247 : vector<2x8xf32>
    %250 = arith.divf %248, %249 : vector<2x8xf32>
    %251 = vector.shape_cast %250 : vector<2x8xf32> to vector<2x1x1x8xf32>
    %252 = vector.broadcast %251 : vector<2x1x1x8xf32> to vector<2x16x8x8xf32>
    %253 = arith.mulf %163, %252 : vector<2x16x8x8xf32>
    %254 = vector.broadcast %251 : vector<2x1x1x8xf32> to vector<2x16x8x8xf32>
    %255 = arith.mulf %228, %254 : vector<2x16x8x8xf32>
    %c0_139 = arith.constant 0 : index
    %c1_140 = arith.constant 1 : index
    %c1_141 = arith.constant 1 : index
    %c0_142 = arith.constant 0 : index
    %c0_143 = arith.constant 0 : index
    %256 = vector.load %arg14[%c0_139, %c1_140, %c1_141, %c0_142, %c0_143] : memref<2x18x2x9x8xf32, #tpu.memory_space<vmem>>, vector<2x16x1x8x8xf32>
    %257 = vector.shape_cast %256 : vector<2x16x1x8x8xf32> to vector<2x16x8x8xf32>
    %258 = vector.shape_cast %253 : vector<2x16x8x8xf32> to vector<2x16x1x8x8xf32>
    tpu.vector_store %arg14[%c0_139, %c1_140, %c1_141, %c0_142, %c0_143], %258 {strides = array<i32>} : memref<2x18x2x9x8xf32, #tpu.memory_space<vmem>>, vector<2x16x1x8x8xf32>,
    %c0_144 = arith.constant 0 : index
    %c1_145 = arith.constant 1 : index
    %c0_146 = arith.constant 0 : index
    %c1_147 = arith.constant 1 : index
    %c0_148 = arith.constant 0 : index
    %259 = vector.load %arg14[%c0_144, %c1_145, %c0_146, %c1_147, %c0_148] : memref<2x18x2x9x8xf32, #tpu.memory_space<vmem>>, vector<2x16x1x8x8xf32>
    %260 = vector.shape_cast %259 : vector<2x16x1x8x8xf32> to vector<2x16x8x8xf32>
    %261 = vector.shape_cast %255 : vector<2x16x8x8xf32> to vector<2x16x1x8x8xf32>
    tpu.vector_store %arg14[%c0_144, %c1_145, %c0_146, %c1_147, %c0_148], %261 {strides = array<i32>} : memref<2x18x2x9x8xf32, #tpu.memory_space<vmem>>, vector<2x16x1x8x8xf32>,
    %c0_149 = arith.constant 0 : index
    %c0_150 = arith.constant 0 : index
    %c0_151 = arith.constant 0 : index
    %c0_152 = arith.constant 0 : index
    %c0_153 = arith.constant 0 : index
    %262 = vector.load %arg14[%c0_149, %c0_150, %c0_151, %c0_152, %c0_153] : memref<2x18x2x9x8xf32, #tpu.memory_space<vmem>>, vector<2x16x1x8x8xf32>
    %263 = vector.shape_cast %262 : vector<2x16x1x8x8xf32> to vector<2x16x8x8xf32>
    %264 = vector.shape_cast %263 : vector<2x16x8x8xf32> to vector<2x8x2x8x8xf32>
    %265 = vector.extract_strided_slice %264 {offsets = [0, 0, 0, 0, 0], sizes = [2, 8, 1, 8, 8], strides = [1, 1, 1, 1, 1]} : vector<2x8x2x8x8xf32> to vector<2x8x1x8x8xf32>
    %266 = vector.shape_cast %265 : vector<2x8x1x8x8xf32> to vector<2x8x8x8xf32>
    %267 = vector.shape_cast %266 : vector<2x8x8x8xf32> to vector<128x8xf32>
    %c0_154 = arith.constant 0 : index
    %c0_155 = arith.constant 0 : index
    %c1_156 = arith.constant 1 : index
    %c0_157 = arith.constant 0 : index
    %c0_158 = arith.constant 0 : index
    %268 = vector.load %arg14[%c0_154, %c0_155, %c1_156, %c0_157, %c0_158] : memref<2x18x2x9x8xf32, #tpu.memory_space<vmem>>, vector<2x16x1x8x8xf32>
    %269 = vector.shape_cast %268 : vector<2x16x1x8x8xf32> to vector<2x16x8x8xf32>
    %270 = vector.shape_cast %269 : vector<2x16x8x8xf32> to vector<2x8x2x8x8xf32>
    %271 = vector.extract_strided_slice %270 {offsets = [0, 0, 0, 0, 0], sizes = [2, 8, 1, 8, 8], strides = [1, 1, 1, 1, 1]} : vector<2x8x2x8x8xf32> to vector<2x8x1x8x8xf32>
    %272 = vector.shape_cast %271 : vector<2x8x1x8x8xf32> to vector<2x8x8x8xf32>
    %273 = vector.shape_cast %272 : vector<2x8x8x8xf32> to vector<128x8xf32>
    %c0_159 = arith.constant 0 : index
    %c0_160 = arith.constant 0 : index
    %c0_161 = arith.constant 0 : index
    %c1_162 = arith.constant 1 : index
    %c0_163 = arith.constant 0 : index
    %274 = vector.load %arg14[%c0_159, %c0_160, %c0_161, %c1_162, %c0_163] : memref<2x18x2x9x8xf32, #tpu.memory_space<vmem>>, vector<2x16x1x8x8xf32>
    %275 = vector.shape_cast %274 : vector<2x16x1x8x8xf32> to vector<2x16x8x8xf32>
    %276 = vector.shape_cast %275 : vector<2x16x8x8xf32> to vector<2x8x2x8x8xf32>
    %277 = vector.extract_strided_slice %276 {offsets = [0, 0, 0, 0, 0], sizes = [2, 8, 1, 8, 8], strides = [1, 1, 1, 1, 1]} : vector<2x8x2x8x8xf32> to vector<2x8x1x8x8xf32>
    %278 = vector.shape_cast %277 : vector<2x8x1x8x8xf32> to vector<2x8x8x8xf32>
    %279 = vector.shape_cast %278 : vector<2x8x8x8xf32> to vector<128x8xf32>
    %c0_164 = arith.constant 0 : index
    %c1_165 = arith.constant 1 : index
    %c0_166 = arith.constant 0 : index
    %c0_167 = arith.constant 0 : index
    %c0_168 = arith.constant 0 : index
    %280 = vector.load %arg14[%c0_164, %c1_165, %c0_166, %c0_167, %c0_168] : memref<2x18x2x9x8xf32, #tpu.memory_space<vmem>>, vector<2x16x1x8x8xf32>
    %281 = vector.shape_cast %280 : vector<2x16x1x8x8xf32> to vector<2x16x8x8xf32>
    %282 = vector.shape_cast %281 : vector<2x16x8x8xf32> to vector<2x8x2x8x8xf32>
    %283 = vector.extract_strided_slice %282 {offsets = [0, 0, 0, 0, 0], sizes = [2, 8, 1, 8, 8], strides = [1, 1, 1, 1, 1]} : vector<2x8x2x8x8xf32> to vector<2x8x1x8x8xf32>
    %284 = vector.shape_cast %283 : vector<2x8x1x8x8xf32> to vector<2x8x8x8xf32>
    %285 = vector.shape_cast %284 : vector<2x8x8x8xf32> to vector<128x8xf32>
    %c0_169 = arith.constant 0 : index
    %c1_170 = arith.constant 1 : index
    %c1_171 = arith.constant 1 : index
    %c0_172 = arith.constant 0 : index
    %c0_173 = arith.constant 0 : index
    %286 = vector.load %arg14[%c0_169, %c1_170, %c1_171, %c0_172, %c0_173] : memref<2x18x2x9x8xf32, #tpu.memory_space<vmem>>, vector<2x16x1x8x8xf32>
    %287 = vector.shape_cast %286 : vector<2x16x1x8x8xf32> to vector<2x16x8x8xf32>
    %288 = vector.shape_cast %287 : vector<2x16x8x8xf32> to vector<2x8x2x8x8xf32>
    %289 = vector.extract_strided_slice %288 {offsets = [0, 0, 0, 0, 0], sizes = [2, 8, 1, 8, 8], strides = [1, 1, 1, 1, 1]} : vector<2x8x2x8x8xf32> to vector<2x8x1x8x8xf32>
    %290 = vector.shape_cast %289 : vector<2x8x1x8x8xf32> to vector<2x8x8x8xf32>
    %291 = vector.shape_cast %290 : vector<2x8x8x8xf32> to vector<128x8xf32>
    %c0_174 = arith.constant 0 : index
    %c1_175 = arith.constant 1 : index
    %c0_176 = arith.constant 0 : index
    %c1_177 = arith.constant 1 : index
    %c0_178 = arith.constant 0 : index
    %292 = vector.load %arg14[%c0_174, %c1_175, %c0_176, %c1_177, %c0_178] : memref<2x18x2x9x8xf32, #tpu.memory_space<vmem>>, vector<2x16x1x8x8xf32>
    %293 = vector.shape_cast %292 : vector<2x16x1x8x8xf32> to vector<2x16x8x8xf32>
    %294 = vector.shape_cast %293 : vector<2x16x8x8xf32> to vector<2x8x2x8x8xf32>
    %295 = vector.extract_strided_slice %294 {offsets = [0, 0, 0, 0, 0], sizes = [2, 8, 1, 8, 8], strides = [1, 1, 1, 1, 1]} : vector<2x8x2x8x8xf32> to vector<2x8x1x8x8xf32>
    %296 = vector.shape_cast %295 : vector<2x8x1x8x8xf32> to vector<2x8x8x8xf32>
    %297 = vector.shape_cast %296 : vector<2x8x8x8xf32> to vector<128x8xf32>
    %c0_179 = arith.constant 0 : index
    %c2_180 = arith.constant 2 : index
    %c0_181 = arith.constant 0 : index
    %c0_182 = arith.constant 0 : index
    %c0_183 = arith.constant 0 : index
    %298 = vector.load %arg14[%c0_179, %c2_180, %c0_181, %c0_182, %c0_183] : memref<2x18x2x9x8xf32, #tpu.memory_space<vmem>>, vector<2x16x1x8x8xf32>
    %299 = vector.shape_cast %298 : vector<2x16x1x8x8xf32> to vector<2x16x8x8xf32>
    %300 = vector.shape_cast %299 : vector<2x16x8x8xf32> to vector<2x8x2x8x8xf32>
    %301 = vector.extract_strided_slice %300 {offsets = [0, 0, 0, 0, 0], sizes = [2, 8, 1, 8, 8], strides = [1, 1, 1, 1, 1]} : vector<2x8x2x8x8xf32> to vector<2x8x1x8x8xf32>
    %302 = vector.shape_cast %301 : vector<2x8x1x8x8xf32> to vector<2x8x8x8xf32>
    %303 = vector.shape_cast %302 : vector<2x8x8x8xf32> to vector<128x8xf32>
    %c0_184 = arith.constant 0 : index
    %c2_185 = arith.constant 2 : index
    %c1_186 = arith.constant 1 : index
    %c0_187 = arith.constant 0 : index
    %c0_188 = arith.constant 0 : index
    %304 = vector.load %arg14[%c0_184, %c2_185, %c1_186, %c0_187, %c0_188] : memref<2x18x2x9x8xf32, #tpu.memory_space<vmem>>, vector<2x16x1x8x8xf32>
    %305 = vector.shape_cast %304 : vector<2x16x1x8x8xf32> to vector<2x16x8x8xf32>
    %306 = vector.shape_cast %305 : vector<2x16x8x8xf32> to vector<2x8x2x8x8xf32>
    %307 = vector.extract_strided_slice %306 {offsets = [0, 0, 0, 0, 0], sizes = [2, 8, 1, 8, 8], strides = [1, 1, 1, 1, 1]} : vector<2x8x2x8x8xf32> to vector<2x8x1x8x8xf32>
    %308 = vector.shape_cast %307 : vector<2x8x1x8x8xf32> to vector<2x8x8x8xf32>
    %309 = vector.shape_cast %308 : vector<2x8x8x8xf32> to vector<128x8xf32>
    %c0_189 = arith.constant 0 : index
    %c2_190 = arith.constant 2 : index
    %c0_191 = arith.constant 0 : index
    %c1_192 = arith.constant 1 : index
    %c0_193 = arith.constant 0 : index
    %310 = vector.load %arg14[%c0_189, %c2_190, %c0_191, %c1_192, %c0_193] : memref<2x18x2x9x8xf32, #tpu.memory_space<vmem>>, vector<2x16x1x8x8xf32>
    %311 = vector.shape_cast %310 : vector<2x16x1x8x8xf32> to vector<2x16x8x8xf32>
    %312 = vector.shape_cast %311 : vector<2x16x8x8xf32> to vector<2x8x2x8x8xf32>
    %313 = vector.extract_strided_slice %312 {offsets = [0, 0, 0, 0, 0], sizes = [2, 8, 1, 8, 8], strides = [1, 1, 1, 1, 1]} : vector<2x8x2x8x8xf32> to vector<2x8x1x8x8xf32>
    %314 = vector.shape_cast %313 : vector<2x8x1x8x8xf32> to vector<2x8x8x8xf32>
    %315 = vector.shape_cast %314 : vector<2x8x8x8xf32> to vector<128x8xf32>
    %316 = tpu.concatenate %267, %273, %279, %285, %291, %297, %303, %309, %315 in 1 : vector<128x8xf32>, vector<128x8xf32>, vector<128x8xf32>, vector<128x8xf32>, vector<128x8xf32>, vector<128x8xf32>, vector<128x8xf32>, vector<128x8xf32>, vector<128x8xf32> -> vector<128x72xf32>
    %317 = arith.truncf %316 : vector<128x72xf32> to vector<128x72xbf16>
    %c0_194 = arith.constant 0 : index
    %c0_195 = arith.constant 0 : index
    %318 = vector.load %arg11[%c0_194, %c0_195] : memref<72x8xbf16, #tpu.memory_space<vmem>>, vector<72x8xbf16>
    %cst_196 = arith.constant dense<0.000000e+00> : vector<128x8xf32>
    %319 = tpu.matmul %317, %318, %cst_196 {dimension_numbers = #tpu.dot_dimension_numbers<[1], [0], [0], [1], [0, 0, 1, 1], [], []>} : vector<128x72xbf16>, vector<72x8xbf16>, vector<128x8xf32> -> vector<128x8xf32>
    %c0_197 = arith.constant 0 : index
    %c0_198 = arith.constant 0 : index
    %320 = vector.load %arg12[%c0_197, %c0_198] : memref<1x8xf32, #tpu.memory_space<vmem>>, vector<1x8xf32>
    %321 = vector.broadcast %320 : vector<1x8xf32> to vector<128x8xf32>
    %322 = arith.addf %319, %321 : vector<128x8xf32>
    %323 = vector.shape_cast %322 : vector<128x8xf32> to vector<2x8x8x8xf32>
    %c0_199 = arith.constant 0 : index
    %c0_200 = arith.constant 0 : index
    %c0_201 = arith.constant 0 : index
    %c0_202 = arith.constant 0 : index
    %324 = vector.load %arg13[%c0_199, %c0_200, %c0_201, %c0_202] : memref<2x8x8x8xf32, #tpu.memory_space<vmem>>, vector<2x8x8x8xf32>
    tpu.vector_store %arg13[%c0_199, %c0_200, %c0_201, %c0_202], %323 {strides = array<i32>} : memref<2x8x8x8xf32, #tpu.memory_space<vmem>>, vector<2x8x8x8xf32>,
    return
  }
}

</mosaic_0001>

<bundles_post_ra>
// kernel: tpu_custom_call.1
= control target key start
LH: loop header
LB: loop body
LE: loop exit
PB: predicated region body
PF: predicated region fallthrough
CT: control target
= control target key end

     0   :  { %vm297_vm0 = vcmask 293888   ;;  %vm394_vm1 = vcmask 1041408   ;;  %s11276_s0 = inlined_call_operand.vmem [shape: bf16[512,36], index: 0, kind: input, shape index: {}]   ;;  %s11277_s1 = inlined_call_operand.vmem [shape: bf16[36,8], index: 1, kind: input, shape index: {}]   ;;  %s11278_s2 = inlined_call_operand.vmem [shape: f32[1,8], index: 2, kind: input, shape index: {}]   ;;  %s11279_s3 = inlined_call_operand.vmem [shape: f32[1,1,8], index: 3, kind: input, shape index: {}]   ;;  %s11280_s4 = inlined_call_operand.vmem [shape: f32[1,1,8], index: 4, kind: input, shape index: {}]   ;;  %s11281_s5 = inlined_call_operand.vmem [shape: f32[9,8], index: 5, kind: input, shape index: {}]   ;;  %s11282_s6 = inlined_call_operand.vmem [shape: f32[1,8], index: 6, kind: input, shape index: {}]   ;;  %s11283_s7 = inlined_call_operand.vmem [shape: f32[8,8], index: 7, kind: input, shape index: {}]   ;;  %s11284_s8 = inlined_call_operand.vmem [shape: f32[1,8], index: 8, kind: input, shape index: {}]   ;;  %s11285_s9 = inlined_call_operand.vmem [shape: f32[8,8], index: 9, kind: input, shape index: {}]   ;;  %s11286_s10 = inlined_call_operand.vmem [shape: f32[1,8], index: 10, kind: input, shape index: {}]   ;;  %s11287_s11 = inlined_call_operand.vmem [shape: bf16[72,8], index: 11, kind: input, shape index: {}]   ;;  %s11288_s12 = inlined_call_operand.vmem [shape: f32[1,8], index: 12, kind: input, shape index: {}]   ;;  %s11289_s13 = inlined_call_operand.hbm [shape: f32[2,8,8,8], index: 13, kind: output, shape index: {}]  }
   0x1   :  { %v5416_v0 = vld [vmem:[%s11277_s1] sm:$0xff]   ;;  %v5417_v1 = vld [vmem:[%s11277_s1 + $0x8] sm:$0xff]   ;;  %v5418_v2 = vld [vmem:[%s11277_s1 + $0x10] ss:$0 sps:$4 sm:$0x33]  }
   0x2   :  { %4968 = vmatprep.subr.bf16.mxu0 %v5416_v0  ;;  %v5419_v3 = vld [vmem:[%s11276_s0] sm:$0xff]   ;;  %5074 = vmatprep.subr.bf16.mxu1 %v5416_v0  ;;  %v396_v4 = vsel %vm394_vm1, %v5418_v2, 0  ;;  %v5420_v5 = vld [vmem:[%s11276_s0 + $0x8] sm:$0xff]   ;;  %v5421_v6 = vld [vmem:[%s11276_s0 + $0x10] sm:$0xff]  }
   0x3   :  { %4969 = vmatpush3.bf16.msra.mxu0 %v5416_v0  ;;  %5077 = vmatpush3.bf16.msra.mxu1 %v5416_v0  ;;  %v5422_v7 = vld [vmem:[%s11276_s0 + $0x18] sm:$0xff]   ;;  %v5423_v8 = vld [vmem:[%s11276_s0 + $0x20] sm:$0xff]   ;;  %v5424_v9 = vld [vmem:[%s11276_s0 + $0x28] sm:$0xff]  }
   0x4   :  { %4970 = vmatprep.subr.bf16.mxu0 %v5417_v1  ;;  %4974 = vmatprep.mubr.msk.bf16.mxu0 %vm297_vm0, %v5419_v3  ;;  %v5425_v10 = vld [vmem:[%s11276_s0 + $0x30] sm:$0xff]   ;;  %v5443_v11 = vld [vmem:[%s11276_s0 + $0xc0] sm:$0xff]   ;;  %v5444_v12 = vld [vmem:[%s11276_s0 + $0xc8] sm:$0xff]  }
   0x5   :  { %5075 = vmatprep.subr.bf16.mxu1 %v5417_v1  ;;  %5022 = vmatprep.mubr.msk.bf16.mxu1 %vm297_vm0, %v5443_v11  ;;  %v5445_v13 = vld [vmem:[%s11276_s0 + $0xd0] sm:$0xff]   ;;  %v5426_v14 = vld [vmem:[%s11276_s0 + $0x38] sm:$0xff]   ;;  %v5427_v15 = vld [vmem:[%s11276_s0 + $0x40] sm:$0xff]  }
   0x6   :  { %v5446_v16 = vld [vmem:[%s11276_s0 + $0xd8] sm:$0xff]   ;;  %v5447_v17 = vld [vmem:[%s11276_s0 + $0xe0] sm:$0xff]  }
   0x7   :  { %4971 = vmatpush3.bf16.msra.mxu0 %v5417_v1  ;;  %5078 = vmatpush3.bf16.msra.mxu1 %v5417_v1 }
   0x8   :  { %5080 = vmatprep.subr.msk.bf16.mxu0 %vm394_vm1, %v5418_v2  ;;  %5081 = vmatprep.subr.msk.bf16.mxu1 %vm394_vm1, %v5418_v2 }
   0xb   :  { %4973 = vmatpush3.bf16.msra.mxu0 %v396_v4  ;;  %5079 = vmatpush3.bf16.msra.mxu1 %v396_v4 }
   0xe   :  { %4975 = vmatmul.mubr.msk.bf16.vlgmr.msra.gmra.mrb[0].mxu0 %vm297_vm0, %v5420_v5  ;;  %5023 = vmatmul.mubr.msk.bf16.vlgmr.msra.gmra.mrb[0].mxu1 %vm297_vm0, %v5444_v12 }
   0xf   :  { %4978 = vmatprep.mubr.msk.bf16.mxu0 %vm297_vm0, %v5421_v6  ;;  %5026 = vmatprep.mubr.msk.bf16.mxu1 %vm297_vm0, %v5445_v13 }
  0x16   :  { %4979 = vmatmul.mubr.msk.bf16.gmra.mrb[4].mxu0 %vm297_vm0, %v5422_v7 }
  0x17   :  { %4982 = vmatprep.mubr.msk.bf16.mxu0 %vm297_vm0, %v5423_v8 }
  0x1e   :  { %4983 = vmatmul.mubr.msk.bf16.gmra.mrb[8].mxu0 %vm297_vm0, %v5424_v9 }
  0x1f   :  { %4986 = vmatprep.mubr.msk.bf16.mxu0 %vm297_vm0, %v5425_v10 }
  0x20   :  { %18 = vsyncpa [#allocation4], 0  ;;  %5027 = vmatmul.mubr.msk.bf16.gmra.mrb[4].mxu1 %vm297_vm0, %v5446_v16  ;;  %v5428_v18 = vld [vmem:[%s11276_s0 + $0x48] sm:$0xff]   ;;  %v5429_v20 = vld [vmem:[%s11276_s0 + $0x50] sm:$0xff]   ;;  %vm687_vm2 = vcmask 64512   ;;  %vm1539_vm3 = vcmask 57344  }
  0x21   :  { %5030 = vmatprep.mubr.msk.bf16.mxu1 %vm297_vm0, %v5447_v17  ;;  %v5448_v19 = vld [vmem:[%s11276_s0 + $0xe8] sm:$0xff]   ;;  %v5449_v21 = vld [vmem:[%s11276_s0 + $0xf0] sm:$0xff]   ;;  %v5430_v22 = vld [vmem:[%s11276_s0 + $0x58] sm:$0xff]   ;;  %v11290_v36 = vmov 0.0   ;;  %vm5729_vm4 = vmmov 0   ;;  %vm3504_vm5 = vcmask 1041409  }
  0x22   :  { %v5450_v23 = vld [vmem:[%s11276_s0 + $0xf8] sm:$0xff]   ;;  %v5431_v24 = vld [vmem:[%s11276_s0 + $0x60] sm:$0xff]   ;;  %v5432_v25 = vld [vmem:[%s11276_s0 + $0x68] sm:$0xff]   ;;  %1595 = vst.msk [vmem:[#allocation2 + $0x58] sm:$0x1] %vm1539_vm3, %v11290_v36  ;;  %5038 = vmatprep.subr.mxu1 %v11290_v36  ;;  %s5734_s23 = smov 32  }
  0x23   :  { %v5433_v26 = vld [vmem:[%s11276_s0 + $0x70] sm:$0xff]   ;;  %v5434_v27 = vld [vmem:[%s11276_s0 + $0x78] sm:$0xff]   ;;  %v5435_v28 = vld [vmem:[%s11276_s0 + $0x80] sm:$0xff]   ;;  %1538 = vst.msk [vmem:[#allocation2] sm:$0xff] %vm687_vm2, %v11290_v36  ;;  %s5736_s24 = smov 48   ;;  %s5738_s29 = smov 64  }
  0x24   :  { %v5436_v29 = vld [vmem:[%s11276_s0 + $0x88] sm:$0xff]   ;;  %v5437_v30 = vld [vmem:[%s11276_s0 + $0x90] sm:$0xff]   ;;  %v5438_v31 = vld [vmem:[%s11276_s0 + $0x98] sm:$0xff]   ;;  %1540 = vst.msk [vmem:[#allocation2 + $0x8] sm:$0x1] %vm1539_vm3, %v11290_v36  ;;  %vm4694_vm6 = vcmask 1043456  }
  0x25   :  { %v5439_v32 = vld [vmem:[%s11276_s0 + $0xa0] sm:$0xff]   ;;  %v5440_v33 = vld [vmem:[%s11276_s0 + $0xa8] sm:$0xff]   ;;  %v5441_v34 = vld [vmem:[%s11276_s0 + $0xb0] sm:$0xff]   ;;  %1541 = vst.msk [vmem:[#allocation2 + $0x10] sm:$0xff] %vm687_vm2, %v11290_v36  ;;  %vm4499_vm7 = vcmask 130048   ;;  %vm4516_vm8 = vcmask 195584  }
  0x26   :  { %4987 = vmatmul.mubr.msk.bf16.gmra.mrb[12].mxu0 %vm297_vm0, %v5426_v14  ;;  %v5442_v35 = vld [vmem:[%s11276_s0 + $0xb8] sm:$0xff]   ;;  %1542 = vst.msk [vmem:[#allocation2 + $0x18] sm:$0x1] %vm1539_vm3, %v11290_v36  ;;  %1544 = vst.msk [vmem:[#allocation2 + $0x248] sm:$0x1] %vm1539_vm3, %v11290_v36  ;;  %vm4533_vm9 = vcmask 261120  }
  0x27   :  { %4990 = vmatprep.mubr.msk.bf16.mxu0 %vm297_vm0, %v5427_v15  ;;  %1543 = vst.msk [vmem:[#allocation2 + $0x240] sm:$0xff] %vm687_vm2, %v11290_v36  ;;  %1545 = vst.msk [vmem:[#allocation2 + $0x250] sm:$0xff] %vm687_vm2, %v11290_v36  ;;  %v6128_v37 = vld [vmem:[%s11278_s2] ss:$0 sm:$0xff]  ;;  %s5735_s2 = smov 40   ;;  %vm4550_vm10 = vcmask 326656  }
  0x28   :  { %5031 = vmatmul.mubr.msk.bf16.gmra.mrb[8].mxu1 %vm297_vm0, %v5448_v19  ;;  %1546 = vst.msk [vmem:[#allocation2 + $0x258] sm:$0x1] %vm1539_vm3, %v11290_v36  ;;  %1549 = vst.msk [vmem:[#allocation2 + $0x228] sm:$0x1] %vm1539_vm3, %v11290_v36  ;;  %vm4567_vm11 = vcmask 392192   ;;  %vm4584_vm12 = vcmask 457728  }
  0x29   :  { %5034 = vmatprep.mubr.msk.bf16.mxu1 %vm297_vm0, %v5449_v21  ;;  %1548 = vst.msk [vmem:[#allocation2 + $0x220] sm:$0xff] %vm687_vm2, %v11290_v36  ;;  %1550 = vst.msk [vmem:[#allocation2 + $0x230] sm:$0xff] %vm687_vm2, %v11290_v36  ;;  %vm4601_vm13 = vcmask 523264   ;;  %vm4669_vm14 = vcmask 588800  }
  0x2a   :  { %1551 = vst.msk [vmem:[#allocation2 + $0x238] sm:$0x1] %vm1539_vm3, %v11290_v36  ;;  %1553 = vst.msk [vmem:[#allocation2 + $0x468] sm:$0x1] %vm1539_vm3, %v11290_v36 }
  0x2b   :  { %1552 = vst.msk [vmem:[#allocation2 + $0x460] sm:$0xff] %vm687_vm2, %v11290_v36  ;;  %1554 = vst.msk [vmem:[#allocation2 + $0x470] sm:$0xff] %vm687_vm2, %v11290_v36 }
  0x2c   :  { %1555 = vst.msk [vmem:[#allocation2 + $0x478] sm:$0x1] %vm1539_vm3, %v11290_v36  ;;  %1557 = vst.msk [vmem:[#allocation2 + $0x20] sm:$0x1] %vm1539_vm3, %v11290_v36 }
  0x2d   :  { %1558 = vst.msk [vmem:[#allocation2 + $0x40] sm:$0x1] %vm1539_vm3, %v11290_v36  ;;  %1559 = vst.msk [vmem:[#allocation2 + $0x60] sm:$0x1] %vm1539_vm3, %v11290_v36 }
  0x2e   :  { %4991 = vmatmul.mubr.msk.bf16.gmra.mrb[16].mxu0 %vm297_vm0, %v5428_v18  ;;  %1560 = vst.msk [vmem:[#allocation2 + $0x80] sm:$0x1] %vm1539_vm3, %v11290_v36  ;;  %1561 = vst.msk [vmem:[#allocation2 + $0xa0] sm:$0x1] %vm1539_vm3, %v11290_v36 }
  0x2f   :  { %4994 = vmatprep.mubr.msk.bf16.mxu0 %vm297_vm0, %v5429_v20  ;;  %1562 = vst.msk [vmem:[#allocation2 + $0xc0] sm:$0x1] %vm1539_vm3, %v11290_v36  ;;  %1563 = vst.msk [vmem:[#allocation2 + $0xe0] sm:$0x1] %vm1539_vm3, %v11290_v36 }
  0x30   :  { %5035 = vmatmul.mubr.msk.bf16.gmra.mrb[12].mxu1 %vm297_vm0, %v5450_v23  ;;  %1564 = vst.msk [vmem:[#allocation2 + $0x100] sm:$0x1] %vm1539_vm3, %v11290_v36  ;;  %1565 = vst.msk [vmem:[#allocation2 + $0x120] sm:$0x1] %vm1539_vm3, %v11290_v36 }
  0x31   :  { %1566 = vst.msk [vmem:[#allocation2 + $0x140] sm:$0x1] %vm1539_vm3, %v11290_v36  ;;  %1567 = vst.msk [vmem:[#allocation2 + $0x160] sm:$0x1] %vm1539_vm3, %v11290_v36 }
  0x32   :  { %1568 = vst.msk [vmem:[#allocation2 + $0x180] sm:$0x1] %vm1539_vm3, %v11290_v36  ;;  %1569 = vst.msk [vmem:[#allocation2 + $0x1a0] sm:$0x1] %vm1539_vm3, %v11290_v36 }
  0x33   :  { %1570 = vst.msk [vmem:[#allocation2 + $0x1c0] sm:$0x1] %vm1539_vm3, %v11290_v36  ;;  %1571 = vst.msk [vmem:[#allocation2 + $0x1e0] sm:$0x1] %vm1539_vm3, %v11290_v36 }
  0x34   :  { %1572 = vst.msk [vmem:[#allocation2 + $0x200] sm:$0x1] %vm1539_vm3, %v11290_v36  ;;  %1575 = vst.msk [vmem:[#allocation2 + $0x260] sm:$0x1] %vm1539_vm3, %v11290_v36 }
  0x35   :  { %1576 = vst.msk [vmem:[#allocation2 + $0x280] sm:$0x1] %vm1539_vm3, %v11290_v36  ;;  %1577 = vst.msk [vmem:[#allocation2 + $0x2a0] sm:$0x1] %vm1539_vm3, %v11290_v36 }
  0x36   :  { %4995 = vmatmul.mubr.msk.bf16.gmra.mrb[20].mxu0 %vm297_vm0, %v5430_v22  ;;  %1578 = vst.msk [vmem:[#allocation2 + $0x2c0] sm:$0x1] %vm1539_vm3, %v11290_v36  ;;  %1579 = vst.msk [vmem:[#allocation2 + $0x2e0] sm:$0x1] %vm1539_vm3, %v11290_v36 }
  0x37   :  { %4998 = vmatprep.mubr.msk.bf16.mxu0 %vm297_vm0, %v5431_v24  ;;  %1580 = vst.msk [vmem:[#allocation2 + $0x300] sm:$0x1] %vm1539_vm3, %v11290_v36  ;;  %1581 = vst.msk [vmem:[#allocation2 + $0x320] sm:$0x1] %vm1539_vm3, %v11290_v36 }
  0x38   :  { %1582 = vst.msk [vmem:[#allocation2 + $0x340] sm:$0x1] %vm1539_vm3, %v11290_v36  ;;  %1583 = vst.msk [vmem:[#allocation2 + $0x360] sm:$0x1] %vm1539_vm3, %v11290_v36 }
  0x39   :  { %1584 = vst.msk [vmem:[#allocation2 + $0x380] sm:$0x1] %vm1539_vm3, %v11290_v36  ;;  %1585 = vst.msk [vmem:[#allocation2 + $0x3a0] sm:$0x1] %vm1539_vm3, %v11290_v36 }
  0x3a   :  { %1586 = vst.msk [vmem:[#allocation2 + $0x3c0] sm:$0x1] %vm1539_vm3, %v11290_v36  ;;  %1587 = vst.msk [vmem:[#allocation2 + $0x3e0] sm:$0x1] %vm1539_vm3, %v11290_v36 }
  0x3b   :  { %1588 = vst.msk [vmem:[#allocation2 + $0x400] sm:$0x1] %vm1539_vm3, %v11290_v36  ;;  %1589 = vst.msk [vmem:[#allocation2 + $0x420] sm:$0x1] %vm1539_vm3, %v11290_v36 }
  0x3c   :  { %1590 = vst.msk [vmem:[#allocation2 + $0x440] sm:$0x1] %vm1539_vm3, %v11290_v36  ;;  %1594 = vst.msk [vmem:[#allocation2 + $0x38] sm:$0x1] %vm1539_vm3, %v11290_v36 }
  0x3d   :  { %1596 = vst.msk [vmem:[#allocation2 + $0x78] sm:$0x1] %vm1539_vm3, %v11290_v36  ;;  %1597 = vst.msk [vmem:[#allocation2 + $0x98] sm:$0x1] %vm1539_vm3, %v11290_v36 }
  0x3e   :  { %4999 = vmatmul.mubr.msk.bf16.gmra.mrb[24].mxu0 %vm297_vm0, %v5432_v25  ;;  %1598 = vst.msk [vmem:[#allocation2 + $0xb8] sm:$0x1] %vm1539_vm3, %v11290_v36  ;;  %1599 = vst.msk [vmem:[#allocation2 + $0xd8] sm:$0x1] %vm1539_vm3, %v11290_v36 }
  0x3f   :  { %5002 = vmatprep.mubr.msk.bf16.mxu0 %vm297_vm0, %v5433_v26  ;;  %1600 = vst.msk [vmem:[#allocation2 + $0xf8] sm:$0x1] %vm1539_vm3, %v11290_v36  ;;  %1601 = vst.msk [vmem:[#allocation2 + $0x118] sm:$0x1] %vm1539_vm3, %v11290_v36 }
  0x40   :  { %1602 = vst.msk [vmem:[#allocation2 + $0x138] sm:$0x1] %vm1539_vm3, %v11290_v36  ;;  %1603 = vst.msk [vmem:[#allocation2 + $0x158] sm:$0x1] %vm1539_vm3, %v11290_v36 }
  0x41   :  { %1604 = vst.msk [vmem:[#allocation2 + $0x178] sm:$0x1] %vm1539_vm3, %v11290_v36  ;;  %1605 = vst.msk [vmem:[#allocation2 + $0x198] sm:$0x1] %vm1539_vm3, %v11290_v36 }
  0x42   :  { %1606 = vst.msk [vmem:[#allocation2 + $0x1b8] sm:$0x1] %vm1539_vm3, %v11290_v36  ;;  %1607 = vst.msk [vmem:[#allocation2 + $0x1d8] sm:$0x1] %vm1539_vm3, %v11290_v36 }
  0x43   :  { %1608 = vst.msk [vmem:[#allocation2 + $0x1f8] sm:$0x1] %vm1539_vm3, %v11290_v36  ;;  %1609 = vst.msk [vmem:[#allocation2 + $0x218] sm:$0x1] %vm1539_vm3, %v11290_v36 }
  0x44   :  { %1612 = vst.msk [vmem:[#allocation2 + $0x278] sm:$0x1] %vm1539_vm3, %v11290_v36  ;;  %1613 = vst.msk [vmem:[#allocation2 + $0x298] sm:$0x1] %vm1539_vm3, %v11290_v36 }
  0x45   :  { %1614 = vst.msk [vmem:[#allocation2 + $0x2b8] sm:$0x1] %vm1539_vm3, %v11290_v36  ;;  %1615 = vst.msk [vmem:[#allocation2 + $0x2d8] sm:$0x1] %vm1539_vm3, %v11290_v36 }
  0x46   :  { %5003 = vmatmul.mubr.msk.bf16.gmra.mrb[28].mxu0 %vm297_vm0, %v5434_v27  ;;  %1616 = vst.msk [vmem:[#allocation2 + $0x2f8] sm:$0x1] %vm1539_vm3, %v11290_v36  ;;  %1617 = vst.msk [vmem:[#allocation2 + $0x318] sm:$0x1] %vm1539_vm3, %v11290_v36 }
  0x47   :  { %5006 = vmatprep.mubr.msk.bf16.mxu0 %vm297_vm0, %v5435_v28  ;;  %1618 = vst.msk [vmem:[#allocation2 + $0x338] sm:$0x1] %vm1539_vm3, %v11290_v36  ;;  %1619 = vst.msk [vmem:[#allocation2 + $0x358] sm:$0x1] %vm1539_vm3, %v11290_v36 }
  0x48   :  { %1620 = vst.msk [vmem:[#allocation2 + $0x378] sm:$0x1] %vm1539_vm3, %v11290_v36  ;;  %1621 = vst.msk [vmem:[#allocation2 + $0x398] sm:$0x1] %vm1539_vm3, %v11290_v36 }
  0x49   :  { %1622 = vst.msk [vmem:[#allocation2 + $0x3b8] sm:$0x1] %vm1539_vm3, %v11290_v36  ;;  %1623 = vst.msk [vmem:[#allocation2 + $0x3d8] sm:$0x1] %vm1539_vm3, %v11290_v36 }
  0x4a   :  { %1624 = vst.msk [vmem:[#allocation2 + $0x3f8] sm:$0x1] %vm1539_vm3, %v11290_v36  ;;  %1625 = vst.msk [vmem:[#allocation2 + $0x418] sm:$0x1] %vm1539_vm3, %v11290_v36 }
  0x4b   :  { %1626 = vst.msk [vmem:[#allocation2 + $0x438] sm:$0x1] %vm1539_vm3, %v11290_v36  ;;  %1627 = vst.msk [vmem:[#allocation2 + $0x458] sm:$0x1] %vm1539_vm3, %v11290_v36 }
  0x4c   :  { %1556 = vst.msk [vmem:[#allocation2] sm:$0x1] %vm1539_vm3, %v11290_v36  ;;  %1573 = vst.msk [vmem:[#allocation2 + $0x220] sm:$0x1] %vm1539_vm3, %v11290_v36 }
  0x4d   :  { %1574 = vst.msk [vmem:[#allocation2 + $0x240] sm:$0x1] %vm1539_vm3, %v11290_v36  ;;  %1591 = vst.msk [vmem:[#allocation2 + $0x460] sm:$0x1] %vm1539_vm3, %v11290_v36 }
  0x4e   :  { %5007 = vmatmul.mubr.msk.bf16.gmra.mrb[32].mxu0 %vm297_vm0, %v5436_v29  ;;  %1593 = vst.msk [vmem:[#allocation2 + $0x18] sm:$0x1] %vm1539_vm3, %v11290_v36  ;;  %1610 = vst.msk [vmem:[#allocation2 + $0x238] sm:$0x1] %vm1539_vm3, %v11290_v36 }
  0x4f   :  { %5010 = vmatprep.mubr.msk.bf16.mxu0 %vm297_vm0, %v5437_v30  ;;  %1611 = vst.msk [vmem:[#allocation2 + $0x258] sm:$0x1] %vm1539_vm3, %v11290_v36  ;;  %1628 = vst.msk [vmem:[#allocation2 + $0x478] sm:$0x1] %vm1539_vm3, %v11290_v36 }
  0x56   :  { %5011 = vmatmul.mubr.msk.bf16.gmra.mrb[36].mxu0 %vm297_vm0, %v5438_v31 }
  0x57   :  { %5014 = vmatprep.mubr.msk.bf16.mxu0 %vm297_vm0, %v5439_v32 }
  0x5e   :  { %5015 = vmatmul.mubr.msk.bf16.gmra.mrb[40].mxu0 %vm297_vm0, %v5440_v33 }
  0x5f   :  { %5018 = vmatprep.mubr.msk.bf16.mxu0 %vm297_vm0, %v5441_v34 }
  0x66   :  { %5019 = vmatmul.mubr.msk.bf16.gmra.mrb[44].mxu0 %vm297_vm0, %v5442_v35 }
  0xe1   :  { %v4976_v38 = vpop.f32.mrb[0].mxu0  ;;  %v6187_v19 = vpop.f32.mrb[0].mxu1 }
  0xe2   :  { %v432_v39 = vpop.f32.mrb[1].mxu0  ;;  %v6131_v40 = vadd.f32 %v4976_v38, %v6128_v37  ;;  %v6192_v24 = vpop.f32.mrb[1].mxu1 }
  0xe3   :  { %v6134_v41 = vadd.f32 %v6128_v37, %v432_v39  ;;  %v4977_v42 = vpop.f32.mrb[2].mxu0  ;;  %v6199_v29 = vpop.f32.mrb[2].mxu1 }
  0xe4   :  { %v435_v43 = vpop.f32.mrb[3].mxu0  ;;  %v6139_v45 = vadd.f32 %v4977_v42, %v6128_v37  ;;  %v828_v47 = vmul.f32 %v6131_v40, %v6131_v40  ;;  %v691_v52 = vsel %vm687_vm2, %v6131_v40, 0.0  ;;  %v6205_v34 = vpop.f32.mrb[3].mxu1 }
  0xe5   :  { %v826_v44 = vmul.f32 %v6134_v41, %v6134_v41  ;;  %v6142_v46 = vadd.f32 %v6128_v37, %v435_v43  ;;  %v688_v48 = vsel %vm687_vm2, %v6134_v41, 0.0 }
  0xe6   :  { %v829_v54 = vmul.f32 %v6139_v45, %v6139_v45  ;;  %v893_v60 = vsel %vm687_vm2, %v828_v47, 0.0  ;;  %v693_v61 = vsel %vm687_vm2, %v6139_v45, 0.0 }
  0xe7   :  { %v689_v49 = vsel %vm687_vm2, %v6142_v46, 0.0  ;;  %v827_v50 = vmul.f32 %v6142_v46, %v6142_v46  ;;  %v890_v53 = vsel %vm687_vm2, %v826_v44, 0.0 }
  0xe8   :  { %v690_v51 = vadd.f32 %v689_v49, %v688_v48  ;;  %v895_v4 = vsel %vm687_vm2, %v829_v54, 0.0 }
  0xe9   :  { %v891_v55 = vsel %vm687_vm2, %v827_v50, 0.0  ;;  %v4980_v56 = vpop.f32.mrb[4].mxu0 }
  0xea   :  { %v692_v57 = vadd.f32 %v691_v52, %v690_v51  ;;  %v892_v58 = vadd.f32 %v891_v55, %v890_v53  ;;  %v448_v59 = vpop.f32.mrb[5].mxu0  ;;  %v6165_v1 = vadd.f32 %v4980_v56, %v6128_v37 }
  0xeb   :  { %v6162_v62 = vadd.f32 %v6128_v37, %v448_v59  ;;  %v4981_v63 = vpop.f32.mrb[6].mxu0 }
  0xec   :  { %v894_v0 = vadd.f32 %v893_v60, %v892_v58  ;;  %v694_v2 = vadd.f32 %v693_v61, %v692_v57  ;;  %v451_v3 = vpop.f32.mrb[7].mxu0  ;;  %v6176_v10 = vadd.f32 %v4981_v63, %v6128_v37  ;;  %v832_v13 = vmul.f32 %v6165_v1, %v6165_v1 }
  0xed   :  { %v695_v5 = vsel %vm687_vm2, %v6162_v62, 0.0  ;;  %v830_v6 = vmul.f32 %v6162_v62, %v6162_v62  ;;  %v6173_v7 = vadd.f32 %v6128_v37, %v451_v3  ;;  %v699_v17 = vsel %vm687_vm2, %v6165_v1, 0.0 }
  0xee   :  { %v696_v8 = vadd.f32 %v695_v5, %v694_v2  ;;  %v896_v9 = vadd.f32 %v895_v4, %v894_v0  ;;  %v833_v20 = vmul.f32 %v6176_v10, %v6176_v10  ;;  %v701_v25 = vsel %vm687_vm2, %v6176_v10, 0.0 }
  0xef   :  { %v897_v11 = vsel %vm687_vm2, %v830_v6, 0.0  ;;  %v697_v12 = vsel %vm687_vm2, %v6173_v7, 0.0  ;;  %v831_v16 = vmul.f32 %v6173_v7, %v6173_v7  ;;  %v901_v30 = vsel %vm687_vm2, %v832_v13, 0.0 }
  0xf0   :  { %v898_v14 = vadd.f32 %v897_v11, %v896_v9  ;;  %v698_v15 = vadd.f32 %v697_v12, %v696_v8  ;;  %v903_v43 = vsel %vm687_vm2, %v833_v20, 0.0 }
  0xf1   :  { %v4984_v18 = vpop.f32.mrb[8].mxu0  ;;  %v899_v22 = vsel %vm687_vm2, %v831_v16, 0.0 }
  0xf2   :  { %v700_v21 = vadd.f32 %v699_v17, %v698_v15  ;;  %v464_v23 = vpop.f32.mrb[9].mxu0  ;;  %v900_v26 = vadd.f32 %v899_v22, %v898_v14  ;;  %v6203_v31 = vadd.f32 %v4984_v18, %v6128_v37 }
  0xf3   :  { %v6197_v27 = vadd.f32 %v6128_v37, %v464_v23  ;;  %v4985_v28 = vpop.f32.mrb[10].mxu0  ;;  %v6228_v58 = vpop.f32.mrb[4].mxu1 }
  0xf4   :  { %v702_v32 = vadd.f32 %v701_v25, %v700_v21  ;;  %v467_v33 = vpop.f32.mrb[11].mxu0  ;;  %v902_v35 = vadd.f32 %v901_v30, %v900_v26  ;;  %v6216_v47 = vadd.f32 %v4985_v28, %v6128_v37  ;;  %v707_v53 = vsel %vm687_vm2, %v6203_v31, 0.0  ;;  %v6230_v61 = vpop.f32.mrb[5].mxu1 }
  0xf5   :  { %v703_v38 = vsel %vm687_vm2, %v6197_v27, 0.0  ;;  %v834_v39 = vmul.f32 %v6197_v27, %v6197_v27  ;;  %v6212_v42 = vadd.f32 %v6128_v37, %v467_v33  ;;  %v836_v54 = vmul.f32 %v6203_v31, %v6203_v31  ;;  %v6237_v4 = vpop.f32.mrb[6].mxu1 }
  0xf6   :  { %v704_v44 = vadd.f32 %v703_v38, %v702_v32  ;;  %v904_v48 = vadd.f32 %v903_v43, %v902_v35  ;;  %v709_v63 = vsel %vm687_vm2, %v6216_v47, 0.0  ;;  %v6239_v8 = vpop.f32.mrb[7].mxu1  ;;  %v837_v11 = vmul.f32 %v6216_v47, %v6216_v47 }
  0xf7   :  { %v905_v49 = vsel %vm687_vm2, %v834_v39, 0.0  ;;  %v705_v50 = vsel %vm687_vm2, %v6212_v42, 0.0  ;;  %v835_v51 = vmul.f32 %v6212_v42, %v6212_v42  ;;  %v909_v9 = vsel %vm687_vm2, %v836_v54, 0.0 }
  0xf8   :  { %v706_v52 = vadd.f32 %v705_v50, %v704_v44  ;;  %v906_v55 = vadd.f32 %v905_v49, %v904_v48  ;;  %v911_v17 = vsel %vm687_vm2, %v837_v11, 0.0 }
  0xf9   :  { %v907_v56 = vsel %vm687_vm2, %v835_v51, 0.0  ;;  %v4988_v57 = vpop.f32.mrb[12].mxu0 }
  0xfa   :  { %v708_v59 = vadd.f32 %v707_v53, %v706_v52  ;;  %v480_v60 = vpop.f32.mrb[13].mxu0  ;;  %v908_v0 = vadd.f32 %v907_v56, %v906_v55  ;;  %v6259_v26 = vadd.f32 %v4988_v57, %v6128_v37 }
  0xfb   :  { %v6235_v2 = vadd.f32 %v6128_v37, %v480_v60  ;;  %v4989_v3 = vpop.f32.mrb[14].mxu0  ;;  %v6254_v21 = vpop.f32.mrb[8].mxu1 }
  0xfc   :  { %v710_v5 = vadd.f32 %v709_v63, %v708_v59  ;;  %v483_v6 = vpop.f32.mrb[15].mxu0  ;;  %v910_v14 = vadd.f32 %v909_v9, %v908_v0  ;;  %v6256_v25 = vpop.f32.mrb[9].mxu1  ;;  %11676 = vst [vmem:[#allocation8_spill] sm:$0xff] %v6259_v26  ;;  %v715_v44 = vsel %vm687_vm2, %v6259_v26, 0.0  ;;  %v6271_v48 = vadd.f32 %v4989_v3, %v6128_v37 }
  0xfd   :  { %11674 = vst [vmem:[#allocation6_spill] sm:$0xff] %v6235_v2  ;;  %v711_v12 = vsel %vm687_vm2, %v6235_v2, 0.0  ;;  %v6247_v13 = vadd.f32 %v6128_v37, %v483_v6  ;;  %v838_v15 = vmul.f32 %v6235_v2, %v6235_v2  ;;  %v6264_v33 = vpop.f32.mrb[10].mxu1  ;;  %v840_v51 = vmul.f32 %v6259_v26, %v6259_v26 }
  0xfe   :  { %v712_v16 = vadd.f32 %v711_v12, %v710_v5  ;;  %v912_v22 = vadd.f32 %v911_v17, %v910_v14  ;;  %v6266_v39 = vpop.f32.mrb[11].mxu1  ;;  %11677 = vst [vmem:[#allocation9_spill] sm:$0xff] %v6271_v48  ;;  %v717_v59 = vsel %vm687_vm2, %v6271_v48, 0.0  ;;  %v841_v9 = vmul.f32 %v6271_v48, %v6271_v48 }
  0xff   :  { %11675 = vst [vmem:[#allocation7_spill] sm:$0xff] %v6247_v13  ;;  %v713_v18 = vsel %vm687_vm2, %v6247_v13, 0.0  ;;  %v913_v28 = vsel %vm687_vm2, %v838_v15, 0.0  ;;  %v839_v30 = vmul.f32 %v6247_v13, %v6247_v13  ;;  %v917_v6 = vsel %vm687_vm2, %v840_v51, 0.0 }
 0x100   :  { %v714_v35 = vadd.f32 %v713_v18, %v712_v16  ;;  %v914_v43 = vadd.f32 %v913_v28, %v912_v22  ;;  %v919_v17 = vsel %vm687_vm2, %v841_v9, 0.0 }
 0x101   :  { %v4992_v20 = vpop.f32.mrb[16].mxu0  ;;  %v915_v49 = vsel %vm687_vm2, %v839_v30, 0.0 }
 0x102   :  { %v496_v23 = vpop.f32.mrb[17].mxu0  ;;  %v716_v50 = vadd.f32 %v715_v44, %v714_v35  ;;  %v916_v55 = vadd.f32 %v915_v49, %v914_v43  ;;  %v6309_v30 = vadd.f32 %v4992_v20, %v6128_v37 }
 0x103   :  { %v4993_v32 = vpop.f32.mrb[18].mxu0  ;;  %v6277_v52 = vadd.f32 %v6128_v37, %v496_v23  ;;  %v6279_v54 = vpop.f32.mrb[12].mxu1 }
 0x104   :  { %v499_v38 = vpop.f32.mrb[19].mxu0  ;;  %v6281_v57 = vpop.f32.mrb[13].mxu1  ;;  %v718_v0 = vadd.f32 %v717_v59, %v716_v50  ;;  %v918_v14 = vadd.f32 %v917_v6, %v916_v55  ;;  %11680 = vst [vmem:[#allocation12_spill] sm:$0xff] %v6309_v30  ;;  %v723_v51 = vsel %vm687_vm2, %v6309_v30, 0.0  ;;  %v6321_v55 = vadd.f32 %v4993_v32, %v6128_v37 }
 0x105   :  { %11678 = vst [vmem:[#allocation10_spill] sm:$0xff] %v6277_v52  ;;  %v6287_v63 = vpop.f32.mrb[14].mxu1  ;;  %v719_v11 = vsel %vm687_vm2, %v6277_v52, 0.0  ;;  %v6297_v12 = vadd.f32 %v6128_v37, %v499_v38  ;;  %v842_v15 = vmul.f32 %v6277_v52, %v6277_v52 }
 0x106   :  { %v6289_v5 = vpop.f32.mrb[15].mxu1  ;;  %v720_v16 = vadd.f32 %v719_v11, %v718_v0  ;;  %v920_v23 = vadd.f32 %v919_v17, %v918_v14  ;;  %11681 = vst [vmem:[#allocation13_spill] sm:$0xff] %v6321_v55  ;;  %v844_v0 = vmul.f32 %v6309_v30, %v6309_v30 }
 0x107   :  { %11679 = vst [vmem:[#allocation11_spill] sm:$0xff] %v6297_v12  ;;  %v721_v18 = vsel %vm687_vm2, %v6297_v12, 0.0  ;;  %v921_v35 = vsel %vm687_vm2, %v842_v15, 0.0  ;;  %v843_v38 = vmul.f32 %v6297_v12, %v6297_v12  ;;  %v725_v15 = vsel %vm687_vm2, %v6321_v55, 0.0 }
 0x108   :  { %v722_v44 = vadd.f32 %v721_v18, %v720_v16  ;;  %v922_v50 = vadd.f32 %v921_v35, %v920_v23  ;;  %v925_v18 = vsel %vm687_vm2, %v844_v0, 0.0  ;;  %v845_v23 = vmul.f32 %v6321_v55, %v6321_v55 }
 0x109   :  { %v4996_v53 = vpop.f32.mrb[20].mxu0  ;;  %v923_v20 = vsel %vm687_vm2, %v843_v38, 0.0 }
 0x10a   :  { %v512_v56 = vpop.f32.mrb[21].mxu0  ;;  %v724_v59 = vadd.f32 %v723_v51, %v722_v44  ;;  %v924_v11 = vadd.f32 %v923_v20, %v922_v50  ;;  %v6349_v44 = vadd.f32 %v6187_v19, %v6128_v37  ;;  %v6354_v51 = vadd.f32 %v4996_v53, %v6128_v37 }
 0x10b   :  { %v6285_v60 = vpop.f32.mrb[22].mxu0  ;;  %v6327_v6 = vadd.f32 %v6128_v37, %v512_v56  ;;  %v927_v0 = vsel %vm687_vm2, %v845_v23, 0.0 }
 0x10c   :  { %v515_v3 = vpop.f32.mrb[23].mxu0  ;;  %v726_v32 = vadd.f32 %v725_v15, %v724_v59  ;;  %v926_v38 = vadd.f32 %v925_v18, %v924_v11  ;;  %11684 = vst [vmem:[#allocation16_spill] sm:$0xff] %v6349_v44  ;;  %11685 = vst [vmem:[#allocation17_spill] sm:$0xff] %v6354_v51  ;;  %v6358_v59 = vadd.f32 %v6128_v37, %v6192_v24  ;;  %v6376_v36 = vsel %vm687_vm2, %v6349_v44, 0.0 }
 0x10d   :  { %11682 = vst [vmem:[#allocation14_spill] sm:$0xff] %v6327_v6  ;;  %v727_v56 = vsel %vm687_vm2, %v6327_v6, 0.0  ;;  %v6345_v35 = vadd.f32 %v6128_v37, %v515_v3  ;;  %v846_v50 = vmul.f32 %v6327_v6, %v6327_v6  ;;  %v876_v53 = vmul.f32 %v6349_v44, %v6349_v44 }
 0x10e   :  { %v728_v20 = vadd.f32 %v727_v56, %v726_v32  ;;  %11686 = vst [vmem:[#allocation18_spill] sm:$0xff] %v6358_v59  ;;  %v928_v15 = vadd.f32 %v927_v0, %v926_v38  ;;  %v848_v38 = vmul.f32 %v6354_v51, %v6354_v51 }
 0x10f   :  { %11683 = vst [vmem:[#allocation15_spill] sm:$0xff] %v6345_v35  ;;  %v729_v3 = vsel %vm687_vm2, %v6345_v35, 0.0  ;;  %v847_v19 = vmul.f32 %v6345_v35, %v6345_v35  ;;  %v929_v32 = vsel %vm687_vm2, %v846_v50, 0.0  ;;  %v6385_v50 = vsel %vm687_vm2, %v6358_v59, 0.0 }
 0x110   :  { %v730_v0 = vadd.f32 %v729_v3, %v728_v20  ;;  %v6398_v20 = vmul.f32 %v6358_v59, %v6358_v59  ;;  %v731_v3 = vsel %vm687_vm2, %v6354_v51, 0.0  ;;  %v6404_v30 = vsel %vm687_vm2, %v876_v53, 0.0 }
 0x111   :  { %v6304_v22 = vpop.f32.mrb[24].mxu0  ;;  %v931_v55 = vsel %vm687_vm2, %v847_v19, 0.0  ;;  %v933_v51 = vsel %vm687_vm2, %v848_v38, 0.0 }
 0x112   :  { %v6306_v28 = vpop.f32.mrb[25].mxu0 }
 0x113   :  { %v6314_v43 = vpop.f32.mrb[26].mxu0  ;;  %v6425_v38 = vadd.f32 %v6128_v37, %v6306_v28 }
 0x114   :  { %v6316_v49 = vpop.f32.mrb[27].mxu0 }
 0x115   :  { %11692 = vst [vmem:[#allocation24_spill] sm:$0xff] %v6425_v38 }
 0x119   :  { %v6329_v9 = vpop.f32.mrb[28].mxu0 }
 0x11a   :  { %v6331_v14 = vpop.f32.mrb[29].mxu0 }
 0x11b   :  { %v6335_v16 = vpop.f32.mrb[30].mxu0 }
 0x11c   :  { %v6337_v17 = vpop.f32.mrb[31].mxu0 }
 0x121   :  { %v5008_v11 = vpop.f32.mrb[32].mxu0 }
 0x122   :  { %v560_v18 = vpop.f32.mrb[33].mxu0  ;;  %v6369_v56 = vadd.f32 %v5008_v11, %v6128_v37  ;;  %v6389_v11 = vadd.f32 %v6285_v60, %v6128_v37 }
 0x123   :  { %v6372_v24 = vadd.f32 %v6128_v37, %v560_v18  ;;  %v5009_v23 = vpop.f32.mrb[34].mxu0 }
 0x124   :  { %11687 = vst [vmem:[#allocation19_spill] sm:$0xff] %v6369_v56  ;;  %v6381_v35 = vadd.f32 %v5009_v23, %v6128_v37  ;;  %v563_v6 = vpop.f32.mrb[35].mxu0  ;;  %11690 = vst [vmem:[#allocation22_spill] sm:$0xff] %v6389_v11  ;;  %v930_v23 = vadd.f32 %v929_v32, %v928_v15  ;;  %v860_v60 = vmul.f32 %v6369_v56, %v6369_v56  ;;  %v733_v32 = vsel %vm687_vm2, %v6389_v11, 0.0 }
 0x125   :  { %11688 = vst [vmem:[#allocation20_spill] sm:$0xff] %v6372_v24  ;;  %v858_v18 = vmul.f32 %v6372_v24, %v6372_v24  ;;  %v6394_v44 = vadd.f32 %v6128_v37, %v563_v6  ;;  %v757_v6 = vsel %vm687_vm2, %v6372_v24, 0.0  ;;  %v732_v15 = vadd.f32 %v731_v3, %v730_v0 }
 0x126   :  { %11689 = vst [vmem:[#allocation21_spill] sm:$0xff] %v6381_v35  ;;  %v861_v19 = vmul.f32 %v6381_v35, %v6381_v35  ;;  %v760_v52 = vsel %vm687_vm2, %v6369_v56, 0.0  ;;  %v932_v13 = vadd.f32 %v931_v55, %v930_v23  ;;  %v762_v28 = vsel %vm687_vm2, %v6381_v35, 0.0 }
 0x127   :  { %11691 = vst [vmem:[#allocation23_spill] sm:$0xff] %v6394_v44  ;;  %v758_v12 = vsel %vm687_vm2, %v6394_v44, 0.0  ;;  %v859_v59 = vmul.f32 %v6394_v44, %v6394_v44  ;;  %v959_v24 = vsel %vm687_vm2, %v858_v18, 0.0  ;;  %v962_v18 = vsel %vm687_vm2, %v860_v60, 0.0 }
 0x128   :  { %v759_v53 = vadd.f32 %v758_v12, %v757_v6  ;;  %v849_v12 = vmul.f32 %v6389_v11, %v6389_v11  ;;  %v6431_v6 = vadd.f32 %v6304_v22, %v6128_v37  ;;  %v734_v23 = vadd.f32 %v733_v32, %v732_v15 }
 0x129   :  { %v960_v48 = vsel %vm687_vm2, %v859_v59, 0.0  ;;  %v5012_v26 = vpop.f32.mrb[36].mxu0  ;;  %v934_v60 = vadd.f32 %v933_v51, %v932_v13  ;;  %v735_v15 = vsel %vm687_vm2, %v6425_v38, 0.0  ;;  %v6451_v32 = vadd.f32 %v6128_v37, %v6316_v49 }
 0x12a   :  { %v761_v0 = vadd.f32 %v760_v52, %v759_v53  ;;  %v961_v3 = vadd.f32 %v960_v48, %v959_v24  ;;  %v576_v44 = vpop.f32.mrb[37].mxu0  ;;  %v964_v48 = vsel %vm687_vm2, %v861_v19, 0.0  ;;  %v6441_v53 = vadd.f32 %v5012_v26, %v6128_v37 }
 0x12b   :  { %v6435_v59 = vadd.f32 %v6128_v37, %v576_v44  ;;  %v5013_v55 = vpop.f32.mrb[38].mxu0  ;;  %v850_v13 = vmul.f32 %v6425_v38, %v6425_v38  ;;  %v6465_v49 = vadd.f32 %v6128_v37, %v6205_v34 }
 0x12c   :  { %v963_v52 = vadd.f32 %v962_v18, %v961_v3  ;;  %v579_v24 = vpop.f32.mrb[39].mxu0  ;;  %11694 = vst [vmem:[#allocation26_spill] sm:$0xff] %v6441_v53  ;;  %v763_v56 = vadd.f32 %v762_v28, %v761_v0  ;;  %v6455_v0 = vadd.f32 %v5013_v55, %v6128_v37  ;;  %v935_v28 = vsel %vm687_vm2, %v849_v12, 0.0 }
 0x12d   :  { %11693 = vst [vmem:[#allocation25_spill] sm:$0xff] %v6435_v59  ;;  %v764_v22 = vsel %vm687_vm2, %v6435_v59, 0.0  ;;  %v862_v44 = vmul.f32 %v6435_v59, %v6435_v59  ;;  %v6458_v18 = vadd.f32 %v6128_v37, %v579_v24  ;;  %v864_v55 = vmul.f32 %v6441_v53, %v6441_v53 }
 0x12e   :  { %v965_v19 = vadd.f32 %v964_v48, %v963_v52  ;;  %v765_v3 = vadd.f32 %v764_v22, %v763_v56  ;;  %11695 = vst [vmem:[#allocation27_spill] sm:$0xff] %v6455_v0  ;;  %v739_v56 = vsel %vm687_vm2, %v6431_v6, 0.0  ;;  %v736_v24 = vadd.f32 %v735_v15, %v734_v23 }
 0x12f   :  { %v966_v26 = vsel %vm687_vm2, %v862_v44, 0.0  ;;  %11696 = vst [vmem:[#allocation28_spill] sm:$0xff] %v6458_v18  ;;  %v766_v48 = vsel %vm687_vm2, %v6458_v18, 0.0  ;;  %v863_v12 = vmul.f32 %v6458_v18, %v6458_v18  ;;  %v936_v22 = vadd.f32 %v935_v28, %v934_v60 }
 0x130   :  { %v967_v51 = vadd.f32 %v966_v26, %v965_v19  ;;  %v737_v44 = vsel %vm687_vm2, %v6451_v32, 0.0  ;;  %v767_v34 = vadd.f32 %v766_v48, %v765_v3  ;;  %v768_v26 = vsel %vm687_vm2, %v6441_v53, 0.0 }
 0x131   :  { %v5016_v52 = vpop.f32.mrb[40].mxu0  ;;  %v865_v59 = vmul.f32 %v6455_v0, %v6455_v0  ;;  %v968_v35 = vsel %vm687_vm2, %v863_v12, 0.0  ;;  %v937_v23 = vsel %vm687_vm2, %v850_v13, 0.0  ;;  %v851_v48 = vmul.f32 %v6451_v32, %v6451_v32 }
 0x132   :  { %v592_v19 = vpop.f32.mrb[41].mxu0  ;;  %v769_v60 = vadd.f32 %v768_v26, %v767_v34  ;;  %v969_v15 = vadd.f32 %v968_v35, %v967_v51  ;;  %v6487_v28 = vadd.f32 %v5016_v52, %v6128_v37  ;;  %v970_v53 = vsel %vm687_vm2, %v864_v55, 0.0 }
 0x133   :  { %v6483_v38 = vadd.f32 %v6128_v37, %v592_v19  ;;  %v5017_v18 = vpop.f32.mrb[42].mxu0  ;;  %v770_v12 = vsel %vm687_vm2, %v6455_v0, 0.0  ;;  %v738_v11 = vadd.f32 %v737_v44, %v736_v24  ;;  %v852_v51 = vmul.f32 %v6431_v6, %v6431_v6 }
 0x134   :  { %v595_v3 = vpop.f32.mrb[43].mxu0  ;;  %v971_v2 = vadd.f32 %v970_v53, %v969_v15  ;;  %v771_v13 = vadd.f32 %v770_v12, %v769_v60  ;;  %v972_v52 = vsel %vm687_vm2, %v865_v59, 0.0  ;;  %v6502_v34 = vadd.f32 %v5017_v18, %v6128_v37 }
 0x135   :  { %11697 = vst [vmem:[#allocation29_spill] sm:$0xff] %v6483_v38  ;;  %v772_v19 = vsel %vm687_vm2, %v6483_v38, 0.0  ;;  %v866_v35 = vmul.f32 %v6483_v38, %v6483_v38  ;;  %v6505_v55 = vadd.f32 %v6128_v37, %v595_v3  ;;  %v868_v26 = vmul.f32 %v6487_v28, %v6487_v28 }
 0x136   :  { %11698 = vst [vmem:[#allocation30_spill] sm:$0xff] %v6502_v34  ;;  %v773_v24 = vadd.f32 %v772_v19, %v771_v13  ;;  %v973_v53 = vadd.f32 %v972_v52, %v971_v2  ;;  %v938_v60 = vadd.f32 %v937_v23, %v936_v22  ;;  %v6512_v15 = vadd.f32 %v6314_v43, %v6128_v37 }
 0x137   :  { %v974_v44 = vsel %vm687_vm2, %v866_v35, 0.0  ;;  %v774_v59 = vsel %vm687_vm2, %v6505_v55, 0.0  ;;  %v867_v18 = vmul.f32 %v6505_v55, %v6505_v55  ;;  %v740_v12 = vadd.f32 %v739_v56, %v738_v11 }
 0x138   :  { %v939_v38 = vsel %vm687_vm2, %v851_v48, 0.0  ;;  %v975_v0 = vadd.f32 %v974_v44, %v973_v53  ;;  %v775_v19 = vadd.f32 %v774_v59, %v773_v24  ;;  %v776_v22 = vsel %vm687_vm2, %v6487_v28, 0.0 }
 0x139   :  { %v5020_v3 = vpop.f32.mrb[44].mxu0  ;;  %v869_v43 = vmul.f32 %v6502_v34, %v6502_v34  ;;  %v976_v23 = vsel %vm687_vm2, %v867_v18, 0.0  ;;  %v978_v52 = vsel %vm687_vm2, %v868_v26, 0.0  ;;  %v778_v11 = vsel %vm687_vm2, %v6502_v34, 0.0 }
 0x13a   :  { %v608_v2 = vpop.f32.mrb[45].mxu0  ;;  %v777_v56 = vadd.f32 %v776_v22, %v775_v19  ;;  %v977_v48 = vadd.f32 %v976_v23, %v975_v0  ;;  %v6531_v53 = vadd.f32 %v5020_v3, %v6128_v37  ;;  %v6542_v26 = vadd.f32 %v6128_v37, %v6331_v14 }
 0x13b   :  { %v6525_v13 = vadd.f32 %v6128_v37, %v608_v2  ;;  %v5021_v35 = vpop.f32.mrb[46].mxu0  ;;  %v940_v2 = vadd.f32 %v939_v38, %v938_v60  ;;  %v980_v22 = vsel %vm687_vm2, %v869_v43, 0.0  ;;  %v853_v43 = vmul.f32 %v6512_v15, %v6512_v15 }
 0x13c   :  { %v611_v24 = vpop.f32.mrb[47].mxu0  ;;  %v979_v19 = vadd.f32 %v978_v52, %v977_v48  ;;  %v779_v0 = vadd.f32 %v778_v11, %v777_v56  ;;  %v6547_v23 = vadd.f32 %v5021_v35, %v6128_v37  ;;  %v941_v52 = vsel %vm687_vm2, %v852_v51, 0.0 }
 0x13d   :  { %11699 = vst [vmem:[#allocation31_spill] sm:$0xff] %v6525_v13  ;;  %v780_v44 = vsel %vm687_vm2, %v6525_v13, 0.0  ;;  %v870_v59 = vmul.f32 %v6525_v13, %v6525_v13  ;;  %v6538_v18 = vadd.f32 %v6128_v37, %v611_v24  ;;  %v741_v24 = vsel %vm687_vm2, %v6512_v15, 0.0 }
 0x13e   :  { %v781_v38 = vadd.f32 %v780_v44, %v779_v0  ;;  %v981_v60 = vadd.f32 %v980_v22, %v979_v19  ;;  %v742_v11 = vadd.f32 %v741_v24, %v740_v12  ;;  %v872_v35 = vmul.f32 %v6531_v53, %v6531_v53 }
 0x13f   :  { %v982_v3 = vsel %vm687_vm2, %v870_v59, 0.0  ;;  %v782_v13 = vsel %vm687_vm2, %v6538_v18, 0.0  ;;  %v871_v14 = vmul.f32 %v6538_v18, %v6538_v18  ;;  %v942_v56 = vadd.f32 %v941_v52, %v940_v2 }
 0x140   :  { %v983_v48 = vadd.f32 %v982_v3, %v981_v60  ;;  %v783_v59 = vadd.f32 %v782_v13, %v781_v38  ;;  %v743_v44 = vsel %vm687_vm2, %v6542_v26, 0.0  ;;  %v6565_v19 = vadd.f32 %v6128_v37, %v6337_v17 }
 0x141   :  { %v984_v34 = vsel %vm687_vm2, %v871_v14, 0.0  ;;  %v784_v51 = vsel %vm687_vm2, %v6531_v53, 0.0  ;;  %v873_v12 = vmul.f32 %v6547_v23, %v6547_v23  ;;  %v854_v2 = vmul.f32 %v6542_v26, %v6542_v26 }
 0x142   :  { %v785_v0 = vadd.f32 %v784_v51, %v783_v59  ;;  %v985_v13 = vadd.f32 %v984_v34, %v983_v48  ;;  %v6575_v22 = vadd.f32 %v6199_v29, %v6128_v37  ;;  %v986_v3 = vsel %vm687_vm2, %v872_v35, 0.0 }
 0x143   :  { %v786_v17 = vsel %vm687_vm2, %v6547_v23, 0.0  ;;  %v990_v24 = vsel %vm687_vm2, %v6398_v20, 0.0  ;;  %v875_v38 = vmul.f32 %v6465_v49, %v6465_v49  ;;  %v943_v60 = vsel %vm687_vm2, %v853_v43, 0.0 }
 0x144   :  { %v744_v14 = vadd.f32 %v743_v44, %v742_v11  ;;  %v987_v52 = vadd.f32 %v986_v3, %v985_v13  ;;  %v787_v34 = vadd.f32 %v786_v17, %v785_v0  ;;  %v944_v48 = vadd.f32 %v943_v60, %v942_v56 }
 0x145   :  { %v745_v29 = vsel %vm687_vm2, %v6565_v19, 0.0  ;;  %v988_v35 = vsel %vm687_vm2, %v873_v12, 0.0  ;;  %v6590_v59 = vadd.f32 %v6128_v37, %v6230_v61  ;;  %v945_v20 = vsel %vm687_vm2, %v854_v2, 0.0 }
 0x146   :  { %v855_v51 = vmul.f32 %v6565_v19, %v6565_v19  ;;  %v789_v43 = vadd.f32 %v6385_v50, %v787_v34  ;;  %v989_v11 = vadd.f32 %v988_v35, %v987_v52  ;;  %v6598_v56 = vadd.f32 %v6329_v9, %v6128_v37 }
 0x147   :  { %v794_v44 = vsel %vm687_vm2, %v6575_v22, 0.0  ;;  %v877_v12 = vmul.f32 %v6575_v22, %v6575_v22  ;;  %v790_v61 = vsel %vm687_vm2, %v6465_v49, 0.0  ;;  %v746_v2 = vadd.f32 %v745_v29, %v744_v14 }
 0x148   :  { %v991_v0 = vadd.f32 %v990_v24, %v989_v11  ;;  %v791_v13 = vadd.f32 %v790_v61, %v789_v43  ;;  %v6608_v50 = vadd.f32 %v6228_v58, %v6128_v37  ;;  %v946_v3 = vadd.f32 %v945_v20, %v944_v48 }
 0x149   :  { %v992_v9 = vsel %vm687_vm2, %v875_v38, 0.0  ;;  %v878_v17 = vmul.f32 %v6590_v59, %v6590_v59  ;;  %v6615_v60 = vadd.f32 %v6128_v37, %v6239_v8  ;;  %v947_v52 = vsel %vm687_vm2, %v855_v51, 0.0 }
 0x14a   :  { %v793_v14 = vadd.f32 %v6376_v36, %v791_v13  ;;  %v993_v24 = vadd.f32 %v992_v9, %v991_v0  ;;  %v796_v34 = vsel %vm687_vm2, %v6590_v59, 0.0  ;;  %v747_v58 = vsel %vm687_vm2, %v6598_v56, 0.0 }
 0x14b   :  { %v856_v38 = vmul.f32 %v6598_v56, %v6598_v56  ;;  %v6627_v48 = vadd.f32 %v6335_v16, %v6128_v37  ;;  %v6631_v8 = vadd.f32 %v6237_v4, %v6128_v37  ;;  %v748_v29 = vadd.f32 %v747_v58, %v746_v2 }
 0x14c   :  { %v996_v36 = vsel %vm687_vm2, %v877_v12, 0.0  ;;  %v995_v35 = vadd.f32 %v6404_v30, %v993_v24  ;;  %v795_v20 = vadd.f32 %v794_v44, %v793_v14  ;;  %v948_v51 = vadd.f32 %v947_v52, %v946_v3 }
 0x14d   :  { %v998_v43 = vsel %vm687_vm2, %v878_v17, 0.0  ;;  %v879_v11 = vmul.f32 %v6615_v60, %v6615_v60  ;;  %v6640_v16 = vadd.f32 %v6128_v37, %v6256_v25  ;;  %v800_v4 = vsel %vm687_vm2, %v6608_v50, 0.0 }
 0x14e   :  { %v880_v61 = vmul.f32 %v6608_v50, %v6608_v50  ;;  %v797_v12 = vadd.f32 %v796_v34, %v795_v20  ;;  %v997_v2 = vadd.f32 %v996_v36, %v995_v35  ;;  %v949_v30 = vsel %vm687_vm2, %v856_v38, 0.0 }
 0x14f   :  { %v749_v44 = vsel %vm687_vm2, %v6627_v48, 0.0  ;;  %v881_v0 = vmul.f32 %v6631_v8, %v6631_v8  ;;  %v798_v25 = vsel %vm687_vm2, %v6615_v60, 0.0  ;;  %v857_v13 = vmul.f32 %v6627_v48, %v6627_v48 }
 0x150   :  { %v750_v3 = vadd.f32 %v749_v44, %v748_v29  ;;  %v999_v9 = vadd.f32 %v998_v43, %v997_v2  ;;  %v799_v17 = vadd.f32 %v798_v25, %v797_v12  ;;  %v950_v52 = vadd.f32 %v949_v30, %v948_v51 }
 0x151   :  { %v1000_v14 = vsel %vm687_vm2, %v879_v11, 0.0  ;;  %v882_v24 = vmul.f32 %v6640_v16, %v6640_v16  ;;  %v6660_v34 = vadd.f32 %v6128_v37, %v6266_v39  ;;  %v1002_v58 = vsel %vm687_vm2, %v880_v61, 0.0 }
 0x152   :  { %v802_v38 = vsel %vm687_vm2, %v6631_v8, 0.0  ;;  %v801_v36 = vadd.f32 %v800_v4, %v799_v17  ;;  %v1001_v35 = vadd.f32 %v1000_v14, %v999_v9  ;;  %v1004_v29 = vsel %vm687_vm2, %v881_v0, 0.0 }
 0x153   :  { %v6668_v20 = vadd.f32 %v6254_v21, %v6128_v37  ;;  %v804_v51 = vsel %vm687_vm2, %v6640_v16, 0.0  ;;  %v6674_v39 = vadd.f32 %v6264_v33, %v6128_v37  ;;  %v951_v43 = vsel %vm687_vm2, %v857_v13, 0.0 }
 0x154   :  { %v751_v11 = vrot.slane %v750_v3, 4  ;;  %v1003_v61 = vadd.f32 %v1002_v58, %v1001_v35  ;;  %v803_v12 = vadd.f32 %v802_v38, %v801_v36  ;;  %v952_v4 = vadd.f32 %v951_v43, %v950_v52 }
 0x155   :  { %v1006_v2 = vsel %vm687_vm2, %v882_v24, 0.0  ;;  %v883_v30 = vmul.f32 %v6660_v34, %v6660_v34  ;;  %v6682_v21 = vadd.f32 %v6128_v37, %v6281_v57  ;;  %v808_v33 = vsel %vm687_vm2, %v6668_v20, 0.0 }
 0x156   :  { %v805_v44 = vadd.f32 %v804_v51, %v803_v12  ;;  %v1005_v0 = vadd.f32 %v1004_v29, %v1003_v61  ;;  %v884_v25 = vmul.f32 %v6668_v20, %v6668_v20  ;;  %v806_v13 = vsel %vm687_vm2, %v6660_v34, 0.0 }
 0x157   :  { %v752_v9 = vadd.f32 %v751_v11, %v750_v3  ;;  %v885_v52 = vmul.f32 %v6674_v39, %v6674_v39  ;;  %v953_v24 = vrot.slane %v952_v4, 4  ;;  %v1008_v57 = vsel %vm687_vm2, %v883_v30, 0.0 }
 0x158   :  { %v1007_v17 = vadd.f32 %v1006_v2, %v1005_v0  ;;  %v807_v14 = vadd.f32 %v806_v13, %v805_v44  ;;  %v886_v58 = vmul.f32 %v6682_v21, %v6682_v21  ;;  %v6697_v38 = vadd.f32 %v6128_v37, %v6289_v5 }
 0x159   :  { %v1010_v29 = vsel %vm687_vm2, %v884_v25, 0.0  ;;  %v810_v3 = vsel %vm687_vm2, %v6674_v39, 0.0  ;;  %v6704_v51 = vadd.f32 %v6279_v54, %v6128_v37  ;;  %v812_v43 = vsel %vm687_vm2, %v6682_v21, 0.0 }
 0x15a   :  { %v809_v36 = vadd.f32 %v808_v33, %v807_v14  ;;  %v1009_v35 = vadd.f32 %v1008_v57, %v1007_v17  ;;  %v753_v11 = vrot.slane %v752_v9, 2  ;;  %v1012_v61 = vsel %vm687_vm2, %v885_v52, 0.0 }
 0x15b   :  { %v954_v2 = vadd.f32 %v953_v24, %v952_v4  ;;  %v1014_v30 = vsel %vm687_vm2, %v886_v58, 0.0  ;;  %v6712_v44 = vadd.f32 %v6287_v63, %v6128_v37  ;;  %v887_v0 = vmul.f32 %v6697_v38, %v6697_v38 }
 0x15c   :  { %v1011_v12 = vadd.f32 %v1010_v29, %v1009_v35  ;;  %v811_v5 = vadd.f32 %v810_v3, %v809_v36  ;;  %v888_v25 = vmul.f32 %v6704_v51, %v6704_v51  ;;  %v814_v13 = vsel %vm687_vm2, %v6697_v38, 0.0 }
 0x15d   :  { %11700 = vst [vmem:[#allocation32_spill] sm:$0xff] %v6712_v44  ;;  %v816_v4 = vsel %vm687_vm2, %v6704_v51, 0.0  ;;  %v754_v14 = vadd.f32 %v753_v11, %v752_v9  ;;  %v955_v24 = vrot.slane %v954_v2, 2  ;;  %v889_v37 = vmul.f32 %v6712_v44, %v6712_v44 }
 0x15e   :  { %v813_v54 = vadd.f32 %v812_v43, %v811_v5  ;;  %v1013_v33 = vadd.f32 %v1012_v61, %v1011_v12  ;;  %v1016_v63 = vsel %vm687_vm2, %v887_v0, 0.0  ;;  %v1018_v36 = vsel %vm687_vm2, %v888_v25, 0.0 }
 0x15f   :  { %v818_v35 = vsel %vm687_vm2, %v6712_v44, 0.0  ;;  %v755_v43 = vrot.slane %v754_v14, 1  ;;  %v956_v61 = vadd.f32 %v955_v24, %v954_v2  ;;  %v1020_v12 = vsel %vm687_vm2, %v889_v37, 0.0 }
 0x160   :  { %v1015_v17 = vadd.f32 %v1014_v30, %v1013_v33  ;;  %v815_v52 = vadd.f32 %v814_v13, %v813_v54 }
 0x161   :  { %v756_v54 = vadd.f32 %v755_v43, %v754_v14  ;;  %v957_v33 = vrot.slane %v956_v61, 1 }
 0x162   :  { %v817_v57 = vadd.f32 %v816_v4, %v815_v52  ;;  %v1017_v58 = vadd.f32 %v1016_v63, %v1015_v17 }
 0x163   :  { %v958_v25 = vadd.f32 %v957_v33, %v956_v61  ;;  %v1028_v52 = vmul.f32 0.00390625, %v756_v54 }
 0x164   :  { %v819_v29 = vadd.f32 %v818_v35, %v817_v57  ;;  %v1019_v3 = vadd.f32 %v1018_v36, %v1017_v58 }
 0x165   :  { %v1030_v36 = vmul.f32 0.00390625, %v958_v25  ;;  %v1032_v2 = vmul.f32 %v1028_v52, %v1028_v52  ;;  %v1036_v35 = vsel %vm687_vm2, %v1028_v52, 0.0 }
 0x166   :  { %v820_v9 = vrot.slane %v819_v29, 4  ;;  %v1021_v11 = vadd.f32 %v1020_v12, %v1019_v3 }
 0x167   :  { %v1034_v43 = vsub.f32 %v1030_v36, %v1032_v2 }
 0x168   :  { %v821_v5 = vadd.f32 %v820_v9, %v819_v29  ;;  %v1022_v30 = vrot.slane %v1021_v11, 4  ;;  %v1041_v9 = vsel %vm687_vm2, %v1030_v36, 0.0 }
 0x169   :  { %v1047_v54 = vadd.f32 1e-05, %v1034_v43 }
 0x16a   :  { %v822_v0 = vrot.slane %v821_v5, 2  ;;  %v1023_v13 = vadd.f32 %v1022_v30, %v1021_v11 }
 0x16b   :  { %5456 = vrsqrt.f32 %v1047_v54 }
 0x16c   :  { %v823_v4 = vadd.f32 %v822_v0, %v821_v5  ;;  %v1024_v17 = vrot.slane %v1023_v13, 2 }
 0x16e   :  { %v824_v63 = vrot.slane %v823_v4, 1  ;;  %v1025_v44 = vadd.f32 %v1024_v17, %v1023_v13  ;;  %v1070_v17 = vlaneseq }
 0x170   :  { %v825_v57 = vadd.f32 %v824_v63, %v823_v4  ;;  %v1026_v58 = vrot.slane %v1025_v44, 1  ;;  %v6733_v63 = vshrl.u32 %v1070_v17, 7 }
 0x172   :  { %v1027_v24 = vadd.f32 %v1026_v58, %v1025_v44  ;;  %v1029_v37 = vmul.f32 0.00390625, %v825_v57  ;;  %11701 = vst [vmem:[#allocation33_spill] sm:$0xff] %v6733_v63  ;;  %v1053_v57 = vld [vmem:[%s11279_s3] sm:$0x1]  ;;  %v1831_v2 = vsub.s32 1, %v6733_v63  ;;  %s5737_s3 = smov 56  }
 0x174   :  { %v1031_v29 = vmul.f32 0.00390625, %v1027_v24  ;;  %v1033_v3 = vmul.f32 %v1029_v37, %v1029_v37  ;;  %v1037_v14 = vsel %vm687_vm2, %v1029_v37, 0.0  ;;  %v1695_v24 = vld [vmem:[%s11281_s5] sm:$0xff] }
 0x175   :  { %v1038_v12 = vadd.f32 %v1037_v14, %v1036_v35  ;;  %v5457_v25 = vpop.eup %5456  ;;  %v1931_v14 = vsub.s32 2, %v6733_v63  ;;  %v6752_v54 = vrot.slane %v1695_v24, %v1831_v2 }
 0x176   :  { %v1035_v61 = vsub.f32 %v1031_v29, %v1033_v3  ;;  %v1042_v11 = vsel %vm687_vm2, %v1031_v29, 0.0  ;;  %v1059_v29 = vld [vmem:[%s11280_s4] sm:$0x1]  ;;  %v6746_v3 = vsub.s32 0, %v6733_v63  ;;  %v1061_v43 = vmul.f32 %v5457_v25, %v1028_v52 }
 0x177   :  { %v1040_v5 = vmul.f32 0.5, %v1038_v12  ;;  %v1043_v30 = vadd.f32 %v1042_v11, %v1041_v9  ;;  %11704 = vst [vmem:[#allocation36_spill] sm:$0xff] %v6752_v54  ;;  %v6756_v63 = vrot.slane %v1695_v24, %v1931_v14 }
 0x178   :  { %v1048_v44 = vadd.f32 1e-05, %v1035_v61  ;;  %11702 = vst [vmem:[#allocation34_spill] sm:$0xff] %v6746_v3 }
 0x179   :  { %v1044_v33 = vmul.f32 0.5, %v1043_v30  ;;  %v1045_v0 = vmul.f32 %v1040_v5, %v1040_v5  ;;  %v6750_v30 = vrot.slane %v1695_v24, %v6746_v3  ;;  %11706 = vst [vmem:[#allocation38_spill] sm:$0xff] %v6756_v63  ;;  %v11721_v63 = vld [vmem:[#allocation15_spill] sm:$0xff] }
 0x17a   :  { %5458 = vrsqrt.f32 %v1048_v44  ;;  %v1797_v44 = vld [vmem:[#allocation2 + $0x10] sm:$0xff] }
 0x17b   :  { %v1046_v13 = vsub.f32 %v1044_v33, %v1045_v0  ;;  %11703 = vst [vmem:[#allocation35_spill] sm:$0xff] %v6750_v30  ;;  %v1060_v33 = vmul.f32 0.5, %v1059_v29  ;;  %v1697_v0 = vld [vmem:[#allocation2] sm:$0xff]  ;;  %v6766_v2 = vmul.f32 %v6752_v54, %v1797_v44 }
 0x17d   :  { %v1051_v4 = vadd.f32 1e-05, %v1046_v13  ;;  %v6754_v13 = vld [vmem:[#allocation2 + $0x1] sm:$0xff]  ;;  %11708 = vst [vmem:[#allocation40_spill] sm:$0xff] %v6766_v2 }
 0x17e   :  { %11705 = vst [vmem:[#allocation37_spill] sm:$0xff] %v6754_v13  ;;  %v6773_v24 = vmul.f32 %v6754_v13, %v6752_v54  ;;  %v11722_v13 = vld [vmem:[#allocation17_spill] sm:$0xff]  ;;  %v11723_v2 = vld [vmem:[#allocation22_spill] sm:$0xff]  ;;  %v11728_v54 = vld [vmem:[#allocation19_spill] sm:$0xff] }
 0x17f   :  { %5460 = vrsqrt.f32 %v1051_v4 }
 0x180   :  { %11710 = vst [vmem:[#allocation42_spill] sm:$0xff] %v6773_v24  ;;  %v11719_v24 = vld [vmem:[#allocation13_spill] sm:$0xff] }
 0x184   :  { %v5459_v58 = vpop.eup %5458 }
 0x185   :  { %v1062_v61 = vmul.f32 %v5459_v58, %v1029_v37 }
 0x189   :  { %v5461_v36 = vpop.eup %5460 }
 0x18a   :  { %v1054_v35 = vmul.f32 %v5461_v36, %v1053_v57 }
 0x18c   :  { %v1055_v12 = vadd.f32 %v5457_v25, %v1054_v35  ;;  %v1056_v9 = vadd.f32 %v5459_v58, %v1054_v35  ;;  %v1063_v11 = vmul.f32 %v1054_v35, %v1040_v5  ;;  %v6763_v58 = vmul.f32 %v6750_v30, %v1697_v0 }
 0x18d   :  { %v6769_v35 = vmul.f32 %v1797_v44, %v6750_v30 }
 0x18e   :  { %v1057_v4 = vmul.f32 0.5, %v1055_v12  ;;  %v1058_v17 = vmul.f32 0.5, %v1056_v9  ;;  %v1064_v57 = vadd.f32 %v1063_v11, %v1061_v43  ;;  %v1065_v36 = vadd.f32 %v1063_v11, %v1062_v61  ;;  %11707 = vst [vmem:[#allocation39_spill] sm:$0xff] %v6763_v58 }
 0x18f   :  { %11709 = vst [vmem:[#allocation41_spill] sm:$0xff] %v6769_v35  ;;  %v11720_v35 = vld [vmem:[#allocation14_spill] sm:$0xff] }
 0x190   :  { %v1066_v52 = vmul.f32 0.5, %v1064_v57  ;;  %v1067_v25 = vmul.f32 0.5, %v1065_v36  ;;  %v1073_v37 = vrot.slane %v1057_v4, %v6746_v3  ;;  %v6760_v5 = vrot.slane %v1058_v17, %v6746_v3  ;;  %v11712_v17 = vld [vmem:[#allocation6_spill] sm:$0xff]  ;;  %v11713_v57 = vld [vmem:[#allocation7_spill] sm:$0xff]  ;;  %v11714_v36 = vld [vmem:[#allocation8_spill] sm:$0xff] }
 0x192   :  { %v1068_v29 = vsub.f32 %v1060_v33, %v1066_v52  ;;  %v1069_v14 = vsub.f32 %v1060_v33, %v1067_v25  ;;  %v1139_v43 = vmul.f32 %v6760_v5, %v6697_v38  ;;  %v6778_v12 = vmul.f32 %v1073_v37, %v6134_v41  ;;  %v11715_v52 = vld [vmem:[#allocation9_spill] sm:$0xff]  ;;  %v11716_v25 = vld [vmem:[#allocation10_spill] sm:$0xff] }
 0x193   :  { %v6781_v9 = vmul.f32 %v1073_v37, %v6142_v46  ;;  %v6784_v61 = vmul.f32 %v1073_v37, %v6131_v40  ;;  %v6787_v11 = vmul.f32 %v1073_v37, %v6139_v45  ;;  %v6790_v0 = vmul.f32 %v1073_v37, %v6162_v62 }
 0x194   :  { %v6793_v33 = vrot.slane %v1068_v29, %v6746_v3  ;;  %v6796_v38 = vrot.slane %v1069_v14, %v6746_v3  ;;  %v6799_v41 = vmul.f32 %v1073_v37, %v6173_v7  ;;  %v6802_v46 = vmul.f32 %v1073_v37, %v6165_v1  ;;  %v11717_v29 = vld [vmem:[#allocation11_spill] sm:$0xff]  ;;  %v11718_v3 = vld [vmem:[#allocation12_spill] sm:$0xff] }
 0x195   :  { %v6805_v40 = vmul.f32 %v1073_v37, %v6176_v10  ;;  %v6808_v45 = vmul.f32 %v1073_v37, %v6197_v27  ;;  %v6811_v62 = vmul.f32 %v1073_v37, %v6212_v42  ;;  %v6814_v44 = vmul.f32 %v1073_v37, %v6203_v31 }
 0x196   :  { %11711 = vst [vmem:[#allocation43_spill] sm:$0xff] %v6796_v38  ;;  %v1215_v4 = vadd.f32 %v6796_v38, %v1139_v43  ;;  %v6818_v7 = vmul.f32 %v1073_v37, %v6216_v47  ;;  %v6821_v1 = vmul.f32 %v1073_v37, %v11712_v17  ;;  %v6824_v10 = vmul.f32 %v1073_v37, %v11713_v57  ;;  %v11734_v38 = vld [vmem:[#allocation26_spill] sm:$0xff] }
 0x197   :  { %v6827_v27 = vmul.f32 %v1073_v37, %v11714_v36  ;;  %v6830_v42 = vmul.f32 %v1073_v37, %v11715_v52  ;;  %v6833_v31 = vmul.f32 %v1073_v37, %v11716_v25  ;;  %v6836_v14 = vmul.f32 %v1073_v37, %v11717_v29 }
 0x198   :  { %v1279_v47 = vmul.f32 0.5, %v1215_v4  ;;  %v1343_v43 = vmul.f32 0.70710677, %v1215_v4  ;;  %v6839_v17 = vmul.f32 %v1073_v37, %v11718_v3  ;;  %v6842_v57 = vmul.f32 %v1073_v37, %v11719_v24  ;;  %v11724_v4 = vld [vmem:[#allocation24_spill] sm:$0xff] }
 0x199   :  { %v6845_v36 = vmul.f32 %v1073_v37, %v11720_v35  ;;  %v6848_v52 = vmul.f32 %v1073_v37, %v11721_v63  ;;  %v6851_v25 = vmul.f32 %v1073_v37, %v11722_v13  ;;  %v6854_v29 = vmul.f32 %v1073_v37, %v11723_v2 }
 0x19a   :  { %5462 = verf.f32 %v1343_v43  ;;  %v6857_v58 = vmul.f32 %v1073_v37, %v11724_v4  ;;  %v6860_v3 = vmul.f32 %v1073_v37, %v6451_v32  ;;  %v6863_v24 = vmul.f32 %v1073_v37, %v6431_v6  ;;  %v11725_v32 = vld [vmem:[#allocation20_spill] sm:$0xff]  ;;  %v11726_v6 = vld [vmem:[#allocation23_spill] sm:$0xff] }
 0x19b   :  { %v6866_v35 = vmul.f32 %v1073_v37, %v6512_v15  ;;  %v6869_v63 = vmul.f32 %v1073_v37, %v6542_v26  ;;  %v6872_v13 = vmul.f32 %v1073_v37, %v6565_v19  ;;  %v6875_v2 = vmul.f32 %v1073_v37, %v6598_v56  ;;  %v11730_v19 = vld [vmem:[#allocation21_spill] sm:$0xff] }
 0x19c   :  { %v6878_v43 = vmul.f32 %v1073_v37, %v6627_v48  ;;  %v6882_v4 = vmul.f32 %v6760_v5, %v11725_v32  ;;  %v6886_v15 = vmul.f32 %v6760_v5, %v11726_v6  ;;  %v6890_v26 = vmul.f32 %v6760_v5, %v11728_v54  ;;  %v11731_v56 = vld [vmem:[#allocation25_spill] sm:$0xff]  ;;  %v11732_v37 = vld [vmem:[#allocation28_spill] sm:$0xff] }
 0x19d   :  { %v6894_v30 = vmul.f32 %v6760_v5, %v11730_v19  ;;  %v6898_v48 = vmul.f32 %v6760_v5, %v11731_v56  ;;  %v6902_v32 = vmul.f32 %v6760_v5, %v11732_v37  ;;  %v6906_v6 = vmul.f32 %v6760_v5, %v11734_v38 }
 0x19e   :  { %11727 = vst [vmem:[#allocation6_spill] sm:$0xff] %v6886_v15  ;;  %11729 = vst [vmem:[#allocation7_spill] sm:$0xff] %v6890_v26  ;;  %v11736_v15 = vld [vmem:[#allocation27_spill] sm:$0xff]  ;;  %v11737_v26 = vld [vmem:[#allocation29_spill] sm:$0xff]  ;;  %v6918_v56 = vmul.f32 %v6760_v5, %v6505_v55  ;;  %v6922_v37 = vmul.f32 %v6760_v5, %v6487_v28  ;;  %v6938_v55 = vmul.f32 %v6760_v5, %v6531_v53 }
 0x19f   :  { %11733 = vst [vmem:[#allocation8_spill] sm:$0xff] %v6902_v32  ;;  %11735 = vst [vmem:[#allocation9_spill] sm:$0xff] %v6906_v6  ;;  %v6910_v54 = vmul.f32 %v6760_v5, %v11736_v15  ;;  %v6914_v19 = vmul.f32 %v6760_v5, %v11737_v26  ;;  %v11739_v32 = vld [vmem:[#allocation30_spill] sm:$0xff]  ;;  %v11740_v6 = vld [vmem:[#allocation31_spill] sm:$0xff]  ;;  %v6934_v26 = vmul.f32 %v6760_v5, %v6538_v18 }
 0x1a0   :  { %11738 = vst [vmem:[#allocation10_spill] sm:$0xff] %v6922_v37  ;;  %v6926_v38 = vmul.f32 %v6760_v5, %v11739_v32  ;;  %v6930_v15 = vmul.f32 %v6760_v5, %v11740_v6  ;;  %v6942_v28 = vmul.f32 %v6760_v5, %v6547_v23  ;;  %v11742_v37 = vld [vmem:[#allocation18_spill] sm:$0xff]  ;;  %v6950_v6 = vmul.f32 %v6760_v5, %v6465_v49 }
 0x1a1   :  { %v6946_v32 = vmul.f32 %v6760_v5, %v11742_v37  ;;  %v6958_v53 = vmul.f32 %v6760_v5, %v6575_v22  ;;  %v6962_v23 = vmul.f32 %v6760_v5, %v6590_v59  ;;  %v6966_v37 = vmul.f32 %v6760_v5, %v6615_v60 }
 0x1a2   :  { %11741 = vst [vmem:[#allocation11_spill] sm:$0xff] %v6930_v15  ;;  %v11743_v15 = vld [vmem:[#allocation16_spill] sm:$0xff]  ;;  %v6970_v49 = vmul.f32 %v6760_v5, %v6608_v50  ;;  %v6978_v22 = vmul.f32 %v6760_v5, %v6640_v16  ;;  %v6982_v59 = vmul.f32 %v6760_v5, %v6660_v34  ;;  %v6986_v60 = vmul.f32 %v6760_v5, %v6668_v20 }
 0x1a3   :  { %v6954_v18 = vmul.f32 %v6760_v5, %v11743_v15  ;;  %v6974_v15 = vmul.f32 %v6760_v5, %v6631_v8  ;;  %v6990_v50 = vmul.f32 %v6760_v5, %v6674_v39  ;;  %v6994_v8 = vmul.f32 %v6760_v5, %v6682_v21 }
 0x1a4   :  { %11744 = vst [vmem:[#allocation12_spill] sm:$0xff] %v6978_v22  ;;  %11745 = vst [vmem:[#allocation13_spill] sm:$0xff] %v6982_v59  ;;  %v6998_v16 = vmul.f32 %v6760_v5, %v6704_v51  ;;  %v11747_v22 = vld [vmem:[#allocation32_spill] sm:$0xff]  ;;  %v5463_v59 = vpop.eup %5462  ;;  %v7006_v20 = vadd.f32 %v6793_v33, %v6778_v12  ;;  %v7010_v39 = vadd.f32 %v6793_v33, %v6781_v9 }
 0x1a5   :  { %v7002_v34 = vmul.f32 %v6760_v5, %v11747_v22  ;;  %v7014_v21 = vadd.f32 %v6793_v33, %v6784_v61  ;;  %v7018_v51 = vadd.f32 %v6793_v33, %v6787_v11  ;;  %v7022_v5 = vadd.f32 %v6793_v33, %v6790_v0 }
 0x1a6   :  { %11746 = vst [vmem:[#allocation14_spill] sm:$0xff] %v6998_v16  ;;  %v1471_v16 = vadd.f32 1.0, %v5463_v59  ;;  %v7026_v12 = vadd.f32 %v6793_v33, %v6799_v41  ;;  %v7030_v9 = vadd.f32 %v6793_v33, %v6802_v46  ;;  %v7034_v61 = vadd.f32 %v6793_v33, %v6805_v40  ;;  %v11749_v59 = vld [vmem:[#allocation6_spill] sm:$0xff] }
 0x1a7   :  { %v7038_v11 = vadd.f32 %v6793_v33, %v6808_v45  ;;  %v7042_v0 = vadd.f32 %v6793_v33, %v6811_v62  ;;  %v7046_v41 = vadd.f32 %v6793_v33, %v6814_v44  ;;  %v7050_v46 = vadd.f32 %v6793_v33, %v6818_v7 }
 0x1a8   :  { %v1535_v22 = vmul.f32 %v1471_v16, %v1279_v47  ;;  %v7054_v40 = vadd.f32 %v6793_v33, %v6821_v1  ;;  %v7058_v45 = vadd.f32 %v6793_v33, %v6824_v10  ;;  %v7062_v62 = vadd.f32 %v6793_v33, %v6827_v27  ;;  %v11750_v16 = vld [vmem:[#allocation7_spill] sm:$0xff] }
 0x1a9   :  { %v7066_v44 = vadd.f32 %v6793_v33, %v6830_v42  ;;  %v7070_v7 = vadd.f32 %v6793_v33, %v6833_v31  ;;  %v7074_v1 = vadd.f32 %v6793_v33, %v6836_v14  ;;  %v7079_v10 = vadd.f32 %v6793_v33, %v6839_v17 }
 0x1aa   :  { %1693 = vst.msk [vmem:[#allocation2 + $0x421] sm:$0xff] %vm687_vm2, %v1535_v22  ;;  %v7083_v27 = vadd.f32 %v6793_v33, %v6842_v57  ;;  %v7087_v42 = vadd.f32 %v6793_v33, %v6845_v36  ;;  %v7091_v31 = vadd.f32 %v6793_v33, %v6848_v52  ;;  %v7095_v14 = vadd.f32 %v6793_v33, %v6851_v25  ;;  %v11753_v22 = vld [vmem:[#allocation9_spill] sm:$0xff] }
 0x1ab   :  { %v7099_v47 = vadd.f32 %v6793_v33, %v6854_v29  ;;  %v7103_v17 = vadd.f32 %v6793_v33, %v6857_v58  ;;  %v7107_v57 = vadd.f32 %v6793_v33, %v6860_v3  ;;  %v7111_v36 = vadd.f32 %v6793_v33, %v6863_v24  ;;  %v11748_v24 = vld [vmem:[#allocation43_spill] sm:$0xff] }
 0x1ac   :  { %v7115_v52 = vadd.f32 %v6793_v33, %v6866_v35  ;;  %v7119_v25 = vadd.f32 %v6793_v33, %v6869_v63  ;;  %v7123_v58 = vadd.f32 %v6793_v33, %v6872_v13  ;;  %v7127_v29 = vadd.f32 %v6793_v33, %v6875_v2 }
 0x1ad   :  { %v7131_v3 = vadd.f32 %v6793_v33, %v6878_v43  ;;  %v7135_v35 = vadd.f32 %v11748_v24, %v6882_v4  ;;  %v7139_v63 = vadd.f32 %v11748_v24, %v11749_v59  ;;  %v7143_v13 = vadd.f32 %v11748_v24, %v11750_v16  ;;  %v11752_v43 = vld [vmem:[#allocation8_spill] sm:$0xff] }
 0x1ae   :  { %v7147_v2 = vadd.f32 %v11748_v24, %v6894_v30  ;;  %v7151_v33 = vadd.f32 %v11748_v24, %v6898_v48  ;;  %v7155_v4 = vadd.f32 %v11748_v24, %v11752_v43  ;;  %v7159_v59 = vadd.f32 %v11748_v24, %v11753_v22 }
 0x1af   :  { %v7163_v16 = vadd.f32 %v11748_v24, %v6910_v54  ;;  %v7167_v30 = vadd.f32 %v11748_v24, %v6914_v19  ;;  %v7171_v48 = vadd.f32 %v11748_v24, %v6918_v56  ;;  %v7179_v22 = vadd.f32 %v11748_v24, %v6926_v38 }
 0x1b0   :  { %11751 = vst [vmem:[#allocation15_spill] sm:$0xff] %v7151_v33  ;;  %11754 = vst [vmem:[#allocation17_spill] sm:$0xff] %v7159_v59  ;;  %v11755_v33 = vld [vmem:[#allocation10_spill] sm:$0xff]  ;;  %v11758_v59 = vld [vmem:[#allocation11_spill] sm:$0xff]  ;;  %v7187_v19 = vadd.f32 %v11748_v24, %v6934_v26  ;;  %v7191_v56 = vadd.f32 %v11748_v24, %v6938_v55  ;;  %v7199_v38 = vadd.f32 %v11748_v24, %v6946_v32 }
 0x1b1   :  { %v7175_v43 = vadd.f32 %v11748_v24, %v11755_v33  ;;  %11757 = vst [vmem:[#allocation24_spill] sm:$0xff] %v7179_v22  ;;  %v7183_v54 = vadd.f32 %v11748_v24, %v11758_v59  ;;  %v7195_v33 = vadd.f32 %v11748_v24, %v6942_v28  ;;  %v7203_v59 = vadd.f32 %v11748_v24, %v6950_v6  ;;  %v1813_v22 = vld [vmem:[#allocation2 + $0x250] sm:$0xff] }
 0x1b2   :  { %11760 = vst [vmem:[#allocation23_spill] sm:$0xff] %v7187_v19  ;;  %11761 = vst [vmem:[#allocation19_spill] sm:$0xff] %v7191_v56  ;;  %v7207_v26 = vadd.f32 %v11748_v24, %v6954_v18  ;;  %v7211_v55 = vadd.f32 %v11748_v24, %v6958_v53  ;;  %v7215_v28 = vadd.f32 %v11748_v24, %v6962_v23 }
 0x1b3   :  { %11756 = vst [vmem:[#allocation22_spill] sm:$0xff] %v7175_v43  ;;  %11759 = vst [vmem:[#allocation20_spill] sm:$0xff] %v7183_v54  ;;  %v1713_v54 = vld [vmem:[#allocation2 + $0x240] sm:$0xff]  ;;  %v7219_v32 = vadd.f32 %v11748_v24, %v6966_v37  ;;  %v7223_v6 = vadd.f32 %v11748_v24, %v6970_v49  ;;  %v7227_v18 = vadd.f32 %v11748_v24, %v6974_v15 }
 0x1b4   :  { %11762 = vst [vmem:[#allocation21_spill] sm:$0xff] %v7195_v33  ;;  %11763 = vst [vmem:[#allocation25_spill] sm:$0xff] %v7199_v38  ;;  %v7239_v37 = vadd.f32 %v11748_v24, %v6986_v60  ;;  %v7243_v49 = vadd.f32 %v11748_v24, %v6990_v50  ;;  %v7247_v15 = vadd.f32 %v11748_v24, %v6994_v8  ;;  %v11783_v50 = vld [vmem:[#allocation39_spill] sm:$0xff]  ;;  %v11786_v8 = vld [vmem:[#allocation38_spill] sm:$0xff] }
 0x1b5   :  { %11764 = vst [vmem:[#allocation28_spill] sm:$0xff] %v7203_v59  ;;  %11765 = vst [vmem:[#allocation26_spill] sm:$0xff] %v7207_v26  ;;  %v11771_v26 = vld [vmem:[#allocation12_spill] sm:$0xff]  ;;  %v7257_v60 = vadd.f32 %v11748_v24, %v7002_v34  ;;  %v11785_v59 = vld [vmem:[#allocation37_spill] sm:$0xff] }
 0x1b6   :  { %11766 = vst [vmem:[#allocation27_spill] sm:$0xff] %v7211_v55  ;;  %11767 = vst [vmem:[#allocation29_spill] sm:$0xff] %v7215_v28  ;;  %v7231_v53 = vadd.f32 %v11748_v24, %v11771_v26  ;;  %v11773_v55 = vld [vmem:[#allocation13_spill] sm:$0xff]  ;;  %v11788_v33 = vld [vmem:[#allocation42_spill] sm:$0xff] }
 0x1b7   :  { %11768 = vst [vmem:[#allocation30_spill] sm:$0xff] %v7219_v32  ;;  %11769 = vst [vmem:[#allocation31_spill] sm:$0xff] %v7223_v6  ;;  %v7235_v23 = vadd.f32 %v11748_v24, %v11773_v55  ;;  %v11780_v6 = vld [vmem:[#allocation35_spill] sm:$0xff]  ;;  %v11787_v38 = vld [vmem:[#allocation41_spill] sm:$0xff] }
 0x1b8   :  { %11770 = vst [vmem:[#allocation18_spill] sm:$0xff] %v7227_v18  ;;  %11772 = vst [vmem:[#allocation16_spill] sm:$0xff] %v7231_v53  ;;  %v11778_v18 = vld [vmem:[#allocation14_spill] sm:$0xff]  ;;  %v2766_v53 = vld [vmem:[#allocation2 + $0x11] sm:$0xff]  ;;  %v1749_v55 = vmul.f32 %v11780_v6, %v1713_v54  ;;  %v2654_v19 = vmul.f32 %v1813_v22, %v11780_v6  ;;  %v7340_v6 = vmul.f32 0.5, %v7091_v31 }
 0x1b9   :  { %11774 = vst [vmem:[#allocation32_spill] sm:$0xff] %v7235_v23  ;;  %11775 = vst [vmem:[#allocation43_spill] sm:$0xff] %v7239_v37  ;;  %v7251_v26 = vadd.f32 %v11748_v24, %v11778_v18  ;;  %v11781_v23 = vld [vmem:[#allocation36_spill] sm:$0xff]  ;;  %v1913_v37 = vld [vmem:[#allocation2 + $0x241] sm:$0xff]  ;;  %v2734_v18 = vadd.f32 %v11788_v33, %v11787_v38  ;;  %v7277_v33 = vmul.f32 0.5, %v7006_v20  ;;  %v7280_v38 = vmul.f32 0.5, %v7010_v39 }
 0x1ba   :  { %11776 = vst [vmem:[#allocation6_spill] sm:$0xff] %v7243_v49  ;;  %11777 = vst [vmem:[#allocation7_spill] sm:$0xff] %v7247_v15  ;;  %v1849_v32 = vmul.f32 %v11781_v23, %v1813_v22  ;;  %v11784_v49 = vld [vmem:[#allocation40_spill] sm:$0xff]  ;;  %v1933_v15 = vmul.f32 %v11786_v8, %v11785_v59  ;;  %v1949_v54 = vmul.f32 %v11786_v8, %v1913_v37  ;;  %v7283_v22 = vmul.f32 0.5, %v7014_v21 }
 0x1bb   :  { %11779 = vst [vmem:[#allocation8_spill] sm:$0xff] %v7251_v26  ;;  %11782 = vst [vmem:[#allocation9_spill] sm:$0xff] %v7257_v60  ;;  %v1865_v28 = vadd.f32 %v11784_v49, %v11783_v50  ;;  %v2798_v26 = vmul.f32 %v2766_v53, %v11786_v8  ;;  %v2718_v34 = vmul.f32 %v1913_v37, %v11781_v23  ;;  %v2782_v24 = vld [vmem:[#allocation2 + $0x251] sm:$0xff]  ;;  %v7298_v53 = vmul.f32 0.5, %v7034_v61 }
 0x1bc   :  { %v1881_v56 = vadd.f32 %v1849_v32, %v1749_v55  ;;  %v2814_v50 = vmul.f32 %v2782_v24, %v11786_v8  ;;  %v7286_v32 = vmul.f32 0.5, %v7018_v51  ;;  %v7301_v37 = vmul.f32 0.5, %v7038_v11  ;;  %11801 = vst [vmem:[#allocation46_spill] sm:$0xff] %v7340_v6 }
 0x1bd   :  { %v7269_v60 = vadd.f32 %v1933_v15, %v1865_v28  ;;  %v7271_v43 = vadd.f32 %v2798_v26, %v2734_v18  ;;  %v2750_v59 = vadd.f32 %v2718_v34, %v2654_v19  ;;  %v7289_v28 = vmul.f32 0.5, %v7022_v5 }
 0x1be   :  { %v7273_v49 = vadd.f32 %v1949_v54, %v1881_v56  ;;  %v7292_v56 = vmul.f32 0.5, %v7026_v12  ;;  %v7295_v19 = vmul.f32 0.5, %v7030_v9  ;;  %v7304_v15 = vmul.f32 0.5, %v7042_v0 }
 0x1bf   :  { %11789 = vst [vmem:[#allocation10_spill] sm:$0xff] %v7269_v60  ;;  %11790 = vst [vmem:[#allocation11_spill] sm:$0xff] %v7271_v43  ;;  %v7307_v26 = vmul.f32 0.5, %v7046_v41  ;;  %v7310_v55 = vmul.f32 0.5, %v7050_v46  ;;  %v7313_v18 = vmul.f32 0.5, %v7054_v40  ;;  %v7316_v54 = vmul.f32 0.5, %v7058_v45 }
 0x1c0   :  { %11791 = vst [vmem:[#allocation12_spill] sm:$0xff] %v7273_v49  ;;  %v7319_v34 = vmul.f32 0.5, %v7062_v62  ;;  %v7322_v24 = vmul.f32 0.5, %v7066_v44  ;;  %v7325_v43 = vmul.f32 0.5, %v7070_v7  ;;  %v7328_v49 = vmul.f32 0.5, %v7074_v1 }
 0x1c1   :  { %11792 = vst [vmem:[#allocation13_spill] sm:$0xff] %v7313_v18  ;;  %11793 = vst [vmem:[#allocation14_spill] sm:$0xff] %v7316_v54  ;;  %v7331_v60 = vmul.f32 0.5, %v7079_v10  ;;  %v7334_v8 = vmul.f32 0.5, %v7083_v27  ;;  %v7337_v23 = vmul.f32 0.5, %v7087_v42  ;;  %v7361_v6 = vmul.f32 0.5, %v7115_v52 }
 0x1c2   :  { %11794 = vst [vmem:[#allocation39_spill] sm:$0xff] %v7319_v34  ;;  %11795 = vst [vmem:[#allocation40_spill] sm:$0xff] %v7322_v24  ;;  %v7343_v24 = vmul.f32 0.5, %v7095_v14  ;;  %v1283_v34 = vmul.f32 0.70710677, %v7010_v39  ;;  %v11809_v18 = vmov 0.0  }
 0x1c3   :  { %11796 = vst [vmem:[#allocation37_spill] sm:$0xff] %v7325_v43  ;;  %11797 = vst [vmem:[#allocation41_spill] sm:$0xff] %v7328_v49  ;;  %v7346_v43 = vmul.f32 0.5, %v7099_v47  ;;  %v3494_v49 = vld [vmem:[%s11283_s7] sm:$0xff]  ;;  %v1284_v54 = vmul.f32 0.70710677, %v7014_v21 }
 0x1c4   :  { %11798 = vst [vmem:[#allocation42_spill] sm:$0xff] %v7331_v60  ;;  %11799 = vst [vmem:[#allocation44_spill] sm:$0xff] %v7334_v8  ;;  %v7352_v60 = vmul.f32 0.5, %v7103_v17  ;;  %v7355_v8 = vmul.f32 0.5, %v7107_v57  ;;  %5039 = vmatpush3.msra.mxu1 %v3494_v49  ;;  %v1285_v49 = vmul.f32 0.70710677, %v7018_v51 }
 0x1c5   :  { %11800 = vst [vmem:[#allocation45_spill] sm:$0xff] %v7337_v23  ;;  %11802 = vst [vmem:[#allocation47_spill] sm:$0xff] %v7343_v24  ;;  %v7358_v23 = vmul.f32 0.5, %v7111_v36  ;;  %v7363_v24 = vadd.f32 %v2814_v50, %v2750_v59  ;;  %5043 = vmatprep.subr.mxu1 %v11809_v18  ;;  %v7380_v59 = vmul.f32 0.5, %v7131_v3  ;;  %v1286_v39 = vmul.f32 0.70710677, %v7022_v5 }
 0x1c6   :  { %11803 = vst [vmem:[#allocation48_spill] sm:$0xff] %v7346_v43  ;;  %11804 = vst [vmem:[#allocation49_spill] sm:$0xff] %v7352_v60  ;;  %v1282_v43 = vmul.f32 0.70710677, %v7006_v20  ;;  %v7370_v60 = vmul.f32 0.5, %v7119_v25  ;;  %v7383_v20 = vmul.f32 0.5, %v7135_v35 }
 0x1c7   :  { %11805 = vst [vmem:[#allocation50_spill] sm:$0xff] %v7355_v8  ;;  %11806 = vst [vmem:[#allocation51_spill] sm:$0xff] %v7358_v23  ;;  %v7373_v8 = vmul.f32 0.5, %v7123_v58  ;;  %v7376_v23 = vmul.f32 0.5, %v7127_v29  ;;  %v7387_v21 = vmul.f32 0.5, %v7139_v63  ;;  %v7390_v50 = vmul.f32 0.5, %v7143_v13 }
 0x1c8   :  { %11807 = vst [vmem:[#allocation52_spill] sm:$0xff] %v7361_v6  ;;  %11808 = vst [vmem:[#allocation53_spill] sm:$0xff] %v7363_v24  ;;  %5464 = verf.f32 %v1282_v43  ;;  %v1287_v24 = vmul.f32 0.70710677, %v7026_v12  ;;  %v7394_v51 = vmul.f32 0.5, %v7147_v2  ;;  %v11818_v18 = vld [vmem:[#allocation15_spill] sm:$0xff] }
 0x1c9   :  { %11810 = vst [vmem:[#allocation54_spill] sm:$0xff] %v7370_v60  ;;  %11811 = vst [vmem:[#allocation55_spill] sm:$0xff] %v7373_v8  ;;  %5466 = verf.f32 %v1283_v34  ;;  %v7401_v5 = vmul.f32 0.5, %v7155_v4  ;;  %v11821_v43 = vld [vmem:[#allocation17_spill] sm:$0xff]  ;;  %v7408_v12 = vmul.f32 0.5, %v7163_v16  ;;  %v7411_v34 = vmul.f32 0.5, %v7167_v30 }
 0x1ca   :  { %11812 = vst [vmem:[#allocation56_spill] sm:$0xff] %v7376_v23  ;;  %11813 = vst [vmem:[#allocation57_spill] sm:$0xff] %v7380_v59  ;;  %v7397_v59 = vmul.f32 0.5, %v11818_v18  ;;  %5468 = verf.f32 %v1284_v54  ;;  %v11826_v54 = vld [vmem:[#allocation22_spill] sm:$0xff]  ;;  %v11834_v23 = vld [vmem:[#allocation19_spill] sm:$0xff] }
 0x1cb   :  { %11814 = vst [vmem:[#allocation58_spill] sm:$0xff] %v7383_v20  ;;  %11815 = vst [vmem:[#allocation59_spill] sm:$0xff] %v7387_v21  ;;  %v1288_v20 = vmul.f32 0.70710677, %v7030_v9  ;;  %v7404_v21 = vmul.f32 0.5, %v11821_v43  ;;  %5470 = verf.f32 %v1285_v49  ;;  %v7415_v9 = vmul.f32 0.5, %v7171_v48 }
 0x1cc   :  { %11816 = vst [vmem:[#allocation60_spill] sm:$0xff] %v7390_v50  ;;  %11817 = vst [vmem:[#allocation61_spill] sm:$0xff] %v7394_v51  ;;  %v1289_v50 = vmul.f32 0.70710677, %v7034_v61  ;;  %5472 = verf.f32 %v1286_v39  ;;  %v11828_v61 = vld [vmem:[#allocation24_spill] sm:$0xff]  ;;  %v11838_v8 = vld [vmem:[#allocation25_spill] sm:$0xff] }
 0x1cd   :  { %11819 = vst [vmem:[#allocation15_spill] sm:$0xff] %v7397_v59  ;;  %11820 = vst [vmem:[#allocation62_spill] sm:$0xff] %v7401_v5  ;;  %v1290_v59 = vmul.f32 0.70710677, %v7038_v11  ;;  %v7418_v5 = vmul.f32 0.5, %v11826_v54  ;;  %5474 = verf.f32 %v1287_v24  ;;  %v7422_v49 = vmul.f32 0.5, %v11828_v61 }
 0x1ce   :  { %11822 = vst [vmem:[#allocation17_spill] sm:$0xff] %v7404_v21  ;;  %11823 = vst [vmem:[#allocation63_spill] sm:$0xff] %v7408_v12  ;;  %v1291_v21 = vmul.f32 0.70710677, %v7042_v0  ;;  %v11830_v51 = vld [vmem:[#allocation20_spill] sm:$0xff]  ;;  %5476 = verf.f32 %v1288_v20  ;;  %v11832_v11 = vld [vmem:[#allocation23_spill] sm:$0xff] }
 0x1cf   :  { %11824 = vst [vmem:[#allocation64_spill] sm:$0xff] %v7411_v34  ;;  %11825 = vst [vmem:[#allocation65_spill] sm:$0xff] %v7415_v9  ;;  %v7425_v12 = vmul.f32 0.5, %v11830_v51  ;;  %v1292_v34 = vmul.f32 0.70710677, %v7046_v41  ;;  %v7429_v39 = vmul.f32 0.5, %v11832_v11  ;;  %5478 = verf.f32 %v1289_v50 }
 0x1d0   :  { %11827 = vst [vmem:[#allocation22_spill] sm:$0xff] %v7418_v5  ;;  %11829 = vst [vmem:[#allocation24_spill] sm:$0xff] %v7422_v49  ;;  %v7432_v9 = vmul.f32 0.5, %v11834_v23  ;;  %v1293_v5 = vmul.f32 0.70710677, %v7050_v46  ;;  %v11836_v0 = vld [vmem:[#allocation21_spill] sm:$0xff]  ;;  %5480 = verf.f32 %v1290_v59 }
 0x1d1   :  { %11831 = vst [vmem:[#allocation20_spill] sm:$0xff] %v7425_v12  ;;  %11833 = vst [vmem:[#allocation66_spill] sm:$0xff] %v7429_v39  ;;  %v7436_v24 = vmul.f32 0.5, %v11836_v0  ;;  %v7439_v49 = vmul.f32 0.5, %v11838_v8  ;;  %v1294_v12 = vmul.f32 0.70710677, %v7054_v40  ;;  %5482 = verf.f32 %v1291_v21 }
 0x1d2   :  { %11835 = vst [vmem:[#allocation67_spill] sm:$0xff] %v7432_v9  ;;  %v11840_v41 = vld [vmem:[#allocation28_spill] sm:$0xff]  ;;  %v11842_v60 = vld [vmem:[#allocation26_spill] sm:$0xff]  ;;  %v1295_v9 = vmul.f32 0.70710677, %v7058_v45  ;;  %v5465_v46 = vpop.eup %5464  ;;  %v11844_v50 = vld [vmem:[#allocation27_spill] sm:$0xff]  ;;  %5484 = verf.f32 %v1292_v34 }
 0x1d3   :  { %11837 = vst [vmem:[#allocation68_spill] sm:$0xff] %v7436_v24  ;;  %11839 = vst [vmem:[#allocation69_spill] sm:$0xff] %v7439_v49  ;;  %v7443_v20 = vmul.f32 0.5, %v11840_v41  ;;  %v7446_v39 = vmul.f32 0.5, %v11842_v60  ;;  %v7450_v23 = vmul.f32 0.5, %v11844_v50  ;;  %v11846_v24 = vld [vmem:[#allocation29_spill] sm:$0xff]  ;;  %v5467_v40 = vpop.eup %5466  ;;  %5486 = verf.f32 %v1293_v5 }
 0x1d4   :  { %v7453_v0 = vmul.f32 0.5, %v11846_v24  ;;  %v1296_v49 = vmul.f32 0.70710677, %v7062_v62  ;;  %v11848_v59 = vld [vmem:[#allocation30_spill] sm:$0xff]  ;;  %v1297_v45 = vmul.f32 0.70710677, %v7066_v44  ;;  %v5469_v21 = vpop.eup %5468  ;;  %5488 = verf.f32 %v1294_v12 }
 0x1d5   :  { %11841 = vst [vmem:[#allocation70_spill] sm:$0xff] %v7443_v20  ;;  %11843 = vst [vmem:[#allocation71_spill] sm:$0xff] %v7446_v39  ;;  %v7457_v41 = vmul.f32 0.5, %v11848_v59  ;;  %v11850_v20 = vld [vmem:[#allocation31_spill] sm:$0xff]  ;;  %v1298_v39 = vmul.f32 0.70710677, %v7070_v7  ;;  %v5471_v62 = vpop.eup %5470  ;;  %5490 = verf.f32 %v1295_v9 }
 0x1d6   :  { %11845 = vst [vmem:[#allocation72_spill] sm:$0xff] %v7450_v23  ;;  %11847 = vst [vmem:[#allocation73_spill] sm:$0xff] %v7453_v0  ;;  %v7460_v60 = vmul.f32 0.5, %v11850_v20  ;;  %v1299_v23 = vmul.f32 0.70710677, %v7074_v1  ;;  %5492 = verf.f32 %v1296_v49  ;;  %v1410_v49 = vadd.f32 1.0, %v5465_v46 }
 0x1d7   :  { %11849 = vst [vmem:[#allocation74_spill] sm:$0xff] %v7457_v41  ;;  %v1300_v0 = vmul.f32 0.70710677, %v7079_v10  ;;  %v1301_v34 = vmul.f32 0.70710677, %v7083_v27  ;;  %5494 = verf.f32 %v1297_v45 }
 0x1d8   :  { %11851 = vst [vmem:[#allocation75_spill] sm:$0xff] %v7460_v60  ;;  %v1302_v59 = vmul.f32 0.70710677, %v7087_v42  ;;  %v1303_v41 = vmul.f32 0.70710677, %v7091_v31  ;;  %v5473_v60 = vpop.eup %5472  ;;  %5496 = verf.f32 %v1298_v39  ;;  %v1412_v39 = vadd.f32 1.0, %v5469_v21 }
 0x1d9   :  { %v1304_v44 = vmul.f32 0.70710677, %v7095_v14  ;;  %v1305_v5 = vmul.f32 0.70710677, %v7099_v47  ;;  %v1306_v7 = vmul.f32 0.70710677, %v7103_v17  ;;  %v5475_v1 = vpop.eup %5474  ;;  %5498 = verf.f32 %v1299_v23 }
 0x1da   :  { %v1307_v10 = vmul.f32 0.70710677, %v7107_v57  ;;  %v1308_v12 = vmul.f32 0.70710677, %v7111_v36  ;;  %v1309_v27 = vmul.f32 0.70710677, %v7115_v52  ;;  %v5477_v42 = vpop.eup %5476  ;;  %5500 = verf.f32 %v1300_v0 }
 0x1db   :  { %v7476_v31 = vmul.f32 0.70710677, %v7119_v25  ;;  %v7479_v9 = vmul.f32 0.70710677, %v7123_v58  ;;  %v7482_v14 = vmul.f32 0.70710677, %v7127_v29  ;;  %v5479_v47 = vpop.eup %5478  ;;  %5502 = verf.f32 %v1301_v34 }
 0x1dc   :  { %v7485_v17 = vmul.f32 0.70710677, %v7131_v3  ;;  %v7488_v57 = vmul.f32 0.70710677, %v7135_v35  ;;  %v7491_v36 = vmul.f32 0.70710677, %v7139_v63  ;;  %v5481_v52 = vpop.eup %5480  ;;  %5504 = verf.f32 %v1302_v59 }
 0x1dd   :  { %v7494_v25 = vmul.f32 0.70710677, %v7143_v13  ;;  %v7497_v58 = vmul.f32 0.70710677, %v7147_v2  ;;  %v7500_v29 = vmul.f32 0.70710677, %v11818_v18  ;;  %v5483_v3 = vpop.eup %5482  ;;  %5506 = verf.f32 %v1303_v41 }
 0x1de   :  { %v1411_v35 = vadd.f32 1.0, %v5467_v40  ;;  %v5485_v45 = vpop.eup %5484  ;;  %v1413_v63 = vadd.f32 1.0, %v5471_v62  ;;  %v1414_v23 = vadd.f32 1.0, %v5473_v60  ;;  %v1415_v20 = vadd.f32 1.0, %v5475_v1 }
 0x1df   :  { %v5487_v24 = vpop.eup %5486  ;;  %v1416_v13 = vadd.f32 1.0, %v5477_v42  ;;  %v1417_v50 = vadd.f32 1.0, %v5479_v47  ;;  %v1418_v2 = vadd.f32 1.0, %v5481_v52  ;;  %5508 = verf.f32 %v1304_v44  ;;  %v11855_v42 = vld [vmem:[#allocation40_spill] sm:$0xff]  ;;  %v11856_v52 = vld [vmem:[#allocation37_spill] sm:$0xff] }
 0x1e0   :  { %v5489_v8 = vpop.eup %5488  ;;  %v1419_v18 = vadd.f32 1.0, %v5483_v3  ;;  %v1420_v11 = vadd.f32 1.0, %v5485_v45  ;;  %v1421_v0 = vadd.f32 1.0, %v5487_v24  ;;  %5510 = verf.f32 %v1305_v5  ;;  %v11858_v45 = vld [vmem:[#allocation42_spill] sm:$0xff] }
 0x1e1   :  { %v5491_v6 = vpop.eup %5490  ;;  %v1422_v46 = vadd.f32 1.0, %v5489_v8  ;;  %v1474_v40 = vmul.f32 %v1410_v49, %v7277_v33  ;;  %v1475_v59 = vmul.f32 %v1411_v35, %v7280_v38  ;;  %5512 = verf.f32 %v1306_v7  ;;  %v11857_v49 = vld [vmem:[#allocation41_spill] sm:$0xff] }
 0x1e2   :  { %v5493_v21 = vpop.eup %5492  ;;  %v1423_v60 = vadd.f32 1.0, %v5491_v6  ;;  %v1476_v41 = vmul.f32 %v1412_v39, %v7283_v22  ;;  %v1477_v62 = vmul.f32 %v1413_v63, %v7286_v32  ;;  %5514 = verf.f32 %v1307_v10  ;;  %v11853_v10 = vld [vmem:[#allocation14_spill] sm:$0xff] }
 0x1e3   :  { %v5495_v34 = vpop.eup %5494  ;;  %v1424_v44 = vadd.f32 1.0, %v5493_v21  ;;  %v1478_v1 = vmul.f32 %v1414_v23, %v7289_v28  ;;  %v1479_v24 = vmul.f32 %v1415_v20, %v7292_v56  ;;  %1630 = vst.msk [vmem:[#allocation2 + $0x30] sm:$0xff] %vm687_vm2, %v1474_v40  ;;  %1663 = vst.msk [vmem:[#allocation2 + $0x21] sm:$0xff] %vm687_vm2, %v1475_v59  ;;  %5516 = verf.f32 %v1308_v12  ;;  %v11859_v23 = vld [vmem:[#allocation44_spill] sm:$0xff]  ;;  %v11861_v21 = vld [vmem:[#allocation46_spill] sm:$0xff] }
 0x1e4   :  { %v5497_v8 = vpop.eup %5496  ;;  %v1425_v33 = vadd.f32 1.0, %v5495_v34  ;;  %v1480_v6 = vmul.f32 %v1416_v13, %v7295_v19  ;;  %v1481_v38 = vmul.f32 %v1417_v50, %v7298_v53  ;;  %1631 = vst.msk [vmem:[#allocation2 + $0x50] sm:$0xff] %vm687_vm2, %v1476_v41  ;;  %1664 = vst.msk [vmem:[#allocation2 + $0x41] sm:$0xff] %vm687_vm2, %v1477_v62  ;;  %5518 = verf.f32 %v1309_v27  ;;  %v11862_v62 = vld [vmem:[#allocation47_spill] sm:$0xff] }
 0x1e5   :  { %v5499_v22 = vpop.eup %5498  ;;  %v1426_v32 = vadd.f32 1.0, %v5497_v8  ;;  %v1482_v28 = vmul.f32 %v1418_v2, %v7301_v37  ;;  %v1483_v56 = vmul.f32 %v1419_v18, %v7304_v15  ;;  %1632 = vst.msk [vmem:[#allocation2 + $0x70] sm:$0xff] %vm687_vm2, %v1478_v1  ;;  %1665 = vst.msk [vmem:[#allocation2 + $0x61] sm:$0xff] %vm687_vm2, %v1479_v24  ;;  %5520 = verf.f32 %v7476_v31  ;;  %v11852_v15 = vld [vmem:[#allocation13_spill] sm:$0xff]  ;;  %v11863_v1 = vld [vmem:[#allocation48_spill] sm:$0xff] }
 0x1e6   :  { %v5501_v20 = vpop.eup %5500  ;;  %v1427_v19 = vadd.f32 1.0, %v5499_v22  ;;  %v1484_v53 = vmul.f32 %v1420_v11, %v7307_v26  ;;  %v1485_v50 = vmul.f32 %v1421_v0, %v7310_v55  ;;  %1633 = vst.msk [vmem:[#allocation2 + $0x90] sm:$0xff] %vm687_vm2, %v1480_v6  ;;  %1666 = vst.msk [vmem:[#allocation2 + $0x81] sm:$0xff] %vm687_vm2, %v1481_v38  ;;  %5522 = verf.f32 %v7479_v9  ;;  %v11854_v55 = vld [vmem:[#allocation39_spill] sm:$0xff]  ;;  %v11860_v0 = vld [vmem:[#allocation45_spill] sm:$0xff] }
 0x1e7   :  { %v5503_v5 = vpop.eup %5502  ;;  %v1428_v37 = vadd.f32 1.0, %v5501_v20  ;;  %v1486_v7 = vmul.f32 %v1422_v46, %v11852_v15  ;;  %v1487_v12 = vmul.f32 %v1423_v60, %v11853_v10  ;;  %1634 = vst.msk [vmem:[#allocation2 + $0xb0] sm:$0xff] %vm687_vm2, %v1482_v28  ;;  %1667 = vst.msk [vmem:[#allocation2 + $0xa1] sm:$0xff] %vm687_vm2, %v1483_v56  ;;  %5524 = verf.f32 %v7482_v14  ;;  %v11866_v20 = vld [vmem:[#allocation51_spill] sm:$0xff] }
 0x1e8   :  { %v5505_v27 = vpop.eup %5504  ;;  %v1429_v26 = vadd.f32 1.0, %v5503_v5  ;;  %v1488_v11 = vmul.f32 %v1424_v44, %v11854_v55  ;;  %v1489_v31 = vmul.f32 %v1425_v33, %v11855_v42  ;;  %1635 = vst.msk [vmem:[#allocation2 + $0xd0] sm:$0xff] %vm687_vm2, %v1484_v53  ;;  %1668 = vst.msk [vmem:[#allocation2 + $0xc1] sm:$0xff] %vm687_vm2, %v1485_v50  ;;  %5526 = verf.f32 %v7485_v17  ;;  %v11864_v33 = vld [vmem:[#allocation49_spill] sm:$0xff]  ;;  %v11867_v5 = vld [vmem:[#allocation52_spill] sm:$0xff] }
 0x1e9   :  { %v5507_v9 = vpop.eup %5506  ;;  %v1430_v47 = vadd.f32 1.0, %v5505_v27  ;;  %v1490_v3 = vmul.f32 %v1426_v32, %v11856_v52  ;;  %v1491_v35 = vmul.f32 %v1427_v19, %v11857_v49  ;;  %1636 = vst.msk [vmem:[#allocation2 + $0xf0] sm:$0xff] %vm687_vm2, %v1486_v7  ;;  %1669 = vst.msk [vmem:[#allocation2 + $0xe1] sm:$0xff] %vm687_vm2, %v1487_v12  ;;  %5528 = verf.f32 %v7488_v57  ;;  %v11868_v7 = vld [vmem:[#allocation23_spill] sm:$0xff]  ;;  %v11869_v12 = vld [vmem:[#allocation54_spill] sm:$0xff] }
 0x1ea   :  { %v5509_v14 = vpop.eup %5508  ;;  %v1431_v39 = vadd.f32 1.0, %v5507_v9  ;;  %v1492_v63 = vmul.f32 %v1428_v37, %v11858_v45  ;;  %v1493_v13 = vmul.f32 %v1429_v26, %v11859_v23  ;;  %1637 = vst.msk [vmem:[#allocation2 + $0x110] sm:$0xff] %vm687_vm2, %v1488_v11  ;;  %1670 = vst.msk [vmem:[#allocation2 + $0x101] sm:$0xff] %vm687_vm2, %v1489_v31  ;;  %v1319_v2 = vmul.f32 0.70710677, %v7155_v4  ;;  %v11870_v55 = vld [vmem:[#allocation19_spill] sm:$0xff] }
 0x1eb   :  { %v5511_v17 = vpop.eup %5510  ;;  %5530 = verf.f32 %v7491_v36  ;;  %v1432_v18 = vadd.f32 1.0, %v5509_v14  ;;  %v1494_v46 = vmul.f32 %v1430_v47, %v11860_v0  ;;  %1638 = vst.msk [vmem:[#allocation2 + $0x130] sm:$0xff] %vm687_vm2, %v1490_v3  ;;  %1671 = vst.msk [vmem:[#allocation2 + $0x121] sm:$0xff] %vm687_vm2, %v1491_v35  ;;  %v1320_v40 = vmul.f32 0.70710677, %v11821_v43  ;;  %v11871_v42 = vld [vmem:[#allocation55_spill] sm:$0xff] }
 0x1ec   :  { %v5513_v57 = vpop.eup %5512  ;;  %5532 = verf.f32 %v7494_v25  ;;  %v1433_v59 = vadd.f32 1.0, %v5511_v17  ;;  %v1495_v60 = vmul.f32 %v1431_v39, %v11861_v21  ;;  %1639 = vst.msk [vmem:[#allocation2 + $0x150] sm:$0xff] %vm687_vm2, %v1492_v63  ;;  %1672 = vst.msk [vmem:[#allocation2 + $0x141] sm:$0xff] %vm687_vm2, %v1493_v13  ;;  %v1321_v36 = vmul.f32 0.70710677, %v7163_v16  ;;  %v11872_v47 = vld [vmem:[#allocation21_spill] sm:$0xff] }
 0x1ed   :  { %v5515_v4 = vpop.eup %5514  ;;  %5534 = verf.f32 %v7497_v58  ;;  %v1434_v41 = vadd.f32 1.0, %v5513_v57  ;;  %v1496_v34 = vmul.f32 %v1432_v18, %v11862_v62  ;;  %1640 = vst.msk [vmem:[#allocation2 + $0x170] sm:$0xff] %vm687_vm2, %v1494_v46  ;;  %v1322_v25 = vmul.f32 0.70710677, %v7167_v30  ;;  %v11873_v49 = vld [vmem:[#allocation56_spill] sm:$0xff]  ;;  %v11874_v39 = vld [vmem:[#allocation25_spill] sm:$0xff] }
 0x1ee   :  { %v5517_v43 = vpop.eup %5516  ;;  %5536 = verf.f32 %v7500_v29  ;;  %v1435_v44 = vadd.f32 1.0, %v5515_v4  ;;  %v1497_v24 = vmul.f32 %v1433_v59, %v11863_v1  ;;  %1673 = vst.msk [vmem:[#allocation2 + $0x161] sm:$0xff] %vm687_vm2, %v1495_v60  ;;  %v1323_v16 = vmul.f32 0.70710677, %v7171_v48  ;;  %v11865_v29 = vld [vmem:[#allocation50_spill] sm:$0xff]  ;;  %v11875_v23 = vld [vmem:[#allocation57_spill] sm:$0xff] }
 0x1ef   :  { %v5519_v8 = vpop.eup %5518  ;;  %5538 = verf.f32 %v1319_v2  ;;  %v1436_v58 = vadd.f32 1.0, %v5517_v43  ;;  %v1498_v6 = vmul.f32 %v1434_v41, %v11864_v33  ;;  %1641 = vst.msk [vmem:[#allocation2 + $0x190] sm:$0xff] %vm687_vm2, %v1496_v34  ;;  %v1324_v22 = vmul.f32 0.70710677, %v11826_v54  ;;  %v11876_v2 = vld [vmem:[#allocation28_spill] sm:$0xff]  ;;  %v11877_v46 = vld [vmem:[#allocation58_spill] sm:$0xff] }
 0x1f0   :  { %v5521_v38 = vpop.eup %5520  ;;  %5540 = verf.f32 %v1320_v40  ;;  %v1437_v30 = vadd.f32 1.0, %v5519_v8  ;;  %v1499_v32 = vmul.f32 %v1435_v44, %v11865_v29  ;;  %1674 = vst.msk [vmem:[#allocation2 + $0x181] sm:$0xff] %vm687_vm2, %v1497_v24  ;;  %v1325_v56 = vmul.f32 0.70710677, %v11828_v61  ;;  %v11878_v59 = vld [vmem:[#allocation26_spill] sm:$0xff]  ;;  %v11879_v4 = vld [vmem:[#allocation59_spill] sm:$0xff] }
 0x1f1   :  { %v5523_v28 = vpop.eup %5522  ;;  %5542 = verf.f32 %v1321_v36  ;;  %v1438_v48 = vadd.f32 1.0, %v5521_v38  ;;  %v1500_v19 = vmul.f32 %v1436_v58, %v11866_v20  ;;  %1642 = vst.msk [vmem:[#allocation2 + $0x1b0] sm:$0xff] %vm687_vm2, %v1498_v6  ;;  %v1326_v50 = vmul.f32 0.70710677, %v11830_v51  ;;  %v11880_v62 = vld [vmem:[#allocation27_spill] sm:$0xff]  ;;  %v11882_v24 = vld [vmem:[#allocation29_spill] sm:$0xff] }
 0x1f2   :  { %v5525_v53 = vpop.eup %5524  ;;  %5544 = verf.f32 %v1322_v25  ;;  %v1439_v54 = vadd.f32 1.0, %v5523_v28  ;;  %v1501_v37 = vmul.f32 %v1437_v30, %v11867_v5  ;;  %1675 = vst.msk [vmem:[#allocation2 + $0x1a1] sm:$0xff] %vm687_vm2, %v1499_v32  ;;  %v1327_v10 = vmul.f32 0.70710677, %v11868_v7  ;;  %v11881_v25 = vld [vmem:[#allocation60_spill] sm:$0xff]  ;;  %v11883_v58 = vld [vmem:[#allocation61_spill] sm:$0xff] }
 0x1f3   :  { %v5527_v15 = vpop.eup %5526  ;;  %5546 = verf.f32 %v1323_v16  ;;  %v1440_v61 = vadd.f32 1.0, %v5525_v53  ;;  %v1502_v27 = vmul.f32 %v1438_v48, %v11869_v12  ;;  %1643 = vst.msk [vmem:[#allocation2 + $0x1d0] sm:$0xff] %vm687_vm2, %v1500_v19  ;;  %v1328_v11 = vmul.f32 0.70710677, %v11870_v55  ;;  %v11884_v38 = vld [vmem:[#allocation30_spill] sm:$0xff]  ;;  %v11885_v29 = vld [vmem:[#allocation15_spill] sm:$0xff] }
 0x1f4   :  { %v5529_v26 = vpop.eup %5528  ;;  %5548 = verf.f32 %v1324_v22  ;;  %v1441_v51 = vadd.f32 1.0, %v5527_v15  ;;  %v1503_v31 = vmul.f32 %v1439_v54, %v11871_v42  ;;  %1676 = vst.msk [vmem:[#allocation2 + $0x1c1] sm:$0xff] %vm687_vm2, %v1501_v37  ;;  %v1329_v52 = vmul.f32 0.70710677, %v11872_v47  ;;  %v11887_v19 = vld [vmem:[#allocation62_spill] sm:$0xff]  ;;  %v11889_v15 = vld [vmem:[#allocation17_spill] sm:$0xff] }
 0x1f5   :  { %v5531_v9 = vpop.eup %5530  ;;  %5550 = verf.f32 %v1325_v56  ;;  %v1442_v3 = vadd.f32 1.0, %v5529_v26  ;;  %v1504_v35 = vmul.f32 %v1440_v61, %v11873_v49  ;;  %1644 = vst.msk [vmem:[#allocation2 + $0x1f0] sm:$0xff] %vm687_vm2, %v1502_v27  ;;  %v1330_v45 = vmul.f32 0.70710677, %v11874_v39  ;;  %v11886_v56 = vld [vmem:[#allocation31_spill] sm:$0xff]  ;;  %v11888_v54 = vld [vmem:[#allocation18_spill] sm:$0xff] }
 0x1f6   :  { %v5533_v14 = vpop.eup %5532  ;;  %5552 = verf.f32 %v1326_v50  ;;  %v1443_v63 = vadd.f32 1.0, %v5531_v9  ;;  %v1505_v13 = vmul.f32 %v1441_v51, %v11875_v23  ;;  %1677 = vst.msk [vmem:[#allocation2 + $0x1e1] sm:$0xff] %vm687_vm2, %v1503_v31  ;;  %v1331_v18 = vmul.f32 0.70710677, %v11876_v2  ;;  %v11890_v61 = vld [vmem:[#allocation16_spill] sm:$0xff]  ;;  %v11891_v26 = vld [vmem:[#allocation63_spill] sm:$0xff] }
 0x1f7   :  { %v5535_v17 = vpop.eup %5534  ;;  %5554 = verf.f32 %v1327_v10  ;;  %v1444_v0 = vadd.f32 1.0, %v5533_v14  ;;  %v1506_v57 = vmul.f32 %v1442_v3, %v11877_v46  ;;  %1645 = vst.msk [vmem:[#allocation2 + $0x210] sm:$0xff] %vm687_vm2, %v1504_v35  ;;  %v1332_v21 = vmul.f32 0.70710677, %v11878_v59  ;;  %v11892_v51 = vld [vmem:[#allocation32_spill] sm:$0xff]  ;;  %v11894_v3 = vld [vmem:[#allocation43_spill] sm:$0xff] }
 0x1f8   :  { %v5537_v40 = vpop.eup %5536  ;;  %5556 = verf.f32 %v1328_v11  ;;  %v1445_v60 = vadd.f32 1.0, %v5535_v17  ;;  %v1507_v36 = vmul.f32 %v1443_v63, %v11879_v4  ;;  %1678 = vst.msk [vmem:[#allocation2 + $0x201] sm:$0xff] %vm687_vm2, %v1505_v13  ;;  %v1333_v34 = vmul.f32 0.70710677, %v11880_v62  ;;  %v11893_v9 = vld [vmem:[#allocation64_spill] sm:$0xff]  ;;  %v11895_v14 = vld [vmem:[#allocation65_spill] sm:$0xff] }
 0x1f9   :  { %v5539_v41 = vpop.eup %5538  ;;  %5558 = verf.f32 %v1329_v52  ;;  %v1446_v43 = vadd.f32 1.0, %v5537_v40  ;;  %v1508_v44 = vmul.f32 %v1444_v0, %v11881_v25  ;;  %1646 = vst.msk [vmem:[#allocation2 + $0x270] sm:$0xff] %vm687_vm2, %v1506_v57  ;;  %v1334_v8 = vmul.f32 0.70710677, %v11882_v24  ;;  %v11896_v63 = vld [vmem:[#allocation6_spill] sm:$0xff]  ;;  %v11898_v0 = vld [vmem:[#allocation7_spill] sm:$0xff] }
 0x1fa   :  { %v5541_v1 = vpop.eup %5540  ;;  %5560 = verf.f32 %v1330_v45  ;;  %v1447_v16 = vadd.f32 1.0, %v5539_v41  ;;  %v1509_v33 = vmul.f32 %v1445_v60, %v11883_v58  ;;  %1679 = vst.msk [vmem:[#allocation2 + $0x261] sm:$0xff] %vm687_vm2, %v1507_v36  ;;  %v1335_v22 = vmul.f32 0.70710677, %v11884_v38  ;;  %v11897_v17 = vld [vmem:[#allocation22_spill] sm:$0xff]  ;;  %v11899_v40 = vld [vmem:[#allocation24_spill] sm:$0xff] }
 0x1fb   :  { %v5543_v6 = vpop.eup %5542  ;;  %5562 = verf.f32 %v1331_v18  ;;  %v1448_v30 = vadd.f32 1.0, %v5541_v1  ;;  %v1510_v32 = vmul.f32 %v1446_v43, %v11885_v29  ;;  %1647 = vst.msk [vmem:[#allocation2 + $0x290] sm:$0xff] %vm687_vm2, %v1508_v44  ;;  %v1336_v48 = vmul.f32 0.70710677, %v11886_v56  ;;  %v11900_v60 = vld [vmem:[#allocation8_spill] sm:$0xff]  ;;  %v11902_v43 = vld [vmem:[#allocation9_spill] sm:$0xff] }
 0x1fc   :  { %v5545_v28 = vpop.eup %5544  ;;  %5564 = verf.f32 %v1332_v21  ;;  %v1449_v20 = vadd.f32 1.0, %v5543_v6  ;;  %v1511_v53 = vmul.f32 %v1447_v16, %v11887_v19  ;;  %1680 = vst.msk [vmem:[#allocation2 + $0x281] sm:$0xff] %vm687_vm2, %v1509_v33  ;;  %v1337_v5 = vmul.f32 0.70710677, %v11888_v54  ;;  %v11901_v41 = vld [vmem:[#allocation20_spill] sm:$0xff]  ;;  %v11903_v1 = vld [vmem:[#allocation66_spill] sm:$0xff] }
 0x1fd   :  { %v5547_v50 = vpop.eup %5546  ;;  %5566 = verf.f32 %v1333_v34  ;;  %v1450_v37 = vadd.f32 1.0, %v5545_v28  ;;  %v1512_v7 = vmul.f32 %v1448_v30, %v11889_v15  ;;  %1648 = vst.msk [vmem:[#allocation2 + $0x2b0] sm:$0xff] %vm687_vm2, %v1510_v32  ;;  %v1338_v12 = vmul.f32 0.70710677, %v11890_v61  ;;  %v11904_v33 = vld [vmem:[#allocation67_spill] sm:$0xff]  ;;  %v11905_v29 = vld [vmem:[#allocation68_spill] sm:$0xff] }
 0x1fe   :  { %v5549_v10 = vpop.eup %5548  ;;  %5568 = verf.f32 %v1334_v8  ;;  %v1451_v27 = vadd.f32 1.0, %v5547_v50  ;;  %v1513_v55 = vmul.f32 %v1449_v20, %v11891_v26  ;;  %1681 = vst.msk [vmem:[#allocation2 + $0x2a1] sm:$0xff] %vm687_vm2, %v1511_v53  ;;  %v1339_v42 = vmul.f32 0.70710677, %v11892_v51  ;;  %v11906_v20 = vld [vmem:[#allocation69_spill] sm:$0xff]  ;;  %v7647_v15 = vld [vmem:[#allocation2 + $0x20] sm:$0xff] }
 0x1ff   :  { %v5551_v11 = vpop.eup %5550  ;;  %5570 = verf.f32 %v1335_v22  ;;  %v1452_v31 = vadd.f32 1.0, %v5549_v10  ;;  %v1514_v47 = vmul.f32 %v1450_v37, %v11893_v9  ;;  %1649 = vst.msk [vmem:[#allocation2 + $0x2d0] sm:$0xff] %vm687_vm2, %v1512_v7  ;;  %v1340_v49 = vmul.f32 0.70710677, %v11894_v3  ;;  %11908 = vst [vmem:[#allocation13_spill] sm:$0xff] %v7647_v15  ;;  %v7649_v7 = vld [vmem:[#allocation2 + $0x420] sm:$0xff] }
 0x200   :  { %v5553_v52 = vpop.eup %5552  ;;  %5572 = verf.f32 %v1336_v48  ;;  %v1453_v35 = vadd.f32 1.0, %v5551_v11  ;;  %v1515_v39 = vmul.f32 %v1451_v27, %v11895_v14  ;;  %1682 = vst.msk [vmem:[#allocation2 + $0x2c1] sm:$0xff] %vm687_vm2, %v1513_v55  ;;  %v1341_v23 = vmul.f32 0.70710677, %v11896_v63  ;;  %11909 = vst [vmem:[#allocation14_spill] sm:$0xff] %v7649_v7  ;;  %v11910_v26 = vld [vmem:[#allocation71_spill] sm:$0xff] }
 0x201   :  { %v5555_v45 = vpop.eup %5554  ;;  %5574 = verf.f32 %v1337_v5  ;;  %v1454_v13 = vadd.f32 1.0, %v5553_v52  ;;  %v1516_v2 = vmul.f32 %v1452_v31, %v11897_v17  ;;  %1650 = vst.msk [vmem:[#allocation2 + $0x2f0] sm:$0xff] %vm687_vm2, %v1514_v47  ;;  %v1342_v46 = vmul.f32 0.70710677, %v11898_v0  ;;  %v11907_v5 = vld [vmem:[#allocation70_spill] sm:$0xff]  ;;  %v11913_v52 = vld [vmem:[#allocation72_spill] sm:$0xff] }
 0x202   :  { %v5557_v18 = vpop.eup %5556  ;;  %5576 = verf.f32 %v1338_v12  ;;  %v1455_v57 = vadd.f32 1.0, %v5555_v45  ;;  %v1517_v59 = vmul.f32 %v1453_v35, %v11899_v40  ;;  %1683 = vst.msk [vmem:[#allocation2 + $0x2e1] sm:$0xff] %vm687_vm2, %v1515_v39  ;;  %v1344_v4 = vmul.f32 0.70710677, %v11900_v60  ;;  %v7659_v11 = vld [vmem:[#allocation2 + $0x40] sm:$0xff]  ;;  %v11916_v45 = vld [vmem:[#allocation73_spill] sm:$0xff] }
 0x203   :  { %v5559_v21 = vpop.eup %5558  ;;  %5578 = verf.f32 %v1339_v42  ;;  %v1456_v36 = vadd.f32 1.0, %v5557_v18  ;;  %v1518_v62 = vmul.f32 %v1454_v13, %v11901_v41  ;;  %1651 = vst.msk [vmem:[#allocation2 + $0x310] sm:$0xff] %vm687_vm2, %v1516_v2  ;;  %v1345_v25 = vmul.f32 0.70710677, %v11902_v43  ;;  %11911 = vst [vmem:[#allocation39_spill] sm:$0xff] %v7659_v11  ;;  %v7673_v35 = vld [vmem:[#allocation2 + $0xa0] sm:$0xff] }
 0x204   :  { %v5561_v34 = vpop.eup %5560  ;;  %5580 = verf.f32 %v1340_v49  ;;  %v1457_v44 = vadd.f32 1.0, %v5559_v21  ;;  %v1519_v24 = vmul.f32 %v1455_v57, %v11903_v1  ;;  %1684 = vst.msk [vmem:[#allocation2 + $0x301] sm:$0xff] %vm687_vm2, %v1517_v59  ;;  %v7628_v16 = vmul.f32 0.5, %v11888_v54  ;;  %v7671_v49 = vld [vmem:[#allocation2 + $0x80] sm:$0xff]  ;;  %11915 = vst [vmem:[#allocation41_spill] sm:$0xff] %v7673_v35  ;;  %v11919_v17 = vld [vmem:[#allocation35_spill] sm:$0xff] }
 0x205   :  { %v5563_v8 = vpop.eup %5562  ;;  %5582 = verf.f32 %v1341_v23  ;;  %v1458_v58 = vadd.f32 1.0, %v5561_v34  ;;  %v1520_v6 = vmul.f32 %v1456_v36, %v11904_v33  ;;  %1652 = vst.msk [vmem:[#allocation2 + $0x330] sm:$0xff] %vm687_vm2, %v1518_v62  ;;  %v7633_v22 = vmul.f32 0.5, %v11890_v61  ;;  %11914 = vst [vmem:[#allocation37_spill] sm:$0xff] %v7671_v49  ;;  %v7677_v23 = vld [vmem:[#allocation2 + $0xc0] sm:$0xff]  ;;  %v11924_v62 = vld [vmem:[#allocation75_spill] sm:$0xff] }
 0x206   :  { %v5565_v38 = vpop.eup %5564  ;;  %5584 = verf.f32 %v1342_v46  ;;  %v1459_v30 = vadd.f32 1.0, %v5563_v8  ;;  %v1521_v32 = vmul.f32 %v1457_v44, %v11905_v29  ;;  %1685 = vst.msk [vmem:[#allocation2 + $0x321] sm:$0xff] %vm687_vm2, %v1519_v24  ;;  %v7638_v56 = vmul.f32 0.5, %v11892_v51  ;;  %v7661_v51 = vld [vmem:[#allocation2 + $0x60] sm:$0xff]  ;;  %11917 = vst [vmem:[#allocation42_spill] sm:$0xff] %v7677_v23  ;;  %v7715_v1 = vld [vmem:[#allocation2 + $0x30] sm:$0xff] }
 0x207   :  { %v5567_v28 = vpop.eup %5566  ;;  %5586 = verf.f32 %v1344_v4  ;;  %v1460_v48 = vadd.f32 1.0, %v5565_v38  ;;  %v1522_v19 = vmul.f32 %v1458_v58, %v11906_v20  ;;  %1653 = vst.msk [vmem:[#allocation2 + $0x350] sm:$0xff] %vm687_vm2, %v1520_v6  ;;  %v7643_v50 = vmul.f32 0.5, %v11894_v3  ;;  %11912 = vst [vmem:[#allocation40_spill] sm:$0xff] %v7661_v51  ;;  %v7679_v13 = vld [vmem:[#allocation2 + $0xe0] sm:$0xff]  ;;  %v7731_v29 = vld [vmem:[#allocation2 + $0x70] sm:$0xff] }
 0x208   :  { %v5569_v53 = vpop.eup %5568  ;;  %5588 = verf.f32 %v1345_v25  ;;  %v1461_v54 = vadd.f32 1.0, %v5567_v28  ;;  %v1523_v37 = vmul.f32 %v1459_v30, %v11907_v5  ;;  %1686 = vst.msk [vmem:[#allocation2 + $0x341] sm:$0xff] %vm687_vm2, %v1521_v32  ;;  %v7652_v61 = vmul.f32 0.5, %v11896_v63  ;;  %11918 = vst [vmem:[#allocation44_spill] sm:$0xff] %v7679_v13  ;;  %v11921_v57 = vld [vmem:[#allocation74_spill] sm:$0xff]  ;;  %v7729_v30 = vld [vmem:[#allocation2 + $0x50] sm:$0xff] }
 0x209   :  { %v5571_v10 = vpop.eup %5570  ;;  %v7655_v12 = vmul.f32 0.5, %v11898_v0  ;;  %v1462_v27 = vadd.f32 1.0, %v5569_v53  ;;  %v1524_v55 = vmul.f32 %v1460_v48, %v11910_v26  ;;  %1654 = vst.msk [vmem:[#allocation2 + $0x370] sm:$0xff] %vm687_vm2, %v1522_v19  ;;  %v7664_v31 = vmul.f32 0.5, %v11900_v60  ;;  %v7691_v59 = vld [vmem:[#allocation2 + $0x100] sm:$0xff]  ;;  %11926 = vst [vmem:[#allocation49_spill] sm:$0xff] %v7715_v1 }
 0x20a   :  { %v5573_v42 = vpop.eup %5572  ;;  %v7667_v9 = vmul.f32 0.5, %v11902_v43  ;;  %v1463_v47 = vadd.f32 1.0, %v5571_v10  ;;  %v1525_v3 = vmul.f32 %v1461_v54, %v11913_v52  ;;  %1687 = vst.msk [vmem:[#allocation2 + $0x361] sm:$0xff] %vm687_vm2, %v1523_v37  ;;  %v7683_v2 = vmul.f32 %v11919_v17, %v7647_v15  ;;  %11922 = vst [vmem:[#allocation46_spill] sm:$0xff] %v7691_v59  ;;  %v7693_v21 = vld [vmem:[#allocation2 + $0x120] sm:$0xff]  ;;  %v7745_v53 = vld [vmem:[#allocation2 + $0x90] sm:$0xff] }
 0x20b   :  { %v5575_v14 = vpop.eup %5574  ;;  %v1464_v39 = vadd.f32 1.0, %v5573_v42  ;;  %v1526_v63 = vmul.f32 %v1462_v27, %v11916_v45  ;;  %1655 = vst.msk [vmem:[#allocation2 + $0x390] sm:$0xff] %vm687_vm2, %v1524_v55  ;;  %v7687_v18 = vmul.f32 %v11919_v17, %v7649_v7  ;;  %11923 = vst [vmem:[#allocation47_spill] sm:$0xff] %v7693_v21  ;;  %v7697_v60 = vmul.f32 %v11919_v17, %v7659_v11  ;;  %v7705_v43 = vld [vmem:[#allocation2 + $0x140] sm:$0xff]  ;;  %v7747_v54 = vld [vmem:[#allocation2 + $0xb0] sm:$0xff] }
 0x20c   :  { %v5577_v0 = vpop.eup %5576  ;;  %v1465_v46 = vadd.f32 1.0, %v5575_v14  ;;  %v1527_v40 = vmul.f32 %v1463_v47, %v11921_v57  ;;  %1688 = vst.msk [vmem:[#allocation2 + $0x381] sm:$0xff] %vm687_vm2, %v1525_v3  ;;  %v7701_v4 = vmul.f32 %v11919_v17, %v7661_v51  ;;  %11925 = vst [vmem:[#allocation48_spill] sm:$0xff] %v7705_v43  ;;  %v7709_v25 = vmul.f32 %v11919_v17, %v7671_v49  ;;  %v7719_v33 = vld [vmem:[#allocation2 + $0x160] sm:$0xff]  ;;  %v7757_v26 = vld [vmem:[#allocation2 + $0xd0] sm:$0xff] }
 0x20d   :  { %11920 = vst [vmem:[#allocation45_spill] sm:$0xff] %v7687_v18  ;;  %v5579_v36 = vpop.eup %5578  ;;  %v1466_v41 = vadd.f32 1.0, %v5577_v0  ;;  %v1528_v34 = vmul.f32 %v1464_v39, %v11924_v62  ;;  %1656 = vst.msk [vmem:[#allocation2 + $0x3b0] sm:$0xff] %vm687_vm2, %v1526_v63  ;;  %v7713_v44 = vmul.f32 %v11919_v17, %v7673_v35  ;;  %v7723_v6 = vmul.f32 %v11919_v17, %v7677_v23  ;;  %v7735_v48 = vld [vmem:[#allocation2 + $0x180] sm:$0xff]  ;;  %v7759_v55 = vld [vmem:[#allocation2 + $0xf0] sm:$0xff] }
 0x20e   :  { %v5581_v24 = vpop.eup %5580  ;;  %v1467_v8 = vadd.f32 1.0, %v5579_v36  ;;  %v1529_v58 = vmul.f32 %v1465_v46, %v7628_v16  ;;  %1689 = vst.msk [vmem:[#allocation2 + $0x3a1] sm:$0xff] %vm687_vm2, %v1527_v40  ;;  %11927 = vst [vmem:[#allocation50_spill] sm:$0xff] %v7719_v33  ;;  %v7727_v38 = vmul.f32 %v11919_v17, %v7679_v13  ;;  %v7739_v20 = vmul.f32 %v11919_v17, %v7691_v59  ;;  %v7751_v10 = vld [vmem:[#allocation2 + $0x1a0] sm:$0xff]  ;;  %v11936_v42 = vld [vmem:[#allocation36_spill] sm:$0xff] }
 0x20f   :  { %11928 = vst [vmem:[#allocation51_spill] sm:$0xff] %v7729_v30  ;;  %11929 = vst [vmem:[#allocation52_spill] sm:$0xff] %v7731_v29  ;;  %v5583_v32 = vpop.eup %5582  ;;  %v1468_v28 = vadd.f32 1.0, %v5581_v24  ;;  %v1530_v16 = vmul.f32 %v1466_v41, %v7633_v22  ;;  %v7743_v19 = vmul.f32 %v11919_v17, %v7693_v21  ;;  %v7755_v27 = vmul.f32 %v11919_v17, %v7705_v43  ;;  %v7771_v39 = vld [vmem:[#allocation2 + $0x110] sm:$0xff]  ;;  %v7867_v49 = vld [vmem:[#allocation2 + $0x340] sm:$0xff] }
 0x210   :  { %1657 = vst.msk [vmem:[#allocation2 + $0x3d0] sm:$0xff] %vm687_vm2, %v1528_v34  ;;  %11930 = vst [vmem:[#allocation23_spill] sm:$0xff] %v7735_v48  ;;  %v5585_v5 = vpop.eup %5584  ;;  %v1469_v37 = vadd.f32 1.0, %v5583_v32  ;;  %v1531_v22 = vmul.f32 %v1467_v8, %v7638_v56  ;;  %v7763_v47 = vmul.f32 %v11936_v42, %v7715_v1  ;;  %v7769_v14 = vmul.f32 %v11919_v17, %v7719_v33  ;;  %v7773_v45 = vld [vmem:[#allocation2 + $0x130] sm:$0xff] }
 0x211   :  { %11931 = vst [vmem:[#allocation54_spill] sm:$0xff] %v7745_v53  ;;  %11932 = vst [vmem:[#allocation19_spill] sm:$0xff] %v7747_v54  ;;  %v5587_v52 = vpop.eup %5586  ;;  %v1470_v3 = vadd.f32 1.0, %v5585_v5  ;;  %v1532_v56 = vmul.f32 %v1468_v28, %v7643_v50  ;;  %v7775_v63 = vld [vmem:[#allocation2 + $0x150] sm:$0xff]  ;;  %v7779_v0 = vmul.f32 %v11936_v42, %v7729_v30  ;;  %v7785_v40 = vmul.f32 %v11919_v17, %v7735_v48  ;;  %v7879_v15 = vld [vmem:[#allocation2 + $0x360] sm:$0xff] }
 0x212   :  { %1690 = vst.msk [vmem:[#allocation2 + $0x3c1] sm:$0xff] %vm687_vm2, %v1529_v58  ;;  %11933 = vst [vmem:[#allocation55_spill] sm:$0xff] %v7751_v10  ;;  %v5589_v46 = vpop.eup %5588  ;;  %v1472_v57 = vadd.f32 1.0, %v5587_v52  ;;  %v1533_v50 = vmul.f32 %v1469_v37, %v7652_v61  ;;  %v7787_v36 = vld [vmem:[#allocation2 + $0x170] sm:$0xff]  ;;  %v1836_v34 = vmul.f32 %v11936_v42, %v7731_v29  ;;  %v7797_v61 = vld [vmem:[#allocation2 + $0x260] sm:$0xff]  ;;  %v7803_v32 = vmul.f32 %v11919_v17, %v7751_v10 }
 0x213   :  { %11934 = vst [vmem:[#allocation21_spill] sm:$0xff] %v7757_v26  ;;  %11935 = vst [vmem:[#allocation56_spill] sm:$0xff] %v7759_v55  ;;  %v7789_v41 = vld [vmem:[#allocation2 + $0x190] sm:$0xff]  ;;  %v1473_v24 = vadd.f32 1.0, %v5589_v46  ;;  %v1534_v8 = vmul.f32 %v1470_v3, %v7655_v12  ;;  %v7799_v58 = vld [vmem:[#allocation2 + $0x280] sm:$0xff]  ;;  %v1838_v52 = vmul.f32 %v11936_v42, %v7747_v54  ;;  %v1839_v3 = vmul.f32 %v11936_v42, %v7757_v26 }
 0x214   :  { %1658 = vst.msk [vmem:[#allocation2 + $0x3f0] sm:$0xff] %vm687_vm2, %v1530_v16  ;;  %11937 = vst [vmem:[#allocation25_spill] sm:$0xff] %v7771_v39  ;;  %v7791_v62 = vld [vmem:[#allocation2 + $0x270] sm:$0xff]  ;;  %v1837_v16 = vmul.f32 %v11936_v42, %v7745_v53  ;;  %v1536_v5 = vmul.f32 %v1472_v57, %v7664_v31  ;;  %v7811_v12 = vld [vmem:[#allocation2 + $0x2a0] sm:$0xff]  ;;  %v1841_v7 = vmul.f32 %v11936_v42, %v7771_v39 }
 0x215   :  { %11938 = vst [vmem:[#allocation57_spill] sm:$0xff] %v7773_v45  ;;  %11939 = vst [vmem:[#allocation28_spill] sm:$0xff] %v7775_v63  ;;  %v7805_v28 = vld [vmem:[#allocation2 + $0x290] sm:$0xff]  ;;  %v7813_v37 = vld [vmem:[#allocation2 + $0x2c0] sm:$0xff]  ;;  %v1537_v46 = vmul.f32 %v1473_v24, %v7667_v9  ;;  %v1842_v10 = vmul.f32 %v11936_v42, %v7773_v45  ;;  %v1843_v48 = vmul.f32 %v11936_v42, %v7775_v63 }
 0x216   :  { %1691 = vst.msk [vmem:[#allocation2 + $0x3e1] sm:$0xff] %vm687_vm2, %v1531_v22  ;;  %11940 = vst [vmem:[#allocation58_spill] sm:$0xff] %v7785_v40  ;;  %v7815_v22 = vld [vmem:[#allocation2 + $0x2b0] sm:$0xff]  ;;  %v7825_v31 = vld [vmem:[#allocation2 + $0x2e0] sm:$0xff]  ;;  %v1750_v24 = vmul.f32 %v11919_v17, %v7797_v61  ;;  %v1844_v21 = vmul.f32 %v11936_v42, %v7787_v36  ;;  %v7852_v59 = vmul.f32 %v11936_v42, %v7789_v41 }
 0x217   :  { %11941 = vst [vmem:[#allocation26_spill] sm:$0xff] %v7787_v36  ;;  %11942 = vst [vmem:[#allocation59_spill] sm:$0xff] %v7789_v41  ;;  %v7827_v57 = vld [vmem:[#allocation2 + $0x2d0] sm:$0xff]  ;;  %v7838_v9 = vld [vmem:[#allocation2 + $0x300] sm:$0xff]  ;;  %v1850_v23 = vmul.f32 %v11936_v42, %v7791_v62  ;;  %v1851_v35 = vmul.f32 %v11936_v42, %v7805_v28  ;;  %v7891_v40 = vadd.f32 %v7763_v47, %v7683_v2 }
 0x218   :  { %11943 = vst [vmem:[#allocation27_spill] sm:$0xff] %v7791_v62  ;;  %1659 = vst.msk [vmem:[#allocation2 + $0x410] sm:$0xff] %vm687_vm2, %v1532_v56  ;;  %v1840_v56 = vmul.f32 %v11936_v42, %v7759_v55  ;;  %v7844_v33 = vld [vmem:[#allocation2 + $0x310] sm:$0xff]  ;;  %v1755_v18 = vmul.f32 %v11919_v17, %v7838_v9  ;;  %v1757_v2 = vmul.f32 %v11919_v17, %v7867_v49 }
 0x219   :  { %11944 = vst [vmem:[#allocation60_spill] sm:$0xff] %v7797_v61  ;;  %11945 = vst [vmem:[#allocation29_spill] sm:$0xff] %v7799_v58  ;;  %v7846_v43 = vld [vmem:[#allocation2 + $0x330] sm:$0xff]  ;;  %v1752_v61 = vmul.f32 %v11919_v17, %v7811_v12  ;;  %v7918_v62 = vadd.f32 %v1838_v52, %v7713_v44  ;;  %v7941_v52 = vadd.f32 %v1841_v7, %v7739_v20  ;;  %v7962_v7 = vld [vmem:[#allocation2 + $0xa1] sm:$0xff] }
 0x21a   :  { %11946 = vst [vmem:[#allocation61_spill] sm:$0xff] %v7803_v32  ;;  %11947 = vst [vmem:[#allocation30_spill] sm:$0xff] %v7805_v28  ;;  %v7861_v13 = vld [vmem:[#allocation2 + $0x350] sm:$0xff] }
 0x21b   :  { %1692 = vst.msk [vmem:[#allocation2 + $0x401] sm:$0xff] %vm687_vm2, %v1533_v50  ;;  %11948 = vst [vmem:[#allocation15_spill] sm:$0xff] %v7811_v12  ;;  %v7829_v50 = vld [vmem:[#allocation2 + $0x2f0] sm:$0xff]  ;;  %v1852_v12 = vmul.f32 %v11936_v42, %v7815_v22  ;;  %v1857_v28 = vmul.f32 %v11936_v42, %v7861_v13 }
 0x21c   :  { %11949 = vst [vmem:[#allocation31_spill] sm:$0xff] %v7813_v37  ;;  %11950 = vst [vmem:[#allocation62_spill] sm:$0xff] %v7815_v22  ;;  %v7871_v51 = vld [vmem:[#allocation2 + $0x370] sm:$0xff]  ;;  %v1854_v11 = vmul.f32 %v11936_v42, %v7829_v50 }
 0x21d   :  { %1660 = vst.msk [vmem:[#allocation2 + $0x430] sm:$0xff] %vm687_vm2, %v1534_v8  ;;  %11951 = vst [vmem:[#allocation18_spill] sm:$0xff] %v7825_v31  ;;  %v1751_v8 = vmul.f32 %v11919_v17, %v7799_v58  ;;  %v1753_v58 = vmul.f32 %v11919_v17, %v7813_v37  ;;  %v1853_v37 = vmul.f32 %v11936_v42, %v7827_v57  ;;  %v7883_v32 = vld [vmem:[#allocation2 + $0x390] sm:$0xff]  ;;  %v7964_v20 = vld [vmem:[#allocation2 + $0x3e0] sm:$0xff] }
 0x21e   :  { %11952 = vst [vmem:[#allocation17_spill] sm:$0xff] %v7827_v57  ;;  %11953 = vst [vmem:[#allocation16_spill] sm:$0xff] %v7829_v50  ;;  %v7893_v57 = vld [vmem:[#allocation2 + $0x380] sm:$0xff]  ;;  %v1858_v47 = vmul.f32 %v11936_v42, %v7871_v51 }
 0x21f   :  { %1661 = vst.msk [vmem:[#allocation2 + $0x450] sm:$0xff] %vm687_vm2, %v1536_v5  ;;  %11954 = vst [vmem:[#allocation63_spill] sm:$0xff] %v7838_v9  ;;  %v7855_v5 = vld [vmem:[#allocation2 + $0x320] sm:$0xff]  ;;  %v7899_v9 = vld [vmem:[#allocation2 + $0x3b0] sm:$0xff] }
 0x220   :  { %11955 = vst [vmem:[#allocation32_spill] sm:$0xff] %v7844_v33  ;;  %11956 = vst [vmem:[#allocation64_spill] sm:$0xff] %v7846_v43  ;;  %v7895_v50 = vld [vmem:[#allocation2 + $0x3a0] sm:$0xff]  ;;  %v1756_v22 = vmul.f32 %v11919_v17, %v7855_v5 }
 0x221   :  { %11957 = vst [vmem:[#allocation43_spill] sm:$0xff] %v7852_v59  ;;  %1694 = vst.msk [vmem:[#allocation2 + $0x441] sm:$0xff] %vm687_vm2, %v1537_v46  ;;  %v1754_v46 = vmul.f32 %v11919_v17, %v7825_v31  ;;  %v1855_v31 = vmul.f32 %v11936_v42, %v7844_v33  ;;  %v1856_v59 = vmul.f32 %v11936_v42, %v7846_v43 }
 0x222   :  { %11958 = vst [vmem:[#allocation65_spill] sm:$0xff] %v7855_v5  ;;  %11959 = vst [vmem:[#allocation6_spill] sm:$0xff] %v7861_v13  ;;  %v7905_v33 = vadd.f32 %v7779_v0, %v7697_v60  ;;  %v7908_v43 = vadd.f32 %v1836_v34, %v7701_v4  ;;  %v7915_v5 = vadd.f32 %v1837_v16, %v7709_v25  ;;  %v7922_v60 = vld [vmem:[#allocation2 + $0x3d0] sm:$0xff] }
 0x223   :  { %11960 = vst [vmem:[#allocation22_spill] sm:$0xff] %v7867_v49  ;;  %11961 = vst [vmem:[#allocation7_spill] sm:$0xff] %v7871_v51  ;;  %v1758_v13 = vmul.f32 %v11919_v17, %v7879_v15  ;;  %v1859_v4 = vmul.f32 %v11936_v42, %v7883_v32  ;;  %v7927_v0 = vadd.f32 %v1839_v3, %v7723_v6  ;;  %v7932_v49 = vld [vmem:[#allocation2 + $0x3c0] sm:$0xff] }
 0x224   :  { %11962 = vst [vmem:[#allocation24_spill] sm:$0xff] %v7879_v15  ;;  %11963 = vst [vmem:[#allocation8_spill] sm:$0xff] %v7883_v32  ;;  %v7930_v34 = vadd.f32 %v1840_v56, %v7727_v38  ;;  %v1759_v25 = vmul.f32 %v11919_v17, %v7893_v57  ;;  %v1760_v44 = vmul.f32 %v11919_v17, %v7895_v50  ;;  %v7943_v15 = vld [vmem:[#allocation2 + $0x21] sm:$0xff] }
 0x225   :  { %11964 = vst [vmem:[#allocation20_spill] sm:$0xff] %v7893_v57  ;;  %11965 = vst [vmem:[#allocation9_spill] sm:$0xff] %v7895_v50  ;;  %v1860_v16 = vmul.f32 %v11936_v42, %v7899_v9  ;;  %v7945_v6 = vld [vmem:[#allocation2 + $0x41] sm:$0xff]  ;;  %v7948_v38 = vadd.f32 %v1842_v10, %v7743_v19  ;;  %v7951_v3 = vadd.f32 %v1843_v48, %v7755_v27 }
 0x226   :  { %11966 = vst [vmem:[#allocation66_spill] sm:$0xff] %v7899_v9  ;;  %11967 = vst [vmem:[#allocation67_spill] sm:$0xff] %v7922_v60  ;;  %v7954_v56 = vadd.f32 %v1844_v21, %v7769_v14  ;;  %v7956_v50 = vadd.f32 %v1850_v23, %v1750_v24  ;;  %v7958_v57 = vld [vmem:[#allocation2 + $0x61] sm:$0xff]  ;;  %v7968_v19 = vmul.f32 %v11936_v42, %v7922_v60 }
 0x227   :  { %11968 = vst [vmem:[#allocation68_spill] sm:$0xff] %v7932_v49  ;;  %11969 = vst [vmem:[#allocation69_spill] sm:$0xff] %v7943_v15  ;;  %v7960_v9 = vld [vmem:[#allocation2 + $0x81] sm:$0xff]  ;;  %v1883_v10 = vadd.f32 %v1851_v35, %v1751_v8  ;;  %v1884_v48 = vadd.f32 %v1852_v12, %v1752_v61  ;;  %v1885_v27 = vadd.f32 %v1853_v37, %v1753_v58 }
 0x228   :  { %11970 = vst [vmem:[#allocation70_spill] sm:$0xff] %v7945_v6  ;;  %11971 = vst [vmem:[#allocation71_spill] sm:$0xff] %v7951_v3  ;;  %v7970_v3 = vld [vmem:[#allocation2 + $0xc1] sm:$0xff]  ;;  %v7976_v23 = vmul.f32 %v11919_v17, %v7932_v49  ;;  %v1886_v14 = vadd.f32 %v1854_v11, %v1754_v46  ;;  %v1887_v24 = vadd.f32 %v1855_v31, %v1755_v18 }
 0x229   :  { %11972 = vst [vmem:[#allocation72_spill] sm:$0xff] %v7954_v56  ;;  %11973 = vst [vmem:[#allocation73_spill] sm:$0xff] %v7958_v57  ;;  %v7972_v21 = vld [vmem:[#allocation2 + $0xe1] sm:$0xff]  ;;  %v1888_v56 = vadd.f32 %v1856_v59, %v1756_v22  ;;  %v1889_v35 = vadd.f32 %v1857_v28, %v1757_v2  ;;  %v1890_v61 = vadd.f32 %v1858_v47, %v1758_v13 }
 0x22a   :  { %11974 = vst [vmem:[#allocation74_spill] sm:$0xff] %v7960_v9  ;;  %11975 = vst [vmem:[#allocation75_spill] sm:$0xff] %v7962_v7  ;;  %v7978_v32 = vld [vmem:[#allocation2 + $0x101] sm:$0xff]  ;;  %v7984_v58 = vadd.f32 %v1859_v4, %v1759_v25  ;;  %v7986_v12 = vadd.f32 %v1860_v16, %v1760_v44  ;;  %v7996_v11 = vmul.f32 %v11919_v17, %v7964_v20 }
 0x22b   :  { %11976 = vst [vmem:[#allocation76_spill] sm:$0xff] %v7964_v20  ;;  %11977 = vst [vmem:[#allocation77_spill] sm:$0xff] %v7968_v19  ;;  %v7980_v51 = vld [vmem:[#allocation2 + $0x121] sm:$0xff] }
 0x22c   :  { %11978 = vst [vmem:[#allocation78_spill] sm:$0xff] %v7970_v3  ;;  %11979 = vst [vmem:[#allocation79_spill] sm:$0xff] %v7972_v21  ;;  %v7982_v42 = vld [vmem:[#allocation2 + $0x141] sm:$0xff] }
 0x22d   :  { %11980 = vst [vmem:[#allocation80_spill] sm:$0xff] %v7976_v23  ;;  %11981 = vst [vmem:[#allocation81_spill] sm:$0xff] %v7978_v32  ;;  %v7988_v37 = vld [vmem:[#allocation2 + $0x161] sm:$0xff] }
 0x22e   :  { %11982 = vst [vmem:[#allocation82_spill] sm:$0xff] %v7980_v51  ;;  %11983 = vst [vmem:[#allocation83_spill] sm:$0xff] %v7982_v42  ;;  %v7990_v8 = vld [vmem:[#allocation2 + $0x261] sm:$0xff] }
 0x22f   :  { %11984 = vst [vmem:[#allocation84_spill] sm:$0xff] %v7984_v58  ;;  %11985 = vst [vmem:[#allocation85_spill] sm:$0xff] %v7986_v12  ;;  %v7992_v49 = vld [vmem:[#allocation2 + $0x281] sm:$0xff] }
 0x230   :  { %11986 = vst [vmem:[#allocation86_spill] sm:$0xff] %v7988_v37  ;;  %11987 = vst [vmem:[#allocation87_spill] sm:$0xff] %v7990_v8  ;;  %v7998_v18 = vld [vmem:[#allocation2 + $0x2a1] sm:$0xff] }
 0x231   :  { %11988 = vst [vmem:[#allocation88_spill] sm:$0xff] %v7992_v49  ;;  %11989 = vst [vmem:[#allocation89_spill] sm:$0xff] %v7996_v11  ;;  %v8000_v59 = vld [vmem:[#allocation2 + $0x2c1] sm:$0xff] }
 0x232   :  { %11990 = vst [vmem:[#allocation90_spill] sm:$0xff] %v7998_v18  ;;  %11991 = vst [vmem:[#allocation91_spill] sm:$0xff] %v8000_v59  ;;  %v8002_v28 = vld [vmem:[#allocation2 + $0x2e1] sm:$0xff] }
 0x233   :  { %11992 = vst [vmem:[#allocation92_spill] sm:$0xff] %v8002_v28  ;;  %v11993_v13 = vld [vmem:[#allocation38_spill] sm:$0xff] }
 0x234   :  { %v1934_v22 = vmul.f32 %v11993_v13, %v7943_v15  ;;  %v1935_v31 = vmul.f32 %v11993_v13, %v7945_v6  ;;  %v1936_v46 = vmul.f32 %v11993_v13, %v7958_v57  ;;  %v8010_v2 = vld [vmem:[#allocation2 + $0x301] sm:$0xff]  ;;  %v1937_v25 = vmul.f32 %v11993_v13, %v7960_v9 }
 0x235   :  { %11994 = vst [vmem:[#allocation93_spill] sm:$0xff] %v8010_v2  ;;  %v8012_v47 = vld [vmem:[#allocation2 + $0x321] sm:$0xff]  ;;  %v1938_v44 = vmul.f32 %v11993_v13, %v7962_v7  ;;  %v1939_v16 = vmul.f32 %v11993_v13, %v7970_v3  ;;  %v1940_v20 = vmul.f32 %v11993_v13, %v7972_v21  ;;  %v1941_v19 = vmul.f32 %v11993_v13, %v7978_v32 }
 0x236   :  { %11995 = vst [vmem:[#allocation94_spill] sm:$0xff] %v8012_v47  ;;  %v8014_v4 = vld [vmem:[#allocation2 + $0x341] sm:$0xff]  ;;  %v1942_v23 = vmul.f32 %v11993_v13, %v7980_v51  ;;  %v8036_v15 = vmul.f32 %v11993_v13, %v7982_v42  ;;  %v8040_v60 = vmul.f32 %v11993_v13, %v7988_v37  ;;  %v1950_v41 = vmul.f32 %v11993_v13, %v7990_v8 }
 0x237   :  { %11996 = vst [vmem:[#allocation95_spill] sm:$0xff] %v8014_v4  ;;  %v8024_v12 = vld [vmem:[#allocation2 + $0x361] sm:$0xff]  ;;  %v1951_v36 = vmul.f32 %v11993_v13, %v7992_v49  ;;  %v1952_v32 = vmul.f32 %v11993_v13, %v7998_v18  ;;  %v1953_v51 = vmul.f32 %v11993_v13, %v8000_v59  ;;  %v1954_v42 = vmul.f32 %v11993_v13, %v8002_v28 }
 0x238   :  { %11997 = vst [vmem:[#allocation96_spill] sm:$0xff] %v8024_v12  ;;  %v8026_v58 = vld [vmem:[#allocation2 + $0x381] sm:$0xff]  ;;  %12000 = vst [vmem:[#allocation99_spill] sm:$0xff] %v8036_v15  ;;  %v1955_v15 = vmul.f32 %v11993_v13, %v8010_v2  ;;  %v1957_v8 = vmul.f32 %v11993_v13, %v8014_v4  ;;  %v1958_v37 = vmul.f32 %v11993_v13, %v8024_v12 }
 0x239   :  { %11998 = vst [vmem:[#allocation97_spill] sm:$0xff] %v8026_v58  ;;  %v8028_v11 = vld [vmem:[#allocation2 + $0x3a1] sm:$0xff]  ;;  %12001 = vst [vmem:[#allocation100_spill] sm:$0xff] %v8040_v60  ;;  %v1956_v60 = vmul.f32 %v11993_v13, %v8012_v47  ;;  %v8062_v63 = vmul.f32 %v11993_v13, %v8026_v58  ;;  %v8069_v39 = vadd.f32 %v1934_v22, %v7891_v40 }
 0x23a   :  { %11999 = vst [vmem:[#allocation98_spill] sm:$0xff] %v8028_v11  ;;  %v8066_v45 = vmul.f32 %v11993_v13, %v8028_v11  ;;  %v8072_v55 = vadd.f32 %v1935_v31, %v7905_v33  ;;  %v8075_v26 = vadd.f32 %v1936_v46, %v7908_v43  ;;  %v8078_v4 = vadd.f32 %v1937_v25, %v7915_v5 }
 0x23b   :  { %12002 = vst [vmem:[#allocation101_spill] sm:$0xff] %v8062_v63  ;;  %12004 = vst [vmem:[#allocation103_spill] sm:$0xff] %v8069_v39  ;;  %v8081_v12 = vadd.f32 %v1938_v44, %v7918_v62  ;;  %v8086_v63 = vld [vmem:[%s11281_s5 + $0x8] ss:$0 sm:$0xff]  ;;  %v8089_v40 = vadd.f32 %v1939_v16, %v7927_v0  ;;  %v8092_v33 = vadd.f32 %v1940_v20, %v7930_v34  ;;  %v12036_v44 = vld [vmem:[#allocation25_spill] sm:$0xff] }
 0x23c   :  { %12003 = vst [vmem:[#allocation102_spill] sm:$0xff] %v8066_v45  ;;  %12005 = vst [vmem:[#allocation104_spill] sm:$0xff] %v8072_v55  ;;  %v8095_v43 = vadd.f32 %v1941_v19, %v7941_v52  ;;  %v8098_v5 = vadd.f32 %v1942_v23, %v7948_v38  ;;  %v8101_v62 = vadd.f32 %v1950_v41, %v7956_v50  ;;  %v8327_v55 = vld [vmem:[#allocation2 + $0x2b1] sm:$0xff] }
 0x23d   :  { %12006 = vst [vmem:[#allocation105_spill] sm:$0xff] %v8075_v26  ;;  %12007 = vst [vmem:[#allocation106_spill] sm:$0xff] %v8078_v4  ;;  %v8103_v22 = vadd.f32 %v1951_v36, %v1883_v10  ;;  %v8105_v31 = vadd.f32 %v1952_v32, %v1884_v48  ;;  %v8107_v46 = vadd.f32 %v1953_v51, %v1885_v27  ;;  %v8289_v4 = vld [vmem:[#allocation2 + $0x51] sm:$0xff] }
 0x23e   :  { %12008 = vst [vmem:[#allocation107_spill] sm:$0xff] %v8081_v12  ;;  %12009 = vst [vmem:[#allocation108_spill] sm:$0xff] %v8089_v40  ;;  %v8109_v0 = vadd.f32 %v1954_v42, %v1886_v14  ;;  %v8111_v25 = vadd.f32 %v1955_v15, %v1887_v24  ;;  %v8113_v34 = vadd.f32 %v1956_v60, %v1888_v56 }
 0x23f   :  { %12010 = vst [vmem:[#allocation109_spill] sm:$0xff] %v8092_v33  ;;  %12011 = vst [vmem:[#allocation110_spill] sm:$0xff] %v8095_v43  ;;  %v8115_v52 = vadd.f32 %v1957_v8, %v1889_v35  ;;  %v8117_v20 = vadd.f32 %v1958_v37, %v1890_v61  ;;  %v8121_v41 = vmul.f32 %v8086_v63, %v7945_v6  ;;  %v12034_v35 = vld [vmem:[#allocation21_spill] sm:$0xff]  ;;  %v12035_v37 = vld [vmem:[#allocation56_spill] sm:$0xff] }
 0x240   :  { %12012 = vst [vmem:[#allocation111_spill] sm:$0xff] %v8098_v5  ;;  %12013 = vst [vmem:[#allocation112_spill] sm:$0xff] %v8101_v62  ;;  %v8125_v36 = vmul.f32 %v8086_v63, %v7958_v57  ;;  %v8129_v51 = vmul.f32 %v8086_v63, %v7960_v9  ;;  %v8133_v15 = vmul.f32 %v8086_v63, %v7962_v7 }
 0x241   :  { %12014 = vst [vmem:[#allocation113_spill] sm:$0xff] %v8103_v22  ;;  %12015 = vst [vmem:[#allocation114_spill] sm:$0xff] %v8105_v31  ;;  %v8137_v42 = vmul.f32 %v8086_v63, %v7970_v3  ;;  %v8141_v32 = vmul.f32 %v8086_v63, %v7972_v21  ;;  %v8145_v50 = vmul.f32 %v8086_v63, %v7992_v49 }
 0x242   :  { %12016 = vst [vmem:[#allocation115_spill] sm:$0xff] %v8107_v46  ;;  %12017 = vst [vmem:[#allocation116_spill] sm:$0xff] %v8109_v0  ;;  %v8149_v60 = vmul.f32 %v8086_v63, %v7998_v18  ;;  %v8153_v38 = vmul.f32 %v8086_v63, %v8000_v59  ;;  %v8157_v56 = vmul.f32 %v8086_v63, %v8002_v28 }
 0x243   :  { %12018 = vst [vmem:[#allocation117_spill] sm:$0xff] %v8111_v25  ;;  %12019 = vst [vmem:[#allocation118_spill] sm:$0xff] %v8113_v34  ;;  %v8161_v19 = vmul.f32 %v8086_v63, %v8010_v2  ;;  %v8165_v10 = vmul.f32 %v8086_v63, %v8012_v47  ;;  %v2639_v48 = vmul.f32 %v7715_v1, %v11919_v17 }
 0x244   :  { %12020 = vst [vmem:[#allocation119_spill] sm:$0xff] %v8115_v52  ;;  %12021 = vst [vmem:[#allocation120_spill] sm:$0xff] %v8117_v20  ;;  %v2640_v27 = vmul.f32 %v7729_v30, %v11919_v17  ;;  %v2641_v23 = vmul.f32 %v7731_v29, %v11919_v17  ;;  %v2642_v14 = vmul.f32 %v7745_v53, %v11919_v17  ;;  %v12059_v52 = vld [vmem:[#allocation69_spill] sm:$0xff] }
 0x245   :  { %12022 = vst [vmem:[#allocation121_spill] sm:$0xff] %v8121_v41  ;;  %12023 = vst [vmem:[#allocation122_spill] sm:$0xff] %v8125_v36  ;;  %v2643_v24 = vmul.f32 %v7747_v54, %v11919_v17  ;;  %v2644_v61 = vmul.f32 %v12034_v35, %v11919_v17  ;;  %v2645_v8 = vmul.f32 %v12035_v37, %v11919_v17  ;;  %v12044_v36 = vld [vmem:[#allocation30_spill] sm:$0xff]  ;;  %v12046_v37 = vld [vmem:[#allocation17_spill] sm:$0xff] }
 0x246   :  { %12024 = vst [vmem:[#allocation123_spill] sm:$0xff] %v8129_v51  ;;  %12025 = vst [vmem:[#allocation124_spill] sm:$0xff] %v8133_v15  ;;  %v2646_v16 = vmul.f32 %v12036_v44, %v11919_v17  ;;  %v12043_v15 = vld [vmem:[#allocation27_spill] sm:$0xff]  ;;  %v2656_v41 = vmul.f32 %v12044_v36, %v11919_v17  ;;  %v12045_v44 = vld [vmem:[#allocation62_spill] sm:$0xff] }
 0x247   :  { %12026 = vst [vmem:[#allocation125_spill] sm:$0xff] %v8137_v42  ;;  %12027 = vst [vmem:[#allocation126_spill] sm:$0xff] %v8141_v32  ;;  %v12041_v32 = vld [vmem:[#allocation59_spill] sm:$0xff]  ;;  %v2655_v51 = vmul.f32 %v12043_v15, %v11919_v17  ;;  %v12047_v35 = vld [vmem:[#allocation16_spill] sm:$0xff] }
 0x248   :  { %12028 = vst [vmem:[#allocation127_spill] sm:$0xff] %v8145_v50  ;;  %12029 = vst [vmem:[#allocation128_spill] sm:$0xff] %v8149_v60  ;;  %v12039_v60 = vld [vmem:[#allocation26_spill] sm:$0xff]  ;;  %v8193_v42 = vmul.f32 %v12041_v32, %v11919_v17  ;;  %v12051_v36 = vld [vmem:[#allocation7_spill] sm:$0xff] }
 0x249   :  { %12030 = vst [vmem:[#allocation129_spill] sm:$0xff] %v8153_v38  ;;  %12031 = vst [vmem:[#allocation130_spill] sm:$0xff] %v8157_v56  ;;  %v12038_v56 = vld [vmem:[#allocation28_spill] sm:$0xff]  ;;  %v8189_v50 = vmul.f32 %v12039_v60, %v11919_v17  ;;  %v2659_v60 = vmul.f32 %v12047_v35, %v11919_v17  ;;  %v12050_v15 = vld [vmem:[#allocation6_spill] sm:$0xff]  ;;  %v2663_v29 = vmul.f32 %v12051_v36, %v11919_v17 }
 0x24a   :  { %12032 = vst [vmem:[#allocation131_spill] sm:$0xff] %v8161_v19  ;;  %12033 = vst [vmem:[#allocation132_spill] sm:$0xff] %v8165_v10  ;;  %v12037_v10 = vld [vmem:[#allocation57_spill] sm:$0xff]  ;;  %v2648_v38 = vmul.f32 %v12038_v56, %v11919_v17  ;;  %v2658_v56 = vmul.f32 %v12046_v37, %v11919_v17  ;;  %v2662_v53 = vmul.f32 %v12050_v15, %v11919_v17  ;;  %v12053_v37 = vld [vmem:[#allocation66_spill] sm:$0xff] }
 0x24b   :  { %v2647_v19 = vmul.f32 %v12037_v10, %v11919_v17  ;;  %12040 = vst [vmem:[#allocation133_spill] sm:$0xff] %v8189_v50  ;;  %12042 = vst [vmem:[#allocation134_spill] sm:$0xff] %v8193_v42  ;;  %v2657_v10 = vmul.f32 %v12045_v44, %v11919_v17  ;;  %v12048_v50 = vld [vmem:[#allocation32_spill] sm:$0xff]  ;;  %v8217_v1 = vmul.f32 %v12053_v37, %v11919_v17  ;;  %v8219_v35 = vld [vmem:[#allocation2 + $0x181] sm:$0xff] }
 0x24c   :  { %v2660_v54 = vmul.f32 %v12048_v50, %v11919_v17  ;;  %v12049_v42 = vld [vmem:[#allocation64_spill] sm:$0xff]  ;;  %12055 = vst [vmem:[#allocation136_spill] sm:$0xff] %v8219_v35  ;;  %v12056_v50 = vld [vmem:[#allocation67_spill] sm:$0xff] }
 0x24d   :  { %v2661_v32 = vmul.f32 %v12049_v42, %v11919_v17  ;;  %v12052_v44 = vld [vmem:[#allocation8_spill] sm:$0xff]  ;;  %12054 = vst [vmem:[#allocation135_spill] sm:$0xff] %v8217_v1  ;;  %v8223_v20 = vmul.f32 %v12056_v50, %v11919_v17 }
 0x24e   :  { %v2664_v30 = vmul.f32 %v12052_v44, %v11919_v17  ;;  %v12058_v42 = vld [vmem:[#allocation36_spill] sm:$0xff] }
 0x24f   :  { %12057 = vst [vmem:[#allocation137_spill] sm:$0xff] %v8223_v20  ;;  %v2703_v34 = vmul.f32 %v12059_v52, %v12058_v42  ;;  %v2704_v15 = vmul.f32 %v7945_v6, %v12058_v42  ;;  %v2705_v36 = vmul.f32 %v7958_v57, %v12058_v42  ;;  %v2706_v44 = vmul.f32 %v7960_v9, %v12058_v42  ;;  %v12060_v52 = vld [vmem:[#allocation81_spill] sm:$0xff]  ;;  %v12061_v6 = vld [vmem:[#allocation82_spill] sm:$0xff]  ;;  %v12062_v57 = vld [vmem:[#allocation83_spill] sm:$0xff] }
 0x250   :  { %v2707_v1 = vmul.f32 %v7962_v7, %v12058_v42  ;;  %v2708_v37 = vmul.f32 %v7970_v3, %v12058_v42  ;;  %v2709_v20 = vmul.f32 %v7972_v21, %v12058_v42  ;;  %v2710_v50 = vmul.f32 %v12060_v52, %v12058_v42  ;;  %v12063_v9 = vld [vmem:[#allocation86_spill] sm:$0xff]  ;;  %v12067_v21 = vld [vmem:[#allocation87_spill] sm:$0xff] }
 0x251   :  { %v2711_v25 = vmul.f32 %v12061_v6, %v12058_v42  ;;  %v2712_v0 = vmul.f32 %v12062_v57, %v12058_v42  ;;  %v8247_v46 = vmul.f32 %v12063_v9, %v12058_v42  ;;  %v8249_v7 = vld [vmem:[#allocation2 + $0x3c1] sm:$0xff]  ;;  %v8253_v3 = vmul.f32 %v8219_v35, %v12058_v42 }
 0x252   :  { %12065 = vst [vmem:[#allocation139_spill] sm:$0xff] %v8249_v7  ;;  %v2719_v31 = vmul.f32 %v12067_v21, %v12058_v42  ;;  %v2720_v22 = vmul.f32 %v7992_v49, %v12058_v42  ;;  %v2721_v62 = vmul.f32 %v7998_v18, %v12058_v42  ;;  %v2722_v5 = vmul.f32 %v8000_v59, %v12058_v42  ;;  %v12068_v21 = vld [vmem:[#allocation95_spill] sm:$0xff]  ;;  %v12069_v49 = vld [vmem:[#allocation96_spill] sm:$0xff] }
 0x253   :  { %12064 = vst [vmem:[#allocation138_spill] sm:$0xff] %v8247_v46  ;;  %12066 = vst [vmem:[#allocation140_spill] sm:$0xff] %v8253_v3  ;;  %v2723_v46 = vmul.f32 %v8002_v28, %v12058_v42  ;;  %v2724_v43 = vmul.f32 %v8010_v2, %v12058_v42  ;;  %v2725_v3 = vmul.f32 %v8012_v47, %v12058_v42 }
 0x254   :  { %v2726_v33 = vmul.f32 %v12068_v21, %v12058_v42  ;;  %v2727_v40 = vmul.f32 %v12069_v49, %v12058_v42  ;;  %v2728_v18 = vmul.f32 %v8026_v58, %v12058_v42  ;;  %v8277_v59 = vmul.f32 %v8028_v11, %v12058_v42  ;;  %v2767_v21 = vld [vmem:[#allocation2 + $0x31] sm:$0xff] }
 0x255   :  { %v8281_v28 = vmul.f32 %v8249_v7, %v12058_v42  ;;  %v8283_v2 = vadd.f32 %v2703_v34, %v2639_v48  ;;  %v8285_v47 = vadd.f32 %v2704_v15, %v2640_v27  ;;  %v8287_v12 = vadd.f32 %v2705_v36, %v2641_v23  ;;  %v8299_v11 = vld [vmem:[#allocation2 + $0x71] sm:$0xff] }
 0x256   :  { %12070 = vst [vmem:[#allocation141_spill] sm:$0xff] %v8277_v59  ;;  %v8291_v49 = vadd.f32 %v2706_v44, %v2642_v14  ;;  %v8293_v58 = vadd.f32 %v2707_v1, %v2643_v24  ;;  %v8295_v26 = vadd.f32 %v2708_v37, %v2644_v61  ;;  %v8297_v59 = vadd.f32 %v2709_v20, %v2645_v8  ;;  %v8303_v34 = vld [vmem:[#allocation2 + $0xb1] sm:$0xff] }
 0x257   :  { %12071 = vst [vmem:[#allocation142_spill] sm:$0xff] %v8281_v28  ;;  %v8301_v28 = vld [vmem:[#allocation2 + $0x91] sm:$0xff]  ;;  %v8305_v15 = vadd.f32 %v2710_v50, %v2646_v16  ;;  %v8307_v36 = vadd.f32 %v2711_v25, %v2647_v19  ;;  %v8309_v48 = vadd.f32 %v2712_v0, %v2648_v38  ;;  %v8311_v27 = vadd.f32 %v2719_v31, %v2655_v51 }
 0x258   :  { %v8313_v1 = vld [vmem:[#allocation2 + $0xd1] sm:$0xff]  ;;  %v2752_v14 = vadd.f32 %v2720_v22, %v2656_v41  ;;  %v2753_v24 = vadd.f32 %v2721_v62, %v2657_v10  ;;  %v2754_v61 = vadd.f32 %v2722_v5, %v2658_v56  ;;  %v2755_v37 = vadd.f32 %v2723_v46, %v2659_v60 }
 0x259   :  { %12072 = vst [vmem:[#allocation143_spill] sm:$0xff] %v8307_v36  ;;  %v8315_v23 = vld [vmem:[#allocation2 + $0xf1] sm:$0xff]  ;;  %v2756_v25 = vadd.f32 %v2724_v43, %v2660_v54  ;;  %v2757_v19 = vadd.f32 %v2725_v3, %v2661_v32  ;;  %v2758_v0 = vadd.f32 %v2726_v33, %v2662_v53  ;;  %v8321_v38 = vadd.f32 %v2727_v40, %v2663_v29 }
 0x25a   :  { %v8317_v20 = vld [vmem:[#allocation2 + $0x111] sm:$0xff]  ;;  %v2760_v36 = vadd.f32 %v2728_v18, %v2664_v30  ;;  %v2799_v22 = vmul.f32 %v2767_v21, %v11993_v13  ;;  %v2800_v54 = vmul.f32 %v8289_v4, %v11993_v13  ;;  %v2801_v29 = vmul.f32 %v8299_v11, %v11993_v13 }
 0x25b   :  { %v2775_v8 = vld [vmem:[#allocation2 + $0x131] sm:$0xff]  ;;  %12073 = vst [vmem:[#allocation144_spill] sm:$0xff] %v8321_v38  ;;  %v2802_v30 = vmul.f32 %v8301_v28, %v11993_v13  ;;  %v2803_v18 = vmul.f32 %v8303_v34, %v11993_v13  ;;  %v2804_v21 = vmul.f32 %v8313_v1, %v11993_v13  ;;  %v2805_v33 = vmul.f32 %v8315_v23, %v11993_v13 }
 0x25c   :  { %v8319_v44 = vld [vmem:[#allocation2 + $0x151] sm:$0xff]  ;;  %v2806_v32 = vmul.f32 %v8317_v20, %v11993_v13  ;;  %v8357_v60 = vmul.f32 %v2775_v8, %v11993_v13  ;;  %v2817_v8 = vmul.f32 %v8327_v55, %v11993_v13  ;;  %v8398_v35 = vadd.f32 %v2799_v22, %v8283_v2 }
 0x25d   :  { %v2777_v50 = vld [vmem:[#allocation2 + $0x171] sm:$0xff]  ;;  %v2808_v56 = vmul.f32 %v8319_v44, %v11993_v13  ;;  %v8418_v2 = vadd.f32 %v2805_v33, %v8297_v59 }
 0x25e   :  { %v8323_v31 = vld [vmem:[#allocation2 + $0x191] sm:$0xff]  ;;  %12076 = vst [vmem:[#allocation147_spill] sm:$0xff] %v8357_v60  ;;  %v8362_v10 = vmul.f32 %v2777_v50, %v11993_v13  ;;  %12082 = vst [vmem:[#allocation153_spill] sm:$0xff] %v8398_v35 }
 0x25f   :  { %v2783_v51 = vld [vmem:[#allocation2 + $0x271] sm:$0xff]  ;;  %v8368_v39 = vmul.f32 %v8323_v31, %v11993_v13  ;;  %12089 = vst [vmem:[#allocation159_spill] sm:$0xff] %v8418_v2  ;;  %v12175_v2 = vld [vmem:[#allocation42_spill] sm:$0xff] }
 0x260   :  { %v8325_v16 = vld [vmem:[#allocation2 + $0x291] sm:$0xff]  ;;  %12077 = vst [vmem:[#allocation148_spill] sm:$0xff] %v8362_v10  ;;  %v2815_v9 = vmul.f32 %v2783_v51, %v11993_v13 }
 0x261   :  { %v8329_v62 = vld [vmem:[#allocation2 + $0x2d1] sm:$0xff]  ;;  %12078 = vst [vmem:[#allocation149_spill] sm:$0xff] %v8368_v39  ;;  %v2816_v57 = vmul.f32 %v8325_v16, %v11993_v13 }
 0x262   :  { %v8331_v5 = vld [vmem:[#allocation2 + $0x2f1] sm:$0xff]  ;;  %v2818_v60 = vmul.f32 %v8329_v62, %v11993_v13 }
 0x263   :  { %v8338_v53 = vld [vmem:[#allocation2 + $0x311] sm:$0xff]  ;;  %v2819_v50 = vmul.f32 %v8331_v5, %v11993_v13 }
 0x264   :  { %v8340_v3 = vld [vmem:[#allocation2 + $0x331] sm:$0xff]  ;;  %v2820_v10 = vmul.f32 %v8338_v53, %v11993_v13  ;;  %v8433_v22 = vadd.f32 %v2818_v60, %v2754_v61  ;;  %v1727_v61 = vld [vmem:[#allocation2 + $0x400] sm:$0xff]  ;;  %v8521_v60 = vmul.f32 %v8086_v63, %v8329_v62 }
 0x265   :  { %12074 = vst [vmem:[#allocation145_spill] sm:$0xff] %v8340_v3  ;;  %v8342_v40 = vld [vmem:[#allocation2 + $0x351] sm:$0xff]  ;;  %v2821_v39 = vmul.f32 %v8340_v3, %v11993_v13  ;;  %v8401_v3 = vadd.f32 %v2800_v54, %v8285_v47  ;;  %v8421_v47 = vadd.f32 %v2806_v32, %v8305_v15  ;;  %v8435_v54 = vadd.f32 %v2819_v50, %v2755_v37 }
 0x266   :  { %12075 = vst [vmem:[#allocation146_spill] sm:$0xff] %v8342_v40  ;;  %v2791_v43 = vld [vmem:[#allocation2 + $0x371] sm:$0xff]  ;;  %v2822_v51 = vmul.f32 %v8342_v40, %v11993_v13  ;;  %v8404_v40 = vadd.f32 %v2801_v29, %v8287_v12  ;;  %v8424_v12 = vadd.f32 %v2808_v56, %v8309_v48  ;;  %12095 = vst [vmem:[#allocation165_spill] sm:$0xff] %v8433_v22  ;;  %v1711_v29 = vld [vmem:[#allocation2 + $0x1c0] sm:$0xff] }
 0x267   :  { %v8352_v46 = vld [vmem:[#allocation2 + $0x391] sm:$0xff]  ;;  %v8386_v6 = vmul.f32 %v2791_v43, %v11993_v13  ;;  %12083 = vst [vmem:[#allocation154_spill] sm:$0xff] %v8401_v3  ;;  %v8407_v43 = vadd.f32 %v2802_v30, %v8291_v49  ;;  %12090 = vst [vmem:[#allocation160_spill] sm:$0xff] %v8421_v47  ;;  %v8427_v49 = vadd.f32 %v2815_v9, %v8311_v27  ;;  %v12178_v3 = vld [vmem:[#allocation47_spill] sm:$0xff] }
 0x268   :  { %v2793_v41 = vld [vmem:[#allocation2 + $0x3b1] sm:$0xff]  ;;  %v2824_v52 = vmul.f32 %v8352_v46, %v11993_v13  ;;  %12084 = vst [vmem:[#allocation155_spill] sm:$0xff] %v8404_v40  ;;  %12091 = vst [vmem:[#allocation161_spill] sm:$0xff] %v8424_v12  ;;  %v8441_v15 = vadd.f32 %v2820_v10, %v2756_v25  ;;  %v8443_v48 = vadd.f32 %v2821_v39, %v2757_v19 }
 0x269   :  { %v8364_v38 = vld [vmem:[#allocation2 + $0x3d1] sm:$0xff]  ;;  %12079 = vst [vmem:[#allocation150_spill] sm:$0xff] %v8386_v6  ;;  %v8391_v45 = vmul.f32 %v2793_v41, %v11993_v13  ;;  %12085 = vst [vmem:[#allocation156_spill] sm:$0xff] %v8407_v43  ;;  %v8410_v6 = vadd.f32 %v2803_v18, %v8293_v58  ;;  %v8413_v41 = vadd.f32 %v2804_v21, %v8295_v26  ;;  %v12177_v43 = vld [vmem:[#allocation46_spill] sm:$0xff] }
 0x26a   :  { %v8395_v7 = vmul.f32 %v8364_v38, %v11993_v13  ;;  %12092 = vst [vmem:[#allocation162_spill] sm:$0xff] %v8427_v49  ;;  %v8429_v58 = vadd.f32 %v2816_v57, %v2752_v14  ;;  %v8431_v26 = vadd.f32 %v2817_v8, %v2753_v24  ;;  %12096 = vst [vmem:[#allocation166_spill] sm:$0xff] %v8435_v54  ;;  %v8437_v59 = vld [vmem:[#allocation2 + $0x1b0] sm:$0xff]  ;;  %v12149_v54 = vld [vmem:[#allocation101_spill] sm:$0xff] }
 0x26b   :  { %12080 = vst [vmem:[#allocation151_spill] sm:$0xff] %v8391_v45  ;;  %12086 = vst [vmem:[#allocation157_spill] sm:$0xff] %v8410_v6  ;;  %v8439_v30 = vld [vmem:[#allocation2 + $0x1d0] sm:$0xff]  ;;  %v8445_v18 = vadd.f32 %v2822_v51, %v2758_v0  ;;  %v8447_v9 = vadd.f32 %v2824_v52, %v2760_v36  ;;  %v8453_v27 = vmul.f32 %v8086_v63, %v8289_v4  ;;  %v8467_v52 = vld [vmem:[#allocation2 + $0x1e0] sm:$0xff] }
 0x26c   :  { %12081 = vst [vmem:[#allocation152_spill] sm:$0xff] %v8395_v7  ;;  %12087 = vst [vmem:[#allocation158_spill] sm:$0xff] %v8413_v41  ;;  %v12088_v7 = vmov 0.0   ;;  %v8449_v57 = vld [vmem:[#allocation2 + $0x3f0] sm:$0xff]  ;;  %v8457_v14 = vmul.f32 %v8086_v63, %v8299_v11  ;;  %v8461_v24 = vmul.f32 %v8086_v63, %v8301_v28  ;;  %v8465_v39 = vmul.f32 %v8086_v63, %v8303_v34  ;;  %v12122_v8 = vld [vmem:[#allocation145_spill] sm:$0xff] }
 0x26d   :  { %5040 = vmatprep.mubr.msk.f32.mxu1 %vm5729_vm4, %v12088_v7  ;;  %12093 = vst [vmem:[#allocation163_spill] sm:$0xff] %v8429_v58  ;;  %12094 = vst [vmem:[#allocation164_spill] sm:$0xff] %v8431_v26  ;;  %v8469_v36 = vld [vmem:[#allocation2 + $0x1f0] sm:$0xff]  ;;  %v8475_v4 = vmul.f32 %v8086_v63, %v8313_v1  ;;  %v8479_v11 = vmul.f32 %v8086_v63, %v8315_v23  ;;  %v8483_v28 = vmul.f32 %v8086_v63, %v8317_v20  ;;  %v8535_v51 = vld [vmem:[#allocation2 + $0x1a1] sm:$0xff] }
 0x26e   :  { %12097 = vst [vmem:[#allocation167_spill] sm:$0xff] %v8437_v59  ;;  %12098 = vst [vmem:[#allocation168_spill] sm:$0xff] %v8439_v30  ;;  %v8471_v37 = vld [vmem:[#allocation2 + $0x410] sm:$0xff]  ;;  %v8487_v34 = vmul.f32 %v8086_v63, %v8319_v44  ;;  %v8493_v19 = vmul.f32 %v8086_v63, %v8323_v31  ;;  %v8497_v1 = vmul.f32 %v8086_v63, %v8325_v16  ;;  %v12130_v7 = vld [vmem:[#allocation43_spill] sm:$0xff] }
 0x26f   :  { %12099 = vst [vmem:[#allocation169_spill] sm:$0xff] %v8441_v15  ;;  %12100 = vst [vmem:[#allocation170_spill] sm:$0xff] %v8443_v48  ;;  %v8489_v25 = vld [vmem:[#allocation2 + $0x430] sm:$0xff]  ;;  %v8501_v23 = vmul.f32 %v8086_v63, %v8327_v55  ;;  %v1747_v20 = vmul.f32 %v11919_v17, %v1711_v29  ;;  %v1748_v44 = vmul.f32 %v11919_v17, %v8467_v52  ;;  %v12125_v29 = vld [vmem:[#allocation146_spill] sm:$0xff] }
 0x270   :  { %12101 = vst [vmem:[#allocation171_spill] sm:$0xff] %v8445_v18  ;;  %12102 = vst [vmem:[#allocation172_spill] sm:$0xff] %v8447_v9  ;;  %v1846_v0 = vmul.f32 %v12058_v42, %v8437_v59  ;;  %v1847_v31 = vmul.f32 %v12058_v42, %v8439_v30  ;;  %v1848_v21 = vmul.f32 %v12058_v42, %v8469_v36  ;;  %v12173_v49 = vld [vmem:[#allocation37_spill] sm:$0xff]  ;;  %v12176_v41 = vld [vmem:[#allocation44_spill] sm:$0xff] }
 0x271   :  { %12103 = vst [vmem:[#allocation173_spill] sm:$0xff] %v8449_v57  ;;  %12104 = vst [vmem:[#allocation174_spill] sm:$0xff] %v8453_v27  ;;  %v1763_v16 = vmul.f32 %v11919_v17, %v1727_v61  ;;  %v1862_v55 = vmul.f32 %v12058_v42, %v8449_v57  ;;  %v1863_v33 = vmul.f32 %v12058_v42, %v8471_v37  ;;  %v12174_v47 = vld [vmem:[#allocation41_spill] sm:$0xff]  ;;  %v12179_v35 = vld [vmem:[#allocation48_spill] sm:$0xff] }
 0x272   :  { %12105 = vst [vmem:[#allocation175_spill] sm:$0xff] %v8457_v14  ;;  %12106 = vst [vmem:[#allocation176_spill] sm:$0xff] %v8461_v24  ;;  %v1864_v32 = vmul.f32 %v12058_v42, %v8489_v25  ;;  %v8525_v56 = vmul.f32 %v8086_v63, %v8331_v5  ;;  %v8529_v10 = vmul.f32 %v8086_v63, %v8338_v53  ;;  %v12129_v53 = vld [vmem:[#allocation58_spill] sm:$0xff]  ;;  %v12188_v30 = vld [vmem:[#allocation31_spill] sm:$0xff] }
 0x273   :  { %12107 = vst [vmem:[#allocation177_spill] sm:$0xff] %v8465_v39  ;;  %12108 = vst [vmem:[#allocation178_spill] sm:$0xff] %v8467_v52  ;;  %v8533_v50 = vmul.f32 %v8086_v63, %v12122_v8  ;;  %v8539_v61 = vmul.f32 %v8086_v63, %v12125_v29  ;;  %v8543_v62 = vmul.f32 %v8086_v63, %v8352_v46  ;;  %v8553_v8 = vld [vmem:[#allocation2 + $0x1e1] sm:$0xff]  ;;  %v12136_v46 = vld [vmem:[#allocation77_spill] sm:$0xff] }
 0x274   :  { %12109 = vst [vmem:[#allocation179_spill] sm:$0xff] %v8469_v36  ;;  %12110 = vst [vmem:[#allocation180_spill] sm:$0xff] %v8471_v37  ;;  %v8547_v5 = vmul.f32 %v8086_v63, %v8364_v38  ;;  %v8562_v38 = vld [vmem:[#allocation2 + $0x421] sm:$0xff]  ;;  %v12147_v39 = vld [vmem:[#allocation100_spill] sm:$0xff] }
 0x275   :  { %12111 = vst [vmem:[#allocation181_spill] sm:$0xff] %v8475_v4  ;;  %12112 = vst [vmem:[#allocation182_spill] sm:$0xff] %v8479_v11  ;;  %v12141_v11 = vld [vmem:[#allocation136_spill] sm:$0xff]  ;;  %v12180_v45 = vld [vmem:[#allocation50_spill] sm:$0xff] }
 0x276   :  { %12113 = vst [vmem:[#allocation183_spill] sm:$0xff] %v8483_v28  ;;  %12114 = vst [vmem:[#allocation184_spill] sm:$0xff] %v8487_v34  ;;  %v1945_v4 = vmul.f32 %v11993_v13, %v12141_v11  ;;  %v8654_v26 = vmul.f32 %v8086_v63, %v12141_v11  ;;  %v12183_v37 = vld [vmem:[#allocation60_spill] sm:$0xff]  ;;  %v8696_v57 = vld [vmem:[#allocation2 + $0x400] sm:$0xff] }
 0x277   :  { %12115 = vst [vmem:[#allocation185_spill] sm:$0xff] %v8489_v25  ;;  %12116 = vst [vmem:[#allocation186_spill] sm:$0xff] %v8493_v19  ;;  %v8560_v19 = vld [vmem:[#allocation2 + $0x401] sm:$0xff] }
 0x278   :  { %12117 = vst [vmem:[#allocation187_spill] sm:$0xff] %v8497_v1  ;;  %12118 = vst [vmem:[#allocation188_spill] sm:$0xff] %v8501_v23  ;;  %v1880_v23 = vadd.f32 %v1848_v21, %v1748_v44  ;;  %v12135_v1 = vld [vmem:[#allocation80_spill] sm:$0xff]  ;;  %v12142_v44 = vld [vmem:[#allocation33_spill] sm:$0xff] }
 0x279   :  { %12119 = vst [vmem:[#allocation189_spill] sm:$0xff] %v8521_v60  ;;  %12120 = vst [vmem:[#allocation190_spill] sm:$0xff] %v8525_v56  ;;  %v8551_v56 = vld [vmem:[#allocation2 + $0x1c1] sm:$0xff]  ;;  %v12134_v60 = vld [vmem:[#allocation61_spill] sm:$0xff]  ;;  %v2131_v27 = vsub.s32 4, %v12142_v44  ;;  %v2231_v9 = vsub.s32 5, %v12142_v44 }
 0x27a   :  { %12121 = vst [vmem:[#allocation191_spill] sm:$0xff] %v8529_v10  ;;  %12123 = vst [vmem:[#allocation145_spill] sm:$0xff] %v8533_v50  ;;  %v1877_v10 = vadd.f32 %v12130_v7, %v12129_v53  ;;  %v8555_v50 = vld [vmem:[#allocation2 + $0x3e1] sm:$0xff]  ;;  %v1878_v29 = vadd.f32 %v1846_v0, %v12134_v60  ;;  %v1895_v7 = vadd.f32 %v1863_v33, %v1763_v16  ;;  %v12140_v53 = vld [vmem:[#allocation45_spill] sm:$0xff]  ;;  %v2332_v18 = vsub.s32 6, %v12142_v44 }
 0x27b   :  { %12124 = vst [vmem:[#allocation192_spill] sm:$0xff] %v8535_v51  ;;  %12126 = vst [vmem:[#allocation146_spill] sm:$0xff] %v8539_v61  ;;  %v1879_v61 = vadd.f32 %v1847_v31, %v1747_v20  ;;  %v1896_v28 = vadd.f32 %v1864_v32, %v12140_v53  ;;  %v1946_v0 = vmul.f32 %v11993_v13, %v8535_v51  ;;  %v2031_v31 = vsub.s32 3, %v12142_v44  ;;  %v12143_v21 = vld [vmem:[#allocation139_spill] sm:$0xff]  ;;  %v12146_v53 = vld [vmem:[#allocation72_spill] sm:$0xff] }
 0x27c   :  { %12127 = vst [vmem:[#allocation193_spill] sm:$0xff] %v8543_v62  ;;  %12128 = vst [vmem:[#allocation194_spill] sm:$0xff] %v8547_v5  ;;  %v1893_v62 = vadd.f32 %v12136_v46, %v12135_v1  ;;  %v12139_v5 = vld [vmem:[#allocation89_spill] sm:$0xff]  ;;  %v1947_v20 = vmul.f32 %v11993_v13, %v8551_v56  ;;  %v1948_v1 = vmul.f32 %v11993_v13, %v8553_v8  ;;  %v12144_v60 = vld [vmem:[#allocation71_spill] sm:$0xff]  ;;  %v2433_v48 = vsub.s32 7, %v12142_v44 }
 0x27d   :  { %12131 = vst [vmem:[#allocation58_spill] sm:$0xff] %v8551_v56  ;;  %12132 = vst [vmem:[#allocation43_spill] sm:$0xff] %v8553_v8  ;;  %v1894_v34 = vadd.f32 %v1862_v55, %v12139_v5  ;;  %v1961_v55 = vmul.f32 %v11993_v13, %v12143_v21  ;;  %v1962_v16 = vmul.f32 %v11993_v13, %v8555_v50  ;;  %v12145_v5 = vld [vmem:[#allocation99_spill] sm:$0xff]  ;;  %v12189_v17 = vld [vmem:[#allocation18_spill] sm:$0xff] }
 0x27e   :  { %12133 = vst [vmem:[#allocation195_spill] sm:$0xff] %v8555_v50  ;;  %12137 = vst [vmem:[#allocation61_spill] sm:$0xff] %v8560_v19  ;;  %v1963_v33 = vmul.f32 %v11993_v13, %v8560_v19  ;;  %v1964_v32 = vmul.f32 %v11993_v13, %v8562_v38  ;;  %v8585_v46 = vadd.f32 %v12145_v5, %v12144_v60  ;;  %v12148_v5 = vld [vmem:[#allocation84_spill] sm:$0xff]  ;;  %v12181_v13 = vld [vmem:[#allocation23_spill] sm:$0xff] }
 0x27f   :  { %12138 = vst [vmem:[#allocation80_spill] sm:$0xff] %v8562_v38  ;;  %v8589_v24 = vadd.f32 %v12147_v39, %v12146_v53  ;;  %v8591_v14 = vadd.f32 %v1945_v4, %v1877_v10  ;;  %v8593_v21 = vadd.f32 %v1946_v0, %v1878_v29  ;;  %v8599_v15 = vadd.f32 %v1947_v20, %v1879_v61  ;;  %v5594_v4 = vld [vmem:[%s11281_s5] sm:$0xff]  ;;  %v12151_v29 = vld [vmem:[#allocation85_spill] sm:$0xff]  ;;  %v12182_v50 = vld [vmem:[#allocation55_spill] sm:$0xff] }
 0x280   :  { %v8601_v60 = vadd.f32 %v1948_v1, %v1880_v23  ;;  %v8605_v39 = vadd.f32 %v12149_v54, %v12148_v5  ;;  %v8610_v10 = vrot.slane %v5594_v4, %v2031_v31  ;;  %v12152_v0 = vld [vmem:[#allocation102_spill] sm:$0xff]  ;;  %v8616_v22 = vadd.f32 %v1961_v55, %v1893_v62  ;;  %v12154_v1 = vld [vmem:[#allocation81_spill] sm:$0xff]  ;;  %12167 = vst [vmem:[#allocation101_spill] sm:$0xff] %v8654_v26  ;;  %v12190_v26 = vld [vmem:[#allocation63_spill] sm:$0xff] }
 0x281   :  { %v8614_v53 = vadd.f32 %v12152_v0, %v12151_v29  ;;  %v8618_v61 = vadd.f32 %v1962_v16, %v1894_v34  ;;  %v8620_v23 = vadd.f32 %v1963_v33, %v1895_v7  ;;  %v8622_v20 = vld [vmem:[#allocation2 + $0x1a1] sm:$0xff]  ;;  %v8624_v54 = vadd.f32 %v1964_v32, %v1896_v28  ;;  %v12164_v16 = vld [vmem:[#allocation13_spill] sm:$0xff]  ;;  %v12201_v56 = vld [vmem:[#allocation104_spill] sm:$0xff] }
 0x282   :  { %12150 = vst [vmem:[#allocation77_spill] sm:$0xff] %v8610_v10  ;;  %12153 = vst [vmem:[#allocation89_spill] sm:$0xff] %v8622_v20  ;;  %v8628_v5 = vmul.f32 %v8086_v63, %v12154_v1  ;;  %v12156_v31 = vld [vmem:[#allocation82_spill] sm:$0xff]  ;;  %v12158_v29 = vld [vmem:[#allocation83_spill] sm:$0xff]  ;;  %v8638_v34 = vrot.slane %v5594_v4, %v2131_v27  ;;  %v8640_v7 = vrot.slane %v5594_v4, %v2231_v9 }
 0x283   :  { %v8632_v44 = vmul.f32 %v8086_v63, %v12156_v31  ;;  %v8636_v62 = vmul.f32 %v8086_v63, %v12158_v29  ;;  %v8642_v55 = vrot.slane %v5594_v4, %v2332_v18  ;;  %v8644_v28 = vrot.slane %v5594_v4, %v2433_v48  ;;  %v12165_v32 = vld [vmem:[#allocation86_spill] sm:$0xff]  ;;  %v12171_v48 = vld [vmem:[#allocation39_spill] sm:$0xff]  ;;  %v12205_v31 = vld [vmem:[#allocation108_spill] sm:$0xff] }
 0x284   :  { %12155 = vst [vmem:[#allocation45_spill] sm:$0xff] %v8628_v5  ;;  %12160 = vst [vmem:[#allocation71_spill] sm:$0xff] %v8638_v34  ;;  %v2033_v33 = vmul.f32 %v8610_v10, %v12164_v16  ;;  %v8650_v0 = vmul.f32 %v8086_v63, %v12165_v32  ;;  %v8658_v27 = vmul.f32 %v8086_v63, %v8622_v20  ;;  %v8660_v9 = vld [vmem:[#allocation2 + $0x1c0] sm:$0xff]  ;;  %v12172_v16 = vld [vmem:[#allocation40_spill] sm:$0xff] }
 0x285   :  { %12157 = vst [vmem:[#allocation136_spill] sm:$0xff] %v8632_v44  ;;  %12159 = vst [vmem:[#allocation139_spill] sm:$0xff] %v8636_v62  ;;  %v8662_v18 = vld [vmem:[#allocation2 + $0x200] sm:$0xff]  ;;  %v2034_v4 = vmul.f32 %v8610_v10, %v12171_v48  ;;  %v2035_v58 = vmul.f32 %v8610_v10, %v12172_v16  ;;  %v2036_v12 = vmul.f32 %v8610_v10, %v12173_v49  ;;  %v12200_v8 = vld [vmem:[#allocation103_spill] sm:$0xff] }
 0x286   :  { %12161 = vst [vmem:[#allocation99_spill] sm:$0xff] %v8640_v7  ;;  %12162 = vst [vmem:[#allocation72_spill] sm:$0xff] %v8642_v55  ;;  %v2037_v11 = vmul.f32 %v8610_v10, %v12174_v47  ;;  %v2038_v63 = vmul.f32 %v8610_v10, %v12175_v2  ;;  %v2039_v6 = vmul.f32 %v8610_v10, %v12176_v41  ;;  %v12192_v44 = vld [vmem:[#allocation22_spill] sm:$0xff]  ;;  %v12197_v55 = vld [vmem:[#allocation76_spill] sm:$0xff] }
 0x287   :  { %12163 = vst [vmem:[#allocation100_spill] sm:$0xff] %v8644_v28  ;;  %12166 = vst [vmem:[#allocation84_spill] sm:$0xff] %v8650_v0  ;;  %v2040_v40 = vmul.f32 %v8610_v10, %v12177_v43  ;;  %v2041_v48 = vmul.f32 %v8610_v10, %v12178_v3  ;;  %v2042_v16 = vmul.f32 %v8610_v10, %v12179_v35  ;;  %v12193_v28 = vld [vmem:[#allocation24_spill] sm:$0xff]  ;;  %v12198_v38 = vld [vmem:[#allocation14_spill] sm:$0xff] }
 0x288   :  { %12168 = vst [vmem:[#allocation85_spill] sm:$0xff] %v8658_v27  ;;  %12169 = vst [vmem:[#allocation102_spill] sm:$0xff] %v8660_v9  ;;  %v2043_v49 = vmul.f32 %v8610_v10, %v12180_v45  ;;  %v2044_v47 = vmul.f32 %v8610_v10, %v12181_v13  ;;  %v2045_v2 = vmul.f32 %v8610_v10, %v12182_v50  ;;  %v8698_v45 = vld [vmem:[#allocation2 + $0x440] sm:$0xff]  ;;  %v12186_v13 = vld [vmem:[#allocation29_spill] sm:$0xff] }
 0x289   :  { %12170 = vst [vmem:[#allocation13_spill] sm:$0xff] %v8662_v18  ;;  %v2046_v41 = vmul.f32 %v8610_v10, %v8660_v9  ;;  %v2047_v43 = vmul.f32 %v8610_v10, %v8467_v52  ;;  %v2048_v3 = vmul.f32 %v8610_v10, %v8662_v18  ;;  %v2049_v35 = vmul.f32 %v8610_v10, %v12183_v37  ;;  %v12187_v50 = vld [vmem:[#allocation15_spill] sm:$0xff]  ;;  %v12191_v37 = vld [vmem:[#allocation65_spill] sm:$0xff]  ;;  %v12194_v18 = vld [vmem:[#allocation20_spill] sm:$0xff] }
 0x28a   :  { %12184 = vst [vmem:[#allocation39_spill] sm:$0xff] %v8696_v57  ;;  %12185 = vst [vmem:[#allocation40_spill] sm:$0xff] %v8698_v45  ;;  %v2050_v51 = vmul.f32 %v8610_v10, %v12186_v13  ;;  %v2051_v42 = vmul.f32 %v8610_v10, %v12187_v50  ;;  %v2052_v59 = vmul.f32 %v8610_v10, %v12188_v30  ;;  %v12195_v52 = vld [vmem:[#allocation9_spill] sm:$0xff]  ;;  %v12196_v9 = vld [vmem:[#allocation68_spill] sm:$0xff] }
 0x28b   :  { %v2053_v27 = vmul.f32 %v8610_v10, %v12189_v17  ;;  %v2054_v0 = vmul.f32 %v8610_v10, %v12190_v26  ;;  %v2055_v62 = vmul.f32 %v8610_v10, %v12191_v37  ;;  %v2056_v5 = vmul.f32 %v8610_v10, %v12192_v44  ;;  %v12199_v19 = vld [vmem:[#allocation10_spill] sm:$0xff]  ;;  %v12202_v20 = vld [vmem:[#allocation105_spill] sm:$0xff]  ;;  %v12204_v29 = vld [vmem:[#allocation107_spill] sm:$0xff] }
 0x28c   :  { %v2057_v13 = vmul.f32 %v8610_v10, %v12193_v28  ;;  %v2058_v50 = vmul.f32 %v8610_v10, %v12194_v18  ;;  %v2059_v30 = vmul.f32 %v8610_v10, %v12195_v52  ;;  %v2060_v17 = vmul.f32 %v8610_v10, %v12196_v9  ;;  %v12203_v32 = vld [vmem:[#allocation106_spill] sm:$0xff] }
 0x28d   :  { %v2061_v26 = vmul.f32 %v8610_v10, %v12197_v55  ;;  %v2062_v37 = vmul.f32 %v8610_v10, %v8696_v57  ;;  %v2063_v44 = vmul.f32 %v8610_v10, %v12198_v38  ;;  %v2064_v28 = vmul.f32 %v8610_v10, %v8698_v45 }
 0x28e   :  { %v8731_v18 = vadd.f32 %v2033_v33, %v12199_v19  ;;  %v8734_v52 = vadd.f32 %v2034_v4, %v12200_v8  ;;  %v8737_v9 = vadd.f32 %v2035_v58, %v12201_v56  ;;  %v8740_v55 = vadd.f32 %v2036_v12, %v12202_v20  ;;  %v12206_v19 = vld [vmem:[#allocation109_spill] sm:$0xff]  ;;  %v12207_v8 = vld [vmem:[#allocation110_spill] sm:$0xff]  ;;  %v12208_v58 = vld [vmem:[#allocation111_spill] sm:$0xff] }
 0x28f   :  { %v8743_v57 = vadd.f32 %v2037_v11, %v12203_v32  ;;  %v8746_v38 = vadd.f32 %v2038_v63, %v12204_v29  ;;  %v8749_v10 = vadd.f32 %v2039_v6, %v12205_v31  ;;  %v8752_v33 = vadd.f32 %v2040_v40, %v12206_v19  ;;  %v12209_v32 = vld [vmem:[#allocation12_spill] sm:$0xff]  ;;  %v12228_v19 = vld [vmem:[#allocation49_spill] sm:$0xff] }
 0x290   :  { %v8755_v4 = vadd.f32 %v2041_v48, %v12207_v8  ;;  %v8758_v56 = vadd.f32 %v2042_v16, %v12208_v58  ;;  %v8761_v12 = vadd.f32 %v2043_v49, %v8585_v46  ;;  %v8764_v20 = vadd.f32 %v2044_v47, %v8589_v24  ;;  %v12210_v46 = vld [vmem:[#allocation112_spill] sm:$0xff]  ;;  %v12211_v24 = vld [vmem:[#allocation113_spill] sm:$0xff] }
 0x291   :  { %v8767_v29 = vadd.f32 %v2045_v2, %v8591_v14  ;;  %v8770_v6 = vadd.f32 %v2046_v41, %v8593_v21  ;;  %v8773_v40 = vadd.f32 %v2047_v43, %v8599_v15  ;;  %v8776_v31 = vadd.f32 %v2048_v3, %v8601_v60  ;;  %v12212_v14 = vld [vmem:[#allocation114_spill] sm:$0xff]  ;;  %v12213_v21 = vld [vmem:[#allocation115_spill] sm:$0xff]  ;;  %v12214_v15 = vld [vmem:[#allocation116_spill] sm:$0xff] }
 0x292   :  { %v8779_v11 = vadd.f32 %v2049_v35, %v12209_v32  ;;  %v8782_v63 = vadd.f32 %v2050_v51, %v12210_v46  ;;  %v8785_v48 = vadd.f32 %v2051_v42, %v12211_v24  ;;  %v8788_v16 = vadd.f32 %v2052_v59, %v12212_v14  ;;  %v12215_v60 = vld [vmem:[#allocation117_spill] sm:$0xff]  ;;  %v12216_v41 = vld [vmem:[#allocation118_spill] sm:$0xff]  ;;  %v12217_v51 = vld [vmem:[#allocation119_spill] sm:$0xff] }
 0x293   :  { %v8791_v49 = vadd.f32 %v2053_v27, %v12213_v21  ;;  %v8794_v47 = vadd.f32 %v2054_v0, %v12214_v15  ;;  %v8797_v2 = vadd.f32 %v2055_v62, %v12215_v60  ;;  %v8800_v43 = vadd.f32 %v2056_v5, %v12216_v41  ;;  %v12219_v42 = vld [vmem:[#allocation120_spill] sm:$0xff]  ;;  %v12237_v46 = vld [vmem:[#allocation25_spill] sm:$0xff]  ;;  %v12240_v41 = vld [vmem:[#allocation26_spill] sm:$0xff] }
 0x294   :  { %v8803_v3 = vadd.f32 %v2057_v13, %v12217_v51  ;;  %v8806_v35 = vadd.f32 %v2058_v50, %v12219_v42  ;;  %v8809_v59 = vadd.f32 %v2059_v30, %v8605_v39  ;;  %v8812_v27 = vadd.f32 %v2060_v17, %v8614_v53  ;;  %v8826_v50 = vld [vmem:[#allocation2 + $0x1b0] sm:$0xff]  ;;  %v12238_v14 = vld [vmem:[#allocation57_spill] sm:$0xff]  ;;  %v12241_v42 = vld [vmem:[#allocation59_spill] sm:$0xff] }
 0x295   :  { %v8815_v0 = vadd.f32 %v2061_v26, %v8616_v22  ;;  %v8818_v62 = vadd.f32 %v2062_v37, %v8618_v61  ;;  %v8821_v5 = vadd.f32 %v2063_v44, %v8620_v23  ;;  %v8824_v13 = vadd.f32 %v2064_v28, %v8624_v54  ;;  %12227 = vst [vmem:[#allocation23_spill] sm:$0xff] %v8826_v50  ;;  %v8830_v30 = vld [vmem:[#allocation2 + $0x1d0] sm:$0xff]  ;;  %v12231_v22 = vld [vmem:[#allocation51_spill] sm:$0xff]  ;;  %v12233_v23 = vld [vmem:[#allocation54_spill] sm:$0xff] }
 0x296   :  { %12218 = vst [vmem:[#allocation37_spill] sm:$0xff] %v8803_v3  ;;  %12220 = vst [vmem:[#allocation41_spill] sm:$0xff] %v8806_v35  ;;  %v2133_v39 = vmul.f32 %v8638_v34, %v12228_v19  ;;  %v8832_v53 = vld [vmem:[#allocation2 + $0x210] sm:$0xff]  ;;  %v2134_v17 = vmul.f32 %v8638_v34, %v12231_v22  ;;  %v2136_v37 = vmul.f32 %v8638_v34, %v12233_v23  ;;  %v12234_v54 = vld [vmem:[#allocation19_spill] sm:$0xff] }
 0x297   :  { %12221 = vst [vmem:[#allocation42_spill] sm:$0xff] %v8809_v59  ;;  %12222 = vst [vmem:[#allocation44_spill] sm:$0xff] %v8812_v27  ;;  %v12232_v61 = vld [vmem:[#allocation52_spill] sm:$0xff]  ;;  %v2137_v44 = vmul.f32 %v8638_v34, %v12234_v54  ;;  %v12235_v28 = vld [vmem:[#allocation21_spill] sm:$0xff]  ;;  %v2140_v24 = vmul.f32 %v8638_v34, %v12237_v46  ;;  %v2141_v21 = vmul.f32 %v8638_v34, %v12238_v14 }
 0x298   :  { %12223 = vst [vmem:[#allocation46_spill] sm:$0xff] %v8815_v0  ;;  %12224 = vst [vmem:[#allocation47_spill] sm:$0xff] %v8818_v62  ;;  %v2135_v26 = vmul.f32 %v8638_v34, %v12232_v61  ;;  %v2138_v8 = vmul.f32 %v8638_v34, %v12235_v28  ;;  %v12236_v58 = vld [vmem:[#allocation56_spill] sm:$0xff]  ;;  %v2143_v51 = vmul.f32 %v8638_v34, %v12240_v41  ;;  %v12246_v41 = vld [vmem:[#allocation30_spill] sm:$0xff] }
 0x299   :  { %12225 = vst [vmem:[#allocation48_spill] sm:$0xff] %v8821_v5  ;;  %12226 = vst [vmem:[#allocation50_spill] sm:$0xff] %v8824_v13  ;;  %v2139_v32 = vmul.f32 %v8638_v34, %v12236_v58  ;;  %v12239_v15 = vld [vmem:[#allocation28_spill] sm:$0xff]  ;;  %v2144_v19 = vmul.f32 %v8638_v34, %v12241_v42  ;;  %v2145_v22 = vmul.f32 %v8638_v34, %v8826_v50  ;;  %v12243_v58 = vld [vmem:[#allocation27_spill] sm:$0xff] }
 0x29a   :  { %12229 = vst [vmem:[#allocation55_spill] sm:$0xff] %v8830_v30  ;;  %12230 = vst [vmem:[#allocation60_spill] sm:$0xff] %v8832_v53  ;;  %v2142_v60 = vmul.f32 %v8638_v34, %v12239_v15  ;;  %v8858_v61 = vld [vmem:[#allocation2 + $0x3f0] sm:$0xff]  ;;  %v2146_v23 = vmul.f32 %v8638_v34, %v8830_v30  ;;  %v2147_v54 = vmul.f32 %v8638_v34, %v8469_v36  ;;  %v12247_v50 = vld [vmem:[#allocation62_spill] sm:$0xff] }
 0x29b   :  { %12242 = vst [vmem:[#allocation29_spill] sm:$0xff] %v8858_v61  ;;  %v2148_v28 = vmul.f32 %v8638_v34, %v8832_v53  ;;  %v2149_v46 = vmul.f32 %v8638_v34, %v12243_v58  ;;  %v8868_v14 = vld [vmem:[#allocation2 + $0x410] sm:$0xff]  ;;  %v2150_v42 = vmul.f32 %v8638_v34, %v12246_v41  ;;  %v2151_v45 = vmul.f32 %v8638_v34, %v12247_v50  ;;  %v12248_v30 = vld [vmem:[#allocation17_spill] sm:$0xff]  ;;  %v12252_v62 = vld [vmem:[#allocation6_spill] sm:$0xff] }
 0x29c   :  { %12244 = vst [vmem:[#allocation15_spill] sm:$0xff] %v8868_v14  ;;  %v8870_v15 = vld [vmem:[#allocation2 + $0x450] sm:$0xff]  ;;  %v2152_v1 = vmul.f32 %v8638_v34, %v12248_v30  ;;  %v2156_v0 = vmul.f32 %v8638_v34, %v12252_v62  ;;  %v12253_v27 = vld [vmem:[#allocation7_spill] sm:$0xff]  ;;  %v12255_v35 = vld [vmem:[#allocation66_spill] sm:$0xff]  ;;  %v2163_v62 = vmul.f32 %v8638_v34, %v8489_v25  ;;  %v8918_v25 = vadd.f32 %v2138_v8, %v8746_v38 }
 0x29d   :  { %12245 = vst [vmem:[#allocation31_spill] sm:$0xff] %v8870_v15  ;;  %v12249_v36 = vld [vmem:[#allocation16_spill] sm:$0xff]  ;;  %v2157_v41 = vmul.f32 %v8638_v34, %v12253_v27  ;;  %v2159_v30 = vmul.f32 %v8638_v34, %v12255_v35  ;;  %v12256_v3 = vld [vmem:[#allocation67_spill] sm:$0xff]  ;;  %v2164_v27 = vmul.f32 %v8638_v34, %v8870_v15  ;;  %v8906_v35 = vadd.f32 %v2134_v17, %v8734_v52  ;;  %v12298_v15 = vld [vmem:[#allocation93_spill] sm:$0xff] }
 0x29e   :  { %v2153_v7 = vmul.f32 %v8638_v34, %v12249_v36  ;;  %v12250_v53 = vld [vmem:[#allocation32_spill] sm:$0xff]  ;;  %v2160_v36 = vmul.f32 %v8638_v34, %v12256_v3  ;;  %v8909_v3 = vadd.f32 %v2135_v26, %v8737_v9  ;;  %v8927_v52 = vadd.f32 %v2141_v21, %v8755_v4  ;;  %v12275_v8 = vld [vmem:[#allocation99_spill] sm:$0xff]  ;;  %v12277_v21 = vld [vmem:[#allocation70_spill] sm:$0xff] }
 0x29f   :  { %v2154_v13 = vmul.f32 %v8638_v34, %v12250_v53  ;;  %v12251_v58 = vld [vmem:[#allocation64_spill] sm:$0xff]  ;;  %v2161_v53 = vmul.f32 %v8638_v34, %v8858_v61  ;;  %v8912_v61 = vadd.f32 %v2136_v37, %v8740_v55  ;;  %v8930_v9 = vadd.f32 %v2142_v60, %v8758_v56  ;;  %v8998_v37 = vld [vmem:[#allocation2 + $0x181] sm:$0xff] }
 0x2a0   :  { %v2155_v5 = vmul.f32 %v8638_v34, %v12251_v58  ;;  %v12254_v59 = vld [vmem:[#allocation8_spill] sm:$0xff]  ;;  %v2162_v58 = vmul.f32 %v8638_v34, %v8868_v14  ;;  %v8915_v14 = vadd.f32 %v2137_v44, %v8743_v57  ;;  %v8933_v55 = vadd.f32 %v2143_v51, %v8761_v12  ;;  %v12271_v17 = vld [vmem:[#allocation50_spill] sm:$0xff]  ;;  %12273 = vst [vmem:[#allocation76_spill] sm:$0xff] %v8998_v37  ;;  %v12274_v44 = vld [vmem:[#allocation69_spill] sm:$0xff] }
 0x2a1   :  { %v2158_v50 = vmul.f32 %v8638_v34, %v12254_v59  ;;  %v8903_v59 = vadd.f32 %v2133_v39, %v8731_v18  ;;  %v8921_v34 = vadd.f32 %v2139_v32, %v8749_v10  ;;  %v8924_v18 = vadd.f32 %v2140_v24, %v8752_v33  ;;  %v9002_v24 = vld [vmem:[#allocation2 + $0x201] sm:$0xff]  ;;  %v12278_v51 = vld [vmem:[#allocation73_spill] sm:$0xff] }
 0x2a2   :  { %v8936_v57 = vadd.f32 %v2144_v19, %v8764_v20  ;;  %v8939_v38 = vadd.f32 %v2145_v22, %v8767_v29  ;;  %v8942_v10 = vadd.f32 %v2146_v23, %v8770_v6  ;;  %v8945_v33 = vadd.f32 %v2147_v54, %v8773_v40  ;;  %12276 = vst [vmem:[#allocation14_spill] sm:$0xff] %v9002_v24  ;;  %v12279_v22 = vld [vmem:[#allocation74_spill] sm:$0xff]  ;;  %v12280_v54 = vld [vmem:[#allocation75_spill] sm:$0xff] }
 0x2a3   :  { %v8948_v4 = vadd.f32 %v2148_v28, %v8776_v31  ;;  %v8951_v56 = vadd.f32 %v2149_v46, %v8779_v11  ;;  %v8954_v12 = vadd.f32 %v2150_v42, %v8782_v63  ;;  %v8957_v20 = vadd.f32 %v2151_v45, %v8785_v48  ;;  %v12257_v63 = vld [vmem:[#allocation37_spill] sm:$0xff]  ;;  %v12281_v46 = vld [vmem:[#allocation78_spill] sm:$0xff] }
 0x2a4   :  { %v8960_v29 = vadd.f32 %v2152_v1, %v8788_v16  ;;  %v8963_v6 = vadd.f32 %v2153_v7, %v8791_v49  ;;  %v8966_v40 = vadd.f32 %v2154_v13, %v8794_v47  ;;  %v8969_v31 = vadd.f32 %v2155_v5, %v8797_v2  ;;  %v12259_v45 = vld [vmem:[#allocation41_spill] sm:$0xff]  ;;  %v12261_v1 = vld [vmem:[#allocation42_spill] sm:$0xff]  ;;  %v12263_v7 = vld [vmem:[#allocation44_spill] sm:$0xff] }
 0x2a5   :  { %v8972_v11 = vadd.f32 %v2156_v0, %v8800_v43  ;;  %v8975_v39 = vadd.f32 %v2157_v41, %v12257_v63  ;;  %v8978_v48 = vadd.f32 %v2158_v50, %v12259_v45  ;;  %v8981_v16 = vadd.f32 %v2159_v30, %v12261_v1  ;;  %v12265_v47 = vld [vmem:[#allocation46_spill] sm:$0xff]  ;;  %v12267_v2 = vld [vmem:[#allocation47_spill] sm:$0xff]  ;;  %v12269_v43 = vld [vmem:[#allocation48_spill] sm:$0xff] }
 0x2a6   :  { %v8984_v49 = vadd.f32 %v2160_v36, %v12263_v7  ;;  %v8987_v13 = vadd.f32 %v2161_v53, %v12265_v47  ;;  %v8990_v5 = vadd.f32 %v2162_v58, %v12267_v2  ;;  %v8993_v0 = vadd.f32 %v2163_v62, %v12269_v43  ;;  %v12282_v41 = vld [vmem:[#allocation79_spill] sm:$0xff]  ;;  %v12283_v30 = vld [vmem:[#allocation81_spill] sm:$0xff]  ;;  %v12284_v53 = vld [vmem:[#allocation82_spill] sm:$0xff] }
 0x2a7   :  { %12258 = vst [vmem:[#allocation18_spill] sm:$0xff] %v8975_v39  ;;  %12260 = vst [vmem:[#allocation63_spill] sm:$0xff] %v8978_v48  ;;  %v8996_v26 = vadd.f32 %v2164_v27, %v12271_v17  ;;  %v2233_v32 = vmul.f32 %v12275_v8, %v12274_v44  ;;  %v2234_v60 = vmul.f32 %v12275_v8, %v12277_v21  ;;  %v12285_v62 = vld [vmem:[#allocation83_spill] sm:$0xff]  ;;  %v12286_v63 = vld [vmem:[#allocation86_spill] sm:$0xff] }
 0x2a8   :  { %12262 = vst [vmem:[#allocation65_spill] sm:$0xff] %v8981_v16  ;;  %12264 = vst [vmem:[#allocation22_spill] sm:$0xff] %v8984_v49  ;;  %v2235_v19 = vmul.f32 %v12275_v8, %v12278_v51  ;;  %v2236_v23 = vmul.f32 %v12275_v8, %v12279_v22  ;;  %v2237_v28 = vmul.f32 %v12275_v8, %v12280_v54  ;;  %v12287_v7 = vld [vmem:[#allocation89_spill] sm:$0xff]  ;;  %v9028_v2 = vld [vmem:[#allocation2 + $0x3c1] sm:$0xff] }
 0x2a9   :  { %12266 = vst [vmem:[#allocation24_spill] sm:$0xff] %v8987_v13  ;;  %12268 = vst [vmem:[#allocation20_spill] sm:$0xff] %v8990_v5  ;;  %v2238_v42 = vmul.f32 %v12275_v8, %v12281_v46  ;;  %v2239_v50 = vmul.f32 %v12275_v8, %v12282_v41  ;;  %v2240_v36 = vmul.f32 %v12275_v8, %v12283_v30  ;;  %v9030_v43 = vld [vmem:[#allocation2 + $0x3e1] sm:$0xff]  ;;  %v12294_v30 = vld [vmem:[#allocation88_spill] sm:$0xff] }
 0x2aa   :  { %12270 = vst [vmem:[#allocation9_spill] sm:$0xff] %v8993_v0  ;;  %12272 = vst [vmem:[#allocation68_spill] sm:$0xff] %v8996_v26  ;;  %v2241_v58 = vmul.f32 %v12275_v8, %v12284_v53  ;;  %v2242_v27 = vmul.f32 %v12275_v8, %v12285_v62  ;;  %v2243_v45 = vmul.f32 %v12275_v8, %v12286_v63  ;;  %v12290_v17 = vld [vmem:[#allocation58_spill] sm:$0xff]  ;;  %v12291_v21 = vld [vmem:[#allocation43_spill] sm:$0xff] }
 0x2ab   :  { %v2244_v1 = vmul.f32 %v12275_v8, %v8998_v37  ;;  %v2245_v47 = vmul.f32 %v12275_v8, %v12287_v7  ;;  %12288 = vst [vmem:[#allocation10_spill] sm:$0xff] %v9028_v2  ;;  %12289 = vst [vmem:[#allocation103_spill] sm:$0xff] %v9030_v43  ;;  %v2246_v44 = vmul.f32 %v12275_v8, %v12290_v17  ;;  %v12292_v54 = vld [vmem:[#allocation87_spill] sm:$0xff]  ;;  %v12295_v62 = vld [vmem:[#allocation90_spill] sm:$0xff] }
 0x2ac   :  { %v2247_v51 = vmul.f32 %v12275_v8, %v12291_v21  ;;  %v2248_v22 = vmul.f32 %v12275_v8, %v9002_v24  ;;  %v2249_v46 = vmul.f32 %v12275_v8, %v12292_v54  ;;  %v9040_v41 = vld [vmem:[#allocation2 + $0x441] sm:$0xff]  ;;  %v2250_v53 = vmul.f32 %v12275_v8, %v12294_v30  ;;  %v12297_v17 = vld [vmem:[#allocation92_spill] sm:$0xff]  ;;  %v12302_v49 = vld [vmem:[#allocation97_spill] sm:$0xff] }
 0x2ad   :  { %12293 = vst [vmem:[#allocation104_spill] sm:$0xff] %v9040_v41  ;;  %v2251_v63 = vmul.f32 %v12275_v8, %v12295_v62  ;;  %v12296_v7 = vld [vmem:[#allocation91_spill] sm:$0xff]  ;;  %v2253_v21 = vmul.f32 %v12275_v8, %v12297_v17  ;;  %v2254_v24 = vmul.f32 %v12275_v8, %v12298_v15  ;;  %v12299_v26 = vld [vmem:[#allocation94_spill] sm:$0xff]  ;;  %v12301_v13 = vld [vmem:[#allocation96_spill] sm:$0xff]  ;;  %v2258_v62 = vmul.f32 %v12275_v8, %v12302_v49 }
 0x2ae   :  { %v2252_v37 = vmul.f32 %v12275_v8, %v12296_v7  ;;  %v2255_v54 = vmul.f32 %v12275_v8, %v12299_v26  ;;  %v12300_v0 = vld [vmem:[#allocation95_spill] sm:$0xff]  ;;  %v2257_v30 = vmul.f32 %v12275_v8, %v12301_v13  ;;  %v12303_v16 = vld [vmem:[#allocation98_spill] sm:$0xff]  ;;  %v2260_v17 = vmul.f32 %v12275_v8, %v9028_v2  ;;  %v12304_v48 = vld [vmem:[#allocation61_spill] sm:$0xff] }
 0x2af   :  { %v2256_v5 = vmul.f32 %v12275_v8, %v12300_v0  ;;  %v2259_v7 = vmul.f32 %v12275_v8, %v12303_v16  ;;  %v2261_v15 = vmul.f32 %v12275_v8, %v9030_v43  ;;  %v2262_v26 = vmul.f32 %v12275_v8, %v12304_v48  ;;  %v12305_v39 = vld [vmem:[#allocation80_spill] sm:$0xff] }
 0x2b0   :  { %v2263_v0 = vmul.f32 %v12275_v8, %v12305_v39  ;;  %v2264_v13 = vmul.f32 %v12275_v8, %v9040_v41  ;;  %v9073_v49 = vadd.f32 %v2233_v32, %v8903_v59  ;;  %v9076_v16 = vadd.f32 %v2234_v60, %v8906_v35  ;;  %v5609_v41 = vld [vmem:[#allocation2 + $0x300] sm:$0xff] }
 0x2b1   :  { %v9079_v2 = vadd.f32 %v2235_v19, %v8909_v3  ;;  %v9082_v43 = vadd.f32 %v2236_v23, %v8912_v61  ;;  %v9085_v48 = vadd.f32 %v2237_v28, %v8915_v14  ;;  %v9088_v39 = vadd.f32 %v2238_v42, %v8918_v25  ;;  %v12321_v28 = vld [vmem:[#allocation68_spill] sm:$0xff] }
 0x2b2   :  { %v9091_v8 = vadd.f32 %v2239_v50, %v8921_v34  ;;  %v9094_v59 = vadd.f32 %v2240_v36, %v8924_v18  ;;  %v9097_v35 = vadd.f32 %v2241_v58, %v8927_v52  ;;  %v9100_v3 = vadd.f32 %v2242_v27, %v8930_v9  ;;  %v2308_v50 = vld [vmem:[#allocation2 + $0x180] sm:$0xff]  ;;  %v12323_v27 = vld [vmem:[#allocation72_spill] sm:$0xff] }
 0x2b3   :  { %v9103_v61 = vadd.f32 %v2243_v45, %v8933_v55  ;;  %v9106_v14 = vadd.f32 %v2244_v1, %v8936_v57  ;;  %v9109_v25 = vadd.f32 %v2245_v47, %v8939_v38  ;;  %v9112_v34 = vadd.f32 %v2246_v44, %v8942_v10  ;;  %v2309_v36 = vld [vmem:[#allocation2 + $0x1a0] sm:$0xff] }
 0x2b4   :  { %v9115_v18 = vadd.f32 %v2247_v51, %v8945_v33  ;;  %v9118_v52 = vadd.f32 %v2248_v22, %v8948_v4  ;;  %v9121_v9 = vadd.f32 %v2249_v46, %v8951_v56  ;;  %v9124_v55 = vadd.f32 %v2250_v53, %v8954_v12  ;;  %v12307_v12 = vld [vmem:[#allocation18_spill] sm:$0xff] }
 0x2b5   :  { %v9127_v57 = vadd.f32 %v2251_v63, %v8957_v20  ;;  %v9130_v38 = vadd.f32 %v2252_v37, %v8960_v29  ;;  %v9133_v10 = vadd.f32 %v2253_v21, %v8963_v6  ;;  %v9136_v33 = vadd.f32 %v2254_v24, %v8966_v40  ;;  %v12309_v20 = vld [vmem:[#allocation63_spill] sm:$0xff]  ;;  %v12311_v29 = vld [vmem:[#allocation65_spill] sm:$0xff]  ;;  %v12313_v6 = vld [vmem:[#allocation22_spill] sm:$0xff] }
 0x2b6   :  { %v9139_v4 = vadd.f32 %v2255_v54, %v8969_v31  ;;  %v9142_v56 = vadd.f32 %v2256_v5, %v8972_v11  ;;  %v9145_v32 = vadd.f32 %v2257_v30, %v12307_v12  ;;  %v9148_v60 = vadd.f32 %v2258_v62, %v12309_v20  ;;  %v12315_v40 = vld [vmem:[#allocation24_spill] sm:$0xff]  ;;  %v12319_v11 = vld [vmem:[#allocation9_spill] sm:$0xff]  ;;  %v5595_v58 = vld [vmem:[#allocation2 + $0x40] sm:$0xff] }
 0x2b7   :  { %v9151_v37 = vadd.f32 %v2259_v7, %v12311_v29  ;;  %v9154_v19 = vadd.f32 %v2260_v17, %v12313_v6  ;;  %v9157_v24 = vadd.f32 %v2261_v15, %v12315_v40  ;;  %v12317_v31 = vld [vmem:[#allocation20_spill] sm:$0xff]  ;;  %v9163_v5 = vadd.f32 %v2263_v0, %v12319_v11  ;;  %v2313_v1 = vld [vmem:[#allocation2 + $0x220] sm:$0xff] }
 0x2b8   :  { %12306 = vst [vmem:[#allocation105_spill] sm:$0xff] %v9142_v56  ;;  %12308 = vst [vmem:[#allocation106_spill] sm:$0xff] %v9145_v32  ;;  %v9160_v23 = vadd.f32 %v2262_v26, %v12317_v31  ;;  %v9166_v42 = vadd.f32 %v2264_v13, %v12321_v28  ;;  %v2334_v45 = vmul.f32 %v5595_v58, %v12323_v27  ;;  %v5596_v47 = vld [vmem:[#allocation2 + $0x60] sm:$0xff] }
 0x2b9   :  { %12310 = vst [vmem:[#allocation107_spill] sm:$0xff] %v9148_v60  ;;  %12312 = vst [vmem:[#allocation108_spill] sm:$0xff] %v9151_v37  ;;  %v2335_v44 = vmul.f32 %v5596_v47, %v12323_v27  ;;  %v5597_v21 = vld [vmem:[#allocation2 + $0x80] sm:$0xff]  ;;  %v2344_v20 = vmul.f32 %v12323_v27, %v2308_v50  ;;  %v2345_v29 = vmul.f32 %v12323_v27, %v2309_v36  ;;  %v12326_v47 = vld [vmem:[#allocation13_spill] sm:$0xff] }
 0x2ba   :  { %12314 = vst [vmem:[#allocation109_spill] sm:$0xff] %v9154_v19  ;;  %12316 = vst [vmem:[#allocation110_spill] sm:$0xff] %v9157_v24  ;;  %v2336_v51 = vmul.f32 %v5597_v21, %v12323_v27  ;;  %v5598_v22 = vld [vmem:[#allocation2 + $0xa0] sm:$0xff]  ;;  %v2348_v21 = vmul.f32 %v12323_v27, %v12326_v47 }
 0x2bb   :  { %12318 = vst [vmem:[#allocation111_spill] sm:$0xff] %v9160_v23  ;;  %12320 = vst [vmem:[#allocation12_spill] sm:$0xff] %v9163_v5  ;;  %v2337_v46 = vmul.f32 %v5598_v22, %v12323_v27  ;;  %v5599_v53 = vld [vmem:[#allocation2 + $0xc0] sm:$0xff]  ;;  %v2349_v22 = vmul.f32 %v12323_v27, %v2313_v1 }
 0x2bc   :  { %12322 = vst [vmem:[#allocation112_spill] sm:$0xff] %v9166_v42  ;;  %v2338_v63 = vmul.f32 %v5599_v53, %v12323_v27  ;;  %v5600_v54 = vld [vmem:[#allocation2 + $0xe0] sm:$0xff] }
 0x2bd   :  { %v2339_v30 = vmul.f32 %v5600_v54, %v12323_v27  ;;  %v5601_v62 = vld [vmem:[#allocation2 + $0x100] sm:$0xff] }
 0x2be   :  { %v2340_v7 = vmul.f32 %v5601_v62, %v12323_v27  ;;  %v5602_v17 = vld [vmem:[#allocation2 + $0x120] sm:$0xff] }
 0x2bf   :  { %v2341_v15 = vmul.f32 %v5602_v17, %v12323_v27  ;;  %v5603_v26 = vld [vmem:[#allocation2 + $0x140] sm:$0xff] }
 0x2c0   :  { %v2342_v0 = vmul.f32 %v5603_v26, %v12323_v27  ;;  %v5604_v13 = vld [vmem:[#allocation2 + $0x160] sm:$0xff] }
 0x2c1   :  { %v2343_v12 = vmul.f32 %v5604_v13, %v12323_v27  ;;  %v12324_v6 = vld [vmem:[#allocation102_spill] sm:$0xff] }
 0x2c2   :  { %v2346_v40 = vmul.f32 %v12323_v27, %v12324_v6  ;;  %v2324_v31 = vld [vmem:[#allocation2 + $0x3c0] sm:$0xff] }
 0x2c3   :  { %v2325_v11 = vld [vmem:[#allocation2 + $0x3e0] sm:$0xff] }
 0x2c4   :  { %v12325_v28 = vld [vmem:[#allocation178_spill] sm:$0xff]  ;;  %v2361_v37 = vmul.f32 %v12323_v27, %v2325_v11  ;;  %v9215_v11 = vadd.f32 %v2337_v46, %v9082_v43  ;;  %v9236_v43 = vadd.f32 %v2344_v20, %v9103_v61  ;;  %v9303_v20 = vld [vmem:[#allocation2 + $0x50] sm:$0xff] }
 0x2c5   :  { %v2347_v58 = vmul.f32 %v12323_v27, %v12325_v28  ;;  %v5605_v53 = vld [vmem:[#allocation2 + $0x280] sm:$0xff]  ;;  %v2354_v28 = vmul.f32 %v5609_v41, %v12323_v27  ;;  %v12327_v41 = vld [vmem:[#allocation39_spill] sm:$0xff]  ;;  %12350 = vst [vmem:[#allocation19_spill] sm:$0xff] %v9303_v20 }
 0x2c6   :  { %v2350_v54 = vmul.f32 %v5605_v53, %v12323_v27  ;;  %v2329_v62 = vld [vmem:[#allocation2 + $0x460] sm:$0xff]  ;;  %v2362_v60 = vmul.f32 %v12323_v27, %v12327_v41  ;;  %v9218_v41 = vadd.f32 %v2338_v63, %v9085_v48  ;;  %v9239_v48 = vadd.f32 %v2345_v29, %v9106_v14  ;;  %v12351_v29 = vld [vmem:[#allocation100_spill] sm:$0xff] }
 0x2c7   :  { %v5606_v50 = vld [vmem:[#allocation2 + $0x2a0] sm:$0xff] }
 0x2c8   :  { %v2351_v36 = vmul.f32 %v5606_v50, %v12323_v27  ;;  %v5607_v17 = vld [vmem:[#allocation2 + $0x2c0] sm:$0xff] }
 0x2c9   :  { %v2352_v26 = vmul.f32 %v5607_v17, %v12323_v27  ;;  %v5608_v13 = vld [vmem:[#allocation2 + $0x2e0] sm:$0xff] }
 0x2ca   :  { %v2353_v6 = vmul.f32 %v5608_v13, %v12323_v27  ;;  %v5610_v42 = vld [vmem:[#allocation2 + $0x320] sm:$0xff]  ;;  %v2360_v13 = vmul.f32 %v12323_v27, %v2324_v31  ;;  %v9212_v31 = vadd.f32 %v2336_v51, %v9079_v2  ;;  %v9233_v2 = vadd.f32 %v2343_v12, %v9100_v3  ;;  %v9301_v12 = vld [vmem:[#allocation2 + $0x170] sm:$0xff] }
 0x2cb   :  { %v2355_v47 = vmul.f32 %v5610_v42, %v12323_v27  ;;  %v5611_v1 = vld [vmem:[#allocation2 + $0x340] sm:$0xff]  ;;  %v9254_v3 = vadd.f32 %v2350_v54, %v9121_v9  ;;  %v9257_v61 = vadd.f32 %v2351_v36, %v9124_v55  ;;  %v9260_v14 = vadd.f32 %v2352_v26, %v9127_v57  ;;  %v12331_v9 = vld [vmem:[#allocation105_spill] sm:$0xff]  ;;  %v12335_v57 = vld [vmem:[#allocation107_spill] sm:$0xff]  ;;  %12349 = vst [vmem:[#allocation54_spill] sm:$0xff] %v9301_v12 }
 0x2cc   :  { %v2356_v5 = vmul.f32 %v5611_v1, %v12323_v27  ;;  %v5612_v53 = vld [vmem:[#allocation2 + $0x360] sm:$0xff]  ;;  %v12328_v1 = vld [vmem:[#allocation40_spill] sm:$0xff] }
 0x2cd   :  { %v2357_v23 = vmul.f32 %v5612_v53, %v12323_v27  ;;  %v5613_v24 = vld [vmem:[#allocation2 + $0x380] sm:$0xff]  ;;  %v2364_v56 = vmul.f32 %v12323_v27, %v12328_v1  ;;  %v2365_v53 = vmul.f32 %v12323_v27, %v2329_v62  ;;  %v9224_v62 = vadd.f32 %v2340_v7, %v9091_v8  ;;  %v9323_v36 = vld [vmem:[#allocation2 + $0xf0] sm:$0xff] }
 0x2ce   :  { %v2358_v50 = vmul.f32 %v5613_v24, %v12323_v27  ;;  %v5614_v19 = vld [vmem:[#allocation2 + $0x3a0] sm:$0xff]  ;;  %v9206_v24 = vadd.f32 %v2334_v45, %v9073_v49  ;;  %v9227_v49 = vadd.f32 %v2341_v15, %v9094_v59  ;;  %v9245_v8 = vadd.f32 %v2347_v58, %v9112_v34  ;;  %v12347_v15 = vld [vmem:[#allocation112_spill] sm:$0xff]  ;;  %12356 = vst [vmem:[#allocation28_spill] sm:$0xff] %v9323_v36 }
 0x2cf   :  { %v2359_v17 = vmul.f32 %v5614_v19, %v12323_v27  ;;  %v5615_v42 = vld [vmem:[#allocation2 + $0x420] sm:$0xff]  ;;  %v9209_v19 = vadd.f32 %v2335_v44, %v9076_v16  ;;  %v9230_v16 = vadd.f32 %v2342_v0, %v9097_v35  ;;  %v9248_v59 = vadd.f32 %v2348_v21, %v9115_v18  ;;  %v9315_v58 = vld [vmem:[#allocation2 + $0xb0] sm:$0xff] }
 0x2d0   :  { %v2363_v32 = vmul.f32 %v5615_v42, %v12323_v27  ;;  %v9221_v42 = vadd.f32 %v2339_v30, %v9088_v39  ;;  %v9242_v39 = vadd.f32 %v2346_v40, %v9109_v25  ;;  %v9251_v35 = vadd.f32 %v2349_v22, %v9118_v52  ;;  %v12333_v55 = vld [vmem:[#allocation106_spill] sm:$0xff]  ;;  %v9307_v40 = vld [vmem:[#allocation2 + $0x70] sm:$0xff]  ;;  %12354 = vst [vmem:[#allocation25_spill] sm:$0xff] %v9315_v58 }
 0x2d1   :  { %v9263_v25 = vadd.f32 %v2353_v6, %v9130_v38  ;;  %v9266_v34 = vadd.f32 %v2354_v28, %v9133_v10  ;;  %v9269_v18 = vadd.f32 %v2355_v47, %v9136_v33  ;;  %v9272_v52 = vadd.f32 %v2356_v5, %v9139_v4  ;;  %v12337_v38 = vld [vmem:[#allocation108_spill] sm:$0xff]  ;;  %v12339_v10 = vld [vmem:[#allocation109_spill] sm:$0xff]  ;;  %v12341_v33 = vld [vmem:[#allocation110_spill] sm:$0xff]  ;;  %12352 = vst [vmem:[#allocation21_spill] sm:$0xff] %v9307_v40 }
 0x2d2   :  { %v9275_v45 = vadd.f32 %v2357_v23, %v12331_v9  ;;  %v9278_v44 = vadd.f32 %v2358_v50, %v12333_v55  ;;  %v9281_v51 = vadd.f32 %v2359_v17, %v12335_v57  ;;  %v9284_v46 = vadd.f32 %v2360_v13, %v12337_v38  ;;  %v12343_v4 = vld [vmem:[#allocation111_spill] sm:$0xff]  ;;  %v12345_v23 = vld [vmem:[#allocation12_spill] sm:$0xff] }
 0x2d3   :  { %12329 = vst [vmem:[#allocation113_spill] sm:$0xff] %v9269_v18  ;;  %12330 = vst [vmem:[#allocation114_spill] sm:$0xff] %v9272_v52  ;;  %v9287_v63 = vadd.f32 %v2361_v37, %v12339_v10  ;;  %v9290_v30 = vadd.f32 %v2362_v60, %v12341_v33  ;;  %v9293_v5 = vadd.f32 %v2363_v32, %v12343_v4  ;;  %v9311_v32 = vld [vmem:[#allocation2 + $0x90] sm:$0xff]  ;;  %v12362_v57 = vld [vmem:[#allocation23_spill] sm:$0xff] }
 0x2d4   :  { %12332 = vst [vmem:[#allocation115_spill] sm:$0xff] %v9275_v45  ;;  %12334 = vst [vmem:[#allocation116_spill] sm:$0xff] %v9278_v44  ;;  %v9296_v7 = vadd.f32 %v2364_v56, %v12345_v23  ;;  %v9299_v0 = vadd.f32 %v2365_v53, %v12347_v15  ;;  %v2435_v37 = vmul.f32 %v9303_v20, %v12351_v29  ;;  %v9319_v22 = vld [vmem:[#allocation2 + $0xd0] sm:$0xff]  ;;  %v12363_v10 = vld [vmem:[#allocation55_spill] sm:$0xff] }
 0x2d5   :  { %12336 = vst [vmem:[#allocation117_spill] sm:$0xff] %v9281_v51  ;;  %12338 = vst [vmem:[#allocation118_spill] sm:$0xff] %v9284_v46  ;;  %v2436_v60 = vmul.f32 %v9307_v40, %v12351_v29  ;;  %v2437_v56 = vmul.f32 %v9311_v32, %v12351_v29  ;;  %v2438_v21 = vmul.f32 %v9315_v58, %v12351_v29  ;;  %v9327_v6 = vld [vmem:[#allocation2 + $0x110] sm:$0xff]  ;;  %v12365_v23 = vld [vmem:[#allocation179_spill] sm:$0xff] }
 0x2d6   :  { %12340 = vst [vmem:[#allocation119_spill] sm:$0xff] %v9287_v63  ;;  %12342 = vst [vmem:[#allocation120_spill] sm:$0xff] %v9290_v30  ;;  %v2439_v54 = vmul.f32 %v9319_v22, %v12351_v29  ;;  %v2440_v26 = vmul.f32 %v9323_v36, %v12351_v29  ;;  %v2441_v28 = vmul.f32 %v9327_v6, %v12351_v29  ;;  %v9331_v47 = vld [vmem:[#allocation2 + $0x130] sm:$0xff]  ;;  %v12379_v30 = vld [vmem:[#allocation15_spill] sm:$0xff] }
 0x2d7   :  { %12344 = vst [vmem:[#allocation49_spill] sm:$0xff] %v9293_v5  ;;  %12346 = vst [vmem:[#allocation51_spill] sm:$0xff] %v9296_v7  ;;  %v2442_v50 = vmul.f32 %v9331_v47, %v12351_v29  ;;  %v9335_v17 = vld [vmem:[#allocation2 + $0x150] sm:$0xff]  ;;  %v2444_v53 = vmul.f32 %v12351_v29, %v9301_v12  ;;  %v2446_v38 = vmul.f32 %v12351_v29, %v12362_v57  ;;  %v12378_v7 = vld [vmem:[#allocation29_spill] sm:$0xff] }
 0x2d8   :  { %12348 = vst [vmem:[#allocation52_spill] sm:$0xff] %v9299_v0  ;;  %12353 = vst [vmem:[#allocation56_spill] sm:$0xff] %v9311_v32  ;;  %v2443_v13 = vmul.f32 %v9335_v17, %v12351_v29  ;;  %v9339_v1 = vld [vmem:[#allocation2 + $0x230] sm:$0xff]  ;;  %v2447_v33 = vmul.f32 %v12351_v29, %v12363_v10  ;;  %v2448_v15 = vmul.f32 %v12351_v29, %v12365_v23  ;;  %v12380_v63 = vld [vmem:[#allocation185_spill] sm:$0xff] }
 0x2d9   :  { %12355 = vst [vmem:[#allocation57_spill] sm:$0xff] %v9319_v22  ;;  %12357 = vst [vmem:[#allocation26_spill] sm:$0xff] %v9327_v6  ;;  %v9343_v9 = vld [vmem:[#allocation2 + $0x190] sm:$0xff]  ;;  %v2450_v12 = vmul.f32 %v12351_v29, %v9339_v1  ;;  %v2462_v5 = vmul.f32 %v12351_v29, %v12378_v7  ;;  %v2464_v46 = vmul.f32 %v12351_v29, %v12380_v63 }
 0x2da   :  { %12358 = vst [vmem:[#allocation59_spill] sm:$0xff] %v9331_v47  ;;  %12359 = vst [vmem:[#allocation27_spill] sm:$0xff] %v9335_v17  ;;  %v2445_v55 = vmul.f32 %v9343_v9, %v12351_v29  ;;  %v9351_v4 = vld [vmem:[#allocation2 + $0x3b0] sm:$0xff]  ;;  %v2467_v44 = vadd.f32 %v2435_v37, %v9206_v24  ;;  %v2468_v45 = vadd.f32 %v2436_v60, %v9209_v19  ;;  %v12382_v37 = vld [vmem:[#allocation113_spill] sm:$0xff] }
 0x2db   :  { %12360 = vst [vmem:[#allocation30_spill] sm:$0xff] %v9339_v1  ;;  %12361 = vst [vmem:[#allocation62_spill] sm:$0xff] %v9343_v9  ;;  %v12366_v27 = vld [vmem:[#allocation60_spill] sm:$0xff]  ;;  %v2470_v7 = vadd.f32 %v2438_v21, %v9215_v11  ;;  %v2471_v52 = vadd.f32 %v2439_v54, %v9218_v41  ;;  %v2473_v63 = vadd.f32 %v2441_v28, %v9224_v62  ;;  %v12383_v60 = vld [vmem:[#allocation114_spill] sm:$0xff] }
 0x2dc   :  { %12364 = vst [vmem:[#allocation17_spill] sm:$0xff] %v9351_v4  ;;  %v2449_v17 = vmul.f32 %v12351_v29, %v12366_v27  ;;  %v9359_v47 = vld [vmem:[#allocation2 + $0x290] sm:$0xff]  ;;  %v2474_v18 = vadd.f32 %v2442_v50, %v9227_v49  ;;  %v2477_v24 = vadd.f32 %v2445_v55, %v9236_v43  ;;  %v2478_v19 = vadd.f32 %v2446_v38, %v9239_v48  ;;  %v12386_v54 = vld [vmem:[#allocation117_spill] sm:$0xff]  ;;  %v9468_v55 = vld [vmem:[#allocation2 + $0x381] sm:$0xff] }
 0x2dd   :  { %12367 = vst [vmem:[#allocation16_spill] sm:$0xff] %v9359_v47  ;;  %v2451_v9 = vmul.f32 %v9359_v47, %v12351_v29  ;;  %v9363_v57 = vld [vmem:[#allocation2 + $0x2b0] sm:$0xff]  ;;  %v2480_v11 = vadd.f32 %v2448_v15, %v9245_v8  ;;  %12400 = vst [vmem:[#allocation50_spill] sm:$0xff] %v9468_v55  ;;  %v9472_v38 = vld [vmem:[#allocation2 + $0x3a1] sm:$0xff] }
 0x2de   :  { %12368 = vst [vmem:[#allocation32_spill] sm:$0xff] %v9363_v57  ;;  %v2452_v10 = vmul.f32 %v9363_v57, %v12351_v29  ;;  %v9367_v6 = vld [vmem:[#allocation2 + $0x2d0] sm:$0xff]  ;;  %v2481_v41 = vadd.f32 %v2449_v17, %v9248_v59  ;;  %v12391_v50 = vld [vmem:[#allocation51_spill] sm:$0xff]  ;;  %12401 = vst [vmem:[#allocation69_spill] sm:$0xff] %v9472_v38 }
 0x2df   :  { %12369 = vst [vmem:[#allocation64_spill] sm:$0xff] %v9367_v6  ;;  %v2453_v36 = vmul.f32 %v9367_v6, %v12351_v29  ;;  %v9371_v22 = vld [vmem:[#allocation2 + $0x2f0] sm:$0xff]  ;;  %v2483_v62 = vadd.f32 %v2451_v9, %v9254_v3  ;;  %v9480_v15 = vld [vmem:[#allocation2 + $0x461] sm:$0xff] }
 0x2e0   :  { %12370 = vst [vmem:[#allocation6_spill] sm:$0xff] %v9371_v22  ;;  %v2454_v1 = vmul.f32 %v9371_v22, %v12351_v29  ;;  %v9375_v27 = vld [vmem:[#allocation2 + $0x310] sm:$0xff]  ;;  %v2484_v49 = vadd.f32 %v2452_v10, %v9257_v61  ;;  %12403 = vst [vmem:[#allocation73_spill] sm:$0xff] %v9480_v15 }
 0x2e1   :  { %12371 = vst [vmem:[#allocation7_spill] sm:$0xff] %v9375_v27  ;;  %v2455_v47 = vmul.f32 %v9375_v27, %v12351_v29  ;;  %v9379_v58 = vld [vmem:[#allocation2 + $0x330] sm:$0xff] }
 0x2e2   :  { %12372 = vst [vmem:[#allocation8_spill] sm:$0xff] %v9379_v58  ;;  %v2456_v57 = vmul.f32 %v9379_v58, %v12351_v29  ;;  %v9383_v32 = vld [vmem:[#allocation2 + $0x350] sm:$0xff]  ;;  %v2460_v58 = vmul.f32 %v12351_v29, %v9351_v4 }
 0x2e3   :  { %12373 = vst [vmem:[#allocation66_spill] sm:$0xff] %v9383_v32  ;;  %v2457_v6 = vmul.f32 %v9383_v32, %v12351_v29  ;;  %v9387_v40 = vld [vmem:[#allocation2 + $0x370] sm:$0xff]  ;;  %v2487_v43 = vadd.f32 %v2455_v47, %v9266_v34 }
 0x2e4   :  { %12374 = vst [vmem:[#allocation67_spill] sm:$0xff] %v9387_v40  ;;  %v2458_v22 = vmul.f32 %v9387_v40, %v12351_v29  ;;  %v9391_v20 = vld [vmem:[#allocation2 + $0x390] sm:$0xff]  ;;  %v2463_v40 = vmul.f32 %v12351_v29, %v12379_v30  ;;  %v2472_v30 = vadd.f32 %v2440_v26, %v9221_v42  ;;  %v2482_v42 = vadd.f32 %v2450_v12, %v9251_v35  ;;  %v12387_v12 = vld [vmem:[#allocation118_spill] sm:$0xff]  ;;  %v12388_v26 = vld [vmem:[#allocation119_spill] sm:$0xff] }
 0x2e5   :  { %12375 = vst [vmem:[#allocation37_spill] sm:$0xff] %v9391_v20  ;;  %v2459_v27 = vmul.f32 %v9391_v20, %v12351_v29  ;;  %v9395_v23 = vld [vmem:[#allocation2 + $0x470] sm:$0xff]  ;;  %v12381_v20 = vld [vmem:[#allocation31_spill] sm:$0xff]  ;;  %v2488_v48 = vadd.f32 %v2456_v57, %v12382_v37  ;;  %v2492_v35 = vadd.f32 %v2460_v58, %v12386_v54  ;;  %v2494_v61 = vadd.f32 %v2462_v5, %v12388_v26  ;;  %v12395_v58 = vld [vmem:[#allocation58_spill] sm:$0xff] }
 0x2e6   :  { %12376 = vst [vmem:[#allocation41_spill] sm:$0xff] %v9395_v23  ;;  %v9399_v0 = vld [vmem:[#allocation2 + $0x3d0] sm:$0xff]  ;;  %v2465_v51 = vmul.f32 %v12351_v29, %v12381_v20  ;;  %v2466_v4 = vmul.f32 %v12351_v29, %v9395_v23  ;;  %v2475_v20 = vadd.f32 %v2443_v13, %v9230_v16  ;;  %v2485_v16 = vadd.f32 %v2453_v36, %v9260_v14  ;;  %v12390_v36 = vld [vmem:[#allocation49_spill] sm:$0xff]  ;;  %v9445_v13 = vld [vmem:[#allocation2 + $0x221] sm:$0xff] }
 0x2e7   :  { %12377 = vst [vmem:[#allocation42_spill] sm:$0xff] %v9399_v0  ;;  %v2461_v32 = vmul.f32 %v9399_v0, %v12351_v29  ;;  %v2469_v0 = vadd.f32 %v2437_v56, %v9212_v31  ;;  %v2476_v29 = vadd.f32 %v2444_v53, %v9233_v2  ;;  %v2479_v31 = vadd.f32 %v2447_v33, %v9242_v39  ;;  %v12384_v56 = vld [vmem:[#allocation115_spill] sm:$0xff]  ;;  %v12385_v21 = vld [vmem:[#allocation116_spill] sm:$0xff] }
 0x2e8   :  { %v2486_v2 = vadd.f32 %v2454_v1, %v9263_v25  ;;  %v2489_v39 = vadd.f32 %v2457_v6, %v12383_v60  ;;  %v2490_v8 = vadd.f32 %v2458_v22, %v12384_v56  ;;  %v2491_v59 = vadd.f32 %v2459_v27, %v12385_v21  ;;  %v12389_v28 = vld [vmem:[#allocation120_spill] sm:$0xff]  ;;  %12393 = vst [vmem:[#allocation44_spill] sm:$0xff] %v9445_v13  ;;  %v9450_v27 = vld [vmem:[%s11281_s5 + $0x8] ss:$0 sm:$0xff]  ;;  %v12405_v56 = vld [vmem:[#allocation61_spill] sm:$0xff] }
 0x2e9   :  { %v2493_v3 = vadd.f32 %v2461_v32, %v12387_v12  ;;  %v2495_v14 = vadd.f32 %v2463_v40, %v12389_v28  ;;  %v2496_v25 = vadd.f32 %v2464_v46, %v12390_v36  ;;  %v2497_v34 = vadd.f32 %v2465_v51, %v12391_v50  ;;  %v12392_v47 = vld [vmem:[#allocation52_spill] sm:$0xff]  ;;  %12394 = vst [vmem:[#allocation46_spill] sm:$0xff] %v9450_v27  ;;  %v12396_v22 = vld [vmem:[#allocation43_spill] sm:$0xff]  ;;  %v12397_v40 = vld [vmem:[#allocation14_spill] sm:$0xff] }
 0x2ea   :  { %v2498_v17 = vadd.f32 %v2466_v4, %v12392_v47  ;;  %v2547_v32 = vmul.f32 %v9450_v27, %v12395_v58  ;;  %v2548_v5 = vmul.f32 %v9450_v27, %v12396_v22  ;;  %v2549_v46 = vmul.f32 %v9450_v27, %v12397_v40  ;;  %v9460_v6 = vld [vmem:[#allocation2 + $0x341] sm:$0xff]  ;;  %v12406_v54 = vld [vmem:[#allocation80_spill] sm:$0xff]  ;;  %v12408_v50 = vld [vmem:[#allocation121_spill] sm:$0xff] }
 0x2eb   :  { %v2550_v51 = vmul.f32 %v9450_v27, %v9445_v13  ;;  %12398 = vst [vmem:[#allocation47_spill] sm:$0xff] %v9460_v6  ;;  %v2557_v1 = vmul.f32 %v9460_v6, %v9450_v27  ;;  %v9464_v53 = vld [vmem:[#allocation2 + $0x361] sm:$0xff]  ;;  %v2559_v57 = vmul.f32 %v9468_v55, %v9450_v27  ;;  %v2560_v10 = vmul.f32 %v9472_v38, %v9450_v27  ;;  %v12407_v26 = vld [vmem:[#allocation104_spill] sm:$0xff]  ;;  %v12414_v22 = vld [vmem:[#allocation45_spill] sm:$0xff] }
 0x2ec   :  { %12399 = vst [vmem:[#allocation48_spill] sm:$0xff] %v9464_v53  ;;  %v2558_v9 = vmul.f32 %v9464_v53, %v9450_v27  ;;  %v9476_v33 = vld [vmem:[#allocation2 + $0x3c1] sm:$0xff]  ;;  %v2563_v21 = vmul.f32 %v9450_v27, %v12405_v56  ;;  %v2564_v12 = vmul.f32 %v9450_v27, %v12406_v54  ;;  %v2565_v28 = vmul.f32 %v9450_v27, %v12407_v26  ;;  %v12411_v55 = vld [vmem:[#allocation124_spill] sm:$0xff]  ;;  %v12412_v53 = vld [vmem:[#allocation125_spill] sm:$0xff] }
 0x2ed   :  { %12402 = vst [vmem:[#allocation70_spill] sm:$0xff] %v9476_v33  ;;  %v2561_v4 = vmul.f32 %v9476_v33, %v9450_v27  ;;  %v12404_v37 = vld [vmem:[#allocation103_spill] sm:$0xff]  ;;  %v2566_v36 = vmul.f32 %v9450_v27, %v9480_v15  ;;  %v2567_v47 = vadd.f32 %v12408_v50, %v2467_v44  ;;  %v12409_v33 = vld [vmem:[#allocation122_spill] sm:$0xff]  ;;  %v2571_v6 = vadd.f32 %v12412_v53, %v2471_v52  ;;  %v12415_v58 = vld [vmem:[#allocation136_spill] sm:$0xff] }
 0x2ee   :  { %v2562_v60 = vmul.f32 %v9450_v27, %v12404_v37  ;;  %v2568_v13 = vadd.f32 %v12409_v33, %v2468_v45  ;;  %v12410_v23 = vld [vmem:[#allocation123_spill] sm:$0xff]  ;;  %v2570_v37 = vadd.f32 %v12411_v55, %v2470_v7  ;;  %v12413_v40 = vld [vmem:[#allocation126_spill] sm:$0xff]  ;;  %v2573_v54 = vadd.f32 %v12414_v22, %v2473_v63  ;;  %v12417_v44 = vld [vmem:[#allocation84_spill] sm:$0xff] }
 0x2ef   :  { %v2569_v38 = vadd.f32 %v12410_v23, %v2469_v0  ;;  %v2572_v56 = vadd.f32 %v12413_v40, %v2472_v30  ;;  %v2574_v26 = vadd.f32 %v12415_v58, %v2474_v18  ;;  %v12416_v15 = vld [vmem:[#allocation139_spill] sm:$0xff]  ;;  %v2576_v50 = vadd.f32 %v12417_v44, %v2476_v29  ;;  %v12418_v33 = vld [vmem:[#allocation101_spill] sm:$0xff]  ;;  %v12421_v22 = vld [vmem:[#allocation128_spill] sm:$0xff] }
 0x2f0   :  { %v2575_v27 = vadd.f32 %v12416_v15, %v2475_v20  ;;  %v2577_v45 = vadd.f32 %v12418_v33, %v2477_v24  ;;  %v12419_v0 = vld [vmem:[#allocation85_spill] sm:$0xff]  ;;  %v2579_v7 = vadd.f32 %v2547_v32, %v2479_v31  ;;  %v2580_v55 = vadd.f32 %v2548_v5, %v2480_v11  ;;  %v12420_v30 = vld [vmem:[#allocation127_spill] sm:$0xff]  ;;  %v9510_v20 = vld [vmem:[%s11282_s6] ss:$0 sm:$0xff] }
 0x2f1   :  { %v2578_v23 = vadd.f32 %v12419_v0, %v2478_v19  ;;  %v2581_v52 = vadd.f32 %v2549_v46, %v2481_v41  ;;  %v2582_v53 = vadd.f32 %v2550_v51, %v2482_v42  ;;  %v2583_v40 = vadd.f32 %v12420_v30, %v2483_v62  ;;  %v12422_v18 = vld [vmem:[#allocation129_spill] sm:$0xff]  ;;  %12423 = vst [vmem:[#allocation74_spill] sm:$0xff] %v9510_v20  ;;  %v12424_v29 = vld [vmem:[#allocation130_spill] sm:$0xff]  ;;  %v12425_v24 = vld [vmem:[#allocation131_spill] sm:$0xff] }
 0x2f2   :  { %v2584_v63 = vadd.f32 %v12421_v22, %v2484_v49  ;;  %v2585_v58 = vadd.f32 %v12422_v18, %v2485_v16  ;;  %v2586_v15 = vadd.f32 %v12424_v29, %v2486_v2  ;;  %v2587_v44 = vadd.f32 %v12425_v24, %v2487_v43  ;;  %v12426_v19 = vld [vmem:[#allocation132_spill] sm:$0xff]  ;;  %v12462_v30 = vld [vmem:[#allocation58_spill] sm:$0xff]  ;;  %v12463_v22 = vld [vmem:[#allocation43_spill] sm:$0xff] }
 0x2f3   :  { %v2588_v31 = vadd.f32 %v12426_v19, %v2488_v48  ;;  %v2589_v11 = vadd.f32 %v2557_v1, %v2489_v39  ;;  %v2590_v41 = vadd.f32 %v2558_v9, %v2490_v8  ;;  %v2591_v42 = vadd.f32 %v2559_v57, %v2491_v59  ;;  %v12464_v18 = vld [vmem:[#allocation185_spill] sm:$0xff]  ;;  %v12465_v29 = vld [vmem:[#allocation195_spill] sm:$0xff]  ;;  %v12467_v19 = vld [vmem:[#allocation80_spill] sm:$0xff] }
 0x2f4   :  { %v2592_v32 = vadd.f32 %v2560_v10, %v2492_v35  ;;  %v2593_v62 = vadd.f32 %v2561_v4, %v2493_v3  ;;  %v2594_v5 = vadd.f32 %v2562_v60, %v2494_v61  ;;  %v2595_v49 = vadd.f32 %v2563_v21, %v2495_v14  ;;  %v12454_v21 = vld [vmem:[#allocation35_spill] sm:$0xff]  ;;  %v12466_v24 = vld [vmem:[#allocation61_spill] sm:$0xff] }
 0x2f5   :  { %v2596_v46 = vadd.f32 %v2564_v12, %v2496_v25  ;;  %v2597_v16 = vadd.f32 %v2565_v28, %v2497_v34  ;;  %v2598_v51 = vadd.f32 %v2566_v36, %v2498_v17  ;;  %v9516_v33 = vadd.f32 %v9510_v20, %v2567_v47  ;;  %v12457_v36 = vld [vmem:[#allocation179_spill] sm:$0xff] }
 0x2f6   :  { %v9519_v0 = vadd.f32 %v9510_v20, %v2568_v13  ;;  %v9522_v2 = vadd.f32 %v9510_v20, %v2569_v38  ;;  %v9525_v43 = vadd.f32 %v9510_v20, %v2570_v37  ;;  %v9528_v48 = vadd.f32 %v9510_v20, %v2571_v6 }
 0x2f7   :  { %12427 = vst [vmem:[#allocation75_spill] sm:$0xff] %v9516_v33  ;;  %v9531_v39 = vadd.f32 %v9510_v20, %v2572_v56  ;;  %v9534_v8 = vadd.f32 %v9510_v20, %v2573_v54  ;;  %v9537_v59 = vadd.f32 %v9510_v20, %v2574_v26  ;;  %v9540_v35 = vadd.f32 %v9510_v20, %v2575_v27  ;;  %v12455_v54 = vld [vmem:[#allocation167_spill] sm:$0xff]  ;;  %v12456_v26 = vld [vmem:[#allocation168_spill] sm:$0xff] }
 0x2f8   :  { %12428 = vst [vmem:[#allocation78_spill] sm:$0xff] %v9519_v0  ;;  %12429 = vst [vmem:[#allocation79_spill] sm:$0xff] %v9522_v2  ;;  %v9543_v3 = vadd.f32 %v9510_v20, %v2576_v50  ;;  %v9546_v61 = vadd.f32 %v9510_v20, %v2577_v45  ;;  %v9549_v14 = vadd.f32 %v9510_v20, %v2578_v23  ;;  %v12458_v50 = vld [vmem:[#allocation36_spill] sm:$0xff]  ;;  %v12517_v0 = vld [vmem:[#allocation37_spill] sm:$0xff] }
 0x2f9   :  { %12430 = vst [vmem:[#allocation81_spill] sm:$0xff] %v9525_v43  ;;  %12431 = vst [vmem:[#allocation82_spill] sm:$0xff] %v9528_v48  ;;  %v9552_v25 = vadd.f32 %v9510_v20, %v2579_v7  ;;  %v9555_v34 = vadd.f32 %v9510_v20, %v2580_v55  ;;  %v9558_v17 = vadd.f32 %v9510_v20, %v2581_v52  ;;  %v12459_v45 = vld [vmem:[#allocation192_spill] sm:$0xff]  ;;  %v12460_v7 = vld [vmem:[#allocation173_spill] sm:$0xff] }
 0x2fa   :  { %12432 = vst [vmem:[#allocation83_spill] sm:$0xff] %v9531_v39  ;;  %12433 = vst [vmem:[#allocation86_spill] sm:$0xff] %v9534_v8  ;;  %v9561_v13 = vadd.f32 %v9510_v20, %v2582_v53  ;;  %v9564_v27 = vadd.f32 %v9510_v20, %v2583_v40  ;;  %v9567_v6 = vadd.f32 %v9510_v20, %v2584_v63  ;;  %v12461_v52 = vld [vmem:[#allocation180_spill] sm:$0xff]  ;;  %v12516_v43 = vld [vmem:[#allocation67_spill] sm:$0xff] }
 0x2fb   :  { %12434 = vst [vmem:[#allocation89_spill] sm:$0xff] %v9537_v59  ;;  %12435 = vst [vmem:[#allocation87_spill] sm:$0xff] %v9540_v35  ;;  %v9570_v1 = vadd.f32 %v9510_v20, %v2585_v58  ;;  %v9573_v9 = vadd.f32 %v9510_v20, %v2586_v15  ;;  %v9576_v57 = vadd.f32 %v9510_v20, %v2587_v44  ;;  %v5645_v35 = vld [vmem:[#allocation2 + $0x270] sm:$0xff] }
 0x2fc   :  { %12436 = vst [vmem:[#allocation88_spill] sm:$0xff] %v9543_v3  ;;  %12437 = vst [vmem:[#allocation90_spill] sm:$0xff] %v9546_v61  ;;  %v9579_v38 = vadd.f32 %v9510_v20, %v2588_v31  ;;  %v9582_v10 = vadd.f32 %v9510_v20, %v2589_v11  ;;  %v9585_v4 = vadd.f32 %v9510_v20, %v2590_v41  ;;  %v2779_v11 = vld [vmem:[#allocation2 + $0x1b1] sm:$0xff] }
 0x2fd   :  { %12438 = vst [vmem:[#allocation91_spill] sm:$0xff] %v9549_v14  ;;  %12439 = vst [vmem:[#allocation92_spill] sm:$0xff] %v9552_v25  ;;  %v9588_v37 = vadd.f32 %v9510_v20, %v2591_v42  ;;  %v9591_v60 = vadd.f32 %v9510_v20, %v2592_v32  ;;  %v9594_v56 = vadd.f32 %v9510_v20, %v2593_v62  ;;  %v2795_v41 = vld [vmem:[#allocation2 + $0x3f1] sm:$0xff]  ;;  %v12505_v25 = vld [vmem:[#allocation23_spill] sm:$0xff] }
 0x2fe   :  { %12440 = vst [vmem:[#allocation93_spill] sm:$0xff] %v9555_v34  ;;  %12441 = vst [vmem:[#allocation94_spill] sm:$0xff] %v9558_v17  ;;  %v2651_v12 = vmul.f32 %v12455_v54, %v12454_v21  ;;  %v2652_v28 = vmul.f32 %v12456_v26, %v12454_v21  ;;  %v2653_v47 = vmul.f32 %v12457_v36, %v12454_v21  ;;  %v12473_v26 = vld [vmem:[#allocation133_spill] sm:$0xff]  ;;  %v12474_v36 = vld [vmem:[#allocation138_spill] sm:$0xff] }
 0x2ff   :  { %12442 = vst [vmem:[#allocation95_spill] sm:$0xff] %v9561_v13  ;;  %12443 = vst [vmem:[#allocation96_spill] sm:$0xff] %v9564_v27  ;;  %v2715_v23 = vmul.f32 %v12459_v45, %v12458_v50  ;;  %v2667_v55 = vmul.f32 %v12460_v7, %v12454_v21  ;;  %v2668_v53 = vmul.f32 %v12461_v52, %v12454_v21  ;;  %v12475_v45 = vld [vmem:[#allocation134_spill] sm:$0xff]  ;;  %v12476_v7 = vld [vmem:[#allocation140_spill] sm:$0xff] }
 0x300   :  { %12444 = vst [vmem:[#allocation97_spill] sm:$0xff] %v9567_v6  ;;  %12445 = vst [vmem:[#allocation98_spill] sm:$0xff] %v9570_v1  ;;  %v2716_v40 = vmul.f32 %v12462_v30, %v12458_v50  ;;  %v2717_v63 = vmul.f32 %v12463_v22, %v12458_v50  ;;  %v2669_v58 = vmul.f32 %v12464_v18, %v12454_v21  ;;  %v9639_v30 = vld [vmem:[#allocation2 + $0x1d1] sm:$0xff]  ;;  %v12504_v34 = vld [vmem:[#allocation62_spill] sm:$0xff] }
 0x301   :  { %12446 = vst [vmem:[#allocation18_spill] sm:$0xff] %v9573_v9  ;;  %12447 = vst [vmem:[#allocation63_spill] sm:$0xff] %v9576_v57  ;;  %v2731_v15 = vmul.f32 %v12465_v29, %v12458_v50  ;;  %v2732_v44 = vmul.f32 %v12466_v24, %v12458_v50  ;;  %v2733_v31 = vmul.f32 %v12467_v19, %v12458_v50  ;;  %v9643_v22 = vld [vmem:[#allocation2 + $0x411] sm:$0xff]  ;;  %v12483_v19 = vld [vmem:[#allocation142_spill] sm:$0xff] }
 0x302   :  { %12448 = vst [vmem:[#allocation65_spill] sm:$0xff] %v9579_v38  ;;  %12449 = vst [vmem:[#allocation22_spill] sm:$0xff] %v9582_v10  ;;  %v9621_v42 = vadd.f32 %v9510_v20, %v2594_v5  ;;  %v9624_v32 = vadd.f32 %v9510_v20, %v2595_v49  ;;  %v9627_v62 = vadd.f32 %v9510_v20, %v2596_v46  ;;  %v9641_v49 = vld [vmem:[#allocation2 + $0x1f1] sm:$0xff]  ;;  %v12506_v14 = vld [vmem:[#allocation55_spill] sm:$0xff] }
 0x303   :  { %12450 = vst [vmem:[#allocation24_spill] sm:$0xff] %v9585_v4  ;;  %12451 = vst [vmem:[#allocation20_spill] sm:$0xff] %v9588_v37  ;;  %v9630_v21 = vadd.f32 %v9510_v20, %v2597_v16  ;;  %v9633_v54 = vadd.f32 %v9510_v20, %v2598_v51  ;;  %v2745_v50 = vadd.f32 %v12474_v36, %v12473_v26  ;;  %v12480_v16 = vld [vmem:[#allocation135_spill] sm:$0xff]  ;;  %v12481_v29 = vld [vmem:[#allocation141_spill] sm:$0xff] }
 0x304   :  { %12452 = vst [vmem:[#allocation9_spill] sm:$0xff] %v9591_v60  ;;  %12453 = vst [vmem:[#allocation68_spill] sm:$0xff] %v9594_v56  ;;  %v2746_v52 = vadd.f32 %v12476_v7, %v12475_v45  ;;  %v2747_v5 = vadd.f32 %v2715_v23, %v2651_v12  ;;  %v2748_v46 = vadd.f32 %v2716_v40, %v2652_v28  ;;  %v12482_v51 = vld [vmem:[#allocation137_spill] sm:$0xff]  ;;  %v12485_v12 = vld [vmem:[#allocation38_spill] sm:$0xff] }
 0x305   :  { %12468 = vst [vmem:[#allocation102_spill] sm:$0xff] %v9621_v42  ;;  %12469 = vst [vmem:[#allocation178_spill] sm:$0xff] %v9624_v32  ;;  %v2749_v18 = vadd.f32 %v2717_v63, %v2653_v47  ;;  %v2761_v24 = vadd.f32 %v12481_v29, %v12480_v16  ;;  %v2763_v26 = vadd.f32 %v2731_v15, %v2667_v55  ;;  %v12486_v16 = vld [vmem:[#allocation143_spill] sm:$0xff]  ;;  %v12493_v17 = vld [vmem:[#allocation152_spill] sm:$0xff] }
 0x306   :  { %12470 = vst [vmem:[#allocation13_spill] sm:$0xff] %v9627_v62  ;;  %12471 = vst [vmem:[#allocation39_spill] sm:$0xff] %v9630_v21  ;;  %v9649_v21 = vld [vmem:[#allocation2 + $0x431] sm:$0xff]  ;;  %v2764_v36 = vadd.f32 %v2732_v44, %v2668_v53  ;;  %v2765_v45 = vadd.f32 %v2733_v31, %v2669_v58  ;;  %v2811_v23 = vmul.f32 %v2779_v11, %v12485_v12  ;;  %v12487_v55 = vld [vmem:[#allocation147_spill] sm:$0xff] }
 0x307   :  { %12472 = vst [vmem:[#allocation40_spill] sm:$0xff] %v9633_v54  ;;  %12477 = vst [vmem:[#allocation105_spill] sm:$0xff] %v9639_v30  ;;  %v2762_v54 = vadd.f32 %v12483_v19, %v12482_v51  ;;  %v2812_v7 = vmul.f32 %v9639_v30, %v12485_v12  ;;  %v2813_v28 = vmul.f32 %v9641_v49, %v12485_v12  ;;  %v12488_v58 = vld [vmem:[#allocation148_spill] sm:$0xff]  ;;  %v12489_v44 = vld [vmem:[#allocation149_spill] sm:$0xff] }
 0x308   :  { %12478 = vst [vmem:[#allocation106_spill] sm:$0xff] %v9641_v49  ;;  %12479 = vst [vmem:[#allocation107_spill] sm:$0xff] %v9643_v22  ;;  %v2827_v47 = vmul.f32 %v2795_v41, %v12485_v12  ;;  %v2828_v40 = vmul.f32 %v9643_v22, %v12485_v12  ;;  %v2829_v63 = vmul.f32 %v9649_v21, %v12485_v12  ;;  %v12490_v19 = vld [vmem:[#allocation144_spill] sm:$0xff]  ;;  %v12491_v62 = vld [vmem:[#allocation150_spill] sm:$0xff] }
 0x309   :  { %12484 = vst [vmem:[#allocation108_spill] sm:$0xff] %v9649_v21  ;;  %v2839_v53 = vadd.f32 %v12487_v55, %v12486_v16  ;;  %v2841_v15 = vadd.f32 %v12488_v58, %v2745_v50  ;;  %v2842_v31 = vadd.f32 %v12489_v44, %v2746_v52  ;;  %v2843_v11 = vadd.f32 %v2811_v23, %v2747_v5  ;;  %v12492_v41 = vld [vmem:[#allocation151_spill] sm:$0xff]  ;;  %v5642_v52 = vld [vmem:[#allocation2 + $0x30] sm:$0xff]  ;;  %v12494_v5 = vld [vmem:[#allocation77_spill] sm:$0xff] }
 0x30a   :  { %v2844_v29 = vadd.f32 %v2812_v7, %v2748_v46  ;;  %v2845_v51 = vadd.f32 %v2813_v28, %v2749_v18  ;;  %v9667_v13 = vadd.f32 %v12491_v62, %v12490_v19  ;;  %v9670_v32 = vadd.f32 %v12492_v41, %v2761_v24  ;;  %v12495_v18 = vld [vmem:[#allocation19_spill] sm:$0xff]  ;;  %v12496_v62 = vld [vmem:[#allocation21_spill] sm:$0xff]  ;;  %v12497_v24 = vld [vmem:[#allocation56_spill] sm:$0xff] }
 0x30b   :  { %v9673_v42 = vadd.f32 %v12493_v17, %v2762_v54  ;;  %v9675_v12 = vadd.f32 %v2827_v47, %v2763_v26  ;;  %v9677_v16 = vadd.f32 %v2828_v40, %v2764_v36  ;;  %v9679_v50 = vadd.f32 %v2829_v63, %v2765_v45  ;;  %v12498_v17 = vld [vmem:[#allocation25_spill] sm:$0xff]  ;;  %v12500_v45 = vld [vmem:[#allocation28_spill] sm:$0xff]  ;;  %v12501_v40 = vld [vmem:[#allocation26_spill] sm:$0xff] }
 0x30c   :  { %v2862_v46 = vmul.f32 %v5642_v52, %v12494_v5  ;;  %v2863_v23 = vmul.f32 %v12495_v18, %v12494_v5  ;;  %v2864_v7 = vmul.f32 %v12496_v62, %v12494_v5  ;;  %v2865_v28 = vmul.f32 %v12497_v24, %v12494_v5  ;;  %v12499_v26 = vld [vmem:[#allocation57_spill] sm:$0xff]  ;;  %v12502_v55 = vld [vmem:[#allocation59_spill] sm:$0xff]  ;;  %v5643_v41 = vld [vmem:[#allocation2 + $0x170] sm:$0xff] }
 0x30d   :  { %v2866_v54 = vmul.f32 %v12498_v17, %v12494_v5  ;;  %v2867_v36 = vmul.f32 %v12499_v26, %v12494_v5  ;;  %v2868_v47 = vmul.f32 %v12500_v45, %v12494_v5  ;;  %v2869_v63 = vmul.f32 %v12501_v40, %v12494_v5  ;;  %v12503_v44 = vld [vmem:[#allocation27_spill] sm:$0xff]  ;;  %v9707_v61 = vld [vmem:[#allocation2 + $0x1f0] sm:$0xff]  ;;  %v12512_v9 = vld [vmem:[#allocation6_spill] sm:$0xff] }
 0x30e   :  { %v2870_v58 = vmul.f32 %v12502_v55, %v12494_v5  ;;  %v2871_v19 = vmul.f32 %v12503_v44, %v12494_v5  ;;  %v2872_v52 = vmul.f32 %v5643_v41, %v12494_v5  ;;  %v2873_v56 = vmul.f32 %v12504_v34, %v12494_v5  ;;  %12507 = vst [vmem:[#allocation109_spill] sm:$0xff] %v9707_v61  ;;  %v12508_v3 = vld [vmem:[#allocation60_spill] sm:$0xff]  ;;  %v12513_v1 = vld [vmem:[#allocation7_spill] sm:$0xff]  ;;  %v12528_v24 = vld [vmem:[#allocation157_spill] sm:$0xff] }
 0x30f   :  { %v2874_v60 = vmul.f32 %v12505_v25, %v12494_v5  ;;  %v2875_v37 = vmul.f32 %v12506_v14, %v12494_v5  ;;  %v2876_v4 = vmul.f32 %v9707_v61, %v12494_v5  ;;  %v2877_v10 = vmul.f32 %v12508_v3, %v12494_v5  ;;  %v12509_v38 = vld [vmem:[#allocation16_spill] sm:$0xff]  ;;  %v12523_v44 = vld [vmem:[#allocation11_spill] sm:$0xff]  ;;  %v12529_v62 = vld [vmem:[#allocation158_spill] sm:$0xff] }
 0x310   :  { %v2878_v41 = vmul.f32 %v5645_v35, %v12494_v5  ;;  %v2879_v59 = vmul.f32 %v12509_v38, %v12494_v5  ;;  %v12510_v57 = vld [vmem:[#allocation32_spill] sm:$0xff]  ;;  %v2882_v39 = vmul.f32 %v12512_v9, %v12494_v5  ;;  %v2883_v48 = vmul.f32 %v12513_v1, %v12494_v5  ;;  %v12515_v35 = vld [vmem:[#allocation66_spill] sm:$0xff]  ;;  %v12519_v1 = vld [vmem:[#allocation29_spill] sm:$0xff] }
 0x311   :  { %v2880_v25 = vmul.f32 %v12510_v57, %v12494_v5  ;;  %v12511_v8 = vld [vmem:[#allocation64_spill] sm:$0xff]  ;;  %v2885_v27 = vmul.f32 %v12515_v35, %v12494_v5  ;;  %v2886_v2 = vmul.f32 %v12516_v43, %v12494_v5  ;;  %v2887_v33 = vmul.f32 %v12517_v0, %v12494_v5  ;;  %v12518_v9 = vld [vmem:[#allocation42_spill] sm:$0xff]  ;;  %v12522_v35 = vld [vmem:[#allocation31_spill] sm:$0xff] }
 0x312   :  { %v2881_v14 = vmul.f32 %v12511_v8, %v12494_v5  ;;  %v12514_v3 = vld [vmem:[#allocation8_spill] sm:$0xff]  ;;  %v2889_v57 = vmul.f32 %v12518_v9, %v12494_v5  ;;  %v2890_v38 = vmul.f32 %v12519_v1, %v12494_v5  ;;  %v2893_v0 = vmul.f32 %v12522_v35, %v12494_v5  ;;  %v12525_v9 = vld [vmem:[#allocation154_spill] sm:$0xff]  ;;  %v12526_v1 = vld [vmem:[#allocation155_spill] sm:$0xff] }
 0x313   :  { %v2884_v6 = vmul.f32 %v12514_v3, %v12494_v5  ;;  %v5646_v20 = vld [vmem:[#allocation2 + $0x3b0] sm:$0xff]  ;;  %v12520_v3 = vld [vmem:[#allocation15_spill] sm:$0xff]  ;;  %v9746_v55 = vadd.f32 %v2862_v46, %v12523_v44  ;;  %v9752_v45 = vadd.f32 %v2864_v7, %v12525_v9  ;;  %v9755_v26 = vadd.f32 %v2865_v28, %v12526_v1  ;;  %v12532_v7 = vld [vmem:[#allocation161_spill] sm:$0xff] }
 0x314   :  { %v2888_v8 = vmul.f32 %v5646_v20, %v12494_v5  ;;  %v2891_v61 = vmul.f32 %v12520_v3, %v12494_v5  ;;  %v9739_v34 = vld [vmem:[#allocation2 + $0x430] sm:$0xff]  ;;  %v12524_v20 = vld [vmem:[#allocation153_spill] sm:$0xff]  ;;  %v12530_v46 = vld [vmem:[#allocation159_spill] sm:$0xff]  ;;  %v9772_v9 = vadd.f32 %v2871_v19, %v2839_v53  ;;  %v9775_v28 = vadd.f32 %v2872_v52, %v12532_v7 }
 0x315   :  { %12521 = vst [vmem:[#allocation110_spill] sm:$0xff] %v9739_v34  ;;  %v2892_v43 = vmul.f32 %v9739_v34, %v12494_v5  ;;  %v9749_v40 = vadd.f32 %v2863_v23, %v12524_v20  ;;  %v12527_v3 = vld [vmem:[#allocation156_spill] sm:$0xff]  ;;  %v9761_v34 = vadd.f32 %v2867_v36, %v12528_v24  ;;  %v9764_v5 = vadd.f32 %v2868_v47, %v12529_v62  ;;  %v12533_v47 = vld [vmem:[#allocation53_spill] sm:$0xff]  ;;  %v12535_v53 = vld [vmem:[#allocation163_spill] sm:$0xff] }
 0x316   :  { %v9758_v17 = vadd.f32 %v2866_v54, %v12527_v3  ;;  %v9767_v44 = vadd.f32 %v2869_v63, %v12530_v46  ;;  %v12531_v23 = vld [vmem:[#allocation160_spill] sm:$0xff]  ;;  %v9777_v20 = vadd.f32 %v2873_v56, %v2841_v15  ;;  %v9779_v54 = vadd.f32 %v2874_v60, %v2842_v31  ;;  %v12537_v60 = vld [vmem:[#allocation165_spill] sm:$0xff]  ;;  %v9913_v18 = vld [vmem:[#allocation2 + $0x321] sm:$0xff] }
 0x317   :  { %v9770_v35 = vadd.f32 %v2870_v58, %v12531_v23  ;;  %v9781_v24 = vadd.f32 %v2875_v37, %v2843_v11  ;;  %v9783_v36 = vadd.f32 %v2876_v4, %v2844_v29  ;;  %v9785_v62 = vadd.f32 %v2877_v10, %v2845_v51  ;;  %v12534_v58 = vld [vmem:[#allocation162_spill] sm:$0xff]  ;;  %v12536_v52 = vld [vmem:[#allocation164_spill] sm:$0xff]  ;;  %v12539_v10 = vld [vmem:[#allocation169_spill] sm:$0xff]  ;;  %12572 = vst [vmem:[#allocation127_spill] sm:$0xff] %v9913_v18 }
 0x318   :  { %v9788_v63 = vadd.f32 %v2878_v41, %v12533_v47  ;;  %v9791_v1 = vadd.f32 %v2879_v59, %v12534_v58  ;;  %v9794_v19 = vadd.f32 %v2880_v25, %v12535_v53  ;;  %v9797_v56 = vadd.f32 %v2881_v14, %v12536_v52  ;;  %v12538_v37 = vld [vmem:[#allocation166_spill] sm:$0xff]  ;;  %v12541_v59 = vld [vmem:[#allocation171_spill] sm:$0xff]  ;;  %v12544_v25 = vld [vmem:[#allocation172_spill] sm:$0xff] }
 0x319   :  { %v9800_v15 = vadd.f32 %v2882_v39, %v12537_v60  ;;  %v9803_v4 = vadd.f32 %v2883_v48, %v12538_v37  ;;  %v9806_v31 = vadd.f32 %v2884_v6, %v12539_v10  ;;  %v12540_v11 = vld [vmem:[#allocation170_spill] sm:$0xff]  ;;  %v9812_v51 = vadd.f32 %v2886_v2, %v12541_v59  ;;  %v12562_v10 = vld [vmem:[#allocation76_spill] sm:$0xff]  ;;  %v12573_v21 = vld [vmem:[#allocation47_spill] sm:$0xff] }
 0x31a   :  { %v9809_v29 = vadd.f32 %v2885_v27, %v12540_v11  ;;  %v9815_v41 = vadd.f32 %v2887_v33, %v9667_v13  ;;  %v9818_v14 = vadd.f32 %v2888_v8, %v12544_v25  ;;  %v9821_v39 = vadd.f32 %v2889_v57, %v9670_v32  ;;  %v5648_v33 = vld [vmem:[#allocation2 + $0x21] sm:$0xff] }
 0x31b   :  { %12542 = vst [vmem:[#allocation111_spill] sm:$0xff] %v9812_v51  ;;  %v9824_v48 = vadd.f32 %v2890_v38, %v9673_v42  ;;  %v9827_v6 = vadd.f32 %v2891_v61, %v9675_v12  ;;  %v9830_v27 = vadd.f32 %v2892_v43, %v9677_v16  ;;  %v9833_v2 = vadd.f32 %v2893_v0, %v9679_v50  ;;  %v12551_v13 = vld [vmem:[#allocation71_spill] sm:$0xff]  ;;  %v12575_v30 = vld [vmem:[#allocation50_spill] sm:$0xff] }
 0x31c   :  { %12543 = vst [vmem:[#allocation12_spill] sm:$0xff] %v9815_v41  ;;  %12545 = vst [vmem:[#allocation112_spill] sm:$0xff] %v9818_v14  ;;  %v2926_v3 = vmul.f32 %v5648_v33, %v12551_v13  ;;  %v9836_v8 = vld [vmem:[#allocation2 + $0x41] sm:$0xff]  ;;  %v2937_v11 = vmul.f32 %v12562_v10, %v12551_v13  ;;  %v2949_v22 = vmul.f32 %v12573_v21, %v12551_v13 }
 0x31d   :  { %12546 = vst [vmem:[#allocation113_spill] sm:$0xff] %v9821_v39  ;;  %12547 = vst [vmem:[#allocation114_spill] sm:$0xff] %v9824_v48  ;;  %v2927_v57 = vmul.f32 %v9836_v8, %v12551_v13  ;;  %v9840_v32 = vld [vmem:[#allocation2 + $0x61] sm:$0xff] }
 0x31e   :  { %12548 = vst [vmem:[#allocation115_spill] sm:$0xff] %v9827_v6  ;;  %12549 = vst [vmem:[#allocation116_spill] sm:$0xff] %v9830_v27  ;;  %v2928_v61 = vmul.f32 %v9840_v32, %v12551_v13  ;;  %v9844_v38 = vld [vmem:[#allocation2 + $0x81] sm:$0xff] }
 0x31f   :  { %12550 = vst [vmem:[#allocation117_spill] sm:$0xff] %v9833_v2  ;;  %12552 = vst [vmem:[#allocation118_spill] sm:$0xff] %v9836_v8  ;;  %v2929_v43 = vmul.f32 %v9844_v38, %v12551_v13  ;;  %v9848_v0 = vld [vmem:[#allocation2 + $0xa1] sm:$0xff]  ;;  %v2951_v2 = vmul.f32 %v12575_v30, %v12551_v13  ;;  %v12581_v30 = vld [vmem:[#allocation104_spill] sm:$0xff] }
 0x320   :  { %12553 = vst [vmem:[#allocation119_spill] sm:$0xff] %v9840_v32  ;;  %12554 = vst [vmem:[#allocation120_spill] sm:$0xff] %v9844_v38  ;;  %v2930_v42 = vmul.f32 %v9848_v0, %v12551_v13  ;;  %v9852_v12 = vld [vmem:[#allocation2 + $0xc1] sm:$0xff]  ;;  %v2957_v41 = vmul.f32 %v12581_v30, %v12551_v13 }
 0x321   :  { %12555 = vst [vmem:[#allocation49_spill] sm:$0xff] %v9848_v0  ;;  %12556 = vst [vmem:[#allocation51_spill] sm:$0xff] %v9852_v12  ;;  %v2931_v16 = vmul.f32 %v9852_v12, %v12551_v13  ;;  %v9856_v50 = vld [vmem:[#allocation2 + $0xe1] sm:$0xff]  ;;  %v9949_v51 = vadd.f32 %v2929_v43, %v9755_v26 }
 0x322   :  { %12557 = vst [vmem:[#allocation52_spill] sm:$0xff] %v9856_v50  ;;  %v2932_v46 = vmul.f32 %v9856_v50, %v12551_v13  ;;  %v9860_v23 = vld [vmem:[#allocation2 + $0x101] sm:$0xff] }
 0x323   :  { %12558 = vst [vmem:[#allocation121_spill] sm:$0xff] %v9860_v23  ;;  %v2933_v7 = vmul.f32 %v9860_v23, %v12551_v13  ;;  %v9864_v47 = vld [vmem:[#allocation2 + $0x121] sm:$0xff] }
 0x324   :  { %12559 = vst [vmem:[#allocation122_spill] sm:$0xff] %v9864_v47  ;;  %v2934_v58 = vmul.f32 %v9864_v47, %v12551_v13  ;;  %v9868_v53 = vld [vmem:[#allocation2 + $0x141] sm:$0xff]  ;;  %v9958_v30 = vadd.f32 %v2932_v46, %v9764_v5  ;;  %v5672_v46 = vld [vmem:[#allocation2 + $0x51] sm:$0xff] }
 0x325   :  { %12560 = vst [vmem:[#allocation123_spill] sm:$0xff] %v9868_v53  ;;  %v2935_v52 = vmul.f32 %v9868_v53, %v12551_v13  ;;  %v9872_v60 = vld [vmem:[#allocation2 + $0x161] sm:$0xff] }
 0x326   :  { %12561 = vst [vmem:[#allocation124_spill] sm:$0xff] %v9872_v60  ;;  %v2936_v37 = vmul.f32 %v9872_v60, %v12551_v13  ;;  %v9878_v59 = vld [vmem:[#allocation2 + $0x1a1] sm:$0xff] }
 0x327   :  { %12563 = vst [vmem:[#allocation125_spill] sm:$0xff] %v9878_v59  ;;  %v2938_v25 = vmul.f32 %v9878_v59, %v12551_v13  ;;  %v9882_v33 = vld [vmem:[#allocation2 + $0x1c1] sm:$0xff] }
 0x328   :  { %12564 = vst [vmem:[#allocation126_spill] sm:$0xff] %v9882_v33  ;;  %v2939_v47 = vmul.f32 %v9882_v33, %v12551_v13  ;;  %v9886_v23 = vld [vmem:[#allocation2 + $0x1e1] sm:$0xff]  ;;  %v9970_v26 = vadd.f32 %v2936_v37, %v9775_v28  ;;  %v5677_v37 = vld [vmem:[#allocation2 + $0xf1] sm:$0xff] }
 0x329   :  { %12565 = vst [vmem:[#allocation45_spill] sm:$0xff] %v9886_v23  ;;  %v2940_v53 = vmul.f32 %v9886_v23, %v12551_v13  ;;  %v12566_v60 = vld [vmem:[#allocation14_spill] sm:$0xff]  ;;  %v12578_v48 = vld [vmem:[#allocation103_spill] sm:$0xff] }
 0x32a   :  { %v2941_v50 = vmul.f32 %v12566_v60, %v12551_v13  ;;  %v5662_v12 = vld [vmem:[#allocation2 + $0x261] sm:$0xff]  ;;  %v2954_v39 = vmul.f32 %v12578_v48, %v12551_v13  ;;  %v9946_v48 = vadd.f32 %v2928_v61, %v9752_v45  ;;  %v9967_v45 = vadd.f32 %v2935_v52, %v9772_v9 }
 0x32b   :  { %v2942_v10 = vmul.f32 %v5662_v12, %v12551_v13  ;;  %v9893_v0 = vld [vmem:[#allocation2 + $0x281] sm:$0xff]  ;;  %v9979_v5 = vadd.f32 %v2939_v47, %v9781_v24  ;;  %v5674_v47 = vld [vmem:[#allocation2 + $0x91] sm:$0xff] }
 0x32c   :  { %12567 = vst [vmem:[#allocation136_spill] sm:$0xff] %v9893_v0  ;;  %v2943_v59 = vmul.f32 %v9893_v0, %v12551_v13  ;;  %v9897_v38 = vld [vmem:[#allocation2 + $0x2a1] sm:$0xff] }
 0x32d   :  { %12568 = vst [vmem:[#allocation139_spill] sm:$0xff] %v9897_v38  ;;  %v2944_v33 = vmul.f32 %v9897_v38, %v12551_v13  ;;  %v9901_v32 = vld [vmem:[#allocation2 + $0x2c1] sm:$0xff]  ;;  %v2948_v38 = vmul.f32 %v9913_v18, %v12551_v13  ;;  %v9988_v9 = vadd.f32 %v2942_v10, %v9788_v63  ;;  %v10009_v63 = vadd.f32 %v2949_v22, %v9809_v29  ;;  %v12595_v22 = vld [vmem:[#allocation116_spill] sm:$0xff] }
 0x32e   :  { %12569 = vst [vmem:[#allocation84_spill] sm:$0xff] %v9901_v32  ;;  %v2945_v23 = vmul.f32 %v9901_v32, %v12551_v13  ;;  %v9905_v8 = vld [vmem:[#allocation2 + $0x2e1] sm:$0xff]  ;;  %v12574_v32 = vld [vmem:[#allocation48_spill] sm:$0xff]  ;;  %v9991_v28 = vadd.f32 %v2943_v59, %v9791_v1 }
 0x32f   :  { %12570 = vst [vmem:[#allocation101_spill] sm:$0xff] %v9905_v8  ;;  %v2946_v12 = vmul.f32 %v9905_v8, %v12551_v13  ;;  %v9909_v60 = vld [vmem:[#allocation2 + $0x301] sm:$0xff]  ;;  %v2950_v49 = vmul.f32 %v12574_v32, %v12551_v13  ;;  %v12576_v8 = vld [vmem:[#allocation69_spill] sm:$0xff]  ;;  %12582 = vst [vmem:[#allocation130_spill] sm:$0xff] %v10009_v63 }
 0x330   :  { %12571 = vst [vmem:[#allocation85_spill] sm:$0xff] %v9909_v60  ;;  %v2947_v0 = vmul.f32 %v9909_v60, %v12551_v13  ;;  %v2952_v27 = vmul.f32 %v12576_v8, %v12551_v13  ;;  %v12577_v6 = vld [vmem:[#allocation10_spill] sm:$0xff]  ;;  %v9940_v8 = vadd.f32 %v2926_v3, %v9746_v55  ;;  %v9961_v55 = vadd.f32 %v2933_v7, %v9767_v44  ;;  %v12583_v1 = vld [vmem:[#allocation111_spill] sm:$0xff]  ;;  %v5678_v59 = vld [vmem:[#allocation2 + $0x111] sm:$0xff] }
 0x331   :  { %v2953_v60 = vmul.f32 %v12577_v6, %v12551_v13  ;;  %v9929_v14 = vld [vmem:[#allocation2 + $0x401] sm:$0xff]  ;;  %v9943_v6 = vadd.f32 %v2927_v57, %v9749_v40  ;;  %v9964_v40 = vadd.f32 %v2934_v58, %v9770_v35  ;;  %v9982_v44 = vadd.f32 %v2940_v53, %v9783_v36  ;;  %v5675_v58 = vld [vmem:[#allocation2 + $0xb1] sm:$0xff] }
 0x332   :  { %12579 = vst [vmem:[#allocation128_spill] sm:$0xff] %v9929_v14  ;;  %v2955_v21 = vmul.f32 %v9929_v14, %v12551_v13  ;;  %v9933_v18 = vld [vmem:[#allocation2 + $0x421] sm:$0xff]  ;;  %v9952_v14 = vadd.f32 %v2930_v42, %v9758_v17  ;;  %v9973_v17 = vadd.f32 %v2937_v11, %v9777_v20  ;;  %v9985_v35 = vadd.f32 %v2941_v50, %v9785_v62  ;;  %v10035_v42 = vld [vmem:[#allocation2 + $0x1b1] sm:$0xff] }
 0x333   :  { %12580 = vst [vmem:[#allocation129_spill] sm:$0xff] %v9933_v18  ;;  %v2956_v32 = vmul.f32 %v9933_v18, %v12551_v13  ;;  %v9955_v18 = vadd.f32 %v2931_v16, %v9761_v34  ;;  %v9976_v34 = vadd.f32 %v2938_v25, %v9779_v54  ;;  %v9994_v20 = vadd.f32 %v2944_v33, %v9794_v19  ;;  %v12585_v19 = vld [vmem:[#allocation12_spill] sm:$0xff]  ;;  %v12600_v16 = vld [vmem:[#allocation99_spill] sm:$0xff] }
 0x334   :  { %v9997_v54 = vadd.f32 %v2945_v23, %v9797_v56  ;;  %v10000_v24 = vadd.f32 %v2946_v12, %v9800_v15  ;;  %v10003_v36 = vadd.f32 %v2947_v0, %v9803_v4  ;;  %v10006_v62 = vadd.f32 %v2948_v38, %v9806_v31  ;;  %v12587_v56 = vld [vmem:[#allocation112_spill] sm:$0xff]  ;;  %v12589_v15 = vld [vmem:[#allocation113_spill] sm:$0xff]  ;;  %v12591_v4 = vld [vmem:[#allocation114_spill] sm:$0xff]  ;;  %12599 = vst [vmem:[#allocation173_spill] sm:$0xff] %v10035_v42 }
 0x335   :  { %v10012_v13 = vadd.f32 %v2950_v49, %v12583_v1  ;;  %v10015_v3 = vadd.f32 %v2951_v2, %v12585_v19  ;;  %v10018_v57 = vadd.f32 %v2952_v27, %v12587_v56  ;;  %v10021_v61 = vadd.f32 %v2953_v60, %v12589_v15  ;;  %v12593_v31 = vld [vmem:[#allocation115_spill] sm:$0xff]  ;;  %v12597_v49 = vld [vmem:[#allocation117_spill] sm:$0xff] }
 0x336   :  { %v10024_v43 = vadd.f32 %v2954_v39, %v12591_v4  ;;  %v10027_v38 = vadd.f32 %v2955_v21, %v12593_v31  ;;  %v10030_v29 = vadd.f32 %v2956_v32, %v12595_v22  ;;  %v10033_v0 = vadd.f32 %v2957_v41, %v12597_v49  ;;  %v3001_v2 = vld [vmem:[#allocation2 + $0x191] sm:$0xff]  ;;  %v12604_v22 = vld [vmem:[#allocation106_spill] sm:$0xff] }
 0x337   :  { %12584 = vst [vmem:[#allocation131_spill] sm:$0xff] %v10012_v13  ;;  %12586 = vst [vmem:[#allocation132_spill] sm:$0xff] %v10015_v3  ;;  %v5671_v27 = vld [vmem:[#allocation2 + $0x31] sm:$0xff]  ;;  %v3023_v23 = vmul.f32 %v5672_v46, %v12600_v16  ;;  %v3025_v32 = vmul.f32 %v5674_v47, %v12600_v16  ;;  %v3026_v41 = vmul.f32 %v5675_v58, %v12600_v16 }
 0x338   :  { %12588 = vst [vmem:[#allocation35_spill] sm:$0xff] %v10018_v57  ;;  %12590 = vst [vmem:[#allocation167_spill] sm:$0xff] %v10021_v61  ;;  %v3022_v50 = vmul.f32 %v5671_v27, %v12600_v16  ;;  %v5673_v39 = vld [vmem:[#allocation2 + $0x71] sm:$0xff]  ;;  %v3028_v11 = vmul.f32 %v5677_v37, %v12600_v16  ;;  %v3029_v25 = vmul.f32 %v5678_v59, %v12600_v16 }
 0x339   :  { %12592 = vst [vmem:[#allocation168_spill] sm:$0xff] %v10024_v43  ;;  %12594 = vst [vmem:[#allocation179_spill] sm:$0xff] %v10027_v38  ;;  %v3024_v7 = vmul.f32 %v5673_v39, %v12600_v16  ;;  %v10040_v21 = vld [vmem:[#allocation2 + $0x211] sm:$0xff]  ;;  %v3033_v56 = vmul.f32 %v3001_v2, %v12600_v16  ;;  %v3034_v15 = vmul.f32 %v10035_v42, %v12600_v16 }
 0x33a   :  { %12596 = vst [vmem:[#allocation36_spill] sm:$0xff] %v10030_v29  ;;  %12598 = vst [vmem:[#allocation192_spill] sm:$0xff] %v10033_v0  ;;  %v5676_v53 = vld [vmem:[#allocation2 + $0xd1] sm:$0xff]  ;;  %v3036_v49 = vmul.f32 %v12604_v22, %v12600_v16  ;;  %v3037_v39 = vmul.f32 %v10040_v21, %v12600_v16  ;;  %v10090_v63 = vadd.f32 %v3022_v50, %v9940_v8 }
 0x33b   :  { %12601 = vst [vmem:[#allocation180_spill] sm:$0xff] %v10040_v21  ;;  %v3027_v52 = vmul.f32 %v5676_v53, %v12600_v16  ;;  %v10047_v33 = vld [vmem:[#allocation2 + $0x131] sm:$0xff]  ;;  %v10111_v8 = vadd.f32 %v3029_v25, %v9961_v55 }
 0x33c   :  { %12602 = vst [vmem:[#allocation58_spill] sm:$0xff] %v10047_v33  ;;  %v3030_v10 = vmul.f32 %v10047_v33, %v12600_v16  ;;  %v5680_v12 = vld [vmem:[#allocation2 + $0x151] sm:$0xff]  ;;  %v10132_v55 = vadd.f32 %v3036_v49, %v9982_v44 }
 0x33d   :  { %v3031_v60 = vmul.f32 %v5680_v12, %v12600_v16  ;;  %v5681_v1 = vld [vmem:[#allocation2 + $0x171] sm:$0xff] }
 0x33e   :  { %v3032_v19 = vmul.f32 %v5681_v1, %v12600_v16  ;;  %v12603_v4 = vld [vmem:[#allocation105_spill] sm:$0xff] }
 0x33f   :  { %v3035_v31 = vmul.f32 %v12603_v4, %v12600_v16  ;;  %v3017_v27 = vld [vmem:[#allocation2 + $0x3d1] sm:$0xff] }
 0x340   :  { %v10060_v46 = vld [vmem:[#allocation2 + $0x3f1] sm:$0xff]  ;;  %v3049_v57 = vmul.f32 %v3017_v27, %v12600_v16  ;;  %v10099_v27 = vadd.f32 %v3025_v32, %v9949_v51  ;;  %v10120_v51 = vadd.f32 %v3032_v19, %v9970_v26  ;;  %v12628_v19 = vld [vmem:[#allocation19_spill] sm:$0xff] }
 0x341   :  { %12605 = vst [vmem:[#allocation43_spill] sm:$0xff] %v10060_v46  ;;  %v5682_v47 = vld [vmem:[#allocation2 + $0x271] sm:$0xff] }
 0x342   :  { %v3038_v58 = vmul.f32 %v5682_v47, %v12600_v16  ;;  %v5683_v53 = vld [vmem:[#allocation2 + $0x291] sm:$0xff] }
 0x343   :  { %v3039_v2 = vmul.f32 %v5683_v53, %v12600_v16  ;;  %v5684_v37 = vld [vmem:[#allocation2 + $0x2b1] sm:$0xff] }
 0x344   :  { %v3040_v59 = vmul.f32 %v5684_v37, %v12600_v16  ;;  %v10067_v12 = vld [vmem:[#allocation2 + $0x451] sm:$0xff] }
 0x345   :  { %12606 = vst [vmem:[#allocation185_spill] sm:$0xff] %v10067_v12  ;;  %v5685_v1 = vld [vmem:[#allocation2 + $0x2d1] sm:$0xff]  ;;  %v10141_v26 = vadd.f32 %v3039_v2, %v9991_v28  ;;  %v12611_v28 = vld [vmem:[#allocation131_spill] sm:$0xff] }
 0x346   :  { %v3041_v22 = vmul.f32 %v5685_v1, %v12600_v16  ;;  %v5686_v4 = vld [vmem:[#allocation2 + $0x2f1] sm:$0xff] }
 0x347   :  { %v3042_v42 = vmul.f32 %v5686_v4, %v12600_v16  ;;  %v5687_v33 = vld [vmem:[#allocation2 + $0x311] sm:$0xff] }
 0x348   :  { %v3043_v21 = vmul.f32 %v5687_v33, %v12600_v16  ;;  %v5688_v0 = vld [vmem:[#allocation2 + $0x331] sm:$0xff]  ;;  %v3050_v33 = vmul.f32 %v10060_v46, %v12600_v16 }
 0x349   :  { %v3044_v47 = vmul.f32 %v5688_v0, %v12600_v16  ;;  %v5689_v29 = vld [vmem:[#allocation2 + $0x351] sm:$0xff]  ;;  %v12608_v0 = vld [vmem:[#allocation107_spill] sm:$0xff] }
 0x34a   :  { %v3045_v53 = vmul.f32 %v5689_v29, %v12600_v16  ;;  %v10074_v38 = vld [vmem:[#allocation2 + $0x371] sm:$0xff]  ;;  %v3051_v3 = vmul.f32 %v12608_v0, %v12600_v16  ;;  %v10102_v0 = vadd.f32 %v3026_v41, %v9952_v14  ;;  %v10123_v14 = vadd.f32 %v3033_v56, %v9973_v17 }
 0x34b   :  { %12607 = vst [vmem:[#allocation195_spill] sm:$0xff] %v10074_v38  ;;  %v3046_v37 = vmul.f32 %v10074_v38, %v12600_v16  ;;  %v5691_v43 = vld [vmem:[#allocation2 + $0x391] sm:$0xff]  ;;  %v3053_v38 = vmul.f32 %v10067_v12, %v12600_v16  ;;  %v10144_v17 = vadd.f32 %v3040_v59, %v9994_v20  ;;  %v10153_v44 = vadd.f32 %v3043_v21, %v10003_v36 }
 0x34c   :  { %v3047_v1 = vmul.f32 %v5691_v43, %v12600_v16  ;;  %v5692_v61 = vld [vmem:[#allocation2 + $0x3b1] sm:$0xff]  ;;  %v10093_v43 = vadd.f32 %v3023_v23, %v9943_v6  ;;  %v10114_v6 = vadd.f32 %v3030_v10, %v9964_v40  ;;  %v10135_v40 = vadd.f32 %v3037_v39, %v9985_v35 }
 0x34d   :  { %v3048_v4 = vmul.f32 %v5692_v61, %v12600_v16  ;;  %v12609_v29 = vld [vmem:[#allocation108_spill] sm:$0xff]  ;;  %v10096_v61 = vadd.f32 %v3024_v7, %v9946_v48  ;;  %v10117_v48 = vadd.f32 %v3031_v60, %v9967_v45  ;;  %v10138_v45 = vadd.f32 %v3038_v58, %v9988_v9  ;;  %v12610_v9 = vld [vmem:[#allocation130_spill] sm:$0xff]  ;;  %v12631_v49 = vld [vmem:[#allocation25_spill] sm:$0xff] }
 0x34e   :  { %v3052_v13 = vmul.f32 %v12609_v29, %v12600_v16  ;;  %v10105_v29 = vadd.f32 %v3027_v52, %v9955_v18  ;;  %v10108_v16 = vadd.f32 %v3028_v11, %v9958_v30  ;;  %v10126_v18 = vadd.f32 %v3034_v15, %v9976_v34  ;;  %v12613_v20 = vld [vmem:[#allocation132_spill] sm:$0xff]  ;;  %v12629_v15 = vld [vmem:[#allocation21_spill] sm:$0xff] }
 0x34f   :  { %v10129_v30 = vadd.f32 %v3035_v31, %v9979_v5  ;;  %v10147_v34 = vadd.f32 %v3041_v22, %v9997_v54  ;;  %v10150_v5 = vadd.f32 %v3042_v42, %v10000_v24  ;;  %v10156_v35 = vadd.f32 %v3044_v47, %v10006_v62  ;;  %v12615_v54 = vld [vmem:[#allocation35_spill] sm:$0xff]  ;;  %v12619_v36 = vld [vmem:[#allocation168_spill] sm:$0xff] }
 0x350   :  { %v10159_v50 = vadd.f32 %v3045_v53, %v12610_v9  ;;  %v10162_v23 = vadd.f32 %v3046_v37, %v12611_v28  ;;  %v10165_v7 = vadd.f32 %v3047_v1, %v12613_v20  ;;  %v10168_v32 = vadd.f32 %v3048_v4, %v12615_v54  ;;  %v12617_v24 = vld [vmem:[#allocation167_spill] sm:$0xff]  ;;  %v12623_v52 = vld [vmem:[#allocation36_spill] sm:$0xff]  ;;  %v12637_v4 = vld [vmem:[#allocation54_spill] sm:$0xff] }
 0x351   :  { %v10171_v42 = vadd.f32 %v3049_v57, %v12617_v24  ;;  %v10174_v21 = vadd.f32 %v3050_v33, %v12619_v36  ;;  %v12621_v62 = vld [vmem:[#allocation179_spill] sm:$0xff]  ;;  %v10180_v11 = vadd.f32 %v3052_v13, %v12623_v52  ;;  %v12625_v25 = vld [vmem:[#allocation192_spill] sm:$0xff]  ;;  %v12638_v9 = vld [vmem:[#allocation62_spill] sm:$0xff] }
 0x352   :  { %12612 = vst [vmem:[#allocation61_spill] sm:$0xff] %v10162_v23  ;;  %12614 = vst [vmem:[#allocation80_spill] sm:$0xff] %v10165_v7  ;;  %v10177_v41 = vadd.f32 %v3051_v3, %v12621_v62  ;;  %v10183_v10 = vadd.f32 %v3053_v38, %v12625_v25  ;;  %v12627_v60 = vld [vmem:[#allocation72_spill] sm:$0xff]  ;;  %v12632_v3 = vld [vmem:[#allocation57_spill] sm:$0xff] }
 0x353   :  { %12616 = vst [vmem:[#allocation133_spill] sm:$0xff] %v10168_v32  ;;  %12618 = vst [vmem:[#allocation138_spill] sm:$0xff] %v10171_v42  ;;  %v3086_v56 = vmul.f32 %v12628_v19, %v12627_v60  ;;  %v3087_v31 = vmul.f32 %v12629_v15, %v12627_v60  ;;  %v12630_v57 = vld [vmem:[#allocation56_spill] sm:$0xff]  ;;  %v3089_v39 = vmul.f32 %v12631_v49, %v12627_v60  ;;  %v12634_v38 = vld [vmem:[#allocation26_spill] sm:$0xff] }
 0x354   :  { %12620 = vst [vmem:[#allocation134_spill] sm:$0xff] %v10174_v21  ;;  %12622 = vst [vmem:[#allocation140_spill] sm:$0xff] %v10177_v41  ;;  %v3088_v22 = vmul.f32 %v12630_v57, %v12627_v60  ;;  %v3090_v58 = vmul.f32 %v12632_v3, %v12627_v60  ;;  %v12633_v13 = vld [vmem:[#allocation28_spill] sm:$0xff]  ;;  %v3092_v59 = vmul.f32 %v12634_v38, %v12627_v60  ;;  %v12635_v47 = vld [vmem:[#allocation59_spill] sm:$0xff] }
 0x355   :  { %12624 = vst [vmem:[#allocation135_spill] sm:$0xff] %v10180_v11  ;;  %12626 = vst [vmem:[#allocation141_spill] sm:$0xff] %v10183_v10  ;;  %v3091_v2 = vmul.f32 %v12633_v13, %v12627_v60  ;;  %v3093_v53 = vmul.f32 %v12635_v47, %v12627_v60  ;;  %v12636_v37 = vld [vmem:[#allocation27_spill] sm:$0xff]  ;;  %v3095_v33 = vmul.f32 %v12637_v4, %v12627_v60  ;;  %v5693_v20 = vld [vmem:[#allocation2 + $0x1b0] sm:$0xff] }
 0x356   :  { %v3094_v1 = vmul.f32 %v12636_v37, %v12627_v60  ;;  %v3096_v28 = vmul.f32 %v12638_v9, %v12627_v60  ;;  %v3097_v54 = vmul.f32 %v5693_v20, %v12627_v60  ;;  %v5694_v24 = vld [vmem:[#allocation2 + $0x1d0] sm:$0xff]  ;;  %v12639_v62 = vld [vmem:[#allocation109_spill] sm:$0xff]  ;;  %v12640_v15 = vld [vmem:[#allocation30_spill] sm:$0xff] }
 0x357   :  { %v3098_v36 = vmul.f32 %v5694_v24, %v12627_v60  ;;  %v3099_v52 = vmul.f32 %v12639_v62, %v12627_v60  ;;  %v5695_v25 = vld [vmem:[#allocation2 + $0x210] sm:$0xff]  ;;  %v3101_v57 = vmul.f32 %v12640_v15, %v12627_v60  ;;  %v12644_v4 = vld [vmem:[#allocation6_spill] sm:$0xff]  ;;  %v12645_v20 = vld [vmem:[#allocation7_spill] sm:$0xff] }
 0x358   :  { %v3100_v19 = vmul.f32 %v5695_v25, %v12627_v60  ;;  %v12641_v49 = vld [vmem:[#allocation16_spill] sm:$0xff]  ;;  %v3105_v9 = vmul.f32 %v12644_v4, %v12627_v60  ;;  %v3106_v24 = vmul.f32 %v12645_v20, %v12627_v60  ;;  %v12647_v15 = vld [vmem:[#allocation66_spill] sm:$0xff] }
 0x359   :  { %v3102_v3 = vmul.f32 %v12641_v49, %v12627_v60  ;;  %v12642_v13 = vld [vmem:[#allocation32_spill] sm:$0xff]  ;;  %v3108_v12 = vmul.f32 %v12647_v15, %v12627_v60  ;;  %v12648_v49 = vld [vmem:[#allocation67_spill] sm:$0xff]  ;;  %v12651_v4 = vld [vmem:[#allocation42_spill] sm:$0xff] }
 0x35a   :  { %v3103_v38 = vmul.f32 %v12642_v13, %v12627_v60  ;;  %v12643_v47 = vld [vmem:[#allocation64_spill] sm:$0xff]  ;;  %v3109_v46 = vmul.f32 %v12648_v49, %v12627_v60  ;;  %v12649_v13 = vld [vmem:[#allocation37_spill] sm:$0xff]  ;;  %v3112_v41 = vmul.f32 %v12651_v4, %v12627_v60  ;;  %v12652_v15 = vld [vmem:[#allocation110_spill] sm:$0xff]  ;;  %v10247_v4 = vadd.f32 %v3087_v31, %v10093_v43 }
 0x35b   :  { %v3104_v37 = vmul.f32 %v12643_v47, %v12627_v60  ;;  %v12646_v62 = vld [vmem:[#allocation8_spill] sm:$0xff]  ;;  %v3110_v10 = vmul.f32 %v12649_v13, %v12627_v60  ;;  %v12650_v47 = vld [vmem:[#allocation17_spill] sm:$0xff]  ;;  %v3115_v32 = vmul.f32 %v12652_v15, %v12627_v60  ;;  %v10256_v15 = vadd.f32 %v3090_v58, %v10102_v0 }
 0x35c   :  { %v3107_v25 = vmul.f32 %v12646_v62, %v12627_v60  ;;  %v3111_v11 = vmul.f32 %v12650_v47, %v12627_v60  ;;  %v5696_v21 = vld [vmem:[#allocation2 + $0x3f0] sm:$0xff]  ;;  %v12653_v13 = vld [vmem:[#allocation41_spill] sm:$0xff]  ;;  %v10244_v47 = vadd.f32 %v3086_v56, %v10090_v63  ;;  %v10265_v63 = vadd.f32 %v3093_v53, %v10111_v8 }
 0x35d   :  { %v3113_v20 = vmul.f32 %v5696_v21, %v12627_v60  ;;  %v5697_v42 = vld [vmem:[#allocation2 + $0x410] sm:$0xff]  ;;  %v3117_v23 = vmul.f32 %v12653_v13, %v12627_v60  ;;  %v10250_v21 = vadd.f32 %v3088_v22, %v10096_v61  ;;  %v10268_v43 = vadd.f32 %v3094_v1, %v10114_v6  ;;  %v12684_v13 = vld [vmem:[#allocation125_spill] sm:$0xff] }
 0x35e   :  { %v3114_v62 = vmul.f32 %v5697_v42, %v12627_v60  ;;  %v5698_v7 = vld [vmem:[#allocation2 + $0x450] sm:$0xff]  ;;  %v10253_v42 = vadd.f32 %v3089_v39, %v10099_v27  ;;  %v10271_v61 = vadd.f32 %v3095_v33, %v10117_v48  ;;  %v10274_v27 = vadd.f32 %v3096_v28, %v10120_v51 }
 0x35f   :  { %v3116_v49 = vmul.f32 %v5698_v7, %v12627_v60  ;;  %v10259_v7 = vadd.f32 %v3091_v2, %v10105_v29  ;;  %v10262_v60 = vadd.f32 %v3092_v59, %v10108_v16  ;;  %v10277_v0 = vadd.f32 %v3097_v54, %v10123_v14  ;;  %v12674_v59 = vld [vmem:[#allocation118_spill] sm:$0xff]  ;;  %v12676_v33 = vld [vmem:[#allocation120_spill] sm:$0xff]  ;;  %v12677_v54 = vld [vmem:[#allocation49_spill] sm:$0xff] }
 0x360   :  { %v10280_v29 = vadd.f32 %v3098_v36, %v10126_v18  ;;  %v10283_v16 = vadd.f32 %v3099_v52, %v10129_v30  ;;  %v10286_v8 = vadd.f32 %v3100_v19, %v10132_v55  ;;  %v10289_v6 = vadd.f32 %v3101_v57, %v10135_v40  ;;  %v12679_v19 = vld [vmem:[#allocation52_spill] sm:$0xff] }
 0x361   :  { %v10292_v48 = vadd.f32 %v3102_v3, %v10138_v45  ;;  %v10295_v51 = vadd.f32 %v3103_v38, %v10141_v26  ;;  %v10298_v14 = vadd.f32 %v3104_v37, %v10144_v17  ;;  %v10301_v18 = vadd.f32 %v3105_v9, %v10147_v34  ;;  %v12657_v26 = vld [vmem:[#allocation61_spill] sm:$0xff]  ;;  %v12659_v17 = vld [vmem:[#allocation80_spill] sm:$0xff]  ;;  %v12681_v38 = vld [vmem:[#allocation122_spill] sm:$0xff] }
 0x362   :  { %v10304_v30 = vadd.f32 %v3106_v24, %v10150_v5  ;;  %v10307_v55 = vadd.f32 %v3107_v25, %v10153_v44  ;;  %v10310_v40 = vadd.f32 %v3108_v12, %v10156_v35  ;;  %v10313_v45 = vadd.f32 %v3109_v46, %v10159_v50  ;;  %v12661_v34 = vld [vmem:[#allocation133_spill] sm:$0xff]  ;;  %v12663_v5 = vld [vmem:[#allocation138_spill] sm:$0xff]  ;;  %v12667_v12 = vld [vmem:[#allocation140_spill] sm:$0xff] }
 0x363   :  { %v10316_v56 = vadd.f32 %v3110_v10, %v12657_v26  ;;  %v10319_v31 = vadd.f32 %v3111_v11, %v12659_v17  ;;  %v10322_v22 = vadd.f32 %v3112_v41, %v12661_v34  ;;  %v10325_v39 = vadd.f32 %v3113_v20, %v12663_v5  ;;  %v12665_v44 = vld [vmem:[#allocation134_spill] sm:$0xff]  ;;  %v12669_v46 = vld [vmem:[#allocation135_spill] sm:$0xff]  ;;  %v12671_v10 = vld [vmem:[#allocation141_spill] sm:$0xff] }
 0x364   :  { %12654 = vst [vmem:[#allocation137_spill] sm:$0xff] %v10307_v55  ;;  %12655 = vst [vmem:[#allocation142_spill] sm:$0xff] %v10310_v40  ;;  %v10328_v58 = vadd.f32 %v3114_v62, %v12665_v44  ;;  %v10331_v35 = vadd.f32 %v3115_v32, %v12667_v12  ;;  %v10334_v50 = vadd.f32 %v3116_v49, %v12669_v46  ;;  %v12673_v11 = vld [vmem:[#allocation100_spill] sm:$0xff]  ;;  %v12675_v41 = vld [vmem:[#allocation119_spill] sm:$0xff] }
 0x365   :  { %12656 = vst [vmem:[#allocation38_spill] sm:$0xff] %v10313_v45  ;;  %12658 = vst [vmem:[#allocation143_spill] sm:$0xff] %v10316_v56  ;;  %v10337_v2 = vadd.f32 %v3117_v23, %v12671_v10  ;;  %v3150_v53 = vmul.f32 %v12674_v59, %v12673_v11  ;;  %v3151_v1 = vmul.f32 %v12675_v41, %v12673_v11  ;;  %v12678_v32 = vld [vmem:[#allocation51_spill] sm:$0xff]  ;;  %v12680_v23 = vld [vmem:[#allocation121_spill] sm:$0xff] }
 0x366   :  { %12660 = vst [vmem:[#allocation147_spill] sm:$0xff] %v10319_v31  ;;  %12662 = vst [vmem:[#allocation148_spill] sm:$0xff] %v10322_v22  ;;  %v3152_v28 = vmul.f32 %v12676_v33, %v12673_v11  ;;  %v3153_v36 = vmul.f32 %v12677_v54, %v12673_v11  ;;  %v3154_v52 = vmul.f32 %v12678_v32, %v12673_v11  ;;  %v12682_v9 = vld [vmem:[#allocation123_spill] sm:$0xff]  ;;  %v12683_v25 = vld [vmem:[#allocation124_spill] sm:$0xff] }
 0x367   :  { %12664 = vst [vmem:[#allocation149_spill] sm:$0xff] %v10325_v39  ;;  %12666 = vst [vmem:[#allocation144_spill] sm:$0xff] %v10328_v58  ;;  %v3155_v57 = vmul.f32 %v12679_v19, %v12673_v11  ;;  %v3156_v3 = vmul.f32 %v12680_v23, %v12673_v11  ;;  %v3157_v37 = vmul.f32 %v12681_v38, %v12673_v11  ;;  %v5699_v62 = vld [vmem:[#allocation2 + $0x181] sm:$0xff]  ;;  %v12686_v5 = vld [vmem:[#allocation45_spill] sm:$0xff] }
 0x368   :  { %12668 = vst [vmem:[#allocation150_spill] sm:$0xff] %v10331_v35  ;;  %12670 = vst [vmem:[#allocation151_spill] sm:$0xff] %v10334_v50  ;;  %v3158_v24 = vmul.f32 %v12682_v9, %v12673_v11  ;;  %v3159_v20 = vmul.f32 %v12683_v25, %v12673_v11  ;;  %v3160_v49 = vmul.f32 %v5699_v62, %v12673_v11  ;;  %v12685_v17 = vld [vmem:[#allocation126_spill] sm:$0xff]  ;;  %v12687_v10 = vld [vmem:[#allocation44_spill] sm:$0xff] }
 0x369   :  { %12672 = vst [vmem:[#allocation152_spill] sm:$0xff] %v10337_v2  ;;  %v3161_v26 = vmul.f32 %v12684_v13, %v12673_v11  ;;  %v3162_v34 = vmul.f32 %v12685_v17, %v12673_v11  ;;  %v3163_v44 = vmul.f32 %v12686_v5, %v12673_v11  ;;  %v5700_v12 = vld [vmem:[#allocation2 + $0x201] sm:$0xff]  ;;  %v3165_v59 = vmul.f32 %v12687_v10, %v12673_v11  ;;  %v12688_v41 = vld [vmem:[#allocation136_spill] sm:$0xff]  ;;  %v12691_v38 = vld [vmem:[#allocation101_spill] sm:$0xff] }
 0x36a   :  { %v3164_v46 = vmul.f32 %v5700_v12, %v12673_v11  ;;  %v3166_v33 = vmul.f32 %v12688_v41, %v12673_v11  ;;  %v12689_v54 = vld [vmem:[#allocation139_spill] sm:$0xff]  ;;  %v12690_v19 = vld [vmem:[#allocation84_spill] sm:$0xff]  ;;  %v3169_v9 = vmul.f32 %v12691_v38, %v12673_v11  ;;  %v12692_v25 = vld [vmem:[#allocation85_spill] sm:$0xff]  ;;  %v3183_v45 = vadd.f32 %v3151_v1, %v10247_v4 }
 0x36b   :  { %v3167_v32 = vmul.f32 %v12689_v54, %v12673_v11  ;;  %v3168_v23 = vmul.f32 %v12690_v19, %v12673_v11  ;;  %v3170_v62 = vmul.f32 %v12692_v25, %v12673_v11  ;;  %v12693_v13 = vld [vmem:[#allocation127_spill] sm:$0xff]  ;;  %v12695_v10 = vld [vmem:[#allocation48_spill] sm:$0xff]  ;;  %v12696_v54 = vld [vmem:[#allocation50_spill] sm:$0xff]  ;;  %v3186_v40 = vadd.f32 %v3154_v52, %v10256_v15 }
 0x36c   :  { %v3171_v17 = vmul.f32 %v12693_v13, %v12673_v11  ;;  %v12694_v5 = vld [vmem:[#allocation47_spill] sm:$0xff]  ;;  %v3173_v41 = vmul.f32 %v12695_v10, %v12673_v11  ;;  %v3174_v2 = vmul.f32 %v12696_v54, %v12673_v11  ;;  %v12697_v19 = vld [vmem:[#allocation69_spill] sm:$0xff]  ;;  %v12698_v38 = vld [vmem:[#allocation70_spill] sm:$0xff]  ;;  %v3189_v55 = vadd.f32 %v3157_v37, %v10265_v63 }
 0x36d   :  { %v3172_v12 = vmul.f32 %v12694_v5, %v12673_v11  ;;  %v3175_v50 = vmul.f32 %v12697_v19, %v12673_v11  ;;  %v3176_v35 = vmul.f32 %v12698_v38, %v12673_v11  ;;  %v5701_v58 = vld [vmem:[#allocation2 + $0x3e1] sm:$0xff]  ;;  %v12699_v13 = vld [vmem:[#allocation128_spill] sm:$0xff]  ;;  %v12700_v5 = vld [vmem:[#allocation129_spill] sm:$0xff]  ;;  %v3182_v19 = vadd.f32 %v3150_v53, %v10244_v47 }
 0x36e   :  { %v3177_v25 = vmul.f32 %v5701_v58, %v12673_v11  ;;  %v3178_v39 = vmul.f32 %v12699_v13, %v12673_v11  ;;  %v3179_v22 = vmul.f32 %v12700_v5, %v12673_v11  ;;  %v5702_v31 = vld [vmem:[#allocation2 + $0x441] sm:$0xff]  ;;  %v12701_v54 = vld [vmem:[#allocation73_spill] sm:$0xff]  ;;  %v3184_v38 = vadd.f32 %v3152_v28, %v10250_v21 }
 0x36f   :  { %v3180_v10 = vmul.f32 %v5702_v31, %v12673_v11  ;;  %v3181_v56 = vmul.f32 %v12701_v54, %v12673_v11  ;;  %v3185_v58 = vadd.f32 %v3153_v36, %v10253_v42  ;;  %v3187_v13 = vadd.f32 %v3155_v57, %v10259_v7  ;;  %v12702_v53 = vld [vmem:[#allocation137_spill] sm:$0xff]  ;;  %v12703_v1 = vld [vmem:[#allocation142_spill] sm:$0xff]  ;;  %v12721_v54 = vld [vmem:[#allocation43_spill] sm:$0xff] }
 0x370   :  { %v3188_v5 = vadd.f32 %v3156_v3, %v10262_v60  ;;  %v3190_v31 = vadd.f32 %v3158_v24, %v10268_v43  ;;  %v3191_v11 = vadd.f32 %v3159_v20, %v10271_v61  ;;  %v3192_v47 = vadd.f32 %v3160_v49, %v10274_v27  ;;  %v3223_v28 = vld [vmem:[#allocation2 + $0x171] sm:$0xff]  ;;  %v12710_v20 = vld [vmem:[#allocation150_spill] sm:$0xff]  ;;  %v12711_v49 = vld [vmem:[#allocation151_spill] sm:$0xff] }
 0x371   :  { %v3193_v4 = vadd.f32 %v3161_v26, %v10277_v0  ;;  %v3194_v21 = vadd.f32 %v3162_v34, %v10280_v29  ;;  %v3195_v42 = vadd.f32 %v3163_v44, %v10283_v16  ;;  %v3196_v15 = vadd.f32 %v3164_v46, %v10286_v8  ;;  %v12704_v16 = vld [vmem:[#allocation38_spill] sm:$0xff]  ;;  %v12705_v8 = vld [vmem:[#allocation143_spill] sm:$0xff]  ;;  %v12708_v37 = vld [vmem:[#allocation149_spill] sm:$0xff] }
 0x372   :  { %v3197_v7 = vadd.f32 %v3165_v59, %v10289_v6  ;;  %v3198_v60 = vadd.f32 %v3166_v33, %v10292_v48  ;;  %v3199_v63 = vadd.f32 %v3167_v32, %v10295_v51  ;;  %v3200_v43 = vadd.f32 %v3168_v23, %v10298_v14  ;;  %v12706_v6 = vld [vmem:[#allocation147_spill] sm:$0xff]  ;;  %v12707_v48 = vld [vmem:[#allocation148_spill] sm:$0xff]  ;;  %v12715_v33 = vld [vmem:[#allocation58_spill] sm:$0xff] }
 0x373   :  { %v3201_v61 = vadd.f32 %v3169_v9, %v10301_v18  ;;  %v3202_v27 = vadd.f32 %v3170_v62, %v10304_v30  ;;  %v3203_v0 = vadd.f32 %v3171_v17, %v12702_v53  ;;  %v3204_v29 = vadd.f32 %v3172_v12, %v12703_v1  ;;  %v3229_v51 = vld [vmem:[#allocation2 + $0x231] sm:$0xff]  ;;  %v12722_v1 = vld [vmem:[#allocation107_spill] sm:$0xff] }
 0x374   :  { %v3205_v36 = vadd.f32 %v3173_v41, %v12704_v16  ;;  %v3206_v52 = vadd.f32 %v3174_v2, %v12705_v8  ;;  %v3207_v57 = vadd.f32 %v3175_v50, %v12706_v6  ;;  %v3208_v3 = vadd.f32 %v3176_v35, %v12707_v48  ;;  %v12709_v24 = vld [vmem:[#allocation144_spill] sm:$0xff]  ;;  %v12714_v2 = vld [vmem:[#allocation46_spill] sm:$0xff]  ;;  %v12716_v32 = vld [vmem:[#allocation173_spill] sm:$0xff] }
 0x375   :  { %v3209_v14 = vadd.f32 %v3177_v25, %v12708_v37  ;;  %v3210_v18 = vadd.f32 %v3178_v39, %v12709_v24  ;;  %v3211_v30 = vadd.f32 %v3179_v22, %v12710_v20  ;;  %v10430_v26 = vadd.f32 %v3180_v10, %v12711_v49  ;;  %v3239_v34 = vld [vmem:[#allocation2 + $0x3b1] sm:$0xff]  ;;  %v12718_v22 = vld [vmem:[#allocation106_spill] sm:$0xff]  ;;  %v12720_v41 = vld [vmem:[#allocation195_spill] sm:$0xff] }
 0x376   :  { %v12712_v44 = vld [vmem:[#allocation152_spill] sm:$0xff]  ;;  %v3253_v50 = vmul.f32 %v12715_v33, %v12714_v2  ;;  %v3255_v35 = vmul.f32 %v12714_v2, %v3223_v28  ;;  %v3257_v23 = vmul.f32 %v12714_v2, %v12716_v32  ;;  %v12717_v9 = vld [vmem:[#allocation105_spill] sm:$0xff]  ;;  %v3259_v62 = vmul.f32 %v12714_v2, %v12718_v22  ;;  %v12727_v37 = vld [vmem:[#allocation174_spill] sm:$0xff] }
 0x377   :  { %v10433_v46 = vadd.f32 %v3181_v56, %v12712_v44  ;;  %v3245_v59 = vld [vmem:[#allocation2 + $0x471] sm:$0xff]  ;;  %v3258_v39 = vmul.f32 %v12714_v2, %v12717_v9  ;;  %v3261_v56 = vmul.f32 %v12714_v2, %v3229_v51  ;;  %v3269_v25 = vmul.f32 %v12720_v41, %v12714_v2  ;;  %v12728_v20 = vld [vmem:[#allocation175_spill] sm:$0xff] }
 0x378   :  { %v12719_v17 = vld [vmem:[#allocation180_spill] sm:$0xff]  ;;  %v3271_v10 = vmul.f32 %v12714_v2, %v3239_v34  ;;  %v3273_v53 = vmul.f32 %v12714_v2, %v12721_v54  ;;  %v3274_v28 = vmul.f32 %v12714_v2, %v12722_v1  ;;  %v12724_v6 = vld [vmem:[#allocation185_spill] sm:$0xff]  ;;  %v10461_v51 = vmul.f32 %v12714_v2, %v3245_v59  ;;  %v12733_v54 = vld [vmem:[#allocation183_spill] sm:$0xff] }
 0x379   :  { %12713 = vst [vmem:[#allocation77_spill] sm:$0xff] %v10433_v46  ;;  %v3260_v12 = vmul.f32 %v12714_v2, %v12719_v17  ;;  %v12723_v16 = vld [vmem:[#allocation108_spill] sm:$0xff]  ;;  %v10458_v48 = vmul.f32 %v12714_v2, %v12724_v6  ;;  %v3278_v24 = vadd.f32 %v12727_v37, %v3182_v19  ;;  %v3279_v49 = vadd.f32 %v12728_v20, %v3183_v45  ;;  %v12730_v33 = vld [vmem:[#allocation177_spill] sm:$0xff]  ;;  %v12732_v17 = vld [vmem:[#allocation182_spill] sm:$0xff] }
 0x37a   :  { %v3275_v8 = vmul.f32 %v12714_v2, %v12723_v16  ;;  %12726 = vst [vmem:[#allocation55_spill] sm:$0xff] %v10461_v51  ;;  %v12729_v34 = vld [vmem:[#allocation176_spill] sm:$0xff]  ;;  %v3281_v32 = vadd.f32 %v12730_v33, %v3185_v58  ;;  %v12731_v9 = vld [vmem:[#allocation181_spill] sm:$0xff]  ;;  %v3283_v41 = vadd.f32 %v12732_v17, %v3187_v13  ;;  %v3284_v1 = vadd.f32 %v12733_v54, %v3188_v5  ;;  %v12735_v59 = vld [vmem:[#allocation186_spill] sm:$0xff] }
 0x37b   :  { %12725 = vst [vmem:[#allocation23_spill] sm:$0xff] %v10458_v48  ;;  %v3280_v44 = vadd.f32 %v12729_v34, %v3184_v38  ;;  %v3282_v22 = vadd.f32 %v12731_v9, %v3186_v40  ;;  %v3285_v16 = vadd.f32 %v3253_v50, %v3189_v55  ;;  %v12734_v6 = vld [vmem:[#allocation184_spill] sm:$0xff]  ;;  %v3287_v48 = vadd.f32 %v3255_v35, %v3191_v11  ;;  %v12736_v38 = vld [vmem:[#allocation187_spill] sm:$0xff]  ;;  %v12738_v33 = vld [vmem:[#allocation189_spill] sm:$0xff] }
 0x37c   :  { %v3286_v46 = vadd.f32 %v12734_v6, %v3190_v31  ;;  %v3288_v2 = vadd.f32 %v12735_v59, %v3192_v47  ;;  %v3289_v51 = vadd.f32 %v3257_v23, %v3193_v4  ;;  %v3290_v19 = vadd.f32 %v3258_v39, %v3194_v21  ;;  %v12737_v34 = vld [vmem:[#allocation188_spill] sm:$0xff]  ;;  %v12739_v9 = vld [vmem:[#allocation190_spill] sm:$0xff]  ;;  %v12740_v55 = vld [vmem:[#allocation191_spill] sm:$0xff] }
 0x37d   :  { %v3291_v37 = vadd.f32 %v3259_v62, %v3195_v42  ;;  %v3292_v45 = vadd.f32 %v3260_v12, %v3196_v15  ;;  %v10472_v20 = vadd.f32 %v3261_v56, %v3197_v7  ;;  %v3294_v58 = vadd.f32 %v12736_v38, %v3198_v60  ;;  %v12741_v31 = vld [vmem:[#allocation145_spill] sm:$0xff]  ;;  %v12742_v35 = vld [vmem:[#allocation146_spill] sm:$0xff]  ;;  %v12755_v12 = vld [vmem:[#allocation79_spill] sm:$0xff] }
 0x37e   :  { %v3295_v40 = vadd.f32 %v12737_v34, %v3199_v63  ;;  %v3296_v13 = vadd.f32 %v12738_v33, %v3200_v43  ;;  %v3297_v5 = vadd.f32 %v12739_v9, %v3201_v61  ;;  %v3298_v50 = vadd.f32 %v12740_v55, %v3202_v27  ;;  %v12743_v21 = vld [vmem:[#allocation193_spill] sm:$0xff]  ;;  %v12744_v7 = vld [vmem:[#allocation194_spill] sm:$0xff]  ;;  %v12747_v27 = vld [vmem:[#allocation75_spill] sm:$0xff] }
 0x37f   :  { %v3299_v11 = vadd.f32 %v12741_v31, %v3203_v0  ;;  %v3300_v47 = vadd.f32 %v12742_v35, %v3204_v29  ;;  %v3301_v4 = vadd.f32 %v3269_v25, %v3205_v36  ;;  %v3302_v42 = vadd.f32 %v12743_v21, %v3206_v52  ;;  %v12745_v61 = vld [vmem:[#allocation74_spill] sm:$0xff]  ;;  %v12768_v9 = vld [vmem:[#allocation83_spill] sm:$0xff] }
 0x380   :  { %v3303_v15 = vadd.f32 %v3271_v10, %v3207_v57  ;;  %v10483_v23 = vadd.f32 %v12744_v7, %v3208_v3  ;;  %v10485_v60 = vadd.f32 %v3273_v53, %v3209_v14  ;;  %v10487_v63 = vadd.f32 %v3274_v28, %v3210_v18  ;;  %v12748_v29 = vld [vmem:[#allocation78_spill] sm:$0xff] }
 0x381   :  { %v10489_v43 = vadd.f32 %v3275_v8, %v3211_v30  ;;  %v10492_v39 = vadd.f32 %v12745_v61, %v3278_v24  ;;  %v3342_v0 = vsel %vm687_vm2, %v12747_v27, 0.0  ;;  %v3343_v36 = vsel %vm687_vm2, %v12748_v29, 0.0  ;;  %v12759_v24 = vld [vmem:[#allocation81_spill] sm:$0xff]  ;;  %v12762_v6 = vld [vmem:[#allocation82_spill] sm:$0xff] }
 0x382   :  { %v10499_v52 = vadd.f32 %v12745_v61, %v3279_v49  ;;  %v10502_v57 = vadd.f32 %v12745_v61, %v3280_v44  ;;  %v10505_v3 = vadd.f32 %v12745_v61, %v3281_v32  ;;  %v3344_v14 = vadd.f32 %v3343_v36, %v3342_v0  ;;  %v12760_v44 = vld [vmem:[#allocation96_spill] sm:$0xff]  ;;  %v12769_v31 = vld [vmem:[#allocation18_spill] sm:$0xff]  ;;  %v12773_v36 = vld [vmem:[#allocation63_spill] sm:$0xff] }
 0x383   :  { %12746 = vst [vmem:[#allocation60_spill] sm:$0xff] %v10492_v39  ;;  %v10508_v18 = vadd.f32 %v12745_v61, %v3282_v22  ;;  %v10511_v30 = vadd.f32 %v12745_v61, %v3283_v41  ;;  %v10514_v62 = vadd.f32 %v12745_v61, %v3284_v1  ;;  %v3345_v56 = vsel %vm687_vm2, %v12755_v12, 0.0  ;;  %v12761_v22 = vld [vmem:[#allocation97_spill] sm:$0xff]  ;;  %v12772_v0 = vld [vmem:[#allocation86_spill] sm:$0xff] }
 0x384   :  { %12749 = vst [vmem:[#allocation29_spill] sm:$0xff] %v10499_v52  ;;  %12750 = vst [vmem:[#allocation15_spill] sm:$0xff] %v10502_v57  ;;  %v10519_v25 = vadd.f32 %v12745_v61, %v3285_v16  ;;  %v10522_v10 = vadd.f32 %v12745_v61, %v3286_v46  ;;  %v10525_v53 = vadd.f32 %v12745_v61, %v3287_v48  ;;  %v3347_v49 = vsel %vm687_vm2, %v12759_v24, 0.0 }
 0x385   :  { %12751 = vst [vmem:[#allocation31_spill] sm:$0xff] %v10505_v3  ;;  %12752 = vst [vmem:[#allocation11_spill] sm:$0xff] %v10508_v18  ;;  %v3346_v28 = vadd.f32 %v3345_v56, %v3344_v14  ;;  %v10528_v8 = vadd.f32 %v12745_v61, %v3288_v2  ;;  %v3379_v32 = vsel %vm687_vm2, %v12760_v44, 0.0  ;;  %v3380_v17 = vsel %vm687_vm2, %v12761_v22, 0.0  ;;  %v12763_v2 = vld [vmem:[#allocation98_spill] sm:$0xff] }
 0x386   :  { %12753 = vst [vmem:[#allocation153_spill] sm:$0xff] %v10511_v30  ;;  %12754 = vst [vmem:[#allocation154_spill] sm:$0xff] %v10514_v62  ;;  %v10537_v41 = vadd.f32 %v12745_v61, %v3289_v51  ;;  %v10540_v46 = vadd.f32 %v12745_v61, %v3290_v19  ;;  %v3381_v54 = vadd.f32 %v3380_v17, %v3379_v32  ;;  %v3349_v59 = vsel %vm687_vm2, %v12762_v6, 0.0  ;;  %v10588_v32 = vld [vmem:[%s11282_s6] ss:$0 sm:$0xff] }
 0x387   :  { %12756 = vst [vmem:[#allocation155_spill] sm:$0xff] %v10519_v25  ;;  %12757 = vst [vmem:[#allocation156_spill] sm:$0xff] %v10522_v10  ;;  %v3348_v48 = vadd.f32 %v3347_v49, %v3346_v28  ;;  %v10543_v1 = vadd.f32 %v12745_v61, %v3291_v37  ;;  %v10546_v16 = vadd.f32 %v12745_v61, %v3292_v45  ;;  %v3382_v38 = vsel %vm687_vm2, %v12763_v2, 0.0 }
 0x388   :  { %12758 = vst [vmem:[#allocation157_spill] sm:$0xff] %v10525_v53  ;;  %v10553_v51 = vadd.f32 %v12745_v61, %v3294_v58  ;;  %v10556_v19 = vadd.f32 %v12745_v61, %v3295_v40  ;;  %v3383_v33 = vadd.f32 %v3382_v38, %v3381_v54  ;;  %v10559_v37 = vadd.f32 %v12745_v61, %v3296_v13 }
 0x389   :  { %v3350_v34 = vadd.f32 %v3349_v59, %v3348_v48  ;;  %v10562_v45 = vadd.f32 %v12745_v61, %v3297_v5  ;;  %v3351_v55 = vsel %vm687_vm2, %v12768_v9, 0.0  ;;  %v3384_v35 = vsel %vm687_vm2, %v12769_v31, 0.0  ;;  %v12775_v48 = vld [vmem:[#allocation89_spill] sm:$0xff] }
 0x38a   :  { %12764 = vst [vmem:[#allocation158_spill] sm:$0xff] %v10553_v51  ;;  %12765 = vst [vmem:[#allocation159_spill] sm:$0xff] %v10556_v19  ;;  %v10569_v58 = vadd.f32 %v12745_v61, %v3298_v50  ;;  %v10572_v40 = vadd.f32 %v12745_v61, %v3299_v11  ;;  %v3385_v7 = vadd.f32 %v3384_v35, %v3383_v33  ;;  %v3353_v13 = vsel %vm687_vm2, %v12772_v0, 0.0  ;;  %v12776_v59 = vld [vmem:[#allocation65_spill] sm:$0xff] }
 0x38b   :  { %12766 = vst [vmem:[#allocation160_spill] sm:$0xff] %v10559_v37  ;;  %12767 = vst [vmem:[#allocation161_spill] sm:$0xff] %v10562_v45  ;;  %v3352_v21 = vadd.f32 %v3351_v55, %v3350_v34  ;;  %v3386_v5 = vsel %vm687_vm2, %v12773_v36, 0.0  ;;  %v3416_v14 = vsel %vm687_vm2, %v10492_v39, 0.0  ;;  %v3417_v56 = vsel %vm687_vm2, %v10499_v52, 0.0  ;;  %v12783_v52 = vld [vmem:[#allocation90_spill] sm:$0xff] }
 0x38c   :  { %12770 = vst [vmem:[#allocation53_spill] sm:$0xff] %v10569_v58  ;;  %12771 = vst [vmem:[#allocation162_spill] sm:$0xff] %v10572_v40  ;;  %v10583_v50 = vadd.f32 %v12745_v61, %v3300_v47  ;;  %v3387_v11 = vadd.f32 %v3386_v5, %v3385_v7  ;;  %v3418_v49 = vadd.f32 %v3417_v56, %v3416_v14  ;;  %v3355_v54 = vsel %vm687_vm2, %v12775_v48, 0.0  ;;  %v12780_v7 = vld [vmem:[#allocation22_spill] sm:$0xff]  ;;  %v12781_v56 = vld [vmem:[#allocation88_spill] sm:$0xff] }
 0x38d   :  { %v3354_v28 = vadd.f32 %v3353_v13, %v3352_v21  ;;  %v10591_v17 = vadd.f32 %v10588_v32, %v3301_v4  ;;  %v3388_v38 = vsel %vm687_vm2, %v12776_v59, 0.0  ;;  %v3419_v47 = vsel %vm687_vm2, %v10502_v57, 0.0  ;;  %v12779_v4 = vld [vmem:[#allocation87_spill] sm:$0xff] }
 0x38e   :  { %12774 = vst [vmem:[#allocation163_spill] sm:$0xff] %v10583_v50  ;;  %v10600_v61 = vadd.f32 %v10588_v32, %v3302_v42  ;;  %v3389_v33 = vadd.f32 %v3388_v38, %v3387_v11  ;;  %v3420_v55 = vadd.f32 %v3419_v47, %v3418_v49  ;;  %v10603_v35 = vadd.f32 %v10588_v32, %v3303_v15  ;;  %v12782_v11 = vld [vmem:[#allocation24_spill] sm:$0xff] }
 0x38f   :  { %v3356_v34 = vadd.f32 %v3355_v54, %v3354_v28  ;;  %v3357_v21 = vsel %vm687_vm2, %v12779_v4, 0.0  ;;  %v3390_v13 = vsel %vm687_vm2, %v12780_v7, 0.0  ;;  %v3421_v5 = vsel %vm687_vm2, %v10505_v3, 0.0 }
 0x390   :  { %12777 = vst [vmem:[#allocation164_spill] sm:$0xff] %v10600_v61  ;;  %12778 = vst [vmem:[#allocation165_spill] sm:$0xff] %v10603_v35  ;;  %v3359_v42 = vsel %vm687_vm2, %v12781_v56, 0.0  ;;  %v3391_v57 = vadd.f32 %v3390_v13, %v3389_v33  ;;  %v3422_v28 = vadd.f32 %v3421_v5, %v3420_v55  ;;  %v3392_v49 = vsel %vm687_vm2, %v12782_v11, 0.0  ;;  %v12784_v55 = vld [vmem:[#allocation20_spill] sm:$0xff] }
 0x391   :  { %v3358_v14 = vadd.f32 %v3357_v21, %v3356_v34  ;;  %v3423_v15 = vsel %vm687_vm2, %v10508_v18, 0.0  ;;  %v3453_v54 = vsel %vm687_vm2, %v10553_v51, 0.0  ;;  %v3454_v38 = vsel %vm687_vm2, %v10556_v19, 0.0 }
 0x392   :  { %v3393_v3 = vadd.f32 %v3392_v49, %v3391_v57  ;;  %v3424_v34 = vadd.f32 %v3423_v15, %v3422_v28  ;;  %v3455_v21 = vadd.f32 %v3454_v38, %v3453_v54  ;;  %v3361_v33 = vsel %vm687_vm2, %v12783_v52, 0.0 }
 0x393   :  { %v3360_v47 = vadd.f32 %v3359_v42, %v3358_v14  ;;  %v3394_v13 = vsel %vm687_vm2, %v12784_v55, 0.0  ;;  %v3425_v5 = vsel %vm687_vm2, %v10511_v30, 0.0  ;;  %v3456_v18 = vsel %vm687_vm2, %v10559_v37, 0.0  ;;  %v12785_v14 = vld [vmem:[#allocation91_spill] sm:$0xff]  ;;  %v12786_v42 = vld [vmem:[#allocation9_spill] sm:$0xff] }
 0x394   :  { %v3395_v39 = vadd.f32 %v3394_v13, %v3393_v3  ;;  %v3426_v11 = vadd.f32 %v3425_v5, %v3424_v34  ;;  %v3457_v19 = vadd.f32 %v3456_v18, %v3455_v21  ;;  %v3363_v57 = vsel %vm687_vm2, %v12785_v14, 0.0  ;;  %v12788_v18 = vld [vmem:[#allocation68_spill] sm:$0xff] }
 0x395   :  { %v3362_v51 = vadd.f32 %v3361_v33, %v3360_v47  ;;  %v3396_v28 = vsel %vm687_vm2, %v12786_v42, 0.0  ;;  %v3427_v49 = vsel %vm687_vm2, %v10514_v62, 0.0  ;;  %v3458_v15 = vsel %vm687_vm2, %v10562_v45, 0.0  ;;  %v12787_v47 = vld [vmem:[#allocation92_spill] sm:$0xff] }
 0x396   :  { %v3397_v38 = vadd.f32 %v3396_v28, %v3395_v39  ;;  %v3428_v30 = vadd.f32 %v3427_v49, %v3426_v11  ;;  %v3459_v37 = vadd.f32 %v3458_v15, %v3457_v19  ;;  %v3365_v3 = vsel %vm687_vm2, %v12787_v47, 0.0  ;;  %v12790_v19 = vld [vmem:[#allocation102_spill] sm:$0xff] }
 0x397   :  { %v3364_v54 = vadd.f32 %v3363_v57, %v3362_v51  ;;  %v3398_v34 = vsel %vm687_vm2, %v12788_v18, 0.0  ;;  %v3429_v21 = vsel %vm687_vm2, %v10519_v25, 0.0  ;;  %v3460_v33 = vsel %vm687_vm2, %v10569_v58, 0.0  ;;  %v12789_v51 = vld [vmem:[#allocation93_spill] sm:$0xff] }
 0x398   :  { %v3399_v5 = vadd.f32 %v3398_v34, %v3397_v38  ;;  %v3430_v62 = vadd.f32 %v3429_v21, %v3428_v30  ;;  %v3461_v45 = vadd.f32 %v3460_v33, %v3459_v37  ;;  %v3367_v39 = vsel %vm687_vm2, %v12789_v51, 0.0  ;;  %v12792_v37 = vld [vmem:[#allocation178_spill] sm:$0xff] }
 0x399   :  { %v3366_v13 = vadd.f32 %v3365_v3, %v3364_v54  ;;  %v3400_v11 = vsel %vm687_vm2, %v12790_v19, 0.0  ;;  %v3431_v57 = vsel %vm687_vm2, %v10522_v10, 0.0  ;;  %v3462_v28 = vsel %vm687_vm2, %v10572_v40, 0.0  ;;  %v12791_v54 = vld [vmem:[#allocation94_spill] sm:$0xff] }
 0x39a   :  { %v3401_v15 = vadd.f32 %v3400_v11, %v3399_v5  ;;  %v3432_v25 = vadd.f32 %v3431_v57, %v3430_v62  ;;  %v3463_v58 = vadd.f32 %v3462_v28, %v3461_v45  ;;  %v3369_v30 = vsel %vm687_vm2, %v12791_v54, 0.0  ;;  %v12794_v45 = vld [vmem:[#allocation13_spill] sm:$0xff] }
 0x39b   :  { %v3368_v49 = vadd.f32 %v3367_v39, %v3366_v13  ;;  %v3402_v38 = vsel %vm687_vm2, %v12792_v37, 0.0  ;;  %v3433_v3 = vsel %vm687_vm2, %v10525_v53, 0.0  ;;  %v3464_v34 = vsel %vm687_vm2, %v10583_v50, 0.0  ;;  %v12793_v13 = vld [vmem:[#allocation95_spill] sm:$0xff] }
 0x39c   :  { %v3403_v33 = vadd.f32 %v3402_v38, %v3401_v15  ;;  %v3434_v10 = vadd.f32 %v3433_v3, %v3432_v25  ;;  %v3465_v40 = vadd.f32 %v3464_v34, %v3463_v58  ;;  %v3371_v62 = vsel %vm687_vm2, %v12793_v13, 0.0  ;;  %v12796_v58 = vld [vmem:[#allocation39_spill] sm:$0xff] }
 0x39d   :  { %v3370_v21 = vadd.f32 %v3369_v30, %v3368_v49  ;;  %v3404_v5 = vsel %vm687_vm2, %v12794_v45, 0.0  ;;  %v3435_v39 = vsel %vm687_vm2, %v10528_v8, 0.0  ;;  %v3466_v11 = vsel %vm687_vm2, %v10591_v17, 0.0 }
 0x39e   :  { %v3405_v28 = vadd.f32 %v3404_v5, %v3403_v33  ;;  %v3436_v53 = vadd.f32 %v3435_v39, %v3434_v10  ;;  %v3467_v50 = vadd.f32 %v3466_v11, %v3465_v40  ;;  %v10671_v25 = vadd.f32 %v10588_v32, %v10483_v23  ;;  %v12798_v40 = vld [vmem:[#allocation40_spill] sm:$0xff]  ;;  %v12799_v5 = vld [vmem:[#allocation23_spill] sm:$0xff] }
 0x39f   :  { %v3372_v57 = vadd.f32 %v3371_v62, %v3370_v21  ;;  %v3406_v49 = vsel %vm687_vm2, %v12796_v58, 0.0  ;;  %v3437_v15 = vsel %vm687_vm2, %v10537_v41, 0.0  ;;  %v3468_v30 = vsel %vm687_vm2, %v10600_v61, 0.0 }
 0x3a0   :  { %12795 = vst [vmem:[#allocation166_spill] sm:$0xff] %v10671_v25  ;;  %v3407_v3 = vadd.f32 %v3406_v49, %v3405_v28  ;;  %v3438_v34 = vadd.f32 %v3437_v15, %v3436_v53  ;;  %v3469_v21 = vadd.f32 %v3468_v30, %v3467_v50  ;;  %v10681_v10 = vadd.f32 %v10588_v32, %v10485_v60 }
 0x3a1   :  { %v3373_v38 = vrot.slane %v3372_v57, 4  ;;  %v3408_v23 = vsel %vm687_vm2, %v12798_v40, 0.0  ;;  %v3439_v33 = vsel %vm687_vm2, %v10540_v46, 0.0  ;;  %v3470_v62 = vsel %vm687_vm2, %v10603_v35, 0.0 }
 0x3a2   :  { %12797 = vst [vmem:[#allocation169_spill] sm:$0xff] %v10681_v10  ;;  %v3308_v39 = vadd.f32 %v12799_v5, %v10430_v26  ;;  %v3409_v11 = vadd.f32 %v3408_v23, %v3407_v3  ;;  %v3440_v28 = vadd.f32 %v3439_v33, %v3438_v34  ;;  %v3471_v53 = vadd.f32 %v3470_v62, %v3469_v21  ;;  %v12801_v34 = vld [vmem:[#allocation77_spill] sm:$0xff]  ;;  %v12802_v21 = vld [vmem:[#allocation55_spill] sm:$0xff] }
 0x3a3   :  { %v10693_v50 = vadd.f32 %v10588_v32, %v10472_v20  ;;  %v10697_v60 = vadd.f32 %v10588_v32, %v10487_v63  ;;  %v3441_v49 = vsel %vm687_vm2, %v10543_v1, 0.0  ;;  %v3472_v15 = vsel %vm687_vm2, %v10671_v25, 0.0 }
 0x3a4   :  { %v3374_v30 = vadd.f32 %v3373_v38, %v3372_v57  ;;  %v3410_v35 = vrot.slane %v3409_v11, 4  ;;  %v3442_v26 = vadd.f32 %v3441_v49, %v3440_v28  ;;  %v3473_v3 = vadd.f32 %v3472_v15, %v3471_v53 }
 0x3a5   :  { %12800 = vst [vmem:[#allocation170_spill] sm:$0xff] %v10697_v60  ;;  %v3309_v23 = vadd.f32 %v12802_v21, %v12801_v34  ;;  %v10707_v20 = vadd.f32 %v10588_v32, %v10489_v43  ;;  %v3443_v63 = vsel %vm687_vm2, %v10546_v16, 0.0  ;;  %v3474_v33 = vsel %vm687_vm2, %v10681_v10, 0.0 }
 0x3a6   :  { %v3444_v62 = vadd.f32 %v3443_v63, %v3442_v26  ;;  %v3475_v5 = vadd.f32 %v3474_v33, %v3473_v3  ;;  %v10714_v57 = vadd.f32 %v10588_v32, %v3308_v39  ;;  %v3445_v38 = vsel %vm687_vm2, %v10693_v50, 0.0 }
 0x3a7   :  { %12803 = vst [vmem:[#allocation171_spill] sm:$0xff] %v10707_v20  ;;  %v3476_v28 = vsel %vm687_vm2, %v10697_v60, 0.0  ;;  %v3375_v53 = vrot.slane %v3374_v30, 2  ;;  %v3411_v43 = vadd.f32 %v3410_v35, %v3409_v11  ;;  %v10721_v34 = vadd.f32 %v10588_v32, %v3309_v23 }
 0x3a8   :  { %12804 = vst [vmem:[#allocation172_spill] sm:$0xff] %v10714_v57  ;;  %v3446_v49 = vadd.f32 %v3445_v38, %v3444_v62  ;;  %v3477_v15 = vadd.f32 %v3476_v28, %v3475_v5  ;;  %v3478_v26 = vsel %vm687_vm2, %v10707_v20, 0.0  ;;  %v3480_v39 = vsel %vm687_vm2, %v10714_v57, 0.0 }
 0x3a9   :  { %12805 = vst [vmem:[#allocation71_spill] sm:$0xff] %v10721_v34  ;;  %v3376_v63 = vadd.f32 %v3375_v53, %v3374_v30  ;;  %v3412_v33 = vrot.slane %v3411_v43, 2  ;;  %v3482_v35 = vsel %vm687_vm2, %v10721_v34, 0.0 }
 0x3aa   :  { %v3447_v3 = vrot.slane %v3446_v49, 4  ;;  %v3479_v21 = vadd.f32 %v3478_v26, %v3477_v15 }
 0x3ab   :  { %v3377_v5 = vrot.slane %v3376_v63, 1  ;;  %v3413_v32 = vadd.f32 %v3412_v33, %v3411_v43  ;;  %v3579_v43 = vld [vmem:[%s11285_s9] sm:$0xff]  ;;  %s5732_s9 = smov 16  }
 0x3ac   :  { %v3448_v10 = vadd.f32 %v3447_v3, %v3446_v49  ;;  %v3481_v25 = vadd.f32 %v3480_v39, %v3479_v21 }
 0x3ad   :  { %v3378_v60 = vadd.f32 %v3377_v5, %v3376_v63  ;;  %v3414_v15 = vrot.slane %v3413_v32, 1 }
 0x3ae   :  { %v3449_v11 = vrot.slane %v3448_v10, 2  ;;  %v3483_v62 = vadd.f32 %v3482_v35, %v3481_v25 }
 0x3af   :  { %v3415_v30 = vadd.f32 %v3414_v15, %v3413_v32  ;;  %v12807_v15 = vld [vmem:[#allocation33_spill] sm:$0xff] }
 0x3b0   :  { %v3450_v23 = vadd.f32 %v3449_v11, %v3448_v10  ;;  %v3484_v38 = vrot.slane %v3483_v62, 4  ;;  %v12806_v10 = vmov 0.0  }
 0x3b2   :  { %v3451_v28 = vrot.slane %v3450_v23, 1  ;;  %v3485_v20 = vadd.f32 %v3484_v38, %v3483_v62 }
 0x3b4   :  { %v3452_v26 = vadd.f32 %v3451_v28, %v3450_v23  ;;  %v3486_v61 = vrot.slane %v3485_v20, 2  ;;  %v5730_v23 = vmov 1966171168  }
 0x3b5   :  { %v3668_v38 = vunpack.c.l.s4 %v5730_v23 }
 0x3b6   :  { %v3487_v57 = vadd.f32 %v3486_v61, %v3485_v20  ;;  %v3490_v49 = vadd.f32 %v3452_v26, %v3378_v60  ;;  %v4897_v61 = vld [vmem:[%s11284_s8] ss:$0 sm:$0xff]  ;;  %s5731_s8 = smov 8  }
 0x3b7   :  { %v3669_v28 = vunpack.c.0.s8 %v3668_v38  ;;  %v12816_v38 = vld [vmem:[#allocation154_spill] sm:$0xff] }
 0x3b8   :  { %v3488_v53 = vrot.slane %v3487_v57, 1  ;;  %v3492_v39 = vmul.f32 0.00390625, %v3490_v49 }
 0x3b9   :  { %v3672_v26 = vsub.s32 %v3669_v28, %v12807_v15  ;;  %v12817_v15 = vld [vmem:[#allocation155_spill] sm:$0xff] }
 0x3ba   :  { %v3489_v3 = vadd.f32 %v3488_v53, %v3487_v57 }
 0x3bc   :  { %v3491_v21 = vadd.f32 %v3489_v3, %v3415_v30 }
 0x3be   :  { %v3493_v34 = vmul.f32 0.00390625, %v3491_v21 }
 0x3c0   :  { %v3505_v25 = vsel %vm3504_vm5, %v3493_v34, %v3492_v39  ;;  %v4899_v34 = vld [vmem:[%s11286_s10] ss:$0 sm:$0xff]  ;;  %s5733_s10 = smov 24  }
 0x3c1   :  { %5041 = vmatmul.mubr.msk.f32.vlgmr.msra.gmra.mrb[16].mxu1 %vm687_vm2, %v3505_v25  ;;  %v12808_v39 = vld [vmem:[#allocation34_spill] sm:$0xff] }
 0x3c2   :  { %5045 = vmatprep.mubr.msk.f32.mxu1 %vm5729_vm4, %v12806_v10  ;;  %5044 = vmatpush3.msra.mxu1 %v3579_v43 }
 0x494   :  { %v3574_v60 = vpop.f32.mrb[16].mxu1 }
 0x495   :  { %v3575_v20 = vadd.f32 %v4897_v61, %v3574_v60  ;;  %v5042_v57 = vpop.f32.mrb[17].mxu1 }
 0x497   :  { %v3578_v63 = vmax.f32 %v3575_v20, 0.0 }
 0x499   :  { %5046 = vmatmul.mubr.msk.f32.vlgmr.msra.gmra.mrb[18].mxu1 %vm687_vm2, %v3578_v63 }
 0x56c   :  { %v3656_v33 = vpop.f32.mrb[18].mxu1 }
 0x56d   :  { %v3657_v35 = vadd.f32 %v4899_v34, %v3656_v33  ;;  %v5047_v11 = vpop.f32.mrb[19].mxu1  ;;  %v12811_v33 = vld [vmem:[#allocation29_spill] sm:$0xff] }
 0x56e   :  { %v12813_v11 = vld [vmem:[#allocation31_spill] sm:$0xff] }
 0x56f   :  { %v4901_v62 = vmul.f32 -1.442695, %v3657_v35  ;;  %v12812_v35 = vld [vmem:[#allocation15_spill] sm:$0xff] }
 0x571   :  { %5590 = vpow2.f32 %v4901_v62  ;;  %v12814_v62 = vld [vmem:[#allocation11_spill] sm:$0xff] }
 0x57b   :  { %v5591_v5 = vpop.eup %5590 }
 0x57c   :  { %v3663_v32 = vadd.f32 1.0, %v5591_v5 }
 0x57e   :  { %5592 = vrcp.f32 %v3663_v32  ;;  %v12815_v32 = vld [vmem:[#allocation153_spill] sm:$0xff] }
 0x588   :  { %v5593_v30 = vpop.eup %5592 }
 0x589   :  { %v3673_v53 = vrot.slane %v5593_v30, %v3672_v26  ;;  %v12818_v30 = vld [vmem:[#allocation156_spill] sm:$0xff] }
 0x58b   :  { %v3674_v49 = vcombine.high %v3673_v53, %v3673_v53  ;;  %v3681_v3 = vrot.slane %v3673_v53, %v3672_v26 }
 0x58d   :  { %v3688_v21 = vrot.slane %v3674_v49, %v3672_v26  ;;  %v10744_v25 = vrot.slane %v3681_v3, %v12808_v39  ;;  %v12819_v49 = vld [vmem:[#allocation157_spill] sm:$0xff] }
 0x58f   :  { %v10747_v10 = vrot.slane %v3688_v21, %v12808_v39  ;;  %v3699_v43 = vmul.f32 %v10744_v25, %v12747_v27  ;;  %v3700_v61 = vmul.f32 %v10744_v25, %v12748_v29  ;;  %v3701_v60 = vmul.f32 %v10744_v25, %v12755_v12 }
 0x590   :  { %v3702_v20 = vmul.f32 %v10744_v25, %v12759_v24  ;;  %v3703_v57 = vmul.f32 %v10744_v25, %v12762_v6  ;;  %v3704_v63 = vmul.f32 %v10744_v25, %v12768_v9  ;;  %v3705_v34 = vmul.f32 %v10744_v25, %v12772_v0 }
 0x591   :  { %v3706_v27 = vmul.f32 %v10744_v25, %v12775_v48  ;;  %v3707_v29 = vmul.f32 %v10744_v25, %v12779_v4  ;;  %v3708_v12 = vmul.f32 %v10744_v25, %v12781_v56  ;;  %v3709_v24 = vmul.f32 %v10744_v25, %v12783_v52  ;;  %3763 = vst.msk [vmem:[#allocation2 + $0x30] sm:$0xff] %vm687_vm2, %v3699_v43 }
 0x592   :  { %3764 = vst.msk [vmem:[#allocation2 + $0x50] sm:$0xff] %vm687_vm2, %v3700_v61  ;;  %3765 = vst.msk [vmem:[#allocation2 + $0x70] sm:$0xff] %vm687_vm2, %v3701_v60  ;;  %v3710_v6 = vmul.f32 %v10744_v25, %v12785_v14  ;;  %v3711_v9 = vmul.f32 %v10744_v25, %v12787_v47  ;;  %v3712_v0 = vmul.f32 %v10744_v25, %v12789_v51  ;;  %v12809_v51 = vld [vmem:[#allocation24_spill] sm:$0xff]  ;;  %v12820_v60 = vld [vmem:[#allocation158_spill] sm:$0xff] }
 0x593   :  { %v3713_v48 = vmul.f32 %v10744_v25, %v12791_v54  ;;  %3766 = vst.msk [vmem:[#allocation2 + $0x90] sm:$0xff] %vm687_vm2, %v3702_v20  ;;  %3767 = vst.msk [vmem:[#allocation2 + $0xb0] sm:$0xff] %vm687_vm2, %v3703_v57  ;;  %v3714_v52 = vmul.f32 %v10744_v25, %v12793_v13  ;;  %v3715_v4 = vmul.f32 %v10747_v10, %v12760_v44  ;;  %v12810_v13 = vld [vmem:[#allocation60_spill] sm:$0xff]  ;;  %v12821_v20 = vld [vmem:[#allocation159_spill] sm:$0xff] }
 0x594   :  { %3768 = vst.msk [vmem:[#allocation2 + $0xd0] sm:$0xff] %vm687_vm2, %v3704_v63  ;;  %3769 = vst.msk [vmem:[#allocation2 + $0xf0] sm:$0xff] %vm687_vm2, %v3705_v34  ;;  %v3716_v56 = vmul.f32 %v10747_v10, %v12761_v22  ;;  %v3717_v14 = vmul.f32 %v10747_v10, %v12763_v2  ;;  %v3718_v47 = vmul.f32 %v10747_v10, %v12769_v31  ;;  %v12822_v57 = vld [vmem:[#allocation160_spill] sm:$0xff]  ;;  %v12823_v63 = vld [vmem:[#allocation161_spill] sm:$0xff] }
 0x595   :  { %3770 = vst.msk [vmem:[#allocation2 + $0x110] sm:$0xff] %vm687_vm2, %v3706_v27  ;;  %3771 = vst.msk [vmem:[#allocation2 + $0x130] sm:$0xff] %vm687_vm2, %v3707_v29  ;;  %v3719_v44 = vmul.f32 %v10747_v10, %v12773_v36  ;;  %v3720_v22 = vmul.f32 %v10747_v10, %v12776_v59  ;;  %v3721_v2 = vmul.f32 %v10747_v10, %v12780_v7  ;;  %v12825_v27 = vld [vmem:[#allocation162_spill] sm:$0xff] }
 0x596   :  { %3772 = vst.msk [vmem:[#allocation2 + $0x150] sm:$0xff] %vm687_vm2, %v3708_v12  ;;  %3773 = vst.msk [vmem:[#allocation2 + $0x170] sm:$0xff] %vm687_vm2, %v3709_v24  ;;  %v3722_v31 = vmul.f32 %v10747_v10, %v12809_v51  ;;  %v3723_v36 = vmul.f32 %v10747_v10, %v12784_v55  ;;  %v3724_v59 = vmul.f32 %v10747_v10, %v12786_v42  ;;  %v12826_v12 = vld [vmem:[#allocation163_spill] sm:$0xff] }
 0x597   :  { %3774 = vst.msk [vmem:[#allocation2 + $0x190] sm:$0xff] %vm687_vm2, %v3710_v6  ;;  %3775 = vst.msk [vmem:[#allocation2 + $0x1b0] sm:$0xff] %vm687_vm2, %v3711_v9  ;;  %v3725_v7 = vmul.f32 %v10747_v10, %v12788_v18  ;;  %v3726_v54 = vmul.f32 %v10747_v10, %v12790_v19  ;;  %v3727_v55 = vmul.f32 %v10747_v10, %v12792_v37  ;;  %v3843_v6 = vld [vmem:[#allocation2 + $0x10] sm:$0xff]  ;;  %v12832_v51 = vld [vmem:[#allocation171_spill] sm:$0xff] }
 0x598   :  { %3776 = vst.msk [vmem:[#allocation2 + $0x1d0] sm:$0xff] %vm687_vm2, %v3712_v0  ;;  %3777 = vst.msk [vmem:[#allocation2 + $0x1f0] sm:$0xff] %vm687_vm2, %v3713_v48  ;;  %v3728_v42 = vmul.f32 %v10747_v10, %v12794_v45  ;;  %v3729_v18 = vmul.f32 %v10747_v10, %v12796_v58  ;;  %v3730_v19 = vmul.f32 %v10747_v10, %v12798_v40  ;;  %v12827_v48 = vld [vmem:[#allocation164_spill] sm:$0xff] }
 0x599   :  { %3778 = vst.msk [vmem:[#allocation2 + $0x210] sm:$0xff] %vm687_vm2, %v3714_v52  ;;  %3779 = vst.msk [vmem:[#allocation2 + $0x270] sm:$0xff] %vm687_vm2, %v3715_v4  ;;  %v3731_v37 = vmul.f32 %v10744_v25, %v12810_v13  ;;  %v3732_v45 = vmul.f32 %v10744_v25, %v12811_v33  ;;  %v3733_v58 = vmul.f32 %v10744_v25, %v12812_v35  ;;  %v10906_v9 = vld [vmem:[#allocation2 + $0x50] sm:$0xff]  ;;  %v12828_v4 = vld [vmem:[#allocation165_spill] sm:$0xff] }
 0x59a   :  { %3780 = vst.msk [vmem:[#allocation2 + $0x290] sm:$0xff] %vm687_vm2, %v3716_v56  ;;  %3781 = vst.msk [vmem:[#allocation2 + $0x2b0] sm:$0xff] %vm687_vm2, %v3717_v14  ;;  %v3734_v40 = vmul.f32 %v10744_v25, %v12813_v11  ;;  %v3735_v5 = vmul.f32 %v10744_v25, %v12814_v62  ;;  %v3736_v23 = vmul.f32 %v10744_v25, %v12815_v32  ;;  %v12829_v14 = vld [vmem:[#allocation166_spill] sm:$0xff]  ;;  %v3891_v32 = vld [vmem:[#allocation2 + $0x30] sm:$0xff] }
 0x59b   :  { %3782 = vst.msk [vmem:[#allocation2 + $0x2d0] sm:$0xff] %vm687_vm2, %v3718_v47  ;;  %3783 = vst.msk [vmem:[#allocation2 + $0x2f0] sm:$0xff] %vm687_vm2, %v3719_v44  ;;  %v3737_v28 = vmul.f32 %v10744_v25, %v12816_v38  ;;  %v3738_v26 = vmul.f32 %v10744_v25, %v12817_v15  ;;  %v3739_v53 = vmul.f32 %v10744_v25, %v12818_v30  ;;  %v12830_v44 = vld [vmem:[#allocation169_spill] sm:$0xff]  ;;  %v3894_v15 = vld [vmem:[#allocation2 + $0xf0] sm:$0xff] }
 0x59c   :  { %3784 = vst.msk [vmem:[#allocation2 + $0x310] sm:$0xff] %vm687_vm2, %v3720_v22  ;;  %3785 = vst.msk [vmem:[#allocation2 + $0x330] sm:$0xff] %vm687_vm2, %v3721_v2  ;;  %v3740_v3 = vmul.f32 %v10744_v25, %v12819_v49  ;;  %v3741_v21 = vmul.f32 %v10744_v25, %v10528_v8  ;;  %v3742_v39 = vmul.f32 %v10744_v25, %v10537_v41  ;;  %v12831_v22 = vld [vmem:[#allocation170_spill] sm:$0xff] }
 0x59d   :  { %3786 = vst.msk [vmem:[#allocation2 + $0x350] sm:$0xff] %vm687_vm2, %v3722_v31  ;;  %3787 = vst.msk [vmem:[#allocation2 + $0x370] sm:$0xff] %vm687_vm2, %v3723_v36  ;;  %v3743_v43 = vmul.f32 %v10744_v25, %v10540_v46  ;;  %v3744_v61 = vmul.f32 %v10744_v25, %v10543_v1  ;;  %v3745_v8 = vmul.f32 %v10744_v25, %v10546_v16  ;;  %v12833_v36 = vld [vmem:[#allocation172_spill] sm:$0xff] }
 0x59e   :  { %3788 = vst.msk [vmem:[#allocation2 + $0x390] sm:$0xff] %vm687_vm2, %v3724_v59  ;;  %3789 = vst.msk [vmem:[#allocation2 + $0x3b0] sm:$0xff] %vm687_vm2, %v3725_v7  ;;  %v3746_v41 = vmul.f32 %v10744_v25, %v10693_v50  ;;  %v3747_v46 = vmul.f32 %v10747_v10, %v12820_v60  ;;  %v3748_v1 = vmul.f32 %v10747_v10, %v12821_v20  ;;  %v12824_v25 = vld [vmem:[#allocation53_spill] sm:$0xff]  ;;  %v3859_v7 = vld [vmem:[#allocation2 + $0x1] sm:$0xff] }
 0x59f   :  { %3790 = vst.msk [vmem:[#allocation2 + $0x3d0] sm:$0xff] %vm687_vm2, %v3726_v54  ;;  %3791 = vst.msk [vmem:[#allocation2 + $0x3f0] sm:$0xff] %vm687_vm2, %v3727_v55  ;;  %v3749_v16 = vmul.f32 %v10747_v10, %v12822_v57  ;;  %v3750_v50 = vmul.f32 %v10747_v10, %v12823_v63  ;;  %v3751_v34 = vmul.f32 %v10747_v10, %v12824_v25  ;;  %v12834_v54 = vld [vmem:[#allocation71_spill] sm:$0xff]  ;;  %v10982_v25 = vld [vmem:[#allocation2 + $0x150] sm:$0xff] }
 0x5a0   :  { %3792 = vst.msk [vmem:[#allocation2 + $0x410] sm:$0xff] %vm687_vm2, %v3728_v42  ;;  %3793 = vst.msk [vmem:[#allocation2 + $0x430] sm:$0xff] %vm687_vm2, %v3729_v18  ;;  %v3752_v29 = vmul.f32 %v10747_v10, %v12825_v27  ;;  %v3753_v24 = vmul.f32 %v10747_v10, %v12826_v12  ;;  %v3754_v0 = vmul.f32 %v10747_v10, %v10591_v17  ;;  %v5452_v63 = vld [vmem:[%s11287_s11 + $0x8] sm:$0xff]  }
 0x5a1   :  { %3794 = vst.msk [vmem:[#allocation2 + $0x450] sm:$0xff] %vm687_vm2, %v3730_v19  ;;  %3795 = vst.msk [vmem:[#allocation2 + $0x21] sm:$0xff] %vm687_vm2, %v3731_v37  ;;  %v3755_v52 = vmul.f32 %v10747_v10, %v12827_v48  ;;  %v3756_v56 = vmul.f32 %v10747_v10, %v12828_v4  ;;  %v3757_v47 = vmul.f32 %v10747_v10, %v12829_v14  ;;  %v3846_v19 = vld [vmem:[#allocation2 + $0xd0] sm:$0xff]  ;;  %v5454_v48 = vld [vmem:[%s11287_s11 + $0x18] sm:$0xff]  }
 0x5a2   :  { %3796 = vst.msk [vmem:[#allocation2 + $0x41] sm:$0xff] %vm687_vm2, %v3732_v45  ;;  %3797 = vst.msk [vmem:[#allocation2 + $0x61] sm:$0xff] %vm687_vm2, %v3733_v58  ;;  %v3758_v17 = vmul.f32 %v10747_v10, %v12830_v44  ;;  %v3759_v2 = vmul.f32 %v10747_v10, %v12831_v22  ;;  %v3760_v31 = vmul.f32 %v10747_v10, %v12832_v51 }
 0x5a3   :  { %3798 = vst.msk [vmem:[#allocation2 + $0x81] sm:$0xff] %vm687_vm2, %v3734_v40  ;;  %3799 = vst.msk [vmem:[#allocation2 + $0xa1] sm:$0xff] %vm687_vm2, %v3735_v5  ;;  %v3761_v59 = vmul.f32 %v10747_v10, %v12833_v36  ;;  %v3762_v55 = vmul.f32 %v10747_v10, %v12834_v54  ;;  %v5096_v42 = vpack.i.bf16 %v10906_v9, %v3843_v6  ;;  %v3845_v10 = vld [vmem:[#allocation2 + $0x90] sm:$0xff] }
 0x5a4   :  { %3800 = vst.msk [vmem:[#allocation2 + $0xc1] sm:$0xff] %vm687_vm2, %v3736_v23  ;;  %3801 = vst.msk [vmem:[#allocation2 + $0xe1] sm:$0xff] %vm687_vm2, %v3737_v28  ;;  %v5101_v45 = vpack.i.bf16 %v3846_v19, %v3845_v10  ;;  %v3892_v23 = vld [vmem:[#allocation2 + $0x70] sm:$0xff]  ;;  %v5156_v57 = vpack.i.bf16 %v3845_v10, %v10906_v9 }
 0x5a5   :  { %3802 = vst.msk [vmem:[#allocation2 + $0x101] sm:$0xff] %vm687_vm2, %v3738_v26  ;;  %3803 = vst.msk [vmem:[#allocation2 + $0x121] sm:$0xff] %vm687_vm2, %v3739_v53  ;;  %5097 = vrot.lane.b32.xlu0 %v5096_v42, %s5731_s8  ;;  %v3893_v28 = vld [vmem:[#allocation2 + $0xb0] sm:$0xff]  ;;  %v5126_v26 = vpack.i.bf16 %v3892_v23, %v3891_v32 }
 0x5a6   :  { %3804 = vst.msk [vmem:[#allocation2 + $0x141] sm:$0xff] %vm687_vm2, %v3740_v3  ;;  %3805 = vst.msk [vmem:[#allocation2 + $0x161] sm:$0xff] %vm687_vm2, %v3741_v21  ;;  %v5131_v49 = vpack.i.bf16 %v3894_v15, %v3893_v28  ;;  %v3850_v6 = vld [vmem:[#allocation2 + $0x1d0] sm:$0xff] }
 0x5a7   :  { %3806 = vst.msk [vmem:[#allocation2 + $0x181] sm:$0xff] %vm687_vm2, %v3742_v39  ;;  %3807 = vst.msk [vmem:[#allocation2 + $0x1a1] sm:$0xff] %vm687_vm2, %v3743_v43  ;;  %v3895_v36 = vld [vmem:[#allocation2 + $0x130] sm:$0xff] }
 0x5a8   :  { %3808 = vst.msk [vmem:[#allocation2 + $0x1c1] sm:$0xff] %vm687_vm2, %v3744_v61  ;;  %3809 = vst.msk [vmem:[#allocation2 + $0x1e1] sm:$0xff] %vm687_vm2, %v3745_v8  ;;  %v3875_v35 = vld [vmem:[#allocation2 + $0x20] sm:$0xff]  ;;  %v3898_v42 = vld [vmem:[#allocation2 + $0x1f0] sm:$0xff] }
 0x5a9   :  { %3810 = vst.msk [vmem:[#allocation2 + $0x201] sm:$0xff] %vm687_vm2, %v3746_v41  ;;  %3811 = vst.msk [vmem:[#allocation2 + $0x261] sm:$0xff] %vm687_vm2, %v3747_v46  ;;  %v10943_v18 = vld [vmem:[#allocation2 + $0x41] sm:$0xff]  ;;  %5102 = vrot.lane.b32.xlu0 %v5101_v45, %s5731_s8  ;;  %v3946_v23 = vld [vmem:[#allocation2 + $0x210] sm:$0xff] }
 0x5aa   :  { %3812 = vst.msk [vmem:[#allocation2 + $0x281] sm:$0xff] %vm687_vm2, %v3748_v1  ;;  %3813 = vst.msk [vmem:[#allocation2 + $0x2a1] sm:$0xff] %vm687_vm2, %v3749_v16  ;;  %v5106_v13 = vpack.i.bf16 %v10943_v18, %v3859_v7  ;;  %v3861_v37 = vld [vmem:[#allocation2 + $0x81] sm:$0xff]  ;;  %v3942_v1 = vld [vmem:[#allocation2 + $0x110] sm:$0xff]  ;;  %v5241_v28 = vpack.i.bf16 %v3946_v23, %v3850_v6 }
 0x5ab   :  { %3814 = vst.msk [vmem:[#allocation2 + $0x2c1] sm:$0xff] %vm687_vm2, %v3750_v50  ;;  %3815 = vst.msk [vmem:[#allocation2 + $0x2e1] sm:$0xff] %vm687_vm2, %v3751_v34  ;;  %v10948_v33 = vld [vmem:[#allocation2 + $0xc1] sm:$0xff]  ;;  %v5161_v50 = vpack.i.bf16 %v3942_v1, %v3846_v19  ;;  %v5166_v34 = vpack.i.bf16 %v3861_v37, %v10943_v18  ;;  %v5171_v12 = vpack.i.bf16 %v10982_v25, %v3942_v1  ;;  %v3851_v15 = vld [vmem:[#allocation2 + $0x250] sm:$0xff] }
 0x5ac   :  { %3816 = vst.msk [vmem:[#allocation2 + $0x301] sm:$0xff] %vm687_vm2, %v3752_v29  ;;  %3817 = vst.msk [vmem:[#allocation2 + $0x321] sm:$0xff] %vm687_vm2, %v3753_v24  ;;  %5107 = vrot.lane.b32.xlu1 %v5106_v13, %s5732_s9  ;;  %v3876_v58 = vld [vmem:[#allocation2 + $0x60] sm:$0xff]  ;;  %v5111_v11 = vpack.i.bf16 %v10948_v33, %v3861_v37  ;;  %v5453_v29 = vld [vmem:[%s11287_s11 + $0x10] sm:$0xff]  }
 0x5ad   :  { %3818 = vst.msk [vmem:[#allocation2 + $0x341] sm:$0xff] %vm687_vm2, %v3754_v0  ;;  %3819 = vst.msk [vmem:[#allocation2 + $0x361] sm:$0xff] %vm687_vm2, %v3755_v52  ;;  %v3877_v40 = vld [vmem:[#allocation2 + $0xa0] sm:$0xff]  ;;  %v5116_v5 = vpack.i.bf16 %v3876_v58, %v3875_v35  ;;  %v3849_v24 = vld [vmem:[#allocation2 + $0x190] sm:$0xff] }
 0x5ae   :  { %3820 = vst.msk [vmem:[#allocation2 + $0x381] sm:$0xff] %vm687_vm2, %v3756_v56  ;;  %3821 = vst.msk [vmem:[#allocation2 + $0x3a1] sm:$0xff] %vm687_vm2, %v3757_v47  ;;  %v3878_v62 = vld [vmem:[#allocation2 + $0xe0] sm:$0xff]  ;;  %v5181_v52 = vpack.i.bf16 %v3850_v6, %v3849_v24 }
 0x5af   :  { %3822 = vst.msk [vmem:[#allocation2 + $0x3c1] sm:$0xff] %vm687_vm2, %v3758_v17  ;;  %3823 = vst.msk [vmem:[#allocation2 + $0x3e1] sm:$0xff] %vm687_vm2, %v3759_v2  ;;  %v5121_v38 = vpack.i.bf16 %v3878_v62, %v3877_v40  ;;  %5117 = vrot.lane.b32.xlu0 %v5116_v5, %s5733_s10  ;;  %v3907_v30 = vld [vmem:[#allocation2 + $0x21] sm:$0xff]  ;;  %v5455_v17 = vld [vmem:[%s11287_s11 + $0x20] ss:$0 sps:$4 sm:$0xff]  }
 0x5b0   :  { %3824 = vst.msk [vmem:[#allocation2 + $0x401] sm:$0xff] %vm687_vm2, %v3760_v31  ;;  %3825 = vst.msk [vmem:[#allocation2 + $0x421] sm:$0xff] %vm687_vm2, %v3761_v59  ;;  %5112 = vrot.lane.b32.xlu1 %v5111_v11, %s5732_s9  ;;  %v3908_v53 = vld [vmem:[#allocation2 + $0x61] sm:$0xff]  ;;  %v3896_v59 = vld [vmem:[#allocation2 + $0x170] sm:$0xff]  ;;  %v4696_v7 = vsel %vm4694_vm6, %v5455_v17, 0 }
 0x5b1   :  { %3826 = vst.msk [vmem:[#allocation2 + $0x441] sm:$0xff] %vm687_vm2, %v3762_v55  ;;  %v3909_v3 = vld [vmem:[#allocation2 + $0xa1] sm:$0xff]  ;;  %v5136_v39 = vpack.i.bf16 %v3908_v53, %v3907_v30  ;;  %v3897_v55 = vld [vmem:[#allocation2 + $0x1b0] sm:$0xff]  ;;  %v5206_v18 = vpack.i.bf16 %v3896_v59, %v3895_v36 }
 0x5b2   :  { %v3910_v21 = vld [vmem:[#allocation2 + $0xe1] sm:$0xff]  ;;  %v5211_v13 = vpack.i.bf16 %v3898_v42, %v3897_v55  ;;  %v3856_v42 = vld [vmem:[#allocation2 + $0x390] sm:$0xff] }
 0x5b3   :  { %5127 = vrot.lane.b32.xlu0 %v5126_v26, %s5734_s23  ;;  %v10958_v43 = vld [vmem:[#allocation2 + $0x40] sm:$0xff]  ;;  %v5141_v8 = vpack.i.bf16 %v3910_v21, %v3909_v3  ;;  %v3852_v26 = vld [vmem:[#allocation2 + $0x290] sm:$0xff] }
 0x5b4   :  { %5122 = vrot.lane.b32.xlu1 %v5121_v38, %s5733_s10  ;;  %v10960_v61 = vld [vmem:[#allocation2 + $0x80] sm:$0xff]  ;;  %v5236_v38 = vpack.i.bf16 %v3849_v24, %v10982_v25  ;;  %v3853_v3 = vld [vmem:[#allocation2 + $0x2d0] sm:$0xff] }
 0x5b5   :  { %v10963_v41 = vld [vmem:[#allocation2 + $0xc0] sm:$0xff]  ;;  %v5146_v46 = vpack.i.bf16 %v10960_v61, %v10958_v43  ;;  %v3854_v21 = vld [vmem:[#allocation2 + $0x310] sm:$0xff] }
 0x5b6   :  { %v10965_v60 = vld [vmem:[#allocation2 + $0x100] sm:$0xff]  ;;  %v3900_v24 = vld [vmem:[#allocation2 + $0x2b0] sm:$0xff] }
 0x5b7   :  { %5137 = vrot.lane.b32.xlu0 %v5136_v39, %s5735_s2  ;;  %v5151_v20 = vpack.i.bf16 %v10965_v60, %v10963_v41  ;;  %v5451_v16 = vld [vmem:[%s11287_s11] sm:$0xff]  }
 0x5b8   :  { %5132 = vrot.lane.b32.xlu1 %v5131_v49, %s5734_s23  ;;  %5048 = vmatprep.subr.bf16.mxu1 %v5451_v16  ;;  %v3958_v27 = vld [vmem:[#allocation2 + $0x101] sm:$0xff]  ;;  %v5256_v49 = vpack.i.bf16 %v3852_v26, %v3851_v15 }
 0x5b9   :  { %5049 = vmatpush3.bf16.msra.mxu1 %v5451_v16  ;;  %v5176_v9 = vpack.i.bf16 %v3958_v27, %v10948_v33  ;;  %v3864_v0 = vld [vmem:[#allocation2 + $0x141] sm:$0xff] }
 0x5ba   :  { %5050 = vmatprep.subr.bf16.mxu1 %v5452_v63  ;;  %v3865_v4 = vld [vmem:[#allocation2 + $0x181] sm:$0xff]  ;;  %v5186_v14 = vpack.i.bf16 %v3864_v0, %v3958_v27 }
 0x5bb   :  { %5147 = vrot.lane.b32.xlu0 %v5146_v46, %s5736_s24  ;;  %v10997_v56 = vld [vmem:[#allocation2 + $0x1c1] sm:$0xff]  ;;  %v5246_v30 = vpack.i.bf16 %v3865_v4, %v3864_v0  ;;  %v3902_v0 = vld [vmem:[#allocation2 + $0x330] sm:$0xff] }
 0x5bc   :  { %5142 = vrot.lane.b32.xlu1 %v5141_v8, %s5735_s2  ;;  %v3879_v47 = vld [vmem:[#allocation2 + $0x120] sm:$0xff]  ;;  %v5191_v22 = vpack.i.bf16 %v10997_v56, %v3865_v4 }
 0x5bd   :  { %5051 = vmatpush3.bf16.msra.mxu1 %v5452_v63  ;;  %v3880_v44 = vld [vmem:[#allocation2 + $0x160] sm:$0xff] }
 0x5be   :  { %5052 = vmatprep.subr.bf16.mxu1 %v5453_v29  ;;  %v3881_v2 = vld [vmem:[#allocation2 + $0x1a0] sm:$0xff]  ;;  %v5196_v31 = vpack.i.bf16 %v3880_v44, %v3879_v47 }
 0x5bf   :  { %5157 = vrot.lane.b32.xlu0 %v5156_v57, %s5737_s3  ;;  %v3882_v51 = vld [vmem:[#allocation2 + $0x1e0] sm:$0xff] }
 0x5c0   :  { %5152 = vrot.lane.b32.xlu1 %v5151_v20, %s5736_s24  ;;  %v5201_v54 = vpack.i.bf16 %v3882_v51, %v3881_v2  ;;  %v3911_v10 = vld [vmem:[#allocation2 + $0x121] sm:$0xff]  ;;  %v5261_v20 = vpack.i.bf16 %v3854_v21, %v3853_v3 }
 0x5c1   :  { %5053 = vmatpush3.bf16.msra.mxu1 %v5453_v29  ;;  %v3912_v19 = vld [vmem:[#allocation2 + $0x161] sm:$0xff] }
 0x5c2   :  { %5054 = vmatprep.subr.bf16.mxu1 %v5454_v48  ;;  %v3913_v37 = vld [vmem:[#allocation2 + $0x1a1] sm:$0xff]  ;;  %v5216_v45 = vpack.i.bf16 %v3912_v19, %v3911_v10 }
 0x5c3   :  { %5167 = vrot.lane.b32.xlu0 %v5166_v34, %s5738_s29  ;;  %v3914_v33 = vld [vmem:[#allocation2 + $0x1e1] sm:$0xff] }
 0x5c4   :  { %5162 = vrot.lane.b32.xlu1 %v5161_v50, %s5737_s3  ;;  %v11010_v35 = vld [vmem:[#allocation2 + $0x140] sm:$0xff]  ;;  %v5221_v11 = vpack.i.bf16 %v3914_v33, %v3913_v37  ;;  %v3858_v37 = vld [vmem:[#allocation2 + $0x410] sm:$0xff] }
 0x5c5   :  { %5055 = vmatpush3.bf16.msra.mxu1 %v5454_v48  ;;  %v11012_v58 = vld [vmem:[#allocation2 + $0x180] sm:$0xff] }
 0x5c6   :  { %5082 = vmatprep.subr.msk.bf16.mxu1 %vm4694_vm6, %v5455_v17  ;;  %v11015_v40 = vld [vmem:[#allocation2 + $0x1c0] sm:$0xff]  ;;  %v5226_v5 = vpack.i.bf16 %v11012_v58, %v11010_v35 }
 0x5c7   :  { %5177 = vrot.lane.b32.xlu0 %v5176_v9, %s5738_s29  ;;  %v3930_v62 = vld [vmem:[#allocation2 + $0x200] sm:$0xff]  ;;  %v3901_v9 = vld [vmem:[#allocation2 + $0x2f0] sm:$0xff] }
 0x5c8   :  { %5172 = vrot.lane.b32.xlu1 %v5171_v12, %s5731_s8  ;;  %v5231_v32 = vpack.i.bf16 %v3930_v62, %v11015_v40  ;;  %v3962_v53 = vld [vmem:[#allocation2 + $0x201] sm:$0xff]  ;;  %v3899_v12 = vld [vmem:[#allocation2 + $0x270] sm:$0xff] }
 0x5c9   :  { %5057 = vmatpush3.bf16.msra.mxu1 %v4696_v7  ;;  %v5251_v39 = vpack.i.bf16 %v3962_v53, %v10997_v56  ;;  %v3867_v8 = vld [vmem:[#allocation2 + $0x241] sm:$0xff]  ;;  %v5286_v48 = vpack.i.bf16 %v3900_v24, %v3899_v12  ;;  %v5291_v56 = vpack.i.bf16 %v3902_v0, %v3901_v9  ;;  %v3950_v7 = vld [vmem:[#allocation2 + $0x350] sm:$0xff] }
 0x5ca   :  { %v3868_v46 = vld [vmem:[#allocation2 + $0x281] sm:$0xff]  ;;  %v5321_v55 = vpack.i.bf16 %v3950_v7, %v3854_v21  ;;  %v5331_v19 = vpack.i.bf16 %v3856_v42, %v3950_v7  ;;  %v3903_v53 = vld [vmem:[#allocation2 + $0x370] sm:$0xff] }
 0x5cb   :  { %5187 = vrot.lane.b32.xlu0 %v5186_v14, %s5732_s9  ;;  %v3869_v1 = vld [vmem:[#allocation2 + $0x2c1] sm:$0xff]  ;;  %v5266_v16 = vpack.i.bf16 %v3868_v46, %v3867_v8  ;;  %v3905_v21 = vld [vmem:[#allocation2 + $0x3f0] sm:$0xff] }
 0x5cc   :  { %5182 = vrot.lane.b32.xlu1 %v5181_v52, %s5731_s8  ;;  %v3870_v57 = vld [vmem:[#allocation2 + $0x301] sm:$0xff]  ;;  %v3954_v0 = vld [vmem:[#allocation2 + $0x450] sm:$0xff] }
 0x5cd   :  { %v3883_v63 = vld [vmem:[#allocation2 + $0x260] sm:$0xff]  ;;  %v5271_v25 = vpack.i.bf16 %v3870_v57, %v3869_v1 }
 0x5ce   :  { %v3884_v50 = vld [vmem:[#allocation2 + $0x2a0] sm:$0xff] }
 0x5cf   :  { %5197 = vrot.lane.b32.xlu0 %v5196_v31, %s5733_s10  ;;  %v3885_v34 = vld [vmem:[#allocation2 + $0x2e0] sm:$0xff]  ;;  %v5276_v29 = vpack.i.bf16 %v3884_v50, %v3883_v63 }
 0x5d0   :  { %5192 = vrot.lane.b32.xlu1 %v5191_v22, %s5732_s9  ;;  %v3886_v27 = vld [vmem:[#allocation2 + $0x320] sm:$0xff] }
 0x5d1   :  { %v5281_v6 = vpack.i.bf16 %v3886_v27, %v3885_v34  ;;  %v3915_v52 = vld [vmem:[#allocation2 + $0x261] sm:$0xff] }
 0x5d2   :  { %v3916_v4 = vld [vmem:[#allocation2 + $0x2a1] sm:$0xff] }
 0x5d3   :  { %5207 = vrot.lane.b32.xlu0 %v5206_v18, %s5734_s23  ;;  %v3917_v14 = vld [vmem:[#allocation2 + $0x2e1] sm:$0xff]  ;;  %v5296_v44 = vpack.i.bf16 %v3916_v4, %v3915_v52  ;;  %v5326_v18 = vpack.i.bf16 %v3869_v1, %v3868_v46 }
 0x5d4   :  { %5202 = vrot.lane.b32.xlu1 %v5201_v54, %s5733_s10  ;;  %v3918_v47 = vld [vmem:[#allocation2 + $0x321] sm:$0xff]  ;;  %v5316_v54 = vpack.i.bf16 %v3853_v3, %v3852_v26 }
 0x5d5   :  { %v11037_v17 = vld [vmem:[#allocation2 + $0x280] sm:$0xff]  ;;  %v5301_v2 = vpack.i.bf16 %v3918_v47, %v3917_v14 }
 0x5d6   :  { %v11039_v22 = vld [vmem:[#allocation2 + $0x2c0] sm:$0xff] }
 0x5d7   :  { %5217 = vrot.lane.b32.xlu0 %v5216_v45, %s5735_s2  ;;  %v11042_v51 = vld [vmem:[#allocation2 + $0x300] sm:$0xff]  ;;  %v5306_v36 = vpack.i.bf16 %v11039_v22, %v11037_v17 }
 0x5d8   :  { %5212 = vrot.lane.b32.xlu1 %v5211_v13, %s5734_s23  ;;  %v11044_v31 = vld [vmem:[#allocation2 + $0x340] sm:$0xff]  ;;  %v3857_v13 = vld [vmem:[#allocation2 + $0x3d0] sm:$0xff] }
 0x5d9   :  { %v5311_v59 = vpack.i.bf16 %v11044_v31, %v11042_v51  ;;  %v3966_v10 = vld [vmem:[#allocation2 + $0x341] sm:$0xff]  ;;  %v5396_v52 = vpack.i.bf16 %v3857_v13, %v3856_v42 }
 0x5da   :  { %v5336_v33 = vpack.i.bf16 %v3966_v10, %v3870_v57  ;;  %v3872_v45 = vld [vmem:[#allocation2 + $0x381] sm:$0xff] }
 0x5db   :  { %5227 = vrot.lane.b32.xlu0 %v5226_v5, %s5736_s24  ;;  %v3873_v62 = vld [vmem:[#allocation2 + $0x3c1] sm:$0xff] }
 0x5dc   :  { %5222 = vrot.lane.b32.xlu1 %v5221_v11, %s5735_s2  ;;  %v5341_v11 = vpack.i.bf16 %v3858_v37, %v3857_v13  ;;  %v3874_v5 = vld [vmem:[#allocation2 + $0x401] sm:$0xff] }
 0x5dd   :  { %v3887_v23 = vld [vmem:[#allocation2 + $0x360] sm:$0xff] }
 0x5de   :  { %v3889_v15 = vld [vmem:[#allocation2 + $0x3e0] sm:$0xff] }
 0x5df   :  { %5237 = vrot.lane.b32.xlu0 %v5236_v38, %s5737_s3  ;;  %v3888_v38 = vld [vmem:[#allocation2 + $0x3a0] sm:$0xff] }
 0x5e0   :  { %5232 = vrot.lane.b32.xlu1 %v5231_v32, %s5736_s24  ;;  %v5346_v32 = vpack.i.bf16 %v3872_v45, %v3966_v10  ;;  %v3890_v26 = vld [vmem:[#allocation2 + $0x420] sm:$0xff] }
 0x5e1   :  { %v5361_v3 = vpack.i.bf16 %v3890_v26, %v3889_v15  ;;  %v3919_v46 = vld [vmem:[#allocation2 + $0x361] sm:$0xff] }
 0x5e2   :  { %v3921_v57 = vld [vmem:[#allocation2 + $0x3e1] sm:$0xff] }
 0x5e3   :  { %5247 = vrot.lane.b32.xlu0 %v5246_v30, %s5738_s29  ;;  %v5356_v30 = vpack.i.bf16 %v3888_v38, %v3887_v23  ;;  %v11065_v50 = vld [vmem:[#allocation2 + $0x380] sm:$0xff] }
 0x5e4   :  { %5242 = vrot.lane.b32.xlu1 %v5241_v28, %s5737_s3  ;;  %v5351_v28 = vpack.i.bf16 %v3874_v5, %v3873_v62  ;;  %v11070_v27 = vld [vmem:[#allocation2 + $0x400] sm:$0xff] }
 0x5e5   :  { %v3970_v14 = vld [vmem:[#allocation2 + $0x441] sm:$0xff] }
 0x5e6   :  { %v3827_v42 = vld [vmem:[#allocation2] sm:$0xff] }
 0x5e7   :  { %5252 = vrot.lane.b32.xlu0 %v5251_v39, %s5738_s29  ;;  %v3906_v39 = vld [vmem:[#allocation2 + $0x430] sm:$0xff] }
 0x5e8   :  { %5257 = vrot.lane.b32.xlu1 %v5256_v49, %s5731_s8  ;;  %v3904_v49 = vld [vmem:[#allocation2 + $0x3b0] sm:$0xff]  ;;  %v5371_v1 = vpack.i.bf16 %v3906_v39, %v3905_v21 }
 0x5e9   :  { %v5366_v8 = vpack.i.bf16 %v3904_v49, %v3903_v53 }
 0x5eb   :  { %5267 = vrot.lane.b32.xlu0 %v5266_v16, %s5732_s9  ;;  %v3922_v16 = vld [vmem:[#allocation2 + $0x421] sm:$0xff] }
 0x5ec   :  { %5262 = vrot.lane.b32.xlu1 %v5261_v20, %s5731_s8  ;;  %v3920_v20 = vld [vmem:[#allocation2 + $0x3a1] sm:$0xff]  ;;  %v5381_v34 = vpack.i.bf16 %v3922_v16, %v3921_v57 }
 0x5ed   :  { %v5376_v63 = vpack.i.bf16 %v3920_v20, %v3919_v46 }
 0x5ef   :  { %5277 = vrot.lane.b32.xlu0 %v5276_v29, %s5733_s10  ;;  %v3938_v29 = vld [vmem:[#allocation2 + $0x440] sm:$0xff] }
 0x5f0   :  { %5272 = vrot.lane.b32.xlu1 %v5271_v25, %s5732_s9  ;;  %v11067_v25 = vld [vmem:[#allocation2 + $0x3c0] sm:$0xff]  ;;  %v5391_v9 = vpack.i.bf16 %v3938_v29, %v11070_v27 }
 0x5f1   :  { %v5386_v24 = vpack.i.bf16 %v11067_v25, %v11065_v50 }
 0x5f3   :  { %5287 = vrot.lane.b32.xlu0 %v5286_v48, %s5734_s23 }
 0x5f4   :  { %5282 = vrot.lane.b32.xlu1 %v5281_v6, %s5733_s10 }
 0x5f7   :  { %5297 = vrot.lane.b32.xlu0 %v5296_v44, %s5735_s2  ;;  %v5406_v44 = vpack.i.bf16 %v3873_v62, %v3872_v45 }
 0x5f8   :  { %5292 = vrot.lane.b32.xlu1 %v5291_v56, %s5734_s23  ;;  %v5401_v56 = vpack.i.bf16 %v3954_v0, %v3858_v37 }
 0x5fb   :  { %5307 = vrot.lane.b32.xlu0 %v5306_v36, %s5736_s24  ;;  %v5411_v36 = vpack.i.bf16 %v3970_v14, %v3874_v5 }
 0x5fc   :  { %5302 = vrot.lane.b32.xlu1 %v5301_v2, %s5735_s2 }
 0x5ff   :  { %5317 = vrot.lane.b32.xlu0 %v5316_v54, %s5737_s3 }
 0x600   :  { %5312 = vrot.lane.b32.xlu1 %v5311_v59, %s5736_s24 }
 0x603   :  { %5327 = vrot.lane.b32.xlu0 %v5326_v18, %s5738_s29 }
 0x604   :  { %5322 = vrot.lane.b32.xlu1 %v5321_v55, %s5737_s3 }
 0x607   :  { %5337 = vrot.lane.b32.xlu0 %v5336_v33, %s5738_s29 }
 0x608   :  { %5332 = vrot.lane.b32.xlu1 %v5331_v19, %s5731_s8 }
 0x60b   :  { %5347 = vrot.lane.b32.xlu0 %v5346_v32, %s5732_s9 }
 0x60c   :  { %5342 = vrot.lane.b32.xlu1 %v5341_v11, %s5731_s8 }
 0x60f   :  { %5357 = vrot.lane.b32.xlu0 %v5356_v30, %s5733_s10 }
 0x610   :  { %5352 = vrot.lane.b32.xlu1 %v5351_v28, %s5732_s9 }
 0x613   :  { %5367 = vrot.lane.b32.xlu0 %v5366_v8, %s5734_s23 }
 0x614   :  { %5362 = vrot.lane.b32.xlu1 %v5361_v3, %s5733_s10 }
 0x617   :  { %5377 = vrot.lane.b32.xlu0 %v5376_v63, %s5735_s2  ;;  %v5098_v12 = vpop.permute.xlu0 %5097 }
 0x618   :  { %5372 = vrot.lane.b32.xlu1 %v5371_v1, %s5734_s23  ;;  %v5100_v54 = vunpack.i.h.bf16 %v5098_v12  ;;  %v5099_v55 = vunpack.i.l.bf16 %v5098_v12 }
 0x61a   :  { %v4484_v45 = vsel %vm687_vm2, %v10958_v43, %v5100_v54  ;;  %v4483_v11 = vsel %vm687_vm2, %v3827_v42, %v5099_v55 }
 0x61b   :  { %5387 = vrot.lane.b32.xlu0 %v5386_v24, %s5736_s24  ;;  %v5103_v48 = vpop.permute.xlu0 %5102 }
 0x61c   :  { %5382 = vrot.lane.b32.xlu1 %v5381_v34, %s5735_s2  ;;  %v5105_v18 = vunpack.i.h.bf16 %v5103_v48  ;;  %v5104_v10 = vunpack.i.l.bf16 %v5103_v48 }
 0x61e   :  { %v5108_v6 = vpop.permute.xlu1 %5107  ;;  %v4486_v32 = vsel %vm687_vm2, %v10963_v41, %v5105_v18  ;;  %v4485_v23 = vsel %vm687_vm2, %v10960_v61, %v5104_v10 }
 0x61f   :  { %5397 = vrot.lane.b32.xlu0 %v5396_v52, %s5737_s3  ;;  %v5110_v13 = vunpack.i.h.bf16 %v5108_v6  ;;  %v5109_v37 = vunpack.i.l.bf16 %v5108_v6 }
 0x620   :  { %5392 = vrot.lane.b32.xlu1 %v5391_v9, %s5736_s24 }
 0x621   :  { %v5118_v47 = vpop.permute.xlu0 %5117  ;;  %v4500_v53 = vsel %vm4499_vm7, %v4483_v11, %v5109_v37  ;;  %v4501_v43 = vsel %vm4499_vm7, %v4484_v45, %v5110_v13 }
 0x622   :  { %v5113_v4 = vpop.permute.xlu1 %5112  ;;  %v5120_v38 = vunpack.i.h.bf16 %v5118_v47  ;;  %v5119_v28 = vunpack.i.l.bf16 %v5118_v47 }
 0x623   :  { %5407 = vrot.lane.b32.xlu0 %v5406_v44, %s5738_s29  ;;  %v5115_v62 = vunpack.i.h.bf16 %v5113_v4  ;;  %v5114_v5 = vunpack.i.l.bf16 %v5113_v4 }
 0x624   :  { %5402 = vrot.lane.b32.xlu1 %v5401_v56, %s5737_s3  ;;  %v4517_v39 = vsel %vm4516_vm8, %v4500_v53, %v5119_v28  ;;  %v4518_v8 = vsel %vm4516_vm8, %v4501_v43, %v5120_v38 }
 0x625   :  { %v5128_v59 = vpop.permute.xlu0 %5127  ;;  %v4502_v3 = vsel %vm4499_vm7, %v4485_v23, %v5114_v5  ;;  %v4503_v41 = vsel %vm4499_vm7, %v4486_v32, %v5115_v62 }
 0x626   :  { %v5123_v2 = vpop.permute.xlu1 %5122  ;;  %v5130_v21 = vunpack.i.h.bf16 %v5128_v59  ;;  %v5129_v61 = vunpack.i.l.bf16 %v5128_v59 }
 0x627   :  { %v5125_v26 = vunpack.i.h.bf16 %v5123_v2  ;;  %v5124_v30 = vunpack.i.l.bf16 %v5123_v2 }
 0x628   :  { %5412 = vrot.lane.b32.xlu1 %v5411_v36, %s5738_s29  ;;  %v4535_v0 = vsel %vm4533_vm9, %v4518_v8, %v5130_v21  ;;  %v4534_v48 = vsel %vm4533_vm9, %v4517_v39, %v5129_v61 }
 0x629   :  { %v5138_v19 = vpop.permute.xlu0 %5137  ;;  %v4519_v57 = vsel %vm4516_vm8, %v4502_v3, %v5124_v30  ;;  %v4520_v16 = vsel %vm4516_vm8, %v4503_v41, %v5125_v26 }
 0x62a   :  { %v11082_v7 = vpop.permute.xlu1 %5132  ;;  %v5140_v46 = vunpack.i.h.bf16 %v5138_v19  ;;  %v5139_v20 = vunpack.i.l.bf16 %v5138_v19 }
 0x62b   :  { %v5135_v29 = vunpack.i.h.bf16 %v11082_v7  ;;  %v5134_v12 = vunpack.i.l.bf16 %v11082_v7 }
 0x62c   :  { %v4551_v56 = vsel %vm4550_vm10, %v4534_v48, %v5139_v20  ;;  %v4552_v14 = vsel %vm4550_vm10, %v4535_v0, %v5140_v46 }
 0x62d   :  { %v5148_v15 = vpop.permute.xlu0 %5147  ;;  %v4536_v13 = vsel %vm4533_vm9, %v4519_v57, %v5134_v12  ;;  %v4537_v37 = vsel %vm4533_vm9, %v4520_v16, %v5135_v29 }
 0x62e   :  { %v11084_v33 = vpop.permute.xlu1 %5142  ;;  %v5150_v63 = vunpack.i.h.bf16 %v5148_v15  ;;  %v5149_v34 = vunpack.i.l.bf16 %v5148_v15 }
 0x62f   :  { %v5145_v52 = vunpack.i.h.bf16 %v11084_v33  ;;  %v5144_v4 = vunpack.i.l.bf16 %v11084_v33 }
 0x630   :  { %v4568_v36 = vsel %vm4567_vm11, %v4551_v56, %v5149_v34  ;;  %v4569_v59 = vsel %vm4567_vm11, %v4552_v14, %v5150_v63 }
 0x631   :  { %v5158_v1 = vpop.permute.xlu0 %5157  ;;  %v4553_v11 = vsel %vm4550_vm10, %v4536_v13, %v5144_v4  ;;  %v4554_v62 = vsel %vm4550_vm10, %v4537_v37, %v5145_v52 }
 0x632   :  { %v5153_v49 = vpop.permute.xlu1 %5152  ;;  %v5160_v6 = vunpack.i.h.bf16 %v5158_v1  ;;  %v5159_v9 = vunpack.i.l.bf16 %v5158_v1 }
 0x633   :  { %v5155_v47 = vunpack.i.h.bf16 %v5153_v49  ;;  %v5154_v44 = vunpack.i.l.bf16 %v5153_v49 }
 0x634   :  { %v4585_v18 = vsel %vm4584_vm12, %v4568_v36, %v5159_v9  ;;  %v4586_v10 = vsel %vm4584_vm12, %v4569_v59, %v5160_v6 }
 0x635   :  { %v5168_v2 = vpop.permute.xlu0 %5167  ;;  %v4570_v23 = vsel %vm4567_vm11, %v4553_v11, %v5154_v44  ;;  %v4571_v38 = vsel %vm4567_vm11, %v4554_v62, %v5155_v47 }
 0x636   :  { %v5163_v24 = vpop.permute.xlu1 %5162  ;;  %v5170_v7 = vunpack.i.h.bf16 %v5168_v2  ;;  %v5169_v54 = vunpack.i.l.bf16 %v5168_v2 }
 0x637   :  { %v5165_v55 = vunpack.i.h.bf16 %v5163_v24  ;;  %v5164_v42 = vunpack.i.l.bf16 %v5163_v24 }
 0x638   :  { %v4602_v33 = vsel %vm4601_vm13, %v4585_v18, %v5169_v54  ;;  %v4603_v45 = vsel %vm4601_vm13, %v4586_v10, %v5170_v7 }
 0x639   :  { %v4618_v5 = vpack.c.bf16 %v4603_v45, %v4602_v33  ;;  %v5178_v32 = vpop.permute.xlu0 %5177  ;;  %v4587_v26 = vsel %vm4584_vm12, %v4570_v23, %v5164_v42  ;;  %v4588_v30 = vsel %vm4584_vm12, %v4571_v38, %v5165_v55 }
 0x63a   :  { %v5173_v19 = vpop.permute.xlu1 %5172  ;;  %v5180_v28 = vunpack.i.h.bf16 %v5178_v32  ;;  %v5179_v15 = vunpack.i.l.bf16 %v5178_v32 }
 0x63b   :  { %5058 = vmatprep.mubr.msk.bf16.mxu1 %vm4669_vm14, %v4618_v5  ;;  %v5175_v1 = vunpack.i.h.bf16 %v5173_v19  ;;  %v5174_v57 = vunpack.i.l.bf16 %v5173_v19 }
 0x63c   :  { %v4605_v43 = vsel %vm4601_vm13, %v4588_v30, %v5180_v28  ;;  %v4604_v49 = vsel %vm4601_vm13, %v4587_v26, %v5179_v15 }
 0x63d   :  { %v4619_v3 = vpack.c.bf16 %v4605_v43, %v4604_v49  ;;  %v5188_v41 = vpop.permute.xlu0 %5187  ;;  %v4488_v52 = vsel %vm687_vm2, %v11010_v35, %v5175_v1  ;;  %v4487_v4 = vsel %vm687_vm2, %v10965_v60, %v5174_v57 }
 0x63e   :  { %v5183_v53 = vpop.permute.xlu1 %5182  ;;  %v5190_v34 = vunpack.i.h.bf16 %v5188_v41  ;;  %v5189_v29 = vunpack.i.l.bf16 %v5188_v41 }
 0x63f   :  { %5059 = vmatmul.mubr.msk.bf16.vlgmr.msra.gmra.mrb[20].mxu1 %vm4669_vm14, %v4619_v3  ;;  %v5185_v16 = vunpack.i.h.bf16 %v5183_v53  ;;  %v5184_v63 = vunpack.i.l.bf16 %v5183_v53 }
 0x640   :  { %v4505_v2 = vsel %vm4499_vm7, %v4488_v52, %v5190_v34  ;;  %v4504_v36 = vsel %vm4499_vm7, %v4487_v4, %v5189_v29 }
 0x641   :  { %v5198_v61 = vpop.permute.xlu0 %5197  ;;  %v4490_v47 = vsel %vm687_vm2, %v11015_v40, %v5185_v16  ;;  %v4489_v44 = vsel %vm687_vm2, %v11012_v58, %v5184_v63 }
 0x642   :  { %v5193_v21 = vpop.permute.xlu1 %5192  ;;  %v5200_v9 = vunpack.i.h.bf16 %v5198_v61  ;;  %v5199_v0 = vunpack.i.l.bf16 %v5198_v61 }
 0x643   :  { %v5195_v24 = vunpack.i.h.bf16 %v5193_v21  ;;  %v5194_v6 = vunpack.i.l.bf16 %v5193_v21 }
 0x644   :  { %v4521_v60 = vsel %vm4516_vm8, %v4504_v36, %v5199_v0  ;;  %v4522_v42 = vsel %vm4516_vm8, %v4505_v2, %v5200_v9 }
 0x645   :  { %v5208_v8 = vpop.permute.xlu0 %5207  ;;  %v4506_v7 = vsel %vm4499_vm7, %v4489_v44, %v5194_v6  ;;  %v4507_v35 = vsel %vm4499_vm7, %v4490_v47, %v5195_v24 }
 0x646   :  { %v5203_v39 = vpop.permute.xlu1 %5202  ;;  %v5210_v54 = vunpack.i.h.bf16 %v5208_v8  ;;  %v5209_v55 = vunpack.i.l.bf16 %v5208_v8 }
 0x647   :  { %v5205_v56 = vunpack.i.h.bf16 %v5203_v39  ;;  %v5204_v14 = vunpack.i.l.bf16 %v5203_v39 }
 0x648   :  { %v4538_v32 = vsel %vm4533_vm9, %v4521_v60, %v5209_v55  ;;  %v4539_v23 = vsel %vm4533_vm9, %v4522_v42, %v5210_v54 }
 0x649   :  { %v5218_v20 = vpop.permute.xlu0 %5217  ;;  %v4523_v58 = vsel %vm4516_vm8, %v4506_v7, %v5204_v14  ;;  %v4524_v19 = vsel %vm4516_vm8, %v4507_v35, %v5205_v56 }
 0x64a   :  { %v5213_v46 = vpop.permute.xlu1 %5212  ;;  %v5220_v18 = vunpack.i.h.bf16 %v5218_v20  ;;  %v5219_v40 = vunpack.i.l.bf16 %v5218_v20 }
 0x64b   :  { %v5215_v33 = vunpack.i.h.bf16 %v5213_v46  ;;  %v5214_v45 = vunpack.i.l.bf16 %v5213_v46 }
 0x64c   :  { %v4555_v15 = vsel %vm4550_vm10, %v4538_v32, %v5219_v40  ;;  %v4556_v26 = vsel %vm4550_vm10, %v4539_v23, %v5220_v18  ;;  %v3835_v18 = vld [vmem:[#allocation2 + $0x240] sm:$0xff] }
 0x64d   :  { %v5228_v48 = vpop.permute.xlu0 %5227  ;;  %v4540_v1 = vsel %vm4533_vm9, %v4523_v58, %v5214_v45  ;;  %v4541_v57 = vsel %vm4533_vm9, %v4524_v19, %v5215_v33 }
 0x64e   :  { %v5223_v12 = vpop.permute.xlu1 %5222  ;;  %v5230_v13 = vunpack.i.h.bf16 %v5228_v48  ;;  %v5229_v37 = vunpack.i.l.bf16 %v5228_v48 }
 0x64f   :  { %v5225_v38 = vunpack.i.h.bf16 %v5223_v12  ;;  %v5224_v28 = vunpack.i.l.bf16 %v5223_v12 }
 0x650   :  { %v4572_v49 = vsel %vm4567_vm11, %v4555_v15, %v5229_v37  ;;  %v4573_v3 = vsel %vm4567_vm11, %v4556_v26, %v5230_v13 }
 0x651   :  { %v5238_v10 = vpop.permute.xlu0 %5237  ;;  %v4557_v34 = vsel %vm4550_vm10, %v4540_v1, %v5224_v28  ;;  %v4558_v29 = vsel %vm4550_vm10, %v4541_v57, %v5225_v38 }
 0x652   :  { %v5233_v59 = vpop.permute.xlu1 %5232  ;;  %v5240_v62 = vunpack.i.h.bf16 %v5238_v10  ;;  %v5239_v5 = vunpack.i.l.bf16 %v5238_v10 }
 0x653   :  { %v5235_v30 = vunpack.i.h.bf16 %v5233_v59  ;;  %v5234_v53 = vunpack.i.l.bf16 %v5233_v59 }
 0x654   :  { %v4589_v8 = vsel %vm4584_vm12, %v4572_v49, %v5239_v5  ;;  %v4590_v46 = vsel %vm4584_vm12, %v4573_v3, %v5240_v62 }
 0x655   :  { %v5248_v43 = vpop.permute.xlu0 %5247  ;;  %v4574_v6 = vsel %vm4567_vm11, %v4557_v34, %v5234_v53  ;;  %v4575_v9 = vsel %vm4567_vm11, %v4558_v29, %v5235_v30 }
 0x656   :  { %v5243_v11 = vpop.permute.xlu1 %5242  ;;  %v5250_v41 = vunpack.i.h.bf16 %v5248_v43  ;;  %v5249_v21 = vunpack.i.l.bf16 %v5248_v43 }
 0x657   :  { %v5245_v61 = vunpack.i.h.bf16 %v5243_v11  ;;  %v5244_v39 = vunpack.i.l.bf16 %v5243_v11 }
 0x658   :  { %v4606_v16 = vsel %vm4601_vm13, %v4589_v8, %v5249_v21  ;;  %v4607_v63 = vsel %vm4601_vm13, %v4590_v46, %v5250_v41 }
 0x659   :  { %v4620_v12 = vpack.c.bf16 %v4607_v63, %v4606_v16  ;;  %v5253_v24 = vpop.permute.xlu0 %5252  ;;  %v4591_v52 = vsel %vm4584_vm12, %v4574_v6, %v5244_v39  ;;  %v4592_v4 = vsel %vm4584_vm12, %v4575_v9, %v5245_v61 }
 0x65a   :  { %v5258_v20 = vpop.permute.xlu1 %5257  ;;  %v5255_v0 = vunpack.i.h.bf16 %v5253_v24  ;;  %v5254_v48 = vunpack.i.l.bf16 %v5253_v24 }
 0x65b   :  { %5062 = vmatprep.mubr.msk.bf16.mxu1 %vm4669_vm14, %v4620_v12  ;;  %v5260_v60 = vunpack.i.h.bf16 %v5258_v20  ;;  %v5259_v42 = vunpack.i.l.bf16 %v5258_v20 }
 0x65c   :  { %v4609_v14 = vsel %vm4601_vm13, %v4592_v4, %v5255_v0  ;;  %v4608_v47 = vsel %vm4601_vm13, %v4591_v52, %v5254_v48 }
 0x65d   :  { %v4621_v44 = vpack.c.bf16 %v4609_v14, %v4608_v47  ;;  %v5268_v2 = vpop.permute.xlu0 %5267  ;;  %v4492_v5 = vsel %vm687_vm2, %v11037_v17, %v5260_v60  ;;  %v4491_v32 = vsel %vm687_vm2, %v3835_v18, %v5259_v42 }
 0x65e   :  { %v5263_v56 = vpop.permute.xlu1 %5262  ;;  %v5270_v58 = vunpack.i.h.bf16 %v5268_v2  ;;  %v5269_v19 = vunpack.i.l.bf16 %v5268_v2 }
 0x65f   :  { %5063 = vmatmul.mubr.msk.bf16.gmra.mrb[24].mxu1 %vm4669_vm14, %v4621_v44  ;;  %v5265_v40 = vunpack.i.h.bf16 %v5263_v56  ;;  %v5264_v10 = vunpack.i.l.bf16 %v5263_v56 }
 0x660   :  { %v4508_v26 = vsel %vm4499_vm7, %v4491_v32, %v5269_v19  ;;  %v4509_v30 = vsel %vm4499_vm7, %v4492_v5, %v5270_v58 }
 0x661   :  { %v5278_v59 = vpop.permute.xlu0 %5277  ;;  %v4494_v28 = vsel %vm687_vm2, %v11042_v51, %v5265_v40  ;;  %v4493_v15 = vsel %vm687_vm2, %v11039_v22, %v5264_v10 }
 0x662   :  { %v5273_v36 = vpop.permute.xlu1 %5272  ;;  %v5280_v45 = vunpack.i.h.bf16 %v5278_v59  ;;  %v5279_v11 = vunpack.i.l.bf16 %v5278_v59 }
 0x663   :  { %v5275_v37 = vunpack.i.h.bf16 %v5273_v36  ;;  %v5274_v33 = vunpack.i.l.bf16 %v5273_v36 }
 0x664   :  { %v4525_v41 = vsel %vm4516_vm8, %v4508_v26, %v5279_v11  ;;  %v4526_v21 = vsel %vm4516_vm8, %v4509_v30, %v5280_v45 }
 0x665   :  { %v5288_v35 = vpop.permute.xlu0 %5287  ;;  %v4510_v43 = vsel %vm4499_vm7, %v4493_v15, %v5274_v33  ;;  %v4511_v49 = vsel %vm4499_vm7, %v4494_v28, %v5275_v37 }
 0x666   :  { %v5283_v7 = vpop.permute.xlu1 %5282  ;;  %v5290_v17 = vunpack.i.h.bf16 %v5288_v35  ;;  %v5289_v3 = vunpack.i.l.bf16 %v5288_v35 }
 0x667   :  { %v5285_v23 = vunpack.i.h.bf16 %v5283_v7  ;;  %v5284_v38 = vunpack.i.l.bf16 %v5283_v7 }
 0x668   :  { %v4543_v29 = vsel %vm4533_vm9, %v4526_v21, %v5290_v17  ;;  %v4542_v12 = vsel %vm4533_vm9, %v4525_v41, %v5289_v3 }
 0x669   :  { %v5298_v55 = vpop.permute.xlu0 %5297  ;;  %v4527_v22 = vsel %vm4516_vm8, %v4510_v43, %v5284_v38  ;;  %v4528_v8 = vsel %vm4516_vm8, %v4511_v49, %v5285_v23 }
 0x66a   :  { %v11165_v54 = vpop.permute.xlu1 %5292  ;;  %v5300_v61 = vunpack.i.h.bf16 %v5298_v55  ;;  %v5299_v51 = vunpack.i.l.bf16 %v5298_v55 }
 0x66b   :  { %v5295_v1 = vunpack.i.h.bf16 %v11165_v54  ;;  %v5294_v57 = vunpack.i.l.bf16 %v11165_v54 }
 0x66c   :  { %v4559_v9 = vsel %vm4550_vm10, %v4542_v12, %v5299_v51  ;;  %v4560_v0 = vsel %vm4550_vm10, %v4543_v29, %v5300_v61 }
 0x66d   :  { %v5308_v62 = vpop.permute.xlu0 %5307  ;;  %v4544_v54 = vsel %vm4533_vm9, %v4527_v22, %v5294_v57  ;;  %v4545_v55 = vsel %vm4533_vm9, %v4528_v8, %v5295_v1 }
 0x66e   :  { %v5303_v13 = vpop.permute.xlu1 %5302  ;;  %v5310_v46 = vunpack.i.h.bf16 %v5308_v62  ;;  %v5309_v20 = vunpack.i.l.bf16 %v5308_v62 }
 0x66f   :  { %v5305_v24 = vunpack.i.h.bf16 %v5303_v13  ;;  %v5304_v6 = vunpack.i.l.bf16 %v5303_v13 }
 0x670   :  { %v4576_v56 = vsel %vm4567_vm11, %v4559_v9, %v5309_v20  ;;  %v4577_v14 = vsel %vm4567_vm11, %v4560_v0, %v5310_v46 }
 0x671   :  { %v5318_v39 = vpop.permute.xlu0 %5317  ;;  %v4561_v18 = vsel %vm4550_vm10, %v4544_v54, %v5304_v6  ;;  %v4562_v40 = vsel %vm4550_vm10, %v4545_v55, %v5305_v24 }
 0x672   :  { %v5313_v53 = vpop.permute.xlu1 %5312  ;;  %v5320_v63 = vunpack.i.h.bf16 %v5318_v39  ;;  %v5319_v34 = vunpack.i.l.bf16 %v5318_v39 }
 0x673   :  { %v5315_v48 = vunpack.i.h.bf16 %v5313_v53  ;;  %v5314_v52 = vunpack.i.l.bf16 %v5313_v53 }
 0x674   :  { %v4593_v59 = vsel %vm4584_vm12, %v4576_v56, %v5319_v34  ;;  %v4594_v7 = vsel %vm4584_vm12, %v4577_v14, %v5320_v63 }
 0x675   :  { %v5328_v4 = vpop.permute.xlu0 %5327  ;;  %v4578_v19 = vsel %vm4567_vm11, %v4561_v18, %v5314_v52  ;;  %v4579_v13 = vsel %vm4567_vm11, %v4562_v40, %v5315_v48 }
 0x676   :  { %v5323_v16 = vpop.permute.xlu1 %5322  ;;  %v5330_v47 = vunpack.i.h.bf16 %v5328_v4  ;;  %v5329_v44 = vunpack.i.l.bf16 %v5328_v4 }
 0x677   :  { %v5325_v2 = vunpack.i.h.bf16 %v5323_v16  ;;  %v5324_v36 = vunpack.i.l.bf16 %v5323_v16 }
 0x678   :  { %v4610_v60 = vsel %vm4601_vm13, %v4593_v59, %v5329_v44  ;;  %v4611_v42 = vsel %vm4601_vm13, %v4594_v7, %v5330_v47 }
 0x679   :  { %v4622_v10 = vpack.c.bf16 %v4611_v42, %v4610_v60  ;;  %v5338_v58 = vpop.permute.xlu0 %5337  ;;  %v4595_v45 = vsel %vm4584_vm12, %v4578_v19, %v5324_v36  ;;  %v4596_v11 = vsel %vm4584_vm12, %v4579_v13, %v5325_v2 }
 0x67a   :  { %v5333_v35 = vpop.permute.xlu1 %5332  ;;  %v5340_v37 = vunpack.i.h.bf16 %v5338_v58  ;;  %v5339_v33 = vunpack.i.l.bf16 %v5338_v58 }
 0x67b   :  { %5066 = vmatprep.mubr.msk.bf16.mxu1 %vm4669_vm14, %v4622_v10  ;;  %v5335_v43 = vunpack.i.h.bf16 %v5333_v35  ;;  %v5334_v49 = vunpack.i.l.bf16 %v5333_v35 }
 0x67c   :  { %v4613_v5 = vsel %vm4601_vm13, %v4596_v11, %v5340_v37  ;;  %v4612_v32 = vsel %vm4601_vm13, %v4595_v45, %v5339_v33 }
 0x67d   :  { %v4623_v23 = vpack.c.bf16 %v4613_v5, %v4612_v32  ;;  %v5348_v38 = vpop.permute.xlu0 %5347  ;;  %v4496_v20 = vsel %vm687_vm2, %v11065_v50, %v5335_v43  ;;  %v4495_v1 = vsel %vm687_vm2, %v11044_v31, %v5334_v49 }
 0x67e   :  { %v5343_v62 = vpop.permute.xlu1 %5342  ;;  %v5350_v21 = vunpack.i.h.bf16 %v5348_v38  ;;  %v5349_v61 = vunpack.i.l.bf16 %v5348_v38 }
 0x67f   :  { %5067 = vmatmul.mubr.msk.bf16.gmra.mrb[28].mxu1 %vm4669_vm14, %v4623_v23  ;;  %v5345_v17 = vunpack.i.h.bf16 %v5343_v62  ;;  %v5344_v3 = vunpack.i.l.bf16 %v5343_v62 }
 0x680   :  { %v4513_v12 = vsel %vm4499_vm7, %v4496_v20, %v5350_v21  ;;  %v4512_v24 = vsel %vm4499_vm7, %v4495_v1, %v5349_v61 }
 0x681   :  { %v5358_v15 = vpop.permute.xlu0 %5357  ;;  %v4498_v57 = vsel %vm687_vm2, %v11070_v27, %v5345_v17  ;;  %v4497_v16 = vsel %vm687_vm2, %v11067_v25, %v5344_v3 }
 0x682   :  { %v5353_v28 = vpop.permute.xlu1 %5352  ;;  %v5360_v22 = vunpack.i.h.bf16 %v5358_v15  ;;  %v5359_v8 = vunpack.i.l.bf16 %v5358_v15 }
 0x683   :  { %v5355_v51 = vunpack.i.h.bf16 %v5353_v28  ;;  %v5354_v39 = vunpack.i.l.bf16 %v5353_v28 }
 0x684   :  { %v4529_v31 = vsel %vm4516_vm8, %v4512_v24, %v5359_v8  ;;  %v4530_v27 = vsel %vm4516_vm8, %v4513_v12, %v5360_v22  ;;  %v4902_v8 = vld [vmem:[%s11288_s12] ss:$0 sm:$0xff]  ;;  %s5739_s12 = smov [#allocation3]  }
 0x685   :  { %v5368_v30 = vpop.permute.xlu0 %5367  ;;  %v4514_v50 = vsel %vm4499_vm7, %v4497_v16, %v5354_v39  ;;  %v4515_v0 = vsel %vm4499_vm7, %v4498_v57, %v5355_v51  ;;  %s4816_s17 = sshll.u32 %s5739_s12, 4  ;;  %s4817_s17 = int_to_ptr.vmem [resolvable:$true] %s4816_s17 }
 0x686   :  { %v5363_v26 = vpop.permute.xlu1 %5362  ;;  %v5370_v6 = vunpack.i.h.bf16 %v5368_v30  ;;  %v5369_v9 = vunpack.i.l.bf16 %v5368_v30  ;;  %s5704_s1 = scalar_lea.vmem %s4817_s17, 2048  ;;  %p5709_p1 = scmp.lt.s32.totalorder %s4817_s17, %s4817_s17 }
 0x687   :  { %v5365_v63 = vunpack.i.h.bf16 %v5363_v26  ;;  %v5364_v34 = vunpack.i.l.bf16 %v5363_v26  ;;  %p5705_p0 = scmp.ne.s32.totalorder %s4817_s17, %s5704_s1  ;;  %p5710_p2 = scmp.lt.s32.totalorder %s5704_s1, %s5704_s1 }
 0x688   :  { %v4546_v59 = vsel %vm4533_vm9, %v4529_v31, %v5369_v9  ;;  %v4547_v7 = vsel %vm4533_vm9, %v4530_v27, %v5370_v6 }
 0x689   :  { %v5378_v41 = vpop.permute.xlu0 %5377  ;;  %v4531_v14 = vsel %vm4516_vm8, %v4514_v50, %v5364_v34  ;;  %v4532_v47 = vsel %vm4516_vm8, %v4515_v0, %v5365_v63  ;;  %p5711_p3 = por %p5710_p2, %p5709_p1 }
 0x68a   :  { %v5373_v53 = vpop.permute.xlu1 %5372  ;;  %v5380_v4 = vunpack.i.h.bf16 %v5378_v41  ;;  %v5379_v56 = vunpack.i.l.bf16 %v5378_v41 }
 0x68b   :  { %v5375_v52 = vunpack.i.h.bf16 %v5373_v53  ;;  %v5374_v25 = vunpack.i.l.bf16 %v5373_v53  ;;  %p5712_p4 = pnand %p5711_p3, %p5705_p0 }
 0x68c   :  { %v4563_v19 = vsel %vm4550_vm10, %v4546_v59, %v5379_v56  ;;  %v4564_v13 = vsel %vm4550_vm10, %v4547_v7, %v5380_v4 }
 0x68d   :  { %v5388_v29 = vpop.permute.xlu0 %5387  ;;  %v4548_v10 = vsel %vm4533_vm9, %v4531_v14, %v5374_v25  ;;  %v4549_v58 = vsel %vm4533_vm9, %v4532_v47, %v5375_v52 }
 0x68e   :  { %v5383_v46 = vpop.permute.xlu1 %5382  ;;  %v5390_v35 = vunpack.i.h.bf16 %v5388_v29  ;;  %v5389_v54 = vunpack.i.l.bf16 %v5388_v29 }
 0x68f   :  { %v5385_v44 = vunpack.i.h.bf16 %v5383_v46  ;;  %v5384_v2 = vunpack.i.l.bf16 %v5383_v46 }
 0x690   :  { %v4580_v5 = vsel %vm4567_vm11, %v4563_v19, %v5389_v54  ;;  %v4581_v32 = vsel %vm4567_vm11, %v4564_v13, %v5390_v35 }
 0x691   :  { %v5398_v36 = vpop.permute.xlu0 %5397  ;;  %v4565_v37 = vsel %vm4550_vm10, %v4548_v10, %v5384_v2  ;;  %v4566_v33 = vsel %vm4550_vm10, %v4549_v58, %v5385_v44 }
 0x692   :  { %v5393_v48 = vpop.permute.xlu1 %5392  ;;  %v5400_v18 = vunpack.i.h.bf16 %v5398_v36  ;;  %v5399_v40 = vunpack.i.l.bf16 %v5398_v36 }
 0x693   :  { %v5395_v55 = vunpack.i.h.bf16 %v5393_v48  ;;  %v5394_v60 = vunpack.i.l.bf16 %v5393_v48 }
 0x694   :  { %v4597_v26 = vsel %vm4584_vm12, %v4580_v5, %v5399_v40  ;;  %v4598_v30 = vsel %vm4584_vm12, %v4581_v32, %v5400_v18 }
 0x695   :  { %v5408_v62 = vpop.permute.xlu0 %5407  ;;  %v4582_v28 = vsel %vm4567_vm11, %v4565_v37, %v5394_v60  ;;  %v4583_v15 = vsel %vm4567_vm11, %v4566_v33, %v5395_v55 }
 0x696   :  { %v5403_v42 = vpop.permute.xlu1 %5402  ;;  %v5410_v23 = vunpack.i.h.bf16 %v5408_v62  ;;  %v5409_v38 = vunpack.i.l.bf16 %v5408_v62 }
 0x697   :  { %v5405_v45 = vunpack.i.h.bf16 %v5403_v42  ;;  %v5404_v11 = vunpack.i.l.bf16 %v5403_v42 }
 0x698   :  { %v4614_v17 = vsel %vm4601_vm13, %v4597_v26, %v5409_v38  ;;  %v4615_v3 = vsel %vm4601_vm13, %v4598_v30, %v5410_v23 }
 0x699   :  { %v4599_v41 = vsel %vm4584_vm12, %v4582_v28, %v5404_v11  ;;  %v4600_v21 = vsel %vm4584_vm12, %v4583_v15, %v5405_v45  ;;  %v4624_v61 = vpack.c.bf16 %v4615_v3, %v4614_v17 }
 0x69a   :  { %v5413_v53 = vpop.permute.xlu1 %5412 }
 0x69b   :  { %v5415_v43 = vunpack.i.h.bf16 %v5413_v53  ;;  %v5414_v49 = vunpack.i.l.bf16 %v5413_v53  ;;  %5070 = vmatprep.mubr.msk.bf16.mxu1 %vm4669_vm14, %v4624_v61 }
 0x69d   :  { %v4616_v51 = vsel %vm4601_vm13, %v4599_v41, %v5414_v49  ;;  %v4617_v39 = vsel %vm4601_vm13, %v4600_v21, %v5415_v43 }
 0x69e   :  { %v4625_v22 = vpack.c.bf16 %v4617_v39, %v4616_v51 }
 0x6a0   :  { %5071 = vmatmul.mubr.msk.bf16.gmra.mrb[32].mxu1 %vm4669_vm14, %v4625_v22 }
 0x712   :  { %v5060_v46 = vpop.f32.mrb[20].mxu1 }
 0x713   :  { %v4741_v20 = vadd.f32 %v5060_v46, %v4902_v8  ;;  %v4732_v1 = vpop.f32.mrb[21].mxu1 }
 0x714   :  { %v4733_v57 = vadd.f32 %v4902_v8, %v4732_v1  ;;  %v5061_v16 = vpop.f32.mrb[22].mxu1 }
 0x715   :  { %4797 = vst.msk [vmem:[#allocation3 + $0x10] sm:$0xff] %vm687_vm2, %v4741_v20  ;;  %v4744_v63 = vadd.f32 %v5061_v16, %v4902_v8  ;;  %v4735_v34 = vpop.f32.mrb[23].mxu1 }
 0x716   :  { %4795 = vst.msk [vmem:[#allocation3] sm:$0xff] %vm687_vm2, %v4733_v57  ;;  %v4736_v29 = vadd.f32 %v4902_v8, %v4735_v34 }
 0x717   :  { %4798 = vst.msk [vmem:[#allocation3 + $0x18] sm:$0xff] %vm687_vm2, %v4744_v63 }
 0x718   :  { %4796 = vst.msk [vmem:[#allocation3 + $0x8] sm:$0xff] %vm687_vm2, %v4736_v29 }
 0x732   :  { %v5064_v12 = vpop.f32.mrb[24].mxu1 }
 0x733   :  { %v4757_v24 = vadd.f32 %v5064_v12, %v4902_v8  ;;  %v4748_v6 = vpop.f32.mrb[25].mxu1 }
 0x734   :  { %v4749_v9 = vadd.f32 %v4902_v8, %v4748_v6  ;;  %v5065_v50 = vpop.f32.mrb[26].mxu1 }
 0x735   :  { %4801 = vst.msk [vmem:[#allocation3 + $0x30] sm:$0xff] %vm687_vm2, %v4757_v24  ;;  %v4760_v0 = vadd.f32 %v5065_v50, %v4902_v8  ;;  %v4751_v31 = vpop.f32.mrb[27].mxu1 }
 0x736   :  { %4799 = vst.msk [vmem:[#allocation3 + $0x20] sm:$0xff] %vm687_vm2, %v4749_v9  ;;  %v4752_v27 = vadd.f32 %v4902_v8, %v4751_v31 }
 0x737   :  { %4802 = vst.msk [vmem:[#allocation3 + $0x38] sm:$0xff] %vm687_vm2, %v4760_v0 }
 0x738   :  { %4800 = vst.msk [vmem:[#allocation3 + $0x28] sm:$0xff] %vm687_vm2, %v4752_v27 }
 0x752   :  { %v5068_v48 = vpop.f32.mrb[28].mxu1 }
 0x753   :  { %v4773_v52 = vadd.f32 %v5068_v48, %v4902_v8  ;;  %v4764_v25 = vpop.f32.mrb[29].mxu1 }
 0x754   :  { %v4765_v4 = vadd.f32 %v4902_v8, %v4764_v25  ;;  %v5069_v56 = vpop.f32.mrb[30].mxu1 }
 0x755   :  { %4805 = vst.msk [vmem:[#allocation3 + $0x50] sm:$0xff] %vm687_vm2, %v4773_v52  ;;  %v4776_v14 = vadd.f32 %v5069_v56, %v4902_v8  ;;  %v4767_v47 = vpop.f32.mrb[31].mxu1 }
 0x756   :  { %4803 = vst.msk [vmem:[#allocation3 + $0x40] sm:$0xff] %vm687_vm2, %v4765_v4  ;;  %v4768_v44 = vadd.f32 %v4902_v8, %v4767_v47 }
 0x757   :  { %4806 = vst.msk [vmem:[#allocation3 + $0x58] sm:$0xff] %vm687_vm2, %v4776_v14 }
 0x758   :  { %4804 = vst.msk [vmem:[#allocation3 + $0x48] sm:$0xff] %vm687_vm2, %v4768_v44 }
 0x773   :  { %v5072_v2 = vpop.f32.mrb[32].mxu1 }
 0x774   :  { %v4789_v36 = vadd.f32 %v5072_v2, %v4902_v8  ;;  %v4780_v59 = vpop.f32.mrb[33].mxu1 }
 0x775   :  { %v4781_v7 = vadd.f32 %v4902_v8, %v4780_v59  ;;  %v5073_v35 = vpop.f32.mrb[34].mxu1 }
 0x776   :  { %4809 = vst.msk [vmem:[#allocation3 + $0x70] sm:$0xff] %vm687_vm2, %v4789_v36  ;;  %v4792_v54 = vadd.f32 %v5073_v35, %v4902_v8  ;;  %v4783_v55 = vpop.f32.mrb[35].mxu1 }
 0x777   :  { %4807 = vst.msk [vmem:[#allocation3 + $0x60] sm:$0xff] %vm687_vm2, %v4781_v7  ;;  %v4784_v60 = vadd.f32 %v4902_v8, %v4783_v55 }
 0x778   :  { %4810 = vst.msk [vmem:[#allocation3 + $0x78] sm:$0xff] %vm687_vm2, %v4792_v54 }
 0x779   :  { %4808 = vst.msk [vmem:[#allocation3 + $0x68] sm:$0xff] %vm687_vm2, %v4784_v60 }
 0x77a   :  { %5715 = shalt.err (!%p5712_p4)
}
 0x77b   :  { %s5716_s19 = scalar_lea.hbm %s11289_s13, 2048 }
 0x77c   :  { %p5717_p5 = scmp.ne.s32.totalorder %s11289_s13, %s5716_s19  ;;  %p5720_p6 = scmp.lt.u32.totalorder %s5716_s19, %s11289_s13 }
 0x77e   :  { %p5722_p7 = pnand %p5720_p6, %p5717_p5 }
 0x780   :  { %5725 = shalt.err (!%p5722_p7)
}
 0x781   :  { %s5740_s9 = smov 128  }
 0x782   :  { %4822 = dma.vmem_to_hbm [thread:$0]  %s4817_s17, 2048, %s11289_s13, [#allocation4], %s5740_s9, %s5740_s9, %s5731_s8  }
 0x783   :  { %5726 = dma.done.wait [#allocation4], 2048  }
 0x784   :  { %5727 = vsyncadd [#allocation4], 4294965248 }
 0x785   :  { %4826 = vsyncpa [#allocation4], 1 }

</bundles_post_ra>
